<compile_context>
chip_gen: v5e
topology: v5e:2x2
jax: 0.10.0
libtpu: 0.0.40
codegen_flags: <defaults>
</compile_context>

<pallas_src>
import jax
import jax.numpy as jnp
from jax import lax
from jax.experimental import pallas as pl
from jax.experimental.pallas import tpu as pltpu

IN_FEATURES = 196608          # fixed by the module: Linear(196608, 10)
OUT_FEATURES = 10
TK = 98304                    # K-slab per grid step: 196608 = 2 * 98304
VMEM_LIMIT_BYTES = 28 << 20   # padded, double-buffered slabs ~19 MB; safe on v5e/v6e/v7x


def _num_tensorcores() -> int:
    """Best-effort TensorCores-per-chip (2 on v7x, 1 on v5e/v6e); conservative default 1."""
    try:
        kind = jax.devices()[0].device_kind.lower()
    except Exception:
        return 1
    return 2 if ("v7" in kind or "7x" in kind) else 1


# ---------------------------------------------------------------------------
# Single-TensorCore path (v5e / v6e): grid = (nk,), bias folded into last step.
# ---------------------------------------------------------------------------
def _linear_kernel(x_ref, w_ref, b_ref, o_ref, acc_ref):
    k = pl.program_id(0)

    @pl.when(k == 0)
    def _():
        acc_ref[...] = jnp.zeros_like(acc_ref)

    # x_ref: (B, TK), w_ref: (N, TK) -> contract the lane (K) axes of both
    # operands (transposed-RHS matmul, no weight relayout):  acc += x @ W^T
    acc_ref[...] += lax.dot_general(
        x_ref[...],
        w_ref[...],
        dimension_numbers=(((1,), (1,)), ((), ())),
        preferred_element_type=jnp.float32,
    )

    @pl.when(k == pl.num_programs(0) - 1)
    def _():
        # Bias folded into the final store: no separate XLA epilogue op.
        o_ref[...] = (acc_ref[...] + b_ref[...]).astype(o_ref.dtype)


def _linear_single_core(x, weight, bias2d):
    B, K = x.shape
    N = weight.shape[0]
    assert K % TK == 0
    nk = K // TK
    return pl.pallas_call(
        _linear_kernel,
        out_shape=jax.ShapeDtypeStruct((B, N), x.dtype),
        grid_spec=pltpu.PrefetchScalarGridSpec(
            num_scalar_prefetch=0,
            grid=(nk,),
            in_specs=[
                pl.BlockSpec((B, TK), lambda k: (0, k)),   # x K-slab
                pl.BlockSpec((N, TK), lambda k: (0, k)),   # W K-slab (lane-dense)
                pl.BlockSpec((1, N), lambda k: (0, 0)),    # bias (resident)
            ],
            out_specs=pl.BlockSpec((B, N), lambda k: (0, 0)),
            scratch_shapes=[pltpu.VMEM((B, N), jnp.float32)],
        ),
        compiler_params=pltpu.CompilerParams(
            dimension_semantics=("arbitrary",),
            vmem_limit_bytes=VMEM_LIMIT_BYTES,
        ),
    )(x, weight, bias2d)


# ---------------------------------------------------------------------------
# Two-TensorCore path (v7x): 2-way CORE_PARALLEL K-split, one partial per core.
# ---------------------------------------------------------------------------
def _linear_kernel_2core(x_ref, w_ref, b_ref, o_ref, acc_ref):
    p = pl.program_id(0)
    k = pl.program_id(1)

    @pl.when(k == 0)
    def _():
        acc_ref[...] = jnp.zeros_like(acc_ref)

    acc_ref[...] += lax.dot_general(
        x_ref[...],
        w_ref[...],
        dimension_numbers=(((1,), (1,)), ((), ())),
        preferred_element_type=jnp.float32,
    )

    @pl.when(k == pl.num_programs(1) - 1)
    def _():
        # Fold bias into core 0's partial only; wrapper just sums the partials.
        b = jnp.where(p == 0, b_ref[...], jnp.zeros_like(b_ref[...]))
        o_ref[...] = (acc_ref[...] + b).astype(o_ref.dtype)


def _linear_two_core(x, weight, bias2d):
    B, K = x.shape
    N = weight.shape[0]
    num_splits = 2
    assert K % (num_splits * TK) == 0
    nk = K // (num_splits * TK)
    partials = pl.pallas_call(
        _linear_kernel_2core,
        out_shape=jax.ShapeDtypeStruct((num_splits, B, N), x.dtype),
        grid_spec=pltpu.PrefetchScalarGridSpec(
            num_scalar_prefetch=0,
            grid=(num_splits, nk),
            in_specs=[
                pl.BlockSpec((B, TK), lambda p, k: (0, p * nk + k)),
                pl.BlockSpec((N, TK), lambda p, k: (0, p * nk + k)),
                pl.BlockSpec((1, N), lambda p, k: (0, 0)),
            ],
            out_specs=pl.BlockSpec((None, B, N), lambda p, k: (p, 0, 0)),
            scratch_shapes=[pltpu.VMEM((B, N), jnp.float32)],
        ),
        compiler_params=pltpu.CompilerParams(
            dimension_semantics=(pltpu.CORE_PARALLEL, pltpu.ARBITRARY),
            vmem_limit_bytes=VMEM_LIMIT_BYTES,
        ),
    )(x, weight, bias2d)
    # Tiny epilogue (2 x B x N = 40 floats): combine per-core partials.
    return partials.sum(axis=0)


def linear_pallas(x, weight, bias):
    """y = x @ weight.T + bias  (PyTorch nn.Linear forward).

    x: (B, K) f32, weight: (N, K) f32 (PyTorch layout), bias: (N,) f32.
    """
    bias2d = bias.reshape(1, -1)
    if _num_tensorcores() >= 2:
        try:
            return _linear_two_core(x, weight, bias2d)
        except Exception:
            # TODO(synk): validate the CORE_PARALLEL 2-way K split (and that both
            # TCs actually stream their own HBM halves) on real v7x hardware.
            pass
    return _linear_single_core(x, weight, bias2d)


if __name__ == "__main__":
    key = jax.random.PRNGKey(0)
    k_x, k_w, k_b = jax.random.split(key, 3)

    batch = 2
    # Deterministic "parameters" (shapes fixed by Linear(196608, 10)); scaled like
    # PyTorch's default uniform(-1/sqrt(fan_in), 1/sqrt(fan_in)) init.
    bound = 1.0 / jnp.sqrt(jnp.float32(IN_FEATURES))
    weight = jax.random.uniform(
        k_w, (OUT_FEATURES, IN_FEATURES), jnp.float32, -bound, bound
    )
    bias = jax.random.uniform(k_b, (OUT_FEATURES,), jnp.float32, -bound, bound)

    x = jax.random.normal(k_x, (batch, IN_FEATURES), jnp.float32)

    out = linear_pallas(x, weight, bias)
    out = jax.block_until_ready(out)

    # Cross-check against plain JAX reference.
    ref = x @ weight.T + bias
    assert out.shape == (batch, OUT_FEATURES)
    assert jnp.allclose(out, ref, atol=1e-3, rtol=1e-3)

    print("KERNEL_OK")
</pallas_src>

<mosaic_0001>
module attributes {stable_mosaic.version = 11 : i64} {
  func.func @_linear_kernel(%arg0: i32, %arg1: memref<2x98304xf32, #tpu.memory_space<vmem>>, %arg2: memref<10x98304xf32, #tpu.memory_space<vmem>>, %arg3: memref<1x10xf32, #tpu.memory_space<vmem>>, %arg4: memref<2x10xf32, #tpu.memory_space<vmem>>, %arg5: memref<2x10xf32, #tpu.memory_space<vmem>>) attributes {dimension_semantics = [#tpu.dimension_semantics<arbitrary>], iteration_bounds = array<i64: 2>, scalar_prefetch = 0 : i64, scratch_operands = 1 : i64, tpu.core_type = #tpu.core_type<tc>, window_params = [{transform_indices = @transform_0, window_bounds = array<i64: 2, 98304>}, {transform_indices = @transform_1, window_bounds = array<i64: 10, 98304>}, {pipeline_mode = #tpu.pipeline_mode<synchronous>, transform_indices = @transform_2, window_bounds = array<i64: 1, 10>}, {pipeline_mode = #tpu.pipeline_mode<synchronous>, transform_indices = @transform_3, window_bounds = array<i64: 2, 10>}]} {
    %c0_i32 = arith.constant 0 : i32
    %0 = arith.cmpi eq, %arg0, %c0_i32 : i32
    %1 = arith.extui %0 : i1 to i32
    %c0_i32_0 = arith.constant 0 : i32
    %2 = arith.cmpi ne, %1, %c0_i32_0 : i32
    scf.if %2 {
      %cst_9 = arith.constant 0.000000e+00 : f32
      %12 = vector.broadcast %cst_9 : f32 to vector<2x10xf32>
      %c0_10 = arith.constant 0 : index
      %c0_11 = arith.constant 0 : index
      %13 = vector.load %arg5[%c0_10, %c0_11] : memref<2x10xf32, #tpu.memory_space<vmem>>, vector<2x10xf32>
      tpu.vector_store %arg5[%c0_10, %c0_11], %12 {strides = array<i32>} : memref<2x10xf32, #tpu.memory_space<vmem>>, vector<2x10xf32>,
    } else {
    }
    %c0 = arith.constant 0 : index
    %c0_1 = arith.constant 0 : index
    %3 = vector.load %arg5[%c0, %c0_1] : memref<2x10xf32, #tpu.memory_space<vmem>>, vector<2x10xf32>
    %c0_2 = arith.constant 0 : index
    %c0_3 = arith.constant 0 : index
    %4 = vector.load %arg1[%c0_2, %c0_3] : memref<2x98304xf32, #tpu.memory_space<vmem>>, vector<2x98304xf32>
    %c0_4 = arith.constant 0 : index
    %c0_5 = arith.constant 0 : index
    %5 = vector.load %arg2[%c0_4, %c0_5] : memref<10x98304xf32, #tpu.memory_space<vmem>>, vector<10x98304xf32>
    %cst = arith.constant dense<0.000000e+00> : vector<2x10xf32>
    %6 = tpu.matmul %4, %5, %cst {dimension_numbers = #tpu.dot_dimension_numbers<[1], [1], [0], [0], [0, 0, 1, 0], [], []>} : vector<2x98304xf32>, vector<10x98304xf32>, vector<2x10xf32> -> vector<2x10xf32>
    %7 = arith.addf %3, %6 : vector<2x10xf32>
    %c0_6 = arith.constant 0 : index
    %c0_7 = arith.constant 0 : index
    %8 = vector.load %arg5[%c0_6, %c0_7] : memref<2x10xf32, #tpu.memory_space<vmem>>, vector<2x10xf32>
    tpu.vector_store %arg5[%c0_6, %c0_7], %7 {strides = array<i32>} : memref<2x10xf32, #tpu.memory_space<vmem>>, vector<2x10xf32>,
    %c1_i32 = arith.constant 1 : i32
    %9 = arith.cmpi eq, %arg0, %c1_i32 : i32
    %10 = arith.extui %9 : i1 to i32
    %c0_i32_8 = arith.constant 0 : i32
    %11 = arith.cmpi ne, %10, %c0_i32_8 : i32
    scf.if %11 {
      %c0_9 = arith.constant 0 : index
      %c0_10 = arith.constant 0 : index
      %12 = vector.load %arg5[%c0_9, %c0_10] : memref<2x10xf32, #tpu.memory_space<vmem>>, vector<2x10xf32>
      %c0_11 = arith.constant 0 : index
      %c0_12 = arith.constant 0 : index
      %13 = vector.load %arg3[%c0_11, %c0_12] : memref<1x10xf32, #tpu.memory_space<vmem>>, vector<1x10xf32>
      %14 = vector.broadcast %13 : vector<1x10xf32> to vector<2x10xf32>
      %15 = arith.addf %12, %14 : vector<2x10xf32>
      %c0_13 = arith.constant 0 : index
      %c0_14 = arith.constant 0 : index
      %16 = vector.load %arg4[%c0_13, %c0_14] : memref<2x10xf32, #tpu.memory_space<vmem>>, vector<2x10xf32>
      tpu.vector_store %arg4[%c0_13, %c0_14], %15 {strides = array<i32>} : memref<2x10xf32, #tpu.memory_space<vmem>>, vector<2x10xf32>,
    } else {
    }
    return
  }
  func.func @transform_0(%arg0: i32) -> (i32, i32) {
    %c0_i32 = arith.constant 0 : i32
    %c0_i32_0 = arith.constant 0 : i32
    return %c0_i32, %arg0 : i32, i32
  }
  func.func @transform_1(%arg0: i32) -> (i32, i32) {
    %c0_i32 = arith.constant 0 : i32
    %c0_i32_0 = arith.constant 0 : i32
    return %c0_i32, %arg0 : i32, i32
  }
  func.func @transform_2(%arg0: i32) -> (i32, i32) {
    %c0_i32 = arith.constant 0 : i32
    %c0_i32_0 = arith.constant 0 : i32
    %c0_i32_1 = arith.constant 0 : i32
    return %c0_i32, %c0_i32_0 : i32, i32
  }
  func.func @transform_3(%arg0: i32) -> (i32, i32) {
    %c0_i32 = arith.constant 0 : i32
    %c0_i32_0 = arith.constant 0 : i32
    %c0_i32_1 = arith.constant 0 : i32
    return %c0_i32, %c0_i32_0 : i32, i32
  }
}

</mosaic_0001>

<bundles_post_ra>
// kernel: tpu_custom_call.1
= control target key start
LH: loop header
LB: loop body
LE: loop exit
PB: predicated region body
PF: predicated region fallthrough
CT: control target
= control target key end

     0   :  { %8 = vsyncpa [#allocation4], 0  ;;  %s23696_s0 = inlined_call_operand.hbm [shape: f32[2,196608], index: 0, kind: input, shape index: {}]   ;;  %s23697_s1 = inlined_call_operand.hbm [shape: f32[10,196608], index: 1, kind: input, shape index: {}]   ;;  %s23698_s2 = inlined_call_operand.hbm [shape: f32[1,10], index: 2, kind: input, shape index: {}]   ;;  %s23699_s3 = inlined_call_operand.hbm [shape: f32[2,10], index: 3, kind: output, shape index: {}]  }
   0x1   :  { %10 = vsyncpa [#allocation4 + $0x1], 0 }
   0x2   :  { %11 = vsyncpa [#allocation7], 0 }
   0x3   :  { %13 = vsyncpa [#allocation7 + $0x1], 0 }
   0x4   :  { %14 = vsyncpa [#allocation5], 0  ;;  %s19635_s12 = smov 0   ;;  %s19637_s13 = smov 0  }
   0x5   :  { %s19639_s14 = smov 0   ;;  %s19641_s15 = smov 0  }
   0x6 LB: > { %s19654_s16 = sadd.s32 4294967295, %s19607_s15   ;;  %p40_p0 = scmp.ne.s32.totalorder %s19599_s13, %s19595_s12  ;;  %s19607_s15 = sphi %s19641_s15, %s23706_s15   ;;  %s19603_s14 = sphi %s19639_s14, %s23705_s14   ;;  %s19599_s13 = sphi %s19637_s13, %s23704_s13   ;;  %s19595_s12 = sphi %s19635_s12, %s23703_s12  }
   0x7   : > { %p41_p1 = scmp.eq.s32.totalorder %s19654_s16, 0  ;;  %p19357_p2 = scmp.ge.s32.totalorder %s19607_s15, 1 }
   0x8   : > { %p119_p3 = scmp.lt.s32.totalorder %s19607_s15, 3  ;;  %p19358_p4 = scmp.ne.s32.totalorder %s19654_s16, 0 }
   0x9   : > { %p19663_p5 = por %p41_p1, %p40_p0  ;;  %s131_s20 = sshll.u32 %s23698_s2, 4  ;;  %s132_s20 = int_to_ptr.hbm [resolvable:$true] %s131_s20 }
   0xa   : > { %p19670_p6 = pnand %p19357_p2, %p119_p3  ;;  %s19609_s22 = smov [#allocation8]  }
   0xb   : > { %s133_s23 = sshll.u32 %s19609_s22, 4  ;;  %s19679_s24 = sadd.s32 1, %s19607_s15   ;;  %s134_s23 = int_to_ptr.vmem [resolvable:$true] %s133_s23 }
   0xc   : > { %p19388_p7 = pneg %p19670_p6  ;;  %s27_s25 = sadd.s32 1, %s19603_s14 }
   0xd   : > { %s24_s26 = ssub.s32 %s19607_s15, %s19679_s24  ;;  %p34_p10 = scmp.ne.s32.totalorder %s19603_s14, %s19599_s13 }
   0xe   : > { %p19389_p8 = pnand %p19388_p7, %p41_p1  ;;  %p25_p9 = scmp.eq.s32.totalorder %s24_s26, 0 }
   0xf   : > { %p35_p11 = scmp.eq.s32.totalorder %s19607_s15, 0  ;;  %p19400_p12 = scmp.lt.s32.totalorder %s19607_s15, 2 }
  0x10   : > { %19391 = dma.hbm_to_vmem [thread:$0]  (!%p19389_p8), %s132_s20, 16, %s134_s23, [#allocation7]  }
  0x11   : > { %s19689_s27 = scalar_select %p25_p9, %s19603_s14, %s27_s25  }
  0x12   : > { %p36_p13 = por %p35_p11, %p34_p10  ;;  %s144_s28 = sand.u32 1, %s19603_s14  }
  0x13   : > { %s19372_s29 = smul.u32 1536, %s144_s28  ;;  %s145_s12 = scalar_lea.sflag [#allocation4], %s144_s28 }
  0x14   : > { %s19370_s30 = smul.u32 1536, %s19607_s15  ;;  %p19693_p0 = pnand %p19400_p12, %p36_p13 }
  0x15   : > { %s19373_s5 = smul.u32 12288, %s144_s28  ;;  %s148_s9 = scalar_lea.vmem [#allocation3], %s19372_s29 }
  0x16   : > { %s153_s8 = scalar_lea.hbm %s23696_s0, %s19370_s30  ;;  %s157_s10 = sshll.u32 %s148_s9, 4  ;;  %s158_s10 = int_to_ptr.vmem [resolvable:$true] %s157_s10 }
  0x17   : > { %s155_s11 = sshll.u32 %s153_s8, 4  ;;  %p19477_p3 = pneg %p19693_p0  ;;  %s156_s11 = int_to_ptr.hbm [resolvable:$true] %s155_s11 }
  0x18   : > { %s19473_s18 = sshra.s32 %s156_s11, 4  ;;  %s19480_s23 = scalar_lea.hbm %s23696_s0, 3072  ;;  %s19474_s18 = int_to_ptr.hbm [resolvable:$true] %s19473_s18 }
  0x19   : > { %s19475_s19 = scalar_lea.hbm %s19474_s18, 1536  ;;  %p19481_p9 = scmp.lt.s32.totalorder %s19474_s18, %s23696_s0 }
  0x1a   : > { %p19476_p2 = scmp.ne.s32.totalorder %s19474_s18, %s19475_s19  ;;  %p19482_p10 = scmp.lt.s32.totalorder %s19480_s23, %s19475_s19 }
  0x1c   : > { %p19478_p7 = pnand %p19477_p3, %p19476_p2  ;;  %p19483_p11 = por %p19482_p10, %p19481_p9 }
  0x1e   : > { %p19479_p8 = pneg %p19478_p7 }
  0x20   : > { %p19484_p12 = pnand %p19483_p11, %p19479_p8 }
  0x22   : > { %19487 = shalt.err (!%p19484_p12)
}
  0x23   : > { %19395 = dma.hbm_to_vmem [thread:$0]  (!%p19693_p0), %s156_s11, 24576, %s158_s10, %s145_s12  }
  0x24   : > { %s164_s28 = sand.u32 1, %s19607_s15   ;;  %s168_s29 = scalar_lea.vmem [#allocation6], %s19373_s5 }
  0x25   : > { %s176_s30 = sshll.u32 %s168_s29, 4  ;;  %s19371_s6 = smul.u32 6144, %s19607_s15  ;;  %s177_s30 = int_to_ptr.vmem [resolvable:$true] %s176_s30 }
  0x26   : > { %s165_s19 = scalar_lea.sflag [#allocation7], %s164_s28  ;;  %s19510_s11 = scalar_lea.hbm %s23697_s1, 24576 }
  0x27   : > { %s173_s9 = scalar_lea.hbm %s23697_s1, %s19371_s6 }
  0x28   : > { %s174_s18 = sshll.u32 %s173_s9, 4  ;;  %s175_s18 = int_to_ptr.hbm [resolvable:$true] %s174_s18 }
  0x29   : > { %s19503_s20 = sshra.s32 %s175_s18, 4  ;;  %s19504_s20 = int_to_ptr.hbm [resolvable:$true] %s19503_s20 }
  0x2a   : > { %s19505_s22 = scalar_lea.hbm %s19504_s20, 12288  ;;  %p19511_p8 = scmp.lt.s32.totalorder %s19504_s20, %s23697_s1 }
  0x2b   : > { %p19506_p13 = scmp.ne.s32.totalorder %s19504_s20, %s19505_s22  ;;  %p19512_p9 = scmp.lt.s32.totalorder %s19510_s11, %s19505_s22 }
  0x2d   : > { %p19508_p2 = pnand %p19506_p13, %p19477_p3  ;;  %p19513_p10 = por %p19512_p9, %p19511_p8 }
  0x2f   : > { %p19509_p7 = pneg %p19508_p2 }
  0x31   : > { %p19514_p11 = pnand %p19513_p10, %p19509_p7 }
  0x33   : > { %19517 = shalt.err (!%p19514_p11)
}
  0x34   : > { %s19610_s23 = smov 196608   ;;  %s19611_s25 = smov 98304  }
  0x35   : > { %s19612_s26 = smov 6144   ;;  %188 = sbr.rel (%p19670_p6) target bundleno = 1766 (0x6e6), region = 32 }
  0x36   : > { %19398 = dma.hbm_to_vmem [thread:$0]  (!%p19693_p0), %s175_s18, 196608, %s177_s30, %s165_s19, %s19610_s23, %s19611_s25, %s19612_s26  }
  0x37   : > { %s190_s28 = sand.u32 (!%p19670_p6), 1, %s19599_s13  }
  0x38   : > { %s19374_s29 = smul.u32 (!%p19670_p6), 1536, %s190_s28  ;;  %s191_s6 = scalar_lea.sflag (!%p19670_p6), [#allocation4], %s190_s28 }
  0x3a   : > { %s19732_s7 = scalar_lea.vmem [#allocation3], %s19374_s29 }
  0x3b   : > { %19578 = dma.done.wait (%p19663_p5), %s191_s6, 24576  }
  0x3c   : > { %19580 = vsyncadd (%p19663_p5), %s191_s6, 4294942720  ;;  %s200_s8 = sand.u32 1, %s19654_s16   ;;  %s19375_s4 = smul.u32 12288, %s190_s28 }
  0x3d   : > { %s201_s30 = scalar_lea.sflag [#allocation7], %s200_s8 }
  0x3e   : > { %s19739_s9 = scalar_lea.vmem [#allocation6], %s19375_s4 }
  0x3f   : > { %19582 = dma.done.wait (%p19663_p5), %s201_s30, 196608  }
  0x40   : > { %19584 = vsyncadd (%p19663_p5), %s201_s30, 4294770688 }
  0x41   : > { %19586 = dma.done.wait (%p41_p1), [#allocation7], 16  }
  0x42   : > { %19588 = vsyncadd (%p41_p1), [#allocation7], 4294967280  ;;  %238 = sbr.rel (%p19358_p4) target bundleno = 73 (0x49), region = 48 }
  0x47   : > { %vm239_vm0 = vcmask 74752   ;;  %v19613_v0 = vmov 0.0  }
  0x48   : > { %240 = vst.msk [vmem:[#allocation2] sm:$0x3] %vm239_vm0, %v19613_v0 }
  0x49 PF: > { %v1204_v1 = vld [vmem:[%s19739_s9 + $0x1810] sm:$0x3]  ;;  %v1202_v2 = vld [vmem:[%s19739_s9 + $0x1800] sm:$0x3]  ;;  %v1203_v3 = vld [vmem:[%s19739_s9 + $0x1808] sm:$0x3] }
  0x4a   : > { %3945 = vmatpush.xpose.msra.mxu2 %v1204_v1  ;;  %3905 = vmatpush.xpose.msra.mxu0 %v1202_v2  ;;  %v1205_v4 = vld [vmem:[%s19739_s9 + $0x1818] sm:$0x3]  ;;  %v436_v5 = vld [vmem:[%s19739_s9 + $0x10] sm:$0xff]  ;;  %v434_v6 = vld [vmem:[%s19739_s9] sm:$0xff]  ;;  %vm19252_vm1 = vcmask 74752   ;;  %p19365_p1 = scmp.ne.s32.totalorder %s19654_s16, 1 }
  0x4b   : > { %3925 = vmatpush.xpose.msra.mxu1 %v1203_v3  ;;  %3965 = vmatpush.xpose.msra.mxu3 %v1205_v4  ;;  %v242_v7 = vld [vmem:[%s19732_s7] sm:$0xff]  ;;  %v435_v8 = vld [vmem:[%s19739_s9 + $0x8] sm:$0xff]  ;;  %v437_v9 = vld [vmem:[%s19739_s9 + $0x18] sm:$0xff] }
  0x4c   : > { %2162 = vst [vmem:[#allocation1] ss:$4 sm:$0xff] %v242_v7  ;;  %v1208_v10 = vld [vmem:[%s19739_s9 + $0x1830] sm:$0x3]  ;;  %v1206_v11 = vld [vmem:[%s19739_s9 + $0x1820] sm:$0x3] }
  0x4d   : > { %v1209_v12 = vld [vmem:[%s19739_s9 + $0x1838] sm:$0x3]  ;;  %v1207_v13 = vld [vmem:[%s19739_s9 + $0x1828] sm:$0x3]  ;;  %v440_v15 = vld [vmem:[%s19739_s9 + $0x30] sm:$0xff] }
  0x4e   : > { %3946 = vmatpush.xpose.msra.mxu2 %v436_v5  ;;  %3906 = vmatpush.xpose.msra.mxu0 %v434_v6  ;;  %v243_v14 = vld [vmem:[%s19732_s7 + $0x8] sm:$0xff]  ;;  %v438_v16 = vld [vmem:[%s19739_s9 + $0x20] sm:$0xff]  ;;  %v441_v17 = vld [vmem:[%s19739_s9 + $0x38] sm:$0xff] }
  0x4f   : > { %3926 = vmatpush.xpose.msra.mxu1 %v435_v8  ;;  %3966 = vmatpush.xpose.msra.mxu3 %v437_v9  ;;  %2164 = vst [vmem:[#allocation1 + $0x20] ss:$4 sm:$0xff] %v243_v14  ;;  %v439_v18 = vld [vmem:[%s19739_s9 + $0x28] sm:$0xff]  ;;  %v244_v19 = vld [vmem:[%s19732_s7 + $0x10] sm:$0xff]  ;;  %v1210_v25 = vld [vmem:[%s19739_s9 + $0x1840] sm:$0x3] }
  0x50   : > { %v1212_v24 = vld [vmem:[%s19739_s9 + $0x1850] sm:$0x3]  ;;  %v1213_v26 = vld [vmem:[%s19739_s9 + $0x1858] sm:$0x3]  ;;  %v1211_v27 = vld [vmem:[%s19739_s9 + $0x1848] sm:$0x3] }
  0x51   : > { %v245_v32 = vld [vmem:[%s19732_s7 + $0x18] sm:$0xff]  ;;  %v444_v33 = vld [vmem:[%s19739_s9 + $0x50] sm:$0xff]  ;;  %v442_v34 = vld [vmem:[%s19739_s9 + $0x40] sm:$0xff] }
  0x52   : > { %4025 = vmatpush.xpose.msrb.mxu2 %v1208_v10  ;;  %3985 = vmatpush.xpose.msrb.mxu0 %v1206_v11  ;;  %v445_v35 = vld [vmem:[%s19739_s9 + $0x58] sm:$0xff]  ;;  %v443_v36 = vld [vmem:[%s19739_s9 + $0x48] sm:$0xff]  ;;  %v1216_v37 = vld [vmem:[%s19739_s9 + $0x1870] sm:$0x3] }
  0x53   : > { %4045 = vmatpush.xpose.msrb.mxu3 %v1209_v12  ;;  %4005 = vmatpush.xpose.msrb.mxu1 %v1207_v13  ;;  %v2167_v20 = vld.sshfl [vmem:[#allocation1 + $0x10] sm:$0xff pattern:$0x73625140]  ;;  %v2165_v21 = vld.sshfl [vmem:[#allocation1] sm:$0xff pattern:$0x73625140] }
  0x54   : > { %3947 = vmatmul.f32.vlgmr.msra.gmra.mxu2 %v2167_v20  ;;  %3907 = vmatmul.f32.vlgmr.msra.gmra.mxu0 %v2165_v21  ;;  %v2166_v22 = vld.sshfl [vmem:[#allocation1 + $0x8] sm:$0xff pattern:$0x73625140]  ;;  %v2168_v23 = vld.sshfl [vmem:[#allocation1 + $0x18] sm:$0xff pattern:$0x73625140] }
  0x55   : > { %3927 = vmatmul.f32.vlgmr.msra.gmra.mxu1 %v2166_v22  ;;  %3967 = vmatmul.f32.vlgmr.msra.gmra.mxu3 %v2168_v23  ;;  %2173 = vst [vmem:[#allocation1] ss:$4 sm:$0xff] %v244_v19  ;;  %v1214_v38 = vld [vmem:[%s19739_s9 + $0x1860] sm:$0x3]  ;;  %v1217_v39 = vld [vmem:[%s19739_s9 + $0x1878] sm:$0x3] }
  0x56   : > { %4026 = vmatpush.xpose.msrb.mxu2 %v440_v15  ;;  %3986 = vmatpush.xpose.msrb.mxu0 %v438_v16  ;;  %v2171_v28 = vld.sshfl [vmem:[#allocation1 + $0x30] sm:$0xff pattern:$0x73625140]  ;;  %v2169_v29 = vld.sshfl [vmem:[#allocation1 + $0x20] sm:$0xff pattern:$0x73625140] }
  0x57   : > { %4046 = vmatpush.xpose.msrb.mxu3 %v441_v17  ;;  %4006 = vmatpush.xpose.msrb.mxu1 %v439_v18  ;;  %v2172_v30 = vld.sshfl [vmem:[#allocation1 + $0x38] sm:$0xff pattern:$0x73625140]  ;;  %v2170_v31 = vld.sshfl [vmem:[#allocation1 + $0x28] sm:$0xff pattern:$0x73625140] }
  0x58   : > { %2174 = vst [vmem:[#allocation1 + $0x20] ss:$4 sm:$0xff] %v245_v32  ;;  %v1215_v41 = vld [vmem:[%s19739_s9 + $0x1868] sm:$0x3]  ;;  %v246_v45 = vld [vmem:[%s19732_s7 + $0x20] sm:$0xff]  ;;  %v448_v46 = vld [vmem:[%s19739_s9 + $0x70] sm:$0xff] }
  0x59   : > { %v446_v47 = vld [vmem:[%s19739_s9 + $0x60] sm:$0xff]  ;;  %v449_v48 = vld [vmem:[%s19739_s9 + $0x78] sm:$0xff]  ;;  %v447_v52 = vld [vmem:[%s19739_s9 + $0x68] sm:$0xff] }
  0x5a   : > { %4105 = vmatpush.xpose.msra.mxu2 %v1212_v24  ;;  %4065 = vmatpush.xpose.msra.mxu0 %v1210_v25  ;;  %v247_v54 = vld [vmem:[%s19732_s7 + $0x28] sm:$0xff]  ;;  %v1220_v55 = vld [vmem:[%s19739_s9 + $0x1890] sm:$0x3]  ;;  %v1218_v56 = vld [vmem:[%s19739_s9 + $0x1880] sm:$0x3] }
  0x5b   : > { %4125 = vmatpush.xpose.msra.mxu3 %v1213_v26  ;;  %4085 = vmatpush.xpose.msra.mxu1 %v1211_v27  ;;  %v1221_v57 = vld [vmem:[%s19739_s9 + $0x1898] sm:$0x3]  ;;  %v1219_v58 = vld [vmem:[%s19739_s9 + $0x1888] sm:$0x3]  ;;  %v248_v63 = vld [vmem:[%s19732_s7 + $0x30] sm:$0xff] }
  0x5c   : > { %4027 = vmatmul.f32.vlgmr.msrb.gmra.mxu2 %v2171_v28  ;;  %3987 = vmatmul.f32.vlgmr.msrb.gmra.mxu0 %v2169_v29  ;;  %v2177_v40 = vld.sshfl [vmem:[#allocation1 + $0x10] sm:$0xff pattern:$0x73625140]  ;;  %v2175_v42 = vld.sshfl [vmem:[#allocation1] sm:$0xff pattern:$0x73625140] }
  0x5d   : > { %4047 = vmatmul.f32.vlgmr.msrb.gmra.mxu3 %v2172_v30  ;;  %4007 = vmatmul.f32.vlgmr.msrb.gmra.mxu1 %v2170_v31  ;;  %v2178_v43 = vld.sshfl [vmem:[#allocation1 + $0x18] sm:$0xff pattern:$0x73625140]  ;;  %v2176_v44 = vld.sshfl [vmem:[#allocation1 + $0x8] sm:$0xff pattern:$0x73625140] }
  0x5e   : > { %4106 = vmatpush.xpose.msra.mxu2 %v444_v33  ;;  %4066 = vmatpush.xpose.msra.mxu0 %v442_v34  ;;  %2183 = vst [vmem:[#allocation1] ss:$4 sm:$0xff] %v246_v45  ;;  %v452_v0 = vld [vmem:[%s19739_s9 + $0x90] sm:$0xff]  ;;  %v450_v1 = vld [vmem:[%s19739_s9 + $0x80] sm:$0xff]  ;;  %v453_v2 = vld [vmem:[%s19739_s9 + $0x98] sm:$0xff] }
  0x5f   : > { %4126 = vmatpush.xpose.msra.mxu3 %v445_v35  ;;  %4086 = vmatpush.xpose.msra.mxu1 %v443_v36  ;;  %v2181_v49 = vld.sshfl [vmem:[#allocation1 + $0x30] sm:$0xff pattern:$0x73625140]  ;;  %v2179_v50 = vld.sshfl [vmem:[#allocation1 + $0x20] sm:$0xff pattern:$0x73625140] }
  0x60   : > { %v2182_v51 = vld.sshfl [vmem:[#allocation1 + $0x38] sm:$0xff pattern:$0x73625140]  ;;  %v2180_v53 = vld.sshfl [vmem:[#allocation1 + $0x28] sm:$0xff pattern:$0x73625140] }
  0x61   : > { %2184 = vst [vmem:[#allocation1 + $0x20] ss:$4 sm:$0xff] %v247_v54  ;;  %v451_v3 = vld [vmem:[%s19739_s9 + $0x88] sm:$0xff]  ;;  %v1224_v4 = vld [vmem:[%s19739_s9 + $0x18b0] sm:$0x3]  ;;  %v249_v12 = vld [vmem:[%s19732_s7 + $0x38] sm:$0xff] }
  0x62   : > { %4185 = vmatpush.xpose.msrb.mxu2 %v1216_v37  ;;  %4145 = vmatpush.xpose.msrb.mxu0 %v1214_v38  ;;  %v1222_v5 = vld [vmem:[%s19739_s9 + $0x18a0] sm:$0x3]  ;;  %v1225_v6 = vld [vmem:[%s19739_s9 + $0x18b8] sm:$0x3]  ;;  %v1223_v7 = vld [vmem:[%s19739_s9 + $0x18a8] sm:$0x3] }
  0x63   : > { %4205 = vmatpush.xpose.msrb.mxu3 %v1217_v39  ;;  %4165 = vmatpush.xpose.msrb.mxu1 %v1215_v41  ;;  %v456_v13 = vld [vmem:[%s19739_s9 + $0xb0] sm:$0xff]  ;;  %v454_v14 = vld [vmem:[%s19739_s9 + $0xa0] sm:$0xff]  ;;  %v457_v15 = vld [vmem:[%s19739_s9 + $0xb8] sm:$0xff] }
  0x64   : > { %4107 = vmatmul.f32.vlgmr.msra.gmra.mxu2 %v2177_v40  ;;  %4067 = vmatmul.f32.vlgmr.msra.gmra.mxu0 %v2175_v42  ;;  %v455_v19 = vld [vmem:[%s19739_s9 + $0xa8] sm:$0xff]  ;;  %v250_v21 = vld [vmem:[%s19732_s7 + $0x40] sm:$0xff]  ;;  %v1228_v22 = vld [vmem:[%s19739_s9 + $0x18d0] sm:$0x3] }
  0x65   : > { %4127 = vmatmul.f32.vlgmr.msra.gmra.mxu3 %v2178_v43  ;;  %4087 = vmatmul.f32.vlgmr.msra.gmra.mxu1 %v2176_v44  ;;  %v2187_v59 = vld.sshfl [vmem:[#allocation1 + $0x10] sm:$0xff pattern:$0x73625140]  ;;  %v2185_v60 = vld.sshfl [vmem:[#allocation1] sm:$0xff pattern:$0x73625140] }
  0x66   : > { %4186 = vmatpush.xpose.msrb.mxu2 %v448_v46  ;;  %4146 = vmatpush.xpose.msrb.mxu0 %v446_v47  ;;  %v2188_v61 = vld.sshfl [vmem:[#allocation1 + $0x18] sm:$0xff pattern:$0x73625140]  ;;  %v2186_v62 = vld.sshfl [vmem:[#allocation1 + $0x8] sm:$0xff pattern:$0x73625140] }
  0x67   : > { %4206 = vmatpush.xpose.msrb.mxu3 %v449_v48  ;;  %4166 = vmatpush.xpose.msrb.mxu1 %v447_v52  ;;  %2193 = vst [vmem:[#allocation1] ss:$4 sm:$0xff] %v248_v63  ;;  %v1226_v23 = vld [vmem:[%s19739_s9 + $0x18c0] sm:$0x3]  ;;  %v1229_v24 = vld [vmem:[%s19739_s9 + $0x18d8] sm:$0x3] }
  0x68   : > { %v2191_v8 = vld.sshfl [vmem:[#allocation1 + $0x30] sm:$0xff pattern:$0x73625140]  ;;  %v2189_v9 = vld.sshfl [vmem:[#allocation1 + $0x20] sm:$0xff pattern:$0x73625140] }
  0x69   : > { %v2192_v10 = vld.sshfl [vmem:[#allocation1 + $0x38] sm:$0xff pattern:$0x73625140]  ;;  %v2190_v11 = vld.sshfl [vmem:[#allocation1 + $0x28] sm:$0xff pattern:$0x73625140] }
  0x6a   : > { %4265 = vmatpush.xpose.msra.mxu2 %v1220_v55  ;;  %4225 = vmatpush.xpose.msra.mxu0 %v1218_v56  ;;  %2194 = vst [vmem:[#allocation1 + $0x20] ss:$4 sm:$0xff] %v249_v12  ;;  %v1227_v25 = vld [vmem:[%s19739_s9 + $0x18c8] sm:$0x3]  ;;  %v460_v31 = vld [vmem:[%s19739_s9 + $0xd0] sm:$0xff]  ;;  %v458_v32 = vld [vmem:[%s19739_s9 + $0xc0] sm:$0xff] }
  0x6b   : > { %4285 = vmatpush.xpose.msra.mxu3 %v1221_v57  ;;  %4245 = vmatpush.xpose.msra.mxu1 %v1219_v58  ;;  %v251_v30 = vld [vmem:[%s19732_s7 + $0x48] sm:$0xff]  ;;  %v461_v33 = vld [vmem:[%s19739_s9 + $0xd8] sm:$0xff]  ;;  %v1232_v35 = vld [vmem:[%s19739_s9 + $0x18f0] sm:$0x3] }
  0x6c   : > { %4187 = vmatmul.f32.vlgmr.msrb.gmra.mxu2 %v2181_v49  ;;  %4147 = vmatmul.f32.vlgmr.msrb.gmra.mxu0 %v2179_v50  ;;  %v459_v34 = vld [vmem:[%s19739_s9 + $0xc8] sm:$0xff]  ;;  %v1230_v36 = vld [vmem:[%s19739_s9 + $0x18e0] sm:$0x3]  ;;  %v1233_v37 = vld [vmem:[%s19739_s9 + $0x18f8] sm:$0x3] }
  0x6d   : > { %4207 = vmatmul.f32.vlgmr.msrb.gmra.mxu3 %v2182_v51  ;;  %4167 = vmatmul.f32.vlgmr.msrb.gmra.mxu1 %v2180_v53  ;;  %v1231_v38 = vld [vmem:[%s19739_s9 + $0x18e8] sm:$0x3]  ;;  %v252_v39 = vld [vmem:[%s19732_s7 + $0x50] sm:$0xff]  ;;  %v462_v48 = vld [vmem:[%s19739_s9 + $0xe0] sm:$0xff] }
  0x6e   : > { %4266 = vmatpush.xpose.msra.mxu2 %v452_v0  ;;  %4226 = vmatpush.xpose.msra.mxu0 %v450_v1  ;;  %v2197_v16 = vld.sshfl [vmem:[#allocation1 + $0x10] sm:$0xff pattern:$0x73625140]  ;;  %v2195_v17 = vld.sshfl [vmem:[#allocation1] sm:$0xff pattern:$0x73625140] }
  0x6f   : > { %4286 = vmatpush.xpose.msra.mxu3 %v453_v2  ;;  %4246 = vmatpush.xpose.msra.mxu1 %v451_v3  ;;  %v19806_v18 = vld.sshfl [vmem:[#allocation1 + $0x18] sm:$0xff pattern:$0x73625140]  ;;  %v2196_v20 = vld.sshfl [vmem:[#allocation1 + $0x8] sm:$0xff pattern:$0x73625140] }
  0x70   : > { %2203 = vst [vmem:[#allocation1] ss:$4 sm:$0xff] %v250_v21  ;;  %v464_v44 = vld [vmem:[%s19739_s9 + $0xf0] sm:$0xff]  ;;  %v253_v50 = vld [vmem:[%s19732_s7 + $0x58] sm:$0xff]  ;;  %v463_v52 = vld [vmem:[%s19739_s9 + $0xe8] sm:$0xff] }
  0x71   : > { %v19814_v26 = vld.sshfl [vmem:[#allocation1 + $0x30] sm:$0xff pattern:$0x73625140]  ;;  %v19816_v27 = vld.sshfl [vmem:[#allocation1 + $0x20] sm:$0xff pattern:$0x73625140] }
  0x72   : > { %4345 = vmatpush.xpose.msrb.mxu2 %v1224_v4  ;;  %4305 = vmatpush.xpose.msrb.mxu0 %v1222_v5  ;;  %v19818_v28 = vld.sshfl [vmem:[#allocation1 + $0x38] sm:$0xff pattern:$0x73625140]  ;;  %v19820_v29 = vld.sshfl [vmem:[#allocation1 + $0x28] sm:$0xff pattern:$0x73625140] }
  0x73   : > { %4365 = vmatpush.xpose.msrb.mxu3 %v1225_v6  ;;  %4325 = vmatpush.xpose.msrb.mxu1 %v1223_v7  ;;  %2204 = vst [vmem:[#allocation1 + $0x20] ss:$4 sm:$0xff] %v251_v30  ;;  %v465_v51 = vld [vmem:[%s19739_s9 + $0xf8] sm:$0xff]  ;;  %v1236_v53 = vld [vmem:[%s19739_s9 + $0x1910] sm:$0x3]  ;;  %v466_v58 = vld [vmem:[%s19739_s9 + $0x100] sm:$0xff] }
  0x74   : > { %4267 = vmatmul.f32.vlgmr.msra.gmra.mxu2 %v2187_v59  ;;  %4227 = vmatmul.f32.vlgmr.msra.gmra.mxu0 %v2185_v60  ;;  %v1234_v54 = vld [vmem:[%s19739_s9 + $0x1900] sm:$0x3]  ;;  %v1237_v55 = vld [vmem:[%s19739_s9 + $0x1918] sm:$0x3]  ;;  %v1235_v56 = vld [vmem:[%s19739_s9 + $0x1908] sm:$0x3] }
  0x75   : > { %4287 = vmatmul.f32.vlgmr.msra.gmra.mxu3 %v2188_v61  ;;  %4247 = vmatmul.f32.vlgmr.msra.gmra.mxu1 %v2186_v62  ;;  %v468_v57 = vld [vmem:[%s19739_s9 + $0x110] sm:$0xff]  ;;  %v469_v59 = vld [vmem:[%s19739_s9 + $0x118] sm:$0xff]  ;;  %v467_v60 = vld [vmem:[%s19739_s9 + $0x108] sm:$0xff] }
  0x76   : > { %4346 = vmatpush.xpose.msrb.mxu2 %v456_v13  ;;  %4306 = vmatpush.xpose.msrb.mxu0 %v454_v14  ;;  %v1240_v61 = vld [vmem:[%s19739_s9 + $0x1930] sm:$0x3]  ;;  %v1238_v62 = vld [vmem:[%s19739_s9 + $0x1920] sm:$0x3]  ;;  %v1241_v63 = vld [vmem:[%s19739_s9 + $0x1938] sm:$0x3] }
  0x77   : > { %4366 = vmatpush.xpose.msrb.mxu3 %v457_v15  ;;  %4326 = vmatpush.xpose.msrb.mxu1 %v455_v19  ;;  %v19832_v40 = vld.sshfl [vmem:[#allocation1 + $0x10] sm:$0xff pattern:$0x73625140]  ;;  %v19834_v41 = vld.sshfl [vmem:[#allocation1] sm:$0xff pattern:$0x73625140] }
  0x78   : > { %v19836_v42 = vld.sshfl [vmem:[#allocation1 + $0x18] sm:$0xff pattern:$0x73625140]  ;;  %v19838_v43 = vld.sshfl [vmem:[#allocation1 + $0x8] sm:$0xff pattern:$0x73625140] }
  0x79   : > { %2213 = vst [vmem:[#allocation1] ss:$4 sm:$0xff] %v252_v39  ;;  %v1239_v0 = vld [vmem:[%s19739_s9 + $0x1928] sm:$0x3]  ;;  %v254_v1 = vld [vmem:[%s19732_s7 + $0x60] sm:$0xff]  ;;  %v472_v6 = vld [vmem:[%s19739_s9 + $0x130] sm:$0xff] }
  0x7a   : > { %4425 = vmatpush.xpose.msra.mxu2 %v1228_v22  ;;  %4385 = vmatpush.xpose.msra.mxu0 %v1226_v23  ;;  %v19841_v45 = vld.sshfl [vmem:[#allocation1 + $0x30] sm:$0xff pattern:$0x73625140]  ;;  %v19843_v46 = vld.sshfl [vmem:[#allocation1 + $0x20] sm:$0xff pattern:$0x73625140] }
  0x7b   : > { %4445 = vmatpush.xpose.msra.mxu3 %v1229_v24  ;;  %4405 = vmatpush.xpose.msra.mxu1 %v1227_v25  ;;  %v19845_v47 = vld.sshfl [vmem:[#allocation1 + $0x38] sm:$0xff pattern:$0x73625140]  ;;  %v19848_v49 = vld.sshfl [vmem:[#allocation1 + $0x28] sm:$0xff pattern:$0x73625140] }
  0x7c   : > { %4347 = vmatmul.f32.vlgmr.msrb.gmra.mxu2 %v2191_v8  ;;  %4307 = vmatmul.f32.vlgmr.msrb.gmra.mxu0 %v2189_v9  ;;  %2214 = vst [vmem:[#allocation1 + $0x20] ss:$4 sm:$0xff] %v253_v50  ;;  %v255_v12 = vld [vmem:[%s19732_s7 + $0x68] sm:$0xff]  ;;  %v473_v13 = vld [vmem:[%s19739_s9 + $0x138] sm:$0xff]  ;;  %v1244_v15 = vld [vmem:[%s19739_s9 + $0x1950] sm:$0x3] }
  0x7d   : > { %4367 = vmatmul.f32.vlgmr.msrb.gmra.mxu3 %v2192_v10  ;;  %4327 = vmatmul.f32.vlgmr.msrb.gmra.mxu1 %v2190_v11  ;;  %v470_v10 = vld [vmem:[%s19739_s9 + $0x120] sm:$0xff]  ;;  %v471_v14 = vld [vmem:[%s19739_s9 + $0x128] sm:$0xff]  ;;  %v476_v19 = vld [vmem:[%s19739_s9 + $0x150] sm:$0xff] }
  0x7e   : > { %4426 = vmatpush.xpose.msra.mxu2 %v460_v31  ;;  %4386 = vmatpush.xpose.msra.mxu0 %v458_v32  ;;  %v477_v21 = vld [vmem:[%s19739_s9 + $0x158] sm:$0xff]  ;;  %v475_v22 = vld [vmem:[%s19739_s9 + $0x148] sm:$0xff]  ;;  %v1248_v23 = vld [vmem:[%s19739_s9 + $0x1970] sm:$0x3] }
  0x7f   : > { %4446 = vmatpush.xpose.msra.mxu3 %v461_v33  ;;  %4406 = vmatpush.xpose.msra.mxu1 %v459_v34  ;;  %v1246_v24 = vld [vmem:[%s19739_s9 + $0x1960] sm:$0x3]  ;;  %v1249_v25 = vld [vmem:[%s19739_s9 + $0x1978] sm:$0x3]  ;;  %v480_v32 = vld [vmem:[%s19739_s9 + $0x170] sm:$0xff] }
  0x80   : > { %v19871_v2 = vld.sshfl [vmem:[#allocation1 + $0x10] sm:$0xff pattern:$0x73625140]  ;;  %v19873_v3 = vld.sshfl [vmem:[#allocation1] sm:$0xff pattern:$0x73625140] }
  0x81   : > { %v19875_v4 = vld.sshfl [vmem:[#allocation1 + $0x18] sm:$0xff pattern:$0x73625140]  ;;  %v19877_v5 = vld.sshfl [vmem:[#allocation1 + $0x8] sm:$0xff pattern:$0x73625140] }
  0x82   : > { %4505 = vmatpush.xpose.msrb.mxu2 %v1232_v35  ;;  %4465 = vmatpush.xpose.msrb.mxu0 %v1230_v36  ;;  %2223 = vst [vmem:[#allocation1] ss:$4 sm:$0xff] %v254_v1  ;;  %v478_v36 = vld [vmem:[%s19739_s9 + $0x160] sm:$0xff]  ;;  %v481_v39 = vld [vmem:[%s19739_s9 + $0x178] sm:$0xff] }
  0x83   : > { %4525 = vmatpush.xpose.msrb.mxu3 %v1233_v37  ;;  %4485 = vmatpush.xpose.msrb.mxu1 %v1231_v38  ;;  %v19880_v7 = vld.sshfl [vmem:[#allocation1 + $0x30] sm:$0xff pattern:$0x73625140]  ;;  %v19882_v8 = vld.sshfl [vmem:[#allocation1 + $0x20] sm:$0xff pattern:$0x73625140] }
  0x84   : > { %4427 = vmatmul.f32.vlgmr.msra.gmra.mxu2 %v2197_v16  ;;  %4387 = vmatmul.f32.vlgmr.msra.gmra.mxu0 %v2195_v17  ;;  %v19884_v9 = vld.sshfl [vmem:[#allocation1 + $0x38] sm:$0xff pattern:$0x73625140]  ;;  %v19887_v11 = vld.sshfl [vmem:[#allocation1 + $0x28] sm:$0xff pattern:$0x73625140] }
  0x85   : > { %4447 = vmatmul.f32.vlgmr.msra.gmra.mxu3 %v19806_v18  ;;  %4407 = vmatmul.f32.vlgmr.msra.gmra.mxu1 %v2196_v20  ;;  %2224 = vst [vmem:[#allocation1 + $0x20] ss:$4 sm:$0xff] %v255_v12  ;;  %v1242_v16 = vld [vmem:[%s19739_s9 + $0x1940] sm:$0x3]  ;;  %v1245_v17 = vld [vmem:[%s19739_s9 + $0x1958] sm:$0x3] }
  0x86   : > { %4506 = vmatpush.xpose.msrb.mxu2 %v464_v44  ;;  %4466 = vmatpush.xpose.msrb.mxu0 %v462_v48  ;;  %v1243_v18 = vld [vmem:[%s19739_s9 + $0x1948] sm:$0x3]  ;;  %v474_v20 = vld [vmem:[%s19739_s9 + $0x140] sm:$0xff]  ;;  %v257_v38 = vld [vmem:[%s19732_s7 + $0x78] sm:$0xff] }
  0x87   : > { %4526 = vmatpush.xpose.msrb.mxu3 %v465_v51  ;;  %4486 = vmatpush.xpose.msrb.mxu1 %v463_v52  ;;  %v1251_v44 = vld [vmem:[%s19739_s9 + $0x1988] sm:$0x3]  ;;  %v1254_v50 = vld [vmem:[%s19739_s9 + $0x19a0] sm:$0x3]  ;;  %v1257_v51 = vld [vmem:[%s19739_s9 + $0x19b8] sm:$0x3] }
  0x88   : > { %v483_v48 = vld [vmem:[%s19739_s9 + $0x188] sm:$0xff]  ;;  %v489_v1 = vld [vmem:[%s19739_s9 + $0x1b8] sm:$0xff] }
  0x89   : > { %v19917_v30 = vld.sshfl [vmem:[#allocation1 + $0x18] sm:$0xff pattern:$0x73625140]  ;;  %v19919_v31 = vld.sshfl [vmem:[#allocation1 + $0x8] sm:$0xff pattern:$0x73625140] }
  0x8a   : > { %4585 = vmatpush.xpose.msra.mxu2 %v1236_v53  ;;  %4545 = vmatpush.xpose.msra.mxu0 %v1234_v54  ;;  %v1255_v52 = vld [vmem:[%s19739_s9 + $0x19a8] sm:$0x3]  ;;  %v258_v53 = vld [vmem:[%s19732_s7 + $0x80] sm:$0xff] }
  0x8b   : > { %4605 = vmatpush.xpose.msra.mxu3 %v1237_v55  ;;  %4565 = vmatpush.xpose.msra.mxu1 %v1235_v56 }
  0x8c   : > { %4507 = vmatmul.f32.vlgmr.msrb.gmra.mxu2 %v19814_v26  ;;  %4467 = vmatmul.f32.vlgmr.msrb.gmra.mxu0 %v19816_v27  ;;  %v1247_v26 = vld [vmem:[%s19739_s9 + $0x1968] sm:$0x3]  ;;  %v256_v27 = vld [vmem:[%s19732_s7 + $0x70] sm:$0xff]  ;;  %v19929_v37 = vld.sshfl [vmem:[#allocation1 + $0x28] sm:$0xff pattern:$0x73625140] }
  0x8d   : > { %4527 = vmatmul.f32.vlgmr.msrb.gmra.mxu3 %v19818_v28  ;;  %4487 = vmatmul.f32.vlgmr.msrb.gmra.mxu1 %v19820_v29  ;;  %v19913_v28 = vld.sshfl [vmem:[#allocation1 + $0x10] sm:$0xff pattern:$0x73625140]  ;;  %v19915_v29 = vld.sshfl [vmem:[#allocation1] sm:$0xff pattern:$0x73625140] }
  0x8e   : > { %4586 = vmatpush.xpose.msra.mxu2 %v468_v57  ;;  %4546 = vmatpush.xpose.msra.mxu0 %v466_v58  ;;  %2233 = vst [vmem:[#allocation1] ss:$4 sm:$0xff] %v256_v27  ;;  %v19922_v33 = vld.sshfl [vmem:[#allocation1 + $0x30] sm:$0xff pattern:$0x73625140]  ;;  %v488_v58 = vld [vmem:[%s19739_s9 + $0x1b0] sm:$0xff] }
  0x8f   : > { %4606 = vmatpush.xpose.msra.mxu3 %v469_v59  ;;  %4566 = vmatpush.xpose.msra.mxu1 %v467_v60  ;;  %v19924_v34 = vld.sshfl [vmem:[#allocation1 + $0x20] sm:$0xff pattern:$0x73625140]  ;;  %v19926_v35 = vld.sshfl [vmem:[#allocation1 + $0x38] sm:$0xff pattern:$0x73625140] }
  0x90   : > { %2234 = vst [vmem:[#allocation1 + $0x20] ss:$4 sm:$0xff] %v257_v38  ;;  %v497_v27 = vld [vmem:[%s19739_s9 + $0x1f8] sm:$0xff] }
  0x92   : > { %4665 = vmatpush.xpose.msrb.mxu2 %v1240_v61  ;;  %4625 = vmatpush.xpose.msrb.mxu0 %v1238_v62  ;;  %v486_v62 = vld [vmem:[%s19739_s9 + $0x1a0] sm:$0xff] }
  0x93   : > { %4685 = vmatpush.xpose.msrb.mxu3 %v1241_v63  ;;  %4645 = vmatpush.xpose.msrb.mxu1 %v1239_v0  ;;  %v259_v0 = vld [vmem:[%s19732_s7 + $0x88] sm:$0xff] }
  0x94   : > { %4587 = vmatmul.f32.vlgmr.msra.gmra.mxu2 %v19832_v40  ;;  %4547 = vmatmul.f32.vlgmr.msra.gmra.mxu0 %v19834_v41  ;;  %v479_v40 = vld [vmem:[%s19739_s9 + $0x168] sm:$0xff]  ;;  %v1252_v41 = vld [vmem:[%s19739_s9 + $0x1990] sm:$0x3] }
  0x95   : > { %4607 = vmatmul.f32.vlgmr.msra.gmra.mxu3 %v19836_v42  ;;  %4567 = vmatmul.f32.vlgmr.msra.gmra.mxu1 %v19838_v43  ;;  %v1250_v42 = vld [vmem:[%s19739_s9 + $0x1980] sm:$0x3]  ;;  %v1253_v43 = vld [vmem:[%s19739_s9 + $0x1998] sm:$0x3] }
  0x96   : > { %4666 = vmatpush.xpose.msrb.mxu2 %v472_v6  ;;  %4626 = vmatpush.xpose.msrb.mxu0 %v470_v10  ;;  %v19955_v54 = vld.sshfl [vmem:[#allocation1 + $0x10] sm:$0xff pattern:$0x73625140]  ;;  %v19957_v55 = vld.sshfl [vmem:[#allocation1] sm:$0xff pattern:$0x73625140] }
  0x97   : > { %4686 = vmatpush.xpose.msrb.mxu3 %v473_v13  ;;  %4646 = vmatpush.xpose.msrb.mxu1 %v471_v14  ;;  %v19959_v56 = vld.sshfl [vmem:[#allocation1 + $0x18] sm:$0xff pattern:$0x73625140]  ;;  %v19961_v57 = vld.sshfl [vmem:[#allocation1 + $0x8] sm:$0xff pattern:$0x73625140] }
  0x98   : > { %2243 = vst [vmem:[#allocation1] ss:$4 sm:$0xff] %v258_v53  ;;  %v19964_v59 = vld.sshfl [vmem:[#allocation1 + $0x30] sm:$0xff pattern:$0x73625140]  ;;  %v260_v13 = vld [vmem:[%s19732_s7 + $0x90] sm:$0xff] }
  0x99   : > { %v19966_v60 = vld.sshfl [vmem:[#allocation1 + $0x20] sm:$0xff pattern:$0x73625140]  ;;  %v19968_v61 = vld.sshfl [vmem:[#allocation1 + $0x38] sm:$0xff pattern:$0x73625140] }
  0x9a   : > { %4745 = vmatpush.xpose.msra.mxu2 %v1244_v15  ;;  %4705 = vmatpush.xpose.msra.mxu0 %v1242_v16  ;;  %v19971_v63 = vld.sshfl [vmem:[#allocation1 + $0x28] sm:$0xff pattern:$0x73625140]  ;;  %v1259_v6 = vld [vmem:[%s19739_s9 + $0x19c8] sm:$0x3] }
  0x9b   : > { %4765 = vmatpush.xpose.msra.mxu3 %v1245_v17  ;;  %4725 = vmatpush.xpose.msra.mxu1 %v1243_v18  ;;  %2244 = vst [vmem:[#allocation1 + $0x20] ss:$4 sm:$0xff] %v259_v0  ;;  %v493_v14 = vld [vmem:[%s19739_s9 + $0x1d8] sm:$0xff]  ;;  %v491_v15 = vld [vmem:[%s19739_s9 + $0x1c8] sm:$0xff]  ;;  %v1264_v16 = vld [vmem:[%s19739_s9 + $0x19f0] sm:$0x3] }
  0x9c   : > { %4667 = vmatmul.f32.vlgmr.msrb.gmra.mxu2 %v19841_v45  ;;  %4627 = vmatmul.f32.vlgmr.msrb.gmra.mxu0 %v19843_v46  ;;  %v484_v45 = vld [vmem:[%s19739_s9 + $0x190] sm:$0xff]  ;;  %v482_v46 = vld [vmem:[%s19739_s9 + $0x180] sm:$0xff]  ;;  %v1265_v18 = vld [vmem:[%s19739_s9 + $0x19f8] sm:$0x3] }
  0x9d   : > { %4687 = vmatmul.f32.vlgmr.msrb.gmra.mxu3 %v19845_v47  ;;  %4647 = vmatmul.f32.vlgmr.msrb.gmra.mxu1 %v19848_v49  ;;  %v485_v47 = vld [vmem:[%s19739_s9 + $0x198] sm:$0xff]  ;;  %v1256_v49 = vld [vmem:[%s19739_s9 + $0x19b0] sm:$0x3]  ;;  %v1262_v17 = vld [vmem:[%s19739_s9 + $0x19e0] sm:$0x3] }
  0x9e   : > { %4746 = vmatpush.xpose.msra.mxu2 %v476_v19  ;;  %4706 = vmatpush.xpose.msra.mxu0 %v474_v20  ;;  %v1263_v19 = vld [vmem:[%s19739_s9 + $0x19e8] sm:$0x3]  ;;  %v496_v20 = vld [vmem:[%s19739_s9 + $0x1f0] sm:$0xff] }
  0x9f   : > { %4766 = vmatpush.xpose.msra.mxu3 %v477_v21  ;;  %4726 = vmatpush.xpose.msra.mxu1 %v475_v22  ;;  %v19989_v10 = vld.sshfl [vmem:[#allocation1 + $0x18] sm:$0xff pattern:$0x73625140]  ;;  %v19992_v12 = vld.sshfl [vmem:[#allocation1 + $0x8] sm:$0xff pattern:$0x73625140] }
  0xa2   : > { %4825 = vmatpush.xpose.msrb.mxu2 %v1248_v23  ;;  %4785 = vmatpush.xpose.msrb.mxu0 %v1246_v24  ;;  %v20006_v21 = vld.sshfl [vmem:[#allocation1 + $0x30] sm:$0xff pattern:$0x73625140]  ;;  %v20008_v22 = vld.sshfl [vmem:[#allocation1 + $0x20] sm:$0xff pattern:$0x73625140] }
  0xa3   : > { %4845 = vmatpush.xpose.msrb.mxu3 %v1249_v25  ;;  %4805 = vmatpush.xpose.msrb.mxu1 %v1247_v26  ;;  %v20010_v23 = vld.sshfl [vmem:[#allocation1 + $0x38] sm:$0xff pattern:$0x73625140]  ;;  %v494_v24 = vld [vmem:[%s19739_s9 + $0x1e0] sm:$0xff]  ;;  %v261_v26 = vld [vmem:[%s19732_s7 + $0x98] sm:$0xff] }
  0xa4   : > { %4747 = vmatmul.f32.vlgmr.msra.gmra.mxu2 %v19871_v2  ;;  %4707 = vmatmul.f32.vlgmr.msra.gmra.mxu0 %v19873_v3  ;;  %v487_v2 = vld [vmem:[%s19739_s9 + $0x1a8] sm:$0xff]  ;;  %v1260_v3 = vld [vmem:[%s19739_s9 + $0x19d0] sm:$0x3]  ;;  %v20013_v25 = vld.sshfl [vmem:[#allocation1 + $0x28] sm:$0xff pattern:$0x73625140] }
  0xa5   : > { %4767 = vmatmul.f32.vlgmr.msra.gmra.mxu3 %v19875_v4  ;;  %4727 = vmatmul.f32.vlgmr.msra.gmra.mxu1 %v19877_v5  ;;  %v1258_v4 = vld [vmem:[%s19739_s9 + $0x19c0] sm:$0x3]  ;;  %v1261_v5 = vld [vmem:[%s19739_s9 + $0x19d8] sm:$0x3]  ;;  %2254 = vst [vmem:[#allocation1 + $0x20] ss:$4 sm:$0xff] %v261_v26 }
  0xa6   : > { %4826 = vmatpush.xpose.msrb.mxu2 %v480_v32  ;;  %4786 = vmatpush.xpose.msrb.mxu0 %v478_v36  ;;  %v1267_v32 = vld [vmem:[%s19739_s9 + $0x1a08] sm:$0x3] }
  0xa7   : > { %4846 = vmatpush.xpose.msrb.mxu3 %v481_v39  ;;  %4806 = vmatpush.xpose.msrb.mxu1 %v479_v40  ;;  %v262_v39 = vld [vmem:[%s19732_s7 + $0xa0] sm:$0xff]  ;;  %v501_v40 = vld [vmem:[%s19739_s9 + $0x218] sm:$0xff] }
  0xaa   : > { %4905 = vmatpush.xpose.msra.mxu2 %v1252_v41  ;;  %4865 = vmatpush.xpose.msra.mxu0 %v1250_v42  ;;  %v499_v41 = vld [vmem:[%s19739_s9 + $0x208] sm:$0xff]  ;;  %v1272_v42 = vld [vmem:[%s19739_s9 + $0x1a30] sm:$0x3] }
  0xab   : > { %4925 = vmatpush.xpose.msra.mxu3 %v1253_v43  ;;  %4885 = vmatpush.xpose.msra.mxu1 %v1251_v44  ;;  %v1270_v43 = vld [vmem:[%s19739_s9 + $0x1a20] sm:$0x3]  ;;  %v1273_v44 = vld [vmem:[%s19739_s9 + $0x1a38] sm:$0x3] }
  0xac   : > { %4827 = vmatmul.f32.vlgmr.msrb.gmra.mxu2 %v19880_v7  ;;  %4787 = vmatmul.f32.vlgmr.msrb.gmra.mxu0 %v19882_v8  ;;  %v492_v7 = vld [vmem:[%s19739_s9 + $0x1d0] sm:$0xff]  ;;  %v19985_v8 = vld.sshfl [vmem:[#allocation1 + $0x10] sm:$0xff pattern:$0x73625140] }
  0xad   : > { %4847 = vmatmul.f32.vlgmr.msrb.gmra.mxu3 %v19884_v9  ;;  %4807 = vmatmul.f32.vlgmr.msrb.gmra.mxu1 %v19887_v11  ;;  %v19987_v9 = vld.sshfl [vmem:[#allocation1] sm:$0xff pattern:$0x73625140]  ;;  %v490_v11 = vld [vmem:[%s19739_s9 + $0x1c0] sm:$0xff] }
  0xae   : > { %4906 = vmatpush.xpose.msra.mxu2 %v484_v45  ;;  %4866 = vmatpush.xpose.msra.mxu0 %v482_v46  ;;  %2253 = vst [vmem:[#allocation1] ss:$4 sm:$0xff] %v260_v13  ;;  %v1271_v45 = vld [vmem:[%s19739_s9 + $0x1a28] sm:$0x3] }
  0xaf   : > { %4926 = vmatpush.xpose.msra.mxu3 %v485_v47  ;;  %4886 = vmatpush.xpose.msra.mxu1 %v483_v48  ;;  %v504_v47 = vld [vmem:[%s19739_s9 + $0x230] sm:$0xff]  ;;  %v20048_v48 = vld.sshfl [vmem:[#allocation1 + $0x30] sm:$0xff pattern:$0x73625140] }
  0xb0   : > { %v20055_v53 = vld.sshfl [vmem:[#allocation1 + $0x28] sm:$0xff pattern:$0x73625140]  ;;  %v507_v13 = vld [vmem:[%s19739_s9 + $0x248] sm:$0xff] }
  0xb2   : > { %4985 = vmatpush.xpose.msrb.mxu2 %v1256_v49  ;;  %4945 = vmatpush.xpose.msrb.mxu0 %v1254_v50  ;;  %v20050_v50 = vld.sshfl [vmem:[#allocation1 + $0x20] sm:$0xff pattern:$0x73625140] }
  0xb3   : > { %5005 = vmatpush.xpose.msrb.mxu3 %v1257_v51  ;;  %4965 = vmatpush.xpose.msrb.mxu1 %v1255_v52  ;;  %v20052_v51 = vld.sshfl [vmem:[#allocation1 + $0x38] sm:$0xff pattern:$0x73625140]  ;;  %v502_v52 = vld [vmem:[%s19739_s9 + $0x220] sm:$0xff] }
  0xb4   : > { %4907 = vmatmul.f32.vlgmr.msra.gmra.mxu2 %v19913_v28  ;;  %4867 = vmatmul.f32.vlgmr.msra.gmra.mxu0 %v19915_v29  ;;  %v495_v28 = vld [vmem:[%s19739_s9 + $0x1e8] sm:$0xff]  ;;  %v1268_v29 = vld [vmem:[%s19739_s9 + $0x1a10] sm:$0x3] }
  0xb5   : > { %4927 = vmatmul.f32.vlgmr.msra.gmra.mxu3 %v19917_v30  ;;  %4887 = vmatmul.f32.vlgmr.msra.gmra.mxu1 %v19919_v31  ;;  %v1266_v30 = vld [vmem:[%s19739_s9 + $0x1a00] sm:$0x3]  ;;  %v1269_v31 = vld [vmem:[%s19739_s9 + $0x1a18] sm:$0x3] }
  0xb6   : > { %4986 = vmatpush.xpose.msrb.mxu2 %v488_v58  ;;  %4946 = vmatpush.xpose.msrb.mxu0 %v486_v62  ;;  %v20031_v36 = vld.sshfl [vmem:[#allocation1 + $0x18] sm:$0xff pattern:$0x73625140]  ;;  %v20034_v38 = vld.sshfl [vmem:[#allocation1 + $0x8] sm:$0xff pattern:$0x73625140] }
  0xb7   : > { %5006 = vmatpush.xpose.msrb.mxu3 %v489_v1  ;;  %4966 = vmatpush.xpose.msrb.mxu1 %v487_v2  ;;  %v1274_v58 = vld [vmem:[%s19739_s9 + $0x1a40] sm:$0x3]  ;;  %v508_v2 = vld [vmem:[%s19739_s9 + $0x250] sm:$0xff] }
  0xba   : > { %5065 = vmatpush.xpose.msra.mxu2 %v1260_v3  ;;  %5025 = vmatpush.xpose.msra.mxu0 %v1258_v4 }
  0xbb   : > { %5085 = vmatpush.xpose.msra.mxu3 %v1261_v5  ;;  %5045 = vmatpush.xpose.msra.mxu1 %v1259_v6 }
  0xbc   : > { %4987 = vmatmul.f32.vlgmr.msrb.gmra.mxu2 %v19922_v33  ;;  %4947 = vmatmul.f32.vlgmr.msrb.gmra.mxu0 %v19924_v34  ;;  %v500_v33 = vld [vmem:[%s19739_s9 + $0x210] sm:$0xff]  ;;  %v20027_v34 = vld.sshfl [vmem:[#allocation1 + $0x10] sm:$0xff pattern:$0x73625140] }
  0xbd   : > { %5007 = vmatmul.f32.vlgmr.msrb.gmra.mxu3 %v19926_v35  ;;  %4967 = vmatmul.f32.vlgmr.msrb.gmra.mxu1 %v19929_v37  ;;  %v20029_v35 = vld.sshfl [vmem:[#allocation1] sm:$0xff pattern:$0x73625140]  ;;  %v498_v37 = vld [vmem:[%s19739_s9 + $0x200] sm:$0xff] }
  0xbe   : > { %5066 = vmatpush.xpose.msra.mxu2 %v492_v7  ;;  %5026 = vmatpush.xpose.msra.mxu0 %v490_v11  ;;  %2263 = vst [vmem:[#allocation1] ss:$4 sm:$0xff] %v262_v39  ;;  %v1284_v39 = vld [vmem:[%s19739_s9 + $0x1a90] sm:$0x3] }
  0xbf   : > { %5086 = vmatpush.xpose.msra.mxu3 %v493_v14  ;;  %5046 = vmatpush.xpose.msra.mxu1 %v491_v15  ;;  %v1280_v14 = vld [vmem:[%s19739_s9 + $0x1a70] sm:$0x3]  ;;  %v1278_v15 = vld [vmem:[%s19739_s9 + $0x1a60] sm:$0x3] }
  0xc2   : > { %5145 = vmatpush.xpose.msrb.mxu2 %v1264_v16  ;;  %5105 = vmatpush.xpose.msrb.mxu0 %v1262_v17  ;;  %v1281_v17 = vld [vmem:[%s19739_s9 + $0x1a78] sm:$0x3] }
  0xc3   : > { %5165 = vmatpush.xpose.msrb.mxu3 %v1265_v18  ;;  %5125 = vmatpush.xpose.msrb.mxu1 %v1263_v19  ;;  %v1279_v18 = vld [vmem:[%s19739_s9 + $0x1a68] sm:$0x3] }
  0xc4   : > { %5067 = vmatmul.f32.vlgmr.msra.gmra.mxu2 %v19955_v54  ;;  %5027 = vmatmul.f32.vlgmr.msra.gmra.mxu0 %v19957_v55  ;;  %v263_v54 = vld [vmem:[%s19732_s7 + $0xa8] sm:$0xff]  ;;  %v505_v55 = vld [vmem:[%s19739_s9 + $0x238] sm:$0xff] }
  0xc5   : > { %5087 = vmatmul.f32.vlgmr.msra.gmra.mxu3 %v19959_v56  ;;  %5047 = vmatmul.f32.vlgmr.msra.gmra.mxu1 %v19961_v57  ;;  %v503_v56 = vld [vmem:[%s19739_s9 + $0x228] sm:$0xff]  ;;  %2264 = vst [vmem:[#allocation1 + $0x20] ss:$4 sm:$0xff] %v263_v54  ;;  %v1276_v57 = vld [vmem:[%s19739_s9 + $0x1a50] sm:$0x3]  ;;  %v514_v54 = vld [vmem:[%s19739_s9 + $0x280] sm:$0xff] }
  0xc6   : > { %5146 = vmatpush.xpose.msrb.mxu2 %v496_v20  ;;  %5106 = vmatpush.xpose.msrb.mxu0 %v494_v24  ;;  %v20069_v3 = vld.sshfl [vmem:[#allocation1 + $0x10] sm:$0xff pattern:$0x73625140]  ;;  %v20071_v6 = vld.sshfl [vmem:[#allocation1] sm:$0xff pattern:$0x73625140] }
  0xc7   : > { %5166 = vmatpush.xpose.msrb.mxu3 %v497_v27  ;;  %5126 = vmatpush.xpose.msrb.mxu1 %v495_v28  ;;  %v20073_v7 = vld.sshfl [vmem:[#allocation1 + $0x18] sm:$0xff pattern:$0x73625140] }
  0xca   : > { %5225 = vmatpush.xpose.msra.mxu2 %v1268_v29  ;;  %5185 = vmatpush.xpose.msra.mxu0 %v1266_v30  ;;  %v510_v29 = vld [vmem:[%s19739_s9 + $0x260] sm:$0xff] }
  0xcb   : > { %5245 = vmatpush.xpose.msra.mxu3 %v1269_v31  ;;  %5205 = vmatpush.xpose.msra.mxu1 %v1267_v32  ;;  %v265_v31 = vld [vmem:[%s19732_s7 + $0xb8] sm:$0xff] }
  0xcc   : > { %5147 = vmatmul.f32.vlgmr.msrb.gmra.mxu2 %v19964_v59  ;;  %5107 = vmatmul.f32.vlgmr.msrb.gmra.mxu0 %v19966_v60  ;;  %v1277_v60 = vld [vmem:[%s19739_s9 + $0x1a58] sm:$0x3]  ;;  %v20090_v24 = vld.sshfl [vmem:[#allocation1 + $0x30] sm:$0xff pattern:$0x73625140] }
  0xcd   : > { %5167 = vmatmul.f32.vlgmr.msrb.gmra.mxu3 %v19968_v61  ;;  %5127 = vmatmul.f32.vlgmr.msrb.gmra.mxu1 %v19971_v63  ;;  %v1275_v61 = vld [vmem:[%s19739_s9 + $0x1a48] sm:$0x3]  ;;  %v20092_v27 = vld.sshfl [vmem:[#allocation1 + $0x20] sm:$0xff pattern:$0x73625140] }
  0xce   : > { %5226 = vmatpush.xpose.msra.mxu2 %v500_v33  ;;  %5186 = vmatpush.xpose.msra.mxu0 %v498_v37  ;;  %v20094_v28 = vld.sshfl [vmem:[#allocation1 + $0x38] sm:$0xff pattern:$0x73625140]  ;;  %v20097_v30 = vld.sshfl [vmem:[#allocation1 + $0x28] sm:$0xff pattern:$0x73625140] }
  0xcf   : > { %5246 = vmatpush.xpose.msra.mxu3 %v501_v40  ;;  %5206 = vmatpush.xpose.msra.mxu1 %v499_v41  ;;  %v513_v33 = vld [vmem:[%s19739_s9 + $0x278] sm:$0xff]  ;;  %v511_v37 = vld [vmem:[%s19739_s9 + $0x268] sm:$0xff]  ;;  %2274 = vst [vmem:[#allocation1 + $0x20] ss:$4 sm:$0xff] %v265_v31  ;;  %v1282_v40 = vld [vmem:[%s19739_s9 + $0x1a80] sm:$0x3] }
  0xd1   : > { %v3908_v46 = vpop.f32.mrf.mxu0 }
  0xd2   : > { %5305 = vmatpush.xpose.msrb.mxu2 %v1272_v42  ;;  %5265 = vmatpush.xpose.msrb.mxu0 %v1270_v43  ;;  %v3928_v49 = vpop.f32.mrf.mxu1  ;;  %v1285_v42 = vld [vmem:[%s19739_s9 + $0x1a98] sm:$0x3]  ;;  %v1283_v43 = vld [vmem:[%s19739_s9 + $0x1a88] sm:$0x3] }
  0xd3   : > { %5325 = vmatpush.xpose.msrb.mxu3 %v1273_v44  ;;  %5285 = vmatpush.xpose.msrb.mxu1 %v1271_v45  ;;  %v3929_v59 = vadd.f32 %v3928_v49, %v3908_v46 }
  0xd4   : > { %5227 = vmatmul.f32.vlgmr.msra.gmra.mxu2 %v19985_v8  ;;  %5187 = vmatmul.f32.vlgmr.msra.gmra.mxu0 %v19987_v9  ;;  %v506_v8 = vld [vmem:[%s19739_s9 + $0x240] sm:$0xff] }
  0xd5   : > { %5247 = vmatmul.f32.vlgmr.msra.gmra.mxu3 %v19989_v10  ;;  %5207 = vmatmul.f32.vlgmr.msra.gmra.mxu1 %v19992_v12  ;;  %v20076_v9 = vld.sshfl [vmem:[#allocation1 + $0x8] sm:$0xff pattern:$0x73625140]  ;;  %v264_v10 = vld [vmem:[%s19732_s7 + $0xb0] sm:$0xff] }
  0xd6   : > { %5306 = vmatpush.xpose.msrb.mxu2 %v504_v47  ;;  %5266 = vmatpush.xpose.msrb.mxu0 %v502_v52  ;;  %v509_v12 = vld [vmem:[%s19739_s9 + $0x258] sm:$0xff]  ;;  %2273 = vst [vmem:[#allocation1] ss:$4 sm:$0xff] %v264_v10  ;;  %v20136_v10 = vld.sshfl [vmem:[#allocation1 + $0x38] sm:$0xff pattern:$0x73625140] }
  0xd7   : > { %v3948_v62 = vpop.f32.mrf.mxu2  ;;  %5326 = vmatpush.xpose.msrb.mxu3 %v505_v55  ;;  %5286 = vmatpush.xpose.msrb.mxu1 %v503_v56  ;;  %v266_v56 = vld [vmem:[%s19732_s7 + $0xc0] sm:$0xff] }
  0xd8   : > { %v3949_v63 = vadd.f32 %v3948_v62, %v3929_v59  ;;  %v3968_v0 = vpop.f32.mrf.mxu3  ;;  %v515_v59 = vld [vmem:[%s19739_s9 + $0x288] sm:$0xff] }
  0xd9   : > { %v3988_v1 = vpop.f32.mrf.mxu0 }
  0xda   : > { %5385 = vmatpush.xpose.msra.mxu2 %v1276_v57  ;;  %5345 = vmatpush.xpose.msra.mxu0 %v1274_v58  ;;  %v3969_v4 = vadd.f32 %v3968_v0, %v3949_v63  ;;  %v4008_v5 = vpop.f32.mrf.mxu1  ;;  %v517_v58 = vld [vmem:[%s19739_s9 + $0x298] sm:$0xff]  ;;  %v1287_v0 = vld [vmem:[%s19739_s9 + $0x1aa8] sm:$0x3] }
  0xdb   : > { %5405 = vmatpush.xpose.msra.mxu3 %v1277_v60  ;;  %5365 = vmatpush.xpose.msra.mxu1 %v1275_v61  ;;  %v1288_v60 = vld [vmem:[%s19739_s9 + $0x1ab0] sm:$0x3]  ;;  %v1286_v61 = vld [vmem:[%s19739_s9 + $0x1aa0] sm:$0x3]  ;;  %v1289_v63 = vld [vmem:[%s19739_s9 + $0x1ab8] sm:$0x3] }
  0xdc   : > { %v3989_v11 = vadd.f32 %v3988_v1, %v3969_v4  ;;  %5307 = vmatmul.f32.vlgmr.msrb.gmra.mxu2 %v20006_v21  ;;  %5267 = vmatmul.f32.vlgmr.msrb.gmra.mxu0 %v20008_v22 }
  0xdd   : > { %5327 = vmatmul.f32.vlgmr.msrb.gmra.mxu3 %v20010_v23  ;;  %5287 = vmatmul.f32.vlgmr.msrb.gmra.mxu1 %v20013_v25  ;;  %v512_v23 = vld [vmem:[%s19739_s9 + $0x270] sm:$0xff]  ;;  %v20111_v45 = vld.sshfl [vmem:[#allocation1 + $0x10] sm:$0xff pattern:$0x73625140] }
  0xde   : > { %v4009_v16 = vadd.f32 %v4008_v5, %v3989_v11  ;;  %5386 = vmatpush.xpose.msra.mxu2 %v508_v2  ;;  %5346 = vmatpush.xpose.msra.mxu0 %v506_v8  ;;  %v20113_v49 = vld.sshfl [vmem:[#allocation1] sm:$0xff pattern:$0x73625140]  ;;  %v20115_v52 = vld.sshfl [vmem:[#allocation1 + $0x18] sm:$0xff pattern:$0x73625140] }
  0xdf   : > { %v4028_v19 = vpop.f32.mrf.mxu2  ;;  %5406 = vmatpush.xpose.msra.mxu3 %v509_v12  ;;  %5366 = vmatpush.xpose.msra.mxu1 %v507_v13  ;;  %v20118_v55 = vld.sshfl [vmem:[#allocation1 + $0x8] sm:$0xff pattern:$0x73625140]  ;;  %v20132_v2 = vld.sshfl [vmem:[#allocation1 + $0x30] sm:$0xff pattern:$0x73625140] }
  0xe0   : > { %v4029_v20 = vadd.f32 %v4028_v19, %v4009_v16  ;;  %v4048_v21 = vpop.f32.mrf.mxu3  ;;  %2283 = vst [vmem:[#allocation1] ss:$4 sm:$0xff] %v266_v56  ;;  %v20134_v8 = vld.sshfl [vmem:[#allocation1 + $0x20] sm:$0xff pattern:$0x73625140]  ;;  %v518_v11 = vld [vmem:[%s19739_s9 + $0x2a0] sm:$0xff] }
  0xe1   : > { %v4068_v22 = vpop.f32.mrf.mxu0  ;;  %v20139_v12 = vld.sshfl [vmem:[#allocation1 + $0x28] sm:$0xff pattern:$0x73625140]  ;;  %v267_v13 = vld [vmem:[%s19732_s7 + $0xc8] sm:$0xff] }
  0xe2   : > { %5465 = vmatpush.xpose.msrb.mxu2 %v1280_v14  ;;  %5425 = vmatpush.xpose.msrb.mxu0 %v1278_v15  ;;  %v4049_v25 = vadd.f32 %v4048_v21, %v4029_v20  ;;  %v4088_v26 = vpop.f32.mrf.mxu1  ;;  %v521_v15 = vld [vmem:[%s19739_s9 + $0x2b8] sm:$0xff]  ;;  %v519_v16 = vld [vmem:[%s19739_s9 + $0x2a8] sm:$0xff]  ;;  %2284 = vst [vmem:[#allocation1 + $0x20] ss:$4 sm:$0xff] %v267_v13 }
  0xe3   : > { %5485 = vmatpush.xpose.msrb.mxu3 %v1281_v17  ;;  %5445 = vmatpush.xpose.msrb.mxu1 %v1279_v18  ;;  %v1292_v17 = vld [vmem:[%s19739_s9 + $0x1ad0] sm:$0x3]  ;;  %v1290_v18 = vld [vmem:[%s19739_s9 + $0x1ac0] sm:$0x3]  ;;  %v1293_v20 = vld [vmem:[%s19739_s9 + $0x1ad8] sm:$0x3] }
  0xe4   : > { %v4069_v32 = vadd.f32 %v4068_v22, %v4049_v25  ;;  %5387 = vmatmul.f32.vlgmr.msra.gmra.mxu2 %v20027_v34  ;;  %5347 = vmatmul.f32.vlgmr.msra.gmra.mxu0 %v20029_v35  ;;  %v1291_v21 = vld [vmem:[%s19739_s9 + $0x1ac8] sm:$0x3] }
  0xe5   : > { %5407 = vmatmul.f32.vlgmr.msra.gmra.mxu3 %v20031_v36  ;;  %5367 = vmatmul.f32.vlgmr.msra.gmra.mxu1 %v20034_v38  ;;  %v516_v38 = vld [vmem:[%s19739_s9 + $0x290] sm:$0xff] }
  0xe6   : > { %v4089_v41 = vadd.f32 %v4088_v26, %v4069_v32  ;;  %5466 = vmatpush.xpose.msrb.mxu2 %v512_v23  ;;  %5426 = vmatpush.xpose.msrb.mxu0 %v510_v29  ;;  %v522_v32 = vld [vmem:[%s19739_s9 + $0x2c0] sm:$0xff] }
  0xe7   : > { %v4108_v44 = vpop.f32.mrf.mxu2  ;;  %5486 = vmatpush.xpose.msrb.mxu3 %v513_v33  ;;  %5446 = vmatpush.xpose.msrb.mxu1 %v511_v37  ;;  %v20153_v23 = vld.sshfl [vmem:[#allocation1 + $0x10] sm:$0xff pattern:$0x73625140]  ;;  %v20155_v29 = vld.sshfl [vmem:[#allocation1] sm:$0xff pattern:$0x73625140] }
  0xe8   : > { %v4109_v34 = vadd.f32 %v4108_v44, %v4089_v41  ;;  %v4128_v35 = vpop.f32.mrf.mxu3  ;;  %v20157_v31 = vld.sshfl [vmem:[#allocation1 + $0x18] sm:$0xff pattern:$0x73625140]  ;;  %v20160_v33 = vld.sshfl [vmem:[#allocation1 + $0x8] sm:$0xff pattern:$0x73625140] }
  0xe9   : > { %v4148_v36 = vpop.f32.mrf.mxu0  ;;  %v268_v37 = vld [vmem:[%s19732_s7 + $0xd0] sm:$0xff]  ;;  %v523_v41 = vld [vmem:[%s19739_s9 + $0x2c8] sm:$0xff] }
  0xea   : > { %5545 = vmatpush.xpose.msra.mxu2 %v1284_v39  ;;  %5505 = vmatpush.xpose.msra.mxu0 %v1282_v40  ;;  %v4129_v46 = vadd.f32 %v4128_v35, %v4109_v34  ;;  %v4168_v47 = vpop.f32.mrf.mxu1  ;;  %v525_v40 = vld [vmem:[%s19739_s9 + $0x2d8] sm:$0xff]  ;;  %2293 = vst [vmem:[#allocation1] ss:$4 sm:$0xff] %v268_v37  ;;  %v1295_v35 = vld [vmem:[%s19739_s9 + $0x1ae8] sm:$0x3] }
  0xeb   : > { %5565 = vmatpush.xpose.msra.mxu3 %v1285_v42  ;;  %5525 = vmatpush.xpose.msra.mxu1 %v1283_v43  ;;  %v1296_v42 = vld [vmem:[%s19739_s9 + $0x1af0] sm:$0x3]  ;;  %v1294_v43 = vld [vmem:[%s19739_s9 + $0x1ae0] sm:$0x3]  ;;  %v1297_v34 = vld [vmem:[%s19739_s9 + $0x1af8] sm:$0x3] }
  0xec   : > { %v4149_v57 = vadd.f32 %v4148_v36, %v4129_v46  ;;  %5467 = vmatmul.f32.vlgmr.msrb.gmra.mxu2 %v20048_v48  ;;  %5427 = vmatmul.f32.vlgmr.msrb.gmra.mxu0 %v20050_v50  ;;  %v20178_v56 = vld.sshfl [vmem:[#allocation1 + $0x38] sm:$0xff pattern:$0x73625140] }
  0xed   : > { %5487 = vmatmul.f32.vlgmr.msrb.gmra.mxu3 %v20052_v51  ;;  %5447 = vmatmul.f32.vlgmr.msrb.gmra.mxu1 %v20055_v53  ;;  %v520_v53 = vld [vmem:[%s19739_s9 + $0x2b0] sm:$0xff] }
  0xee   : > { %v4169_v62 = vadd.f32 %v4168_v47, %v4149_v57  ;;  %5546 = vmatpush.xpose.msra.mxu2 %v516_v38  ;;  %5506 = vmatpush.xpose.msra.mxu0 %v514_v54  ;;  %v20174_v38 = vld.sshfl [vmem:[#allocation1 + $0x30] sm:$0xff pattern:$0x73625140]  ;;  %v20176_v54 = vld.sshfl [vmem:[#allocation1 + $0x20] sm:$0xff pattern:$0x73625140] }
  0xef   : > { %v4188_v1 = vpop.f32.mrf.mxu2  ;;  %5566 = vmatpush.xpose.msra.mxu3 %v517_v58  ;;  %5526 = vmatpush.xpose.msra.mxu1 %v515_v59  ;;  %v526_v57 = vld [vmem:[%s19739_s9 + $0x2e0] sm:$0xff]  ;;  %v269_v59 = vld [vmem:[%s19732_s7 + $0xd8] sm:$0xff] }
  0xf0   : > { %v4189_v48 = vadd.f32 %v4188_v1, %v4169_v62  ;;  %v4208_v50 = vpop.f32.mrf.mxu3  ;;  %v20181_v58 = vld.sshfl [vmem:[#allocation1 + $0x28] sm:$0xff pattern:$0x73625140]  ;;  %v527_v62 = vld [vmem:[%s19739_s9 + $0x2e8] sm:$0xff] }
  0xf1   : > { %v4228_v51 = vpop.f32.mrf.mxu0  ;;  %2294 = vst [vmem:[#allocation1 + $0x20] ss:$4 sm:$0xff] %v269_v59  ;;  %v20199_v13 = vld.sshfl [vmem:[#allocation1 + $0x18] sm:$0xff pattern:$0x73625140] }
  0xf2   : > { %5625 = vmatpush.xpose.msrb.mxu2 %v1288_v60  ;;  %5585 = vmatpush.xpose.msrb.mxu0 %v1286_v61  ;;  %v4209_v4 = vadd.f32 %v4208_v50, %v4189_v48  ;;  %v4248_v5 = vpop.f32.mrf.mxu1  ;;  %v529_v61 = vld [vmem:[%s19739_s9 + $0x2f8] sm:$0xff]  ;;  %v1299_v50 = vld [vmem:[%s19739_s9 + $0x1b08] sm:$0x3] }
  0xf3   : > { %5645 = vmatpush.xpose.msrb.mxu3 %v1289_v63  ;;  %5605 = vmatpush.xpose.msrb.mxu1 %v1287_v0  ;;  %v1300_v63 = vld [vmem:[%s19739_s9 + $0x1b10] sm:$0x3]  ;;  %v1298_v0 = vld [vmem:[%s19739_s9 + $0x1b00] sm:$0x3]  ;;  %v1301_v48 = vld [vmem:[%s19739_s9 + $0x1b18] sm:$0x3] }
  0xf4   : > { %v4229_v14 = vadd.f32 %v4228_v51, %v4209_v4  ;;  %5547 = vmatmul.f32.vlgmr.msra.gmra.mxu2 %v20069_v3  ;;  %5507 = vmatmul.f32.vlgmr.msra.gmra.mxu0 %v20071_v6 }
  0xf5   : > { %5567 = vmatmul.f32.vlgmr.msra.gmra.mxu3 %v20073_v7  ;;  %5527 = vmatmul.f32.vlgmr.msra.gmra.mxu1 %v20076_v9  ;;  %v524_v9 = vld [vmem:[%s19739_s9 + $0x2d0] sm:$0xff] }
  0xf6   : > { %v4249_v19 = vadd.f32 %v4248_v5, %v4229_v14  ;;  %5626 = vmatpush.xpose.msrb.mxu2 %v520_v53  ;;  %5586 = vmatpush.xpose.msrb.mxu0 %v518_v11  ;;  %v20195_v53 = vld.sshfl [vmem:[#allocation1 + $0x10] sm:$0xff pattern:$0x73625140]  ;;  %v20197_v11 = vld.sshfl [vmem:[#allocation1] sm:$0xff pattern:$0x73625140] }
  0xf7   : > { %v4268_v22 = vpop.f32.mrf.mxu2  ;;  %5646 = vmatpush.xpose.msrb.mxu3 %v521_v15  ;;  %5606 = vmatpush.xpose.msrb.mxu1 %v519_v16  ;;  %v530_v14 = vld [vmem:[%s19739_s9 + $0x300] sm:$0xff] }
  0xf8   : > { %v4269_v3 = vadd.f32 %v4268_v22, %v4249_v19  ;;  %v4288_v6 = vpop.f32.mrf.mxu3  ;;  %v20202_v15 = vld.sshfl [vmem:[#allocation1 + $0x8] sm:$0xff pattern:$0x73625140]  ;;  %v531_v19 = vld [vmem:[%s19739_s9 + $0x308] sm:$0xff] }
  0xf9   : > { %v4308_v7 = vpop.f32.mrf.mxu0  ;;  %v270_v16 = vld [vmem:[%s19732_s7 + $0xe0] sm:$0xff]  ;;  %v20220_v37 = vld.sshfl [vmem:[#allocation1 + $0x38] sm:$0xff pattern:$0x73625140] }
  0xfa   : > { %5705 = vmatpush.xpose.msra.mxu2 %v1292_v17  ;;  %5665 = vmatpush.xpose.msra.mxu0 %v1290_v18  ;;  %v4289_v25 = vadd.f32 %v4288_v6, %v4269_v3  ;;  %v4328_v26 = vpop.f32.mrf.mxu1  ;;  %v533_v18 = vld [vmem:[%s19739_s9 + $0x318] sm:$0xff]  ;;  %2303 = vst [vmem:[#allocation1] ss:$4 sm:$0xff] %v270_v16  ;;  %v1303_v6 = vld [vmem:[%s19739_s9 + $0x1b28] sm:$0x3] }
  0xfb   : > { %5725 = vmatpush.xpose.msra.mxu3 %v1293_v20  ;;  %5685 = vmatpush.xpose.msra.mxu1 %v1291_v21  ;;  %v1304_v20 = vld [vmem:[%s19739_s9 + $0x1b30] sm:$0x3]  ;;  %v1302_v21 = vld [vmem:[%s19739_s9 + $0x1b20] sm:$0x3]  ;;  %v1305_v3 = vld [vmem:[%s19739_s9 + $0x1b38] sm:$0x3] }
  0xfc   : > { %v4309_v39 = vadd.f32 %v4308_v7, %v4289_v25  ;;  %5627 = vmatmul.f32.vlgmr.msrb.gmra.mxu2 %v20090_v24  ;;  %5587 = vmatmul.f32.vlgmr.msrb.gmra.mxu0 %v20092_v27 }
  0xfd   : > { %5647 = vmatmul.f32.vlgmr.msrb.gmra.mxu3 %v20094_v28  ;;  %5607 = vmatmul.f32.vlgmr.msrb.gmra.mxu1 %v20097_v30  ;;  %v528_v30 = vld [vmem:[%s19739_s9 + $0x2f0] sm:$0xff] }
  0xfe   : > { %v4329_v44 = vadd.f32 %v4328_v26, %v4309_v39  ;;  %5706 = vmatpush.xpose.msra.mxu2 %v524_v9  ;;  %5666 = vmatpush.xpose.msra.mxu0 %v522_v32  ;;  %v20216_v9 = vld.sshfl [vmem:[#allocation1 + $0x30] sm:$0xff pattern:$0x73625140]  ;;  %v20218_v32 = vld.sshfl [vmem:[#allocation1 + $0x20] sm:$0xff pattern:$0x73625140] }
  0xff   : > { %v4348_v36 = vpop.f32.mrf.mxu2  ;;  %5726 = vmatpush.xpose.msra.mxu3 %v525_v40  ;;  %5686 = vmatpush.xpose.msra.mxu1 %v523_v41  ;;  %v534_v39 = vld [vmem:[%s19739_s9 + $0x320] sm:$0xff]  ;;  %v271_v41 = vld [vmem:[%s19732_s7 + $0xe8] sm:$0xff] }
 0x100   : > { %v4349_v24 = vadd.f32 %v4348_v36, %v4329_v44  ;;  %v4368_v27 = vpop.f32.mrf.mxu3  ;;  %v20223_v40 = vld.sshfl [vmem:[#allocation1 + $0x28] sm:$0xff pattern:$0x73625140]  ;;  %v535_v44 = vld [vmem:[%s19739_s9 + $0x328] sm:$0xff] }
 0x101   : > { %v4388_v28 = vpop.f32.mrf.mxu0  ;;  %2304 = vst [vmem:[#allocation1 + $0x20] ss:$4 sm:$0xff] %v271_v41  ;;  %v20241_v59 = vld.sshfl [vmem:[#allocation1 + $0x18] sm:$0xff pattern:$0x73625140] }
 0x102   : > { %5785 = vmatpush.xpose.msrb.mxu2 %v1296_v42  ;;  %5745 = vmatpush.xpose.msrb.mxu0 %v1294_v43  ;;  %v4369_v46 = vadd.f32 %v4368_v27, %v4349_v24  ;;  %v4408_v47 = vpop.f32.mrf.mxu1  ;;  %v537_v43 = vld [vmem:[%s19739_s9 + $0x338] sm:$0xff]  ;;  %v1307_v27 = vld [vmem:[%s19739_s9 + $0x1b48] sm:$0x3] }
 0x103   : > { %5805 = vmatpush.xpose.msrb.mxu3 %v1297_v34  ;;  %5765 = vmatpush.xpose.msrb.mxu1 %v1295_v35  ;;  %v1308_v34 = vld [vmem:[%s19739_s9 + $0x1b50] sm:$0x3]  ;;  %v1306_v35 = vld [vmem:[%s19739_s9 + $0x1b40] sm:$0x3]  ;;  %v1309_v24 = vld [vmem:[%s19739_s9 + $0x1b58] sm:$0x3] }
 0x104   : > { %v4389_v60 = vadd.f32 %v4388_v28, %v4369_v46  ;;  %5707 = vmatmul.f32.vlgmr.msra.gmra.mxu2 %v20111_v45  ;;  %5667 = vmatmul.f32.vlgmr.msra.gmra.mxu0 %v20113_v49 }
 0x105   : > { %5727 = vmatmul.f32.vlgmr.msra.gmra.mxu3 %v20115_v52  ;;  %5687 = vmatmul.f32.vlgmr.msra.gmra.mxu1 %v20118_v55  ;;  %v532_v55 = vld [vmem:[%s19739_s9 + $0x310] sm:$0xff] }
 0x106   : > { %v4409_v1 = vadd.f32 %v4408_v47, %v4389_v60  ;;  %5786 = vmatpush.xpose.msrb.mxu2 %v528_v30  ;;  %5746 = vmatpush.xpose.msrb.mxu0 %v526_v57  ;;  %v20237_v30 = vld.sshfl [vmem:[#allocation1 + $0x10] sm:$0xff pattern:$0x73625140]  ;;  %v20239_v57 = vld.sshfl [vmem:[#allocation1] sm:$0xff pattern:$0x73625140] }
 0x107   : > { %v4428_v51 = vpop.f32.mrf.mxu2  ;;  %5806 = vmatpush.xpose.msrb.mxu3 %v529_v61  ;;  %5766 = vmatpush.xpose.msrb.mxu1 %v527_v62  ;;  %v538_v60 = vld [vmem:[%s19739_s9 + $0x340] sm:$0xff]  ;;  %v272_v62 = vld [vmem:[%s19732_s7 + $0xf0] sm:$0xff] }
 0x108   : > { %v4429_v45 = vadd.f32 %v4428_v51, %v4409_v1  ;;  %v4448_v49 = vpop.f32.mrf.mxu3  ;;  %v20244_v61 = vld.sshfl [vmem:[#allocation1 + $0x8] sm:$0xff pattern:$0x73625140]  ;;  %v539_v1 = vld [vmem:[%s19739_s9 + $0x348] sm:$0xff] }
 0x109   : > { %v4468_v52 = vpop.f32.mrf.mxu0  ;;  %2313 = vst [vmem:[#allocation1] ss:$4 sm:$0xff] %v272_v62  ;;  %v20262_v16 = vld.sshfl [vmem:[#allocation1 + $0x38] sm:$0xff pattern:$0x73625140] }
 0x10a   : > { %5865 = vmatpush.xpose.msra.mxu2 %v1300_v63  ;;  %5825 = vmatpush.xpose.msra.mxu0 %v1298_v0  ;;  %v4449_v4 = vadd.f32 %v4448_v49, %v4429_v45  ;;  %v4488_v5 = vpop.f32.mrf.mxu1  ;;  %v541_v0 = vld [vmem:[%s19739_s9 + $0x358] sm:$0xff]  ;;  %v1311_v49 = vld [vmem:[%s19739_s9 + $0x1b68] sm:$0x3] }
 0x10b   : > { %5885 = vmatpush.xpose.msra.mxu3 %v1301_v48  ;;  %5845 = vmatpush.xpose.msra.mxu1 %v1299_v50  ;;  %v1312_v48 = vld [vmem:[%s19739_s9 + $0x1b70] sm:$0x3]  ;;  %v1310_v50 = vld [vmem:[%s19739_s9 + $0x1b60] sm:$0x3]  ;;  %v1313_v45 = vld [vmem:[%s19739_s9 + $0x1b78] sm:$0x3] }
 0x10c   : > { %v4469_v17 = vadd.f32 %v4468_v52, %v4449_v4  ;;  %5787 = vmatmul.f32.vlgmr.msrb.gmra.mxu2 %v20132_v2  ;;  %5747 = vmatmul.f32.vlgmr.msrb.gmra.mxu0 %v20134_v8 }
 0x10d   : > { %5807 = vmatmul.f32.vlgmr.msrb.gmra.mxu3 %v20136_v10  ;;  %5767 = vmatmul.f32.vlgmr.msrb.gmra.mxu1 %v20139_v12  ;;  %v536_v12 = vld [vmem:[%s19739_s9 + $0x330] sm:$0xff] }
 0x10e   : > { %v4489_v22 = vadd.f32 %v4488_v5, %v4469_v17  ;;  %5866 = vmatpush.xpose.msra.mxu2 %v532_v55  ;;  %5826 = vmatpush.xpose.msra.mxu0 %v530_v14  ;;  %v20258_v55 = vld.sshfl [vmem:[#allocation1 + $0x30] sm:$0xff pattern:$0x73625140]  ;;  %v20260_v14 = vld.sshfl [vmem:[#allocation1 + $0x20] sm:$0xff pattern:$0x73625140] }
 0x10f   : > { %v4508_v7 = vpop.f32.mrf.mxu2  ;;  %5886 = vmatpush.xpose.msra.mxu3 %v533_v18  ;;  %5846 = vmatpush.xpose.msra.mxu1 %v531_v19  ;;  %v542_v17 = vld [vmem:[%s19739_s9 + $0x360] sm:$0xff]  ;;  %v273_v19 = vld [vmem:[%s19732_s7 + $0xf8] sm:$0xff] }
 0x110   : > { %v4509_v2 = vadd.f32 %v4508_v7, %v4489_v22  ;;  %v4528_v8 = vpop.f32.mrf.mxu3  ;;  %v20265_v18 = vld.sshfl [vmem:[#allocation1 + $0x28] sm:$0xff pattern:$0x73625140]  ;;  %v543_v22 = vld [vmem:[%s19739_s9 + $0x368] sm:$0xff] }
 0x111   : > { %v4548_v10 = vpop.f32.mrf.mxu0  ;;  %2314 = vst [vmem:[#allocation1 + $0x20] ss:$4 sm:$0xff] %v273_v19  ;;  %v20283_v41 = vld.sshfl [vmem:[#allocation1 + $0x18] sm:$0xff pattern:$0x73625140] }
 0x112   : > { %5945 = vmatpush.xpose.msrb.mxu2 %v1304_v20  ;;  %5905 = vmatpush.xpose.msrb.mxu0 %v1302_v21  ;;  %v4529_v25 = vadd.f32 %v4528_v8, %v4509_v2  ;;  %v4568_v26 = vpop.f32.mrf.mxu1  ;;  %v545_v21 = vld [vmem:[%s19739_s9 + $0x378] sm:$0xff]  ;;  %v1315_v8 = vld [vmem:[%s19739_s9 + $0x1b88] sm:$0x3] }
 0x113   : > { %5965 = vmatpush.xpose.msrb.mxu3 %v1305_v3  ;;  %5925 = vmatpush.xpose.msrb.mxu1 %v1303_v6  ;;  %v1316_v3 = vld [vmem:[%s19739_s9 + $0x1b90] sm:$0x3]  ;;  %v1314_v6 = vld [vmem:[%s19739_s9 + $0x1b80] sm:$0x3]  ;;  %v1317_v2 = vld [vmem:[%s19739_s9 + $0x1b98] sm:$0x3] }
 0x114   : > { %v4549_v42 = vadd.f32 %v4548_v10, %v4529_v25  ;;  %5867 = vmatmul.f32.vlgmr.msra.gmra.mxu2 %v20153_v23  ;;  %5827 = vmatmul.f32.vlgmr.msra.gmra.mxu0 %v20155_v29 }
 0x115   : > { %5887 = vmatmul.f32.vlgmr.msra.gmra.mxu3 %v20157_v31  ;;  %5847 = vmatmul.f32.vlgmr.msra.gmra.mxu1 %v20160_v33  ;;  %v540_v33 = vld [vmem:[%s19739_s9 + $0x350] sm:$0xff] }
 0x116   : > { %v4569_v36 = vadd.f32 %v4568_v26, %v4549_v42  ;;  %5946 = vmatpush.xpose.msrb.mxu2 %v536_v12  ;;  %5906 = vmatpush.xpose.msrb.mxu0 %v534_v39  ;;  %v20279_v12 = vld.sshfl [vmem:[#allocation1 + $0x10] sm:$0xff pattern:$0x73625140]  ;;  %v20281_v39 = vld.sshfl [vmem:[#allocation1] sm:$0xff pattern:$0x73625140] }
 0x117   : > { %v4588_v28 = vpop.f32.mrf.mxu2  ;;  %5966 = vmatpush.xpose.msrb.mxu3 %v537_v43  ;;  %5926 = vmatpush.xpose.msrb.mxu1 %v535_v44  ;;  %v546_v42 = vld [vmem:[%s19739_s9 + $0x380] sm:$0xff] }
 0x118   : > { %v4589_v23 = vadd.f32 %v4588_v28, %v4569_v36  ;;  %v4608_v29 = vpop.f32.mrf.mxu3  ;;  %v20286_v43 = vld.sshfl [vmem:[#allocation1 + $0x8] sm:$0xff pattern:$0x73625140]  ;;  %v547_v36 = vld [vmem:[%s19739_s9 + $0x388] sm:$0xff] }
 0x119   : > { %v4628_v31 = vpop.f32.mrf.mxu0  ;;  %v274_v44 = vld [vmem:[%s19732_s7 + $0x100] sm:$0xff]  ;;  %v20304_v62 = vld.sshfl [vmem:[#allocation1 + $0x38] sm:$0xff pattern:$0x73625140] }
 0x11a   : > { %6025 = vmatpush.xpose.msra.mxu2 %v1308_v34  ;;  %5985 = vmatpush.xpose.msra.mxu0 %v1306_v35  ;;  %v4609_v46 = vadd.f32 %v4608_v29, %v4589_v23  ;;  %v4648_v47 = vpop.f32.mrf.mxu1  ;;  %v549_v35 = vld [vmem:[%s19739_s9 + $0x398] sm:$0xff]  ;;  %2323 = vst [vmem:[#allocation1] ss:$4 sm:$0xff] %v274_v44  ;;  %v1319_v29 = vld [vmem:[%s19739_s9 + $0x1ba8] sm:$0x3] }
 0x11b   : > { %6045 = vmatpush.xpose.msra.mxu3 %v1309_v24  ;;  %6005 = vmatpush.xpose.msra.mxu1 %v1307_v27  ;;  %v1320_v24 = vld [vmem:[%s19739_s9 + $0x1bb0] sm:$0x3]  ;;  %v1318_v27 = vld [vmem:[%s19739_s9 + $0x1ba0] sm:$0x3]  ;;  %v1321_v23 = vld [vmem:[%s19739_s9 + $0x1bb8] sm:$0x3] }
 0x11c   : > { %v4629_v63 = vadd.f32 %v4628_v31, %v4609_v46  ;;  %5947 = vmatmul.f32.vlgmr.msrb.gmra.mxu2 %v20174_v38  ;;  %5907 = vmatmul.f32.vlgmr.msrb.gmra.mxu0 %v20176_v54 }
 0x11d   : > { %5967 = vmatmul.f32.vlgmr.msrb.gmra.mxu3 %v20178_v56  ;;  %5927 = vmatmul.f32.vlgmr.msrb.gmra.mxu1 %v20181_v58  ;;  %v544_v58 = vld [vmem:[%s19739_s9 + $0x370] sm:$0xff] }
 0x11e   : > { %v4649_v51 = vadd.f32 %v4648_v47, %v4629_v63  ;;  %6026 = vmatpush.xpose.msra.mxu2 %v540_v33  ;;  %5986 = vmatpush.xpose.msra.mxu0 %v538_v60  ;;  %v20300_v33 = vld.sshfl [vmem:[#allocation1 + $0x30] sm:$0xff pattern:$0x73625140]  ;;  %v20302_v60 = vld.sshfl [vmem:[#allocation1 + $0x20] sm:$0xff pattern:$0x73625140] }
 0x11f   : > { %v4668_v52 = vpop.f32.mrf.mxu2  ;;  %6046 = vmatpush.xpose.msra.mxu3 %v541_v0  ;;  %6006 = vmatpush.xpose.msra.mxu1 %v539_v1  ;;  %v550_v63 = vld [vmem:[%s19739_s9 + $0x3a0] sm:$0xff]  ;;  %v275_v1 = vld [vmem:[%s19732_s7 + $0x108] sm:$0xff] }
 0x120   : > { %v4669_v38 = vadd.f32 %v4668_v52, %v4649_v51  ;;  %v4688_v54 = vpop.f32.mrf.mxu3  ;;  %v20307_v0 = vld.sshfl [vmem:[#allocation1 + $0x28] sm:$0xff pattern:$0x73625140]  ;;  %v551_v51 = vld [vmem:[%s19739_s9 + $0x3a8] sm:$0xff] }
 0x121   : > { %v4708_v56 = vpop.f32.mrf.mxu0  ;;  %2324 = vst [vmem:[#allocation1 + $0x20] ss:$4 sm:$0xff] %v275_v1  ;;  %v20325_v19 = vld.sshfl [vmem:[#allocation1 + $0x18] sm:$0xff pattern:$0x73625140] }
 0x122   : > { %6105 = vmatpush.xpose.msrb.mxu2 %v1312_v48  ;;  %6065 = vmatpush.xpose.msrb.mxu0 %v1310_v50  ;;  %v4689_v4 = vadd.f32 %v4688_v54, %v4669_v38  ;;  %v4728_v5 = vpop.f32.mrf.mxu1  ;;  %v553_v50 = vld [vmem:[%s19739_s9 + $0x3b8] sm:$0xff]  ;;  %v1323_v54 = vld [vmem:[%s19739_s9 + $0x1bc8] sm:$0x3] }
 0x123   : > { %6125 = vmatpush.xpose.msrb.mxu3 %v1313_v45  ;;  %6085 = vmatpush.xpose.msrb.mxu1 %v1311_v49  ;;  %v1324_v45 = vld [vmem:[%s19739_s9 + $0x1bd0] sm:$0x3]  ;;  %v1322_v49 = vld [vmem:[%s19739_s9 + $0x1bc0] sm:$0x3]  ;;  %v1325_v38 = vld [vmem:[%s19739_s9 + $0x1bd8] sm:$0x3] }
 0x124   : > { %v4709_v20 = vadd.f32 %v4708_v56, %v4689_v4  ;;  %6027 = vmatmul.f32.vlgmr.msra.gmra.mxu2 %v20195_v53  ;;  %5987 = vmatmul.f32.vlgmr.msra.gmra.mxu0 %v20197_v11 }
 0x125   : > { %6047 = vmatmul.f32.vlgmr.msra.gmra.mxu3 %v20199_v13  ;;  %6007 = vmatmul.f32.vlgmr.msra.gmra.mxu1 %v20202_v15  ;;  %v548_v15 = vld [vmem:[%s19739_s9 + $0x390] sm:$0xff] }
 0x126   : > { %v4729_v7 = vadd.f32 %v4728_v5, %v4709_v20  ;;  %6106 = vmatpush.xpose.msrb.mxu2 %v544_v58  ;;  %6066 = vmatpush.xpose.msrb.mxu0 %v542_v17  ;;  %v20321_v58 = vld.sshfl [vmem:[#allocation1 + $0x10] sm:$0xff pattern:$0x73625140]  ;;  %v20323_v17 = vld.sshfl [vmem:[#allocation1] sm:$0xff pattern:$0x73625140] }
 0x127   : > { %v4748_v10 = vpop.f32.mrf.mxu2  ;;  %6126 = vmatpush.xpose.msrb.mxu3 %v545_v21  ;;  %6086 = vmatpush.xpose.msrb.mxu1 %v543_v22  ;;  %v554_v20 = vld [vmem:[%s19739_s9 + $0x3c0] sm:$0xff]  ;;  %v276_v22 = vld [vmem:[%s19732_s7 + $0x110] sm:$0xff] }
 0x128   : > { %v4749_v53 = vadd.f32 %v4748_v10, %v4729_v7  ;;  %v4768_v11 = vpop.f32.mrf.mxu3  ;;  %v20328_v21 = vld.sshfl [vmem:[#allocation1 + $0x8] sm:$0xff pattern:$0x73625140]  ;;  %v555_v7 = vld [vmem:[%s19739_s9 + $0x3c8] sm:$0xff] }
 0x129   : > { %v4788_v13 = vpop.f32.mrf.mxu0  ;;  %2333 = vst [vmem:[#allocation1] ss:$4 sm:$0xff] %v276_v22  ;;  %v20346_v44 = vld.sshfl [vmem:[#allocation1 + $0x38] sm:$0xff pattern:$0x73625140] }
 0x12a   : > { %6185 = vmatpush.xpose.msra.mxu2 %v1316_v3  ;;  %6145 = vmatpush.xpose.msra.mxu0 %v1314_v6  ;;  %v4769_v25 = vadd.f32 %v4768_v11, %v4749_v53  ;;  %v4808_v26 = vpop.f32.mrf.mxu1  ;;  %v557_v6 = vld [vmem:[%s19739_s9 + $0x3d8] sm:$0xff]  ;;  %v1327_v11 = vld [vmem:[%s19739_s9 + $0x1be8] sm:$0x3] }
 0x12b   : > { %6205 = vmatpush.xpose.msra.mxu3 %v1317_v2  ;;  %6165 = vmatpush.xpose.msra.mxu1 %v1315_v8  ;;  %v1328_v2 = vld [vmem:[%s19739_s9 + $0x1bf0] sm:$0x3]  ;;  %v1326_v8 = vld [vmem:[%s19739_s9 + $0x1be0] sm:$0x3]  ;;  %v1329_v53 = vld [vmem:[%s19739_s9 + $0x1bf8] sm:$0x3] }
 0x12c   : > { %v4789_v34 = vadd.f32 %v4788_v13, %v4769_v25  ;;  %6107 = vmatmul.f32.vlgmr.msrb.gmra.mxu2 %v20216_v9  ;;  %6067 = vmatmul.f32.vlgmr.msrb.gmra.mxu0 %v20218_v32 }
 0x12d   : > { %6127 = vmatmul.f32.vlgmr.msrb.gmra.mxu3 %v20220_v37  ;;  %6087 = vmatmul.f32.vlgmr.msrb.gmra.mxu1 %v20223_v40  ;;  %v552_v40 = vld [vmem:[%s19739_s9 + $0x3b0] sm:$0xff] }
 0x12e   : > { %v4809_v28 = vadd.f32 %v4808_v26, %v4789_v34  ;;  %6186 = vmatpush.xpose.msra.mxu2 %v548_v15  ;;  %6146 = vmatpush.xpose.msra.mxu0 %v546_v42  ;;  %v20342_v15 = vld.sshfl [vmem:[#allocation1 + $0x30] sm:$0xff pattern:$0x73625140]  ;;  %v20344_v42 = vld.sshfl [vmem:[#allocation1 + $0x20] sm:$0xff pattern:$0x73625140] }
 0x12f   : > { %v4828_v31 = vpop.f32.mrf.mxu2  ;;  %6206 = vmatpush.xpose.msra.mxu3 %v549_v35  ;;  %6166 = vmatpush.xpose.msra.mxu1 %v547_v36  ;;  %v558_v34 = vld [vmem:[%s19739_s9 + $0x3e0] sm:$0xff]  ;;  %v277_v36 = vld [vmem:[%s19732_s7 + $0x118] sm:$0xff] }
 0x130   : > { %v4829_v9 = vadd.f32 %v4828_v31, %v4809_v28  ;;  %v4848_v32 = vpop.f32.mrf.mxu3  ;;  %v20349_v35 = vld.sshfl [vmem:[#allocation1 + $0x28] sm:$0xff pattern:$0x73625140]  ;;  %v559_v28 = vld [vmem:[%s19739_s9 + $0x3e8] sm:$0xff] }
 0x131   : > { %v4868_v37 = vpop.f32.mrf.mxu0  ;;  %2334 = vst [vmem:[#allocation1 + $0x20] ss:$4 sm:$0xff] %v277_v36  ;;  %v20367_v1 = vld.sshfl [vmem:[#allocation1 + $0x18] sm:$0xff pattern:$0x73625140] }
 0x132   : > { %6265 = vmatpush.xpose.msrb.mxu2 %v1320_v24  ;;  %6225 = vmatpush.xpose.msrb.mxu0 %v1318_v27  ;;  %v4849_v46 = vadd.f32 %v4848_v32, %v4829_v9  ;;  %v4888_v47 = vpop.f32.mrf.mxu1  ;;  %v561_v27 = vld [vmem:[%s19739_s9 + $0x3f8] sm:$0xff]  ;;  %v1331_v32 = vld [vmem:[%s19739_s9 + $0x1c08] sm:$0x3] }
 0x133   : > { %6285 = vmatpush.xpose.msrb.mxu3 %v1321_v23  ;;  %6245 = vmatpush.xpose.msrb.mxu1 %v1319_v29  ;;  %v1332_v23 = vld [vmem:[%s19739_s9 + $0x1c10] sm:$0x3]  ;;  %v1330_v29 = vld [vmem:[%s19739_s9 + $0x1c00] sm:$0x3]  ;;  %v1333_v9 = vld [vmem:[%s19739_s9 + $0x1c18] sm:$0x3] }
 0x134   : > { %v4869_v48 = vadd.f32 %v4868_v37, %v4849_v46  ;;  %6187 = vmatmul.f32.vlgmr.msra.gmra.mxu2 %v20237_v30  ;;  %6147 = vmatmul.f32.vlgmr.msra.gmra.mxu0 %v20239_v57 }
 0x135   : > { %6207 = vmatmul.f32.vlgmr.msra.gmra.mxu3 %v20241_v59  ;;  %6167 = vmatmul.f32.vlgmr.msra.gmra.mxu1 %v20244_v61  ;;  %v556_v61 = vld [vmem:[%s19739_s9 + $0x3d0] sm:$0xff] }
 0x136   : > { %v4889_v52 = vadd.f32 %v4888_v47, %v4869_v48  ;;  %6266 = vmatpush.xpose.msrb.mxu2 %v552_v40  ;;  %6226 = vmatpush.xpose.msrb.mxu0 %v550_v63  ;;  %v20363_v40 = vld.sshfl [vmem:[#allocation1 + $0x10] sm:$0xff pattern:$0x73625140]  ;;  %v20365_v63 = vld.sshfl [vmem:[#allocation1] sm:$0xff pattern:$0x73625140] }
 0x137   : > { %v4908_v56 = vpop.f32.mrf.mxu2  ;;  %6286 = vmatpush.xpose.msrb.mxu3 %v553_v50  ;;  %6246 = vmatpush.xpose.msrb.mxu1 %v551_v51  ;;  %v562_v48 = vld [vmem:[%s19739_s9 + $0x400] sm:$0xff] }
 0x138   : > { %v4909_v30 = vadd.f32 %v4908_v56, %v4889_v52  ;;  %v4928_v57 = vpop.f32.mrf.mxu3  ;;  %v20370_v50 = vld.sshfl [vmem:[#allocation1 + $0x8] sm:$0xff pattern:$0x73625140]  ;;  %v563_v52 = vld [vmem:[%s19739_s9 + $0x408] sm:$0xff] }
 0x139   : > { %v4948_v59 = vpop.f32.mrf.mxu0  ;;  %v278_v51 = vld [vmem:[%s19732_s7 + $0x120] sm:$0xff]  ;;  %v20388_v22 = vld.sshfl [vmem:[#allocation1 + $0x38] sm:$0xff pattern:$0x73625140] }
 0x13a   : > { %6345 = vmatpush.xpose.msra.mxu2 %v1324_v45  ;;  %6305 = vmatpush.xpose.msra.mxu0 %v1322_v49  ;;  %v4929_v4 = vadd.f32 %v4928_v57, %v4909_v30  ;;  %v4968_v5 = vpop.f32.mrf.mxu1  ;;  %v565_v49 = vld [vmem:[%s19739_s9 + $0x418] sm:$0xff]  ;;  %2343 = vst [vmem:[#allocation1] ss:$4 sm:$0xff] %v278_v51  ;;  %v1335_v57 = vld [vmem:[%s19739_s9 + $0x1c28] sm:$0x3] }
 0x13b   : > { %6365 = vmatpush.xpose.msra.mxu3 %v1325_v38  ;;  %6325 = vmatpush.xpose.msra.mxu1 %v1323_v54  ;;  %v1336_v38 = vld [vmem:[%s19739_s9 + $0x1c30] sm:$0x3]  ;;  %v1334_v54 = vld [vmem:[%s19739_s9 + $0x1c20] sm:$0x3]  ;;  %v1337_v30 = vld [vmem:[%s19739_s9 + $0x1c38] sm:$0x3] }
 0x13c   : > { %v4949_v3 = vadd.f32 %v4948_v59, %v4929_v4  ;;  %6267 = vmatmul.f32.vlgmr.msrb.gmra.mxu2 %v20258_v55  ;;  %6227 = vmatmul.f32.vlgmr.msrb.gmra.mxu0 %v20260_v14 }
 0x13d   : > { %6287 = vmatmul.f32.vlgmr.msrb.gmra.mxu3 %v20262_v16  ;;  %6247 = vmatmul.f32.vlgmr.msrb.gmra.mxu1 %v20265_v18  ;;  %v560_v18 = vld [vmem:[%s19739_s9 + $0x3f0] sm:$0xff] }
 0x13e   : > { %v4969_v10 = vadd.f32 %v4968_v5, %v4949_v3  ;;  %6346 = vmatpush.xpose.msra.mxu2 %v556_v61  ;;  %6306 = vmatpush.xpose.msra.mxu0 %v554_v20  ;;  %v20384_v61 = vld.sshfl [vmem:[#allocation1 + $0x30] sm:$0xff pattern:$0x73625140]  ;;  %v20386_v20 = vld.sshfl [vmem:[#allocation1 + $0x20] sm:$0xff pattern:$0x73625140] }
 0x13f   : > { %v4988_v13 = vpop.f32.mrf.mxu2  ;;  %6366 = vmatpush.xpose.msra.mxu3 %v557_v6  ;;  %6326 = vmatpush.xpose.msra.mxu1 %v555_v7  ;;  %v566_v3 = vld [vmem:[%s19739_s9 + $0x420] sm:$0xff]  ;;  %v279_v7 = vld [vmem:[%s19732_s7 + $0x128] sm:$0xff] }
 0x140   : > { %v4989_v55 = vadd.f32 %v4988_v13, %v4969_v10  ;;  %v5008_v14 = vpop.f32.mrf.mxu3  ;;  %v20391_v6 = vld.sshfl [vmem:[#allocation1 + $0x28] sm:$0xff pattern:$0x73625140]  ;;  %v567_v10 = vld [vmem:[%s19739_s9 + $0x428] sm:$0xff] }
 0x141   : > { %v5028_v16 = vpop.f32.mrf.mxu0  ;;  %2344 = vst [vmem:[#allocation1 + $0x20] ss:$4 sm:$0xff] %v279_v7  ;;  %v20409_v36 = vld.sshfl [vmem:[#allocation1 + $0x18] sm:$0xff pattern:$0x73625140] }
 0x142   : > { %6425 = vmatpush.xpose.msrb.mxu2 %v1328_v2  ;;  %6385 = vmatpush.xpose.msrb.mxu0 %v1326_v8  ;;  %v5009_v25 = vadd.f32 %v5008_v14, %v4989_v55  ;;  %v5048_v26 = vpop.f32.mrf.mxu1  ;;  %v569_v8 = vld [vmem:[%s19739_s9 + $0x438] sm:$0xff]  ;;  %v1339_v14 = vld [vmem:[%s19739_s9 + $0x1c48] sm:$0x3] }
 0x143   : > { %6445 = vmatpush.xpose.msrb.mxu3 %v1329_v53  ;;  %6405 = vmatpush.xpose.msrb.mxu1 %v1327_v11  ;;  %v1340_v53 = vld [vmem:[%s19739_s9 + $0x1c50] sm:$0x3]  ;;  %v1338_v11 = vld [vmem:[%s19739_s9 + $0x1c40] sm:$0x3]  ;;  %v1341_v55 = vld [vmem:[%s19739_s9 + $0x1c58] sm:$0x3] }
 0x144   : > { %v5029_v24 = vadd.f32 %v5028_v16, %v5009_v25  ;;  %6347 = vmatmul.f32.vlgmr.msra.gmra.mxu2 %v20279_v12  ;;  %6307 = vmatmul.f32.vlgmr.msra.gmra.mxu0 %v20281_v39 }
 0x145   : > { %6367 = vmatmul.f32.vlgmr.msra.gmra.mxu3 %v20283_v41  ;;  %6327 = vmatmul.f32.vlgmr.msra.gmra.mxu1 %v20286_v43  ;;  %v564_v43 = vld [vmem:[%s19739_s9 + $0x410] sm:$0xff] }
 0x146   : > { %v5049_v31 = vadd.f32 %v5048_v26, %v5029_v24  ;;  %6426 = vmatpush.xpose.msrb.mxu2 %v560_v18  ;;  %6386 = vmatpush.xpose.msrb.mxu0 %v558_v34  ;;  %v20405_v18 = vld.sshfl [vmem:[#allocation1 + $0x10] sm:$0xff pattern:$0x73625140]  ;;  %v20407_v34 = vld.sshfl [vmem:[#allocation1] sm:$0xff pattern:$0x73625140] }
 0x147   : > { %v5068_v37 = vpop.f32.mrf.mxu2  ;;  %6446 = vmatpush.xpose.msrb.mxu3 %v561_v27  ;;  %6406 = vmatpush.xpose.msrb.mxu1 %v559_v28  ;;  %v570_v24 = vld [vmem:[%s19739_s9 + $0x440] sm:$0xff]  ;;  %v280_v28 = vld [vmem:[%s19732_s7 + $0x130] sm:$0xff] }
 0x148   : > { %v5069_v12 = vadd.f32 %v5068_v37, %v5049_v31  ;;  %v5088_v39 = vpop.f32.mrf.mxu3  ;;  %v20412_v27 = vld.sshfl [vmem:[#allocation1 + $0x8] sm:$0xff pattern:$0x73625140]  ;;  %v571_v31 = vld [vmem:[%s19739_s9 + $0x448] sm:$0xff] }
 0x149   : > { %v5108_v41 = vpop.f32.mrf.mxu0  ;;  %2353 = vst [vmem:[#allocation1] ss:$4 sm:$0xff] %v280_v28  ;;  %v20430_v51 = vld.sshfl [vmem:[#allocation1 + $0x38] sm:$0xff pattern:$0x73625140] }
 0x14a   : > { %6505 = vmatpush.xpose.msra.mxu2 %v1332_v23  ;;  %6465 = vmatpush.xpose.msra.mxu0 %v1330_v29  ;;  %v5089_v46 = vadd.f32 %v5088_v39, %v5069_v12  ;;  %v5128_v47 = vpop.f32.mrf.mxu1  ;;  %v573_v29 = vld [vmem:[%s19739_s9 + $0x458] sm:$0xff]  ;;  %v1343_v39 = vld [vmem:[%s19739_s9 + $0x1c68] sm:$0x3] }
 0x14b   : > { %6525 = vmatpush.xpose.msra.mxu3 %v1333_v9  ;;  %6485 = vmatpush.xpose.msra.mxu1 %v1331_v32  ;;  %v1344_v9 = vld [vmem:[%s19739_s9 + $0x1c70] sm:$0x3]  ;;  %v1342_v32 = vld [vmem:[%s19739_s9 + $0x1c60] sm:$0x3]  ;;  %v1345_v12 = vld [vmem:[%s19739_s9 + $0x1c78] sm:$0x3] }
 0x14c   : > { %v5109_v45 = vadd.f32 %v5108_v41, %v5089_v46  ;;  %6427 = vmatmul.f32.vlgmr.msrb.gmra.mxu2 %v20300_v33  ;;  %6387 = vmatmul.f32.vlgmr.msrb.gmra.mxu0 %v20302_v60 }
 0x14d   : > { %6447 = vmatmul.f32.vlgmr.msrb.gmra.mxu3 %v20304_v62  ;;  %6407 = vmatmul.f32.vlgmr.msrb.gmra.mxu1 %v20307_v0  ;;  %v568_v0 = vld [vmem:[%s19739_s9 + $0x430] sm:$0xff] }
 0x14e   : > { %v5129_v56 = vadd.f32 %v5128_v47, %v5109_v45  ;;  %6506 = vmatpush.xpose.msra.mxu2 %v564_v43  ;;  %6466 = vmatpush.xpose.msra.mxu0 %v562_v48  ;;  %v20426_v43 = vld.sshfl [vmem:[#allocation1 + $0x30] sm:$0xff pattern:$0x73625140]  ;;  %v20428_v48 = vld.sshfl [vmem:[#allocation1 + $0x20] sm:$0xff pattern:$0x73625140] }
 0x14f   : > { %v5148_v59 = vpop.f32.mrf.mxu2  ;;  %6526 = vmatpush.xpose.msra.mxu3 %v565_v49  ;;  %6486 = vmatpush.xpose.msra.mxu1 %v563_v52  ;;  %v574_v45 = vld [vmem:[%s19739_s9 + $0x460] sm:$0xff]  ;;  %v281_v52 = vld [vmem:[%s19732_s7 + $0x138] sm:$0xff] }
 0x150   : > { %v5149_v33 = vadd.f32 %v5148_v59, %v5129_v56  ;;  %v5168_v60 = vpop.f32.mrf.mxu3  ;;  %v20433_v49 = vld.sshfl [vmem:[#allocation1 + $0x28] sm:$0xff pattern:$0x73625140]  ;;  %v575_v56 = vld [vmem:[%s19739_s9 + $0x468] sm:$0xff] }
 0x151   : > { %v5188_v62 = vpop.f32.mrf.mxu0  ;;  %2354 = vst [vmem:[#allocation1 + $0x20] ss:$4 sm:$0xff] %v281_v52  ;;  %v20451_v7 = vld.sshfl [vmem:[#allocation1 + $0x18] sm:$0xff pattern:$0x73625140] }
 0x152   : > { %6585 = vmatpush.xpose.msrb.mxu2 %v1336_v38  ;;  %6545 = vmatpush.xpose.msrb.mxu0 %v1334_v54  ;;  %v5169_v4 = vadd.f32 %v5168_v60, %v5149_v33  ;;  %v5208_v5 = vpop.f32.mrf.mxu1  ;;  %v577_v54 = vld [vmem:[%s19739_s9 + $0x478] sm:$0xff]  ;;  %v1347_v60 = vld [vmem:[%s19739_s9 + $0x1c88] sm:$0x3] }
 0x153   : > { %6605 = vmatpush.xpose.msrb.mxu3 %v1337_v30  ;;  %6565 = vmatpush.xpose.msrb.mxu1 %v1335_v57  ;;  %v1348_v30 = vld [vmem:[%s19739_s9 + $0x1c90] sm:$0x3]  ;;  %v1346_v57 = vld [vmem:[%s19739_s9 + $0x1c80] sm:$0x3]  ;;  %v1349_v33 = vld [vmem:[%s19739_s9 + $0x1c98] sm:$0x3] }
 0x154   : > { %v5189_v2 = vadd.f32 %v5188_v62, %v5169_v4  ;;  %6507 = vmatmul.f32.vlgmr.msra.gmra.mxu2 %v20321_v58  ;;  %6467 = vmatmul.f32.vlgmr.msra.gmra.mxu0 %v20323_v17 }
 0x155   : > { %6527 = vmatmul.f32.vlgmr.msra.gmra.mxu3 %v20325_v19  ;;  %6487 = vmatmul.f32.vlgmr.msra.gmra.mxu1 %v20328_v21  ;;  %v572_v21 = vld [vmem:[%s19739_s9 + $0x450] sm:$0xff] }
 0x156   : > { %v5209_v13 = vadd.f32 %v5208_v5, %v5189_v2  ;;  %6586 = vmatpush.xpose.msrb.mxu2 %v568_v0  ;;  %6546 = vmatpush.xpose.msrb.mxu0 %v566_v3  ;;  %v20447_v0 = vld.sshfl [vmem:[#allocation1 + $0x10] sm:$0xff pattern:$0x73625140]  ;;  %v20449_v3 = vld.sshfl [vmem:[#allocation1] sm:$0xff pattern:$0x73625140] }
 0x157   : > { %v5228_v16 = vpop.f32.mrf.mxu2  ;;  %6606 = vmatpush.xpose.msrb.mxu3 %v569_v8  ;;  %6566 = vmatpush.xpose.msrb.mxu1 %v567_v10  ;;  %v578_v2 = vld [vmem:[%s19739_s9 + $0x480] sm:$0xff] }
 0x158   : > { %v5229_v58 = vadd.f32 %v5228_v16, %v5209_v13  ;;  %v5248_v17 = vpop.f32.mrf.mxu3  ;;  %v20454_v8 = vld.sshfl [vmem:[#allocation1 + $0x8] sm:$0xff pattern:$0x73625140]  ;;  %v579_v13 = vld [vmem:[%s19739_s9 + $0x488] sm:$0xff] }
 0x159   : > { %v5268_v19 = vpop.f32.mrf.mxu0  ;;  %v282_v10 = vld [vmem:[%s19732_s7 + $0x140] sm:$0xff]  ;;  %v20472_v28 = vld.sshfl [vmem:[#allocation1 + $0x38] sm:$0xff pattern:$0x73625140] }
 0x15a   : > { %6665 = vmatpush.xpose.msra.mxu2 %v1340_v53  ;;  %6625 = vmatpush.xpose.msra.mxu0 %v1338_v11  ;;  %v5249_v25 = vadd.f32 %v5248_v17, %v5229_v58  ;;  %v5288_v26 = vpop.f32.mrf.mxu1  ;;  %v581_v11 = vld [vmem:[%s19739_s9 + $0x498] sm:$0xff]  ;;  %2363 = vst [vmem:[#allocation1] ss:$4 sm:$0xff] %v282_v10  ;;  %v1351_v17 = vld [vmem:[%s19739_s9 + $0x1ca8] sm:$0x3] }
 0x15b   : > { %6685 = vmatpush.xpose.msra.mxu3 %v1341_v55  ;;  %6645 = vmatpush.xpose.msra.mxu1 %v1339_v14  ;;  %v1352_v55 = vld [vmem:[%s19739_s9 + $0x1cb0] sm:$0x3]  ;;  %v1350_v14 = vld [vmem:[%s19739_s9 + $0x1ca0] sm:$0x3]  ;;  %v1353_v58 = vld [vmem:[%s19739_s9 + $0x1cb8] sm:$0x3] }
 0x15c   : > { %v5269_v23 = vadd.f32 %v5268_v19, %v5249_v25  ;;  %6587 = vmatmul.f32.vlgmr.msrb.gmra.mxu2 %v20342_v15  ;;  %6547 = vmatmul.f32.vlgmr.msrb.gmra.mxu0 %v20344_v42 }
 0x15d   : > { %6607 = vmatmul.f32.vlgmr.msrb.gmra.mxu3 %v20346_v44  ;;  %6567 = vmatmul.f32.vlgmr.msrb.gmra.mxu1 %v20349_v35  ;;  %v576_v35 = vld [vmem:[%s19739_s9 + $0x470] sm:$0xff] }
 0x15e   : > { %v5289_v37 = vadd.f32 %v5288_v26, %v5269_v23  ;;  %6666 = vmatpush.xpose.msra.mxu2 %v572_v21  ;;  %6626 = vmatpush.xpose.msra.mxu0 %v570_v24  ;;  %v20468_v21 = vld.sshfl [vmem:[#allocation1 + $0x30] sm:$0xff pattern:$0x73625140]  ;;  %v20470_v24 = vld.sshfl [vmem:[#allocation1 + $0x20] sm:$0xff pattern:$0x73625140] }
 0x15f   : > { %v5308_v41 = vpop.f32.mrf.mxu2  ;;  %6686 = vmatpush.xpose.msra.mxu3 %v573_v29  ;;  %6646 = vmatpush.xpose.msra.mxu1 %v571_v31  ;;  %v582_v23 = vld [vmem:[%s19739_s9 + $0x4a0] sm:$0xff]  ;;  %v283_v31 = vld [vmem:[%s19732_s7 + $0x148] sm:$0xff] }
 0x160   : > { %v5309_v15 = vadd.f32 %v5308_v41, %v5289_v37  ;;  %v5328_v42 = vpop.f32.mrf.mxu3  ;;  %v20475_v29 = vld.sshfl [vmem:[#allocation1 + $0x28] sm:$0xff pattern:$0x73625140]  ;;  %v583_v37 = vld [vmem:[%s19739_s9 + $0x4a8] sm:$0xff] }
 0x161   : > { %v5348_v44 = vpop.f32.mrf.mxu0  ;;  %2364 = vst [vmem:[#allocation1 + $0x20] ss:$4 sm:$0xff] %v283_v31  ;;  %v20493_v52 = vld.sshfl [vmem:[#allocation1 + $0x18] sm:$0xff pattern:$0x73625140] }
 0x162   : > { %6745 = vmatpush.xpose.msrb.mxu2 %v1344_v9  ;;  %6705 = vmatpush.xpose.msrb.mxu0 %v1342_v32  ;;  %v5329_v46 = vadd.f32 %v5328_v42, %v5309_v15  ;;  %v5368_v47 = vpop.f32.mrf.mxu1  ;;  %v585_v32 = vld [vmem:[%s19739_s9 + $0x4b8] sm:$0xff]  ;;  %v1355_v42 = vld [vmem:[%s19739_s9 + $0x1cc8] sm:$0x3] }
 0x163   : > { %6765 = vmatpush.xpose.msrb.mxu3 %v1345_v12  ;;  %6725 = vmatpush.xpose.msrb.mxu1 %v1343_v39  ;;  %v1356_v12 = vld [vmem:[%s19739_s9 + $0x1cd0] sm:$0x3]  ;;  %v1354_v39 = vld [vmem:[%s19739_s9 + $0x1cc0] sm:$0x3]  ;;  %v1357_v15 = vld [vmem:[%s19739_s9 + $0x1cd8] sm:$0x3] }
 0x164   : > { %v5349_v38 = vadd.f32 %v5348_v44, %v5329_v46  ;;  %6667 = vmatmul.f32.vlgmr.msra.gmra.mxu2 %v20363_v40  ;;  %6627 = vmatmul.f32.vlgmr.msra.gmra.mxu0 %v20365_v63 }
 0x165   : > { %6687 = vmatmul.f32.vlgmr.msra.gmra.mxu3 %v20367_v1  ;;  %6647 = vmatmul.f32.vlgmr.msra.gmra.mxu1 %v20370_v50  ;;  %v580_v50 = vld [vmem:[%s19739_s9 + $0x490] sm:$0xff] }
 0x166   : > { %v5369_v59 = vadd.f32 %v5368_v47, %v5349_v38  ;;  %6746 = vmatpush.xpose.msrb.mxu2 %v576_v35  ;;  %6706 = vmatpush.xpose.msrb.mxu0 %v574_v45  ;;  %v20489_v35 = vld.sshfl [vmem:[#allocation1 + $0x10] sm:$0xff pattern:$0x73625140]  ;;  %v20491_v45 = vld.sshfl [vmem:[#allocation1] sm:$0xff pattern:$0x73625140] }
 0x167   : > { %v5388_v62 = vpop.f32.mrf.mxu2  ;;  %6766 = vmatpush.xpose.msrb.mxu3 %v577_v54  ;;  %6726 = vmatpush.xpose.msrb.mxu1 %v575_v56  ;;  %v586_v38 = vld [vmem:[%s19739_s9 + $0x4c0] sm:$0xff]  ;;  %v284_v56 = vld [vmem:[%s19732_s7 + $0x150] sm:$0xff] }
 0x168   : > { %v5389_v40 = vadd.f32 %v5388_v62, %v5369_v59  ;;  %v5408_v63 = vpop.f32.mrf.mxu3  ;;  %v20496_v54 = vld.sshfl [vmem:[#allocation1 + $0x8] sm:$0xff pattern:$0x73625140]  ;;  %v587_v59 = vld [vmem:[%s19739_s9 + $0x4c8] sm:$0xff] }
 0x169   : > { %v5428_v1 = vpop.f32.mrf.mxu0  ;;  %2373 = vst [vmem:[#allocation1] ss:$4 sm:$0xff] %v284_v56  ;;  %v20514_v10 = vld.sshfl [vmem:[#allocation1 + $0x38] sm:$0xff pattern:$0x73625140] }
 0x16a   : > { %6825 = vmatpush.xpose.msra.mxu2 %v1348_v30  ;;  %6785 = vmatpush.xpose.msra.mxu0 %v1346_v57  ;;  %v5409_v4 = vadd.f32 %v5408_v63, %v5389_v40  ;;  %v5448_v5 = vpop.f32.mrf.mxu1  ;;  %v589_v57 = vld [vmem:[%s19739_s9 + $0x4d8] sm:$0xff]  ;;  %v1359_v63 = vld [vmem:[%s19739_s9 + $0x1ce8] sm:$0x3] }
 0x16b   : > { %6845 = vmatpush.xpose.msra.mxu3 %v1349_v33  ;;  %6805 = vmatpush.xpose.msra.mxu1 %v1347_v60  ;;  %v1360_v33 = vld [vmem:[%s19739_s9 + $0x1cf0] sm:$0x3]  ;;  %v1358_v60 = vld [vmem:[%s19739_s9 + $0x1ce0] sm:$0x3]  ;;  %v1361_v40 = vld [vmem:[%s19739_s9 + $0x1cf8] sm:$0x3] }
 0x16c   : > { %v5429_v53 = vadd.f32 %v5428_v1, %v5409_v4  ;;  %6747 = vmatmul.f32.vlgmr.msrb.gmra.mxu2 %v20384_v61  ;;  %6707 = vmatmul.f32.vlgmr.msrb.gmra.mxu0 %v20386_v20 }
 0x16d   : > { %6767 = vmatmul.f32.vlgmr.msrb.gmra.mxu3 %v20388_v22  ;;  %6727 = vmatmul.f32.vlgmr.msrb.gmra.mxu1 %v20391_v6  ;;  %v584_v6 = vld [vmem:[%s19739_s9 + $0x4b0] sm:$0xff] }
 0x16e   : > { %v5449_v16 = vadd.f32 %v5448_v5, %v5429_v53  ;;  %6826 = vmatpush.xpose.msra.mxu2 %v580_v50  ;;  %6786 = vmatpush.xpose.msra.mxu0 %v578_v2  ;;  %v20510_v50 = vld.sshfl [vmem:[#allocation1 + $0x30] sm:$0xff pattern:$0x73625140]  ;;  %v20512_v2 = vld.sshfl [vmem:[#allocation1 + $0x20] sm:$0xff pattern:$0x73625140] }
 0x16f   : > { %v5468_v19 = vpop.f32.mrf.mxu2  ;;  %6846 = vmatpush.xpose.msra.mxu3 %v581_v11  ;;  %6806 = vmatpush.xpose.msra.mxu1 %v579_v13  ;;  %v590_v53 = vld [vmem:[%s19739_s9 + $0x4e0] sm:$0xff]  ;;  %v285_v13 = vld [vmem:[%s19732_s7 + $0x158] sm:$0xff] }
 0x170   : > { %v5469_v61 = vadd.f32 %v5468_v19, %v5449_v16  ;;  %v5488_v20 = vpop.f32.mrf.mxu3  ;;  %v20517_v11 = vld.sshfl [vmem:[#allocation1 + $0x28] sm:$0xff pattern:$0x73625140]  ;;  %v591_v16 = vld [vmem:[%s19739_s9 + $0x4e8] sm:$0xff] }
 0x171   : > { %v5508_v22 = vpop.f32.mrf.mxu0  ;;  %2374 = vst [vmem:[#allocation1 + $0x20] ss:$4 sm:$0xff] %v285_v13  ;;  %v20535_v31 = vld.sshfl [vmem:[#allocation1 + $0x18] sm:$0xff pattern:$0x73625140] }
 0x172   : > { %6905 = vmatpush.xpose.msrb.mxu2 %v1352_v55  ;;  %6865 = vmatpush.xpose.msrb.mxu0 %v1350_v14  ;;  %v5489_v25 = vadd.f32 %v5488_v20, %v5469_v61  ;;  %v5528_v26 = vpop.f32.mrf.mxu1  ;;  %v593_v14 = vld [vmem:[%s19739_s9 + $0x4f8] sm:$0xff]  ;;  %v1363_v20 = vld [vmem:[%s19739_s9 + $0x1d08] sm:$0x3] }
 0x173   : > { %6925 = vmatpush.xpose.msrb.mxu3 %v1353_v58  ;;  %6885 = vmatpush.xpose.msrb.mxu1 %v1351_v17  ;;  %v1364_v58 = vld [vmem:[%s19739_s9 + $0x1d10] sm:$0x3]  ;;  %v1362_v17 = vld [vmem:[%s19739_s9 + $0x1d00] sm:$0x3]  ;;  %v1365_v61 = vld [vmem:[%s19739_s9 + $0x1d18] sm:$0x3] }
 0x174   : > { %v5509_v9 = vadd.f32 %v5508_v22, %v5489_v25  ;;  %6827 = vmatmul.f32.vlgmr.msra.gmra.mxu2 %v20405_v18  ;;  %6787 = vmatmul.f32.vlgmr.msra.gmra.mxu0 %v20407_v34 }
 0x175   : > { %6847 = vmatmul.f32.vlgmr.msra.gmra.mxu3 %v20409_v36  ;;  %6807 = vmatmul.f32.vlgmr.msra.gmra.mxu1 %v20412_v27  ;;  %v588_v27 = vld [vmem:[%s19739_s9 + $0x4d0] sm:$0xff] }
 0x176   : > { %v5529_v41 = vadd.f32 %v5528_v26, %v5509_v9  ;;  %6906 = vmatpush.xpose.msrb.mxu2 %v584_v6  ;;  %6866 = vmatpush.xpose.msrb.mxu0 %v582_v23  ;;  %v20531_v6 = vld.sshfl [vmem:[#allocation1 + $0x10] sm:$0xff pattern:$0x73625140]  ;;  %v20533_v23 = vld.sshfl [vmem:[#allocation1] sm:$0xff pattern:$0x73625140] }
 0x177   : > { %v5548_v44 = vpop.f32.mrf.mxu2  ;;  %6926 = vmatpush.xpose.msrb.mxu3 %v585_v32  ;;  %6886 = vmatpush.xpose.msrb.mxu1 %v583_v37  ;;  %v594_v9 = vld [vmem:[%s19739_s9 + $0x500] sm:$0xff] }
 0x178   : > { %v5549_v18 = vadd.f32 %v5548_v44, %v5529_v41  ;;  %v5568_v34 = vpop.f32.mrf.mxu3  ;;  %v20538_v32 = vld.sshfl [vmem:[#allocation1 + $0x8] sm:$0xff pattern:$0x73625140]  ;;  %v595_v41 = vld [vmem:[%s19739_s9 + $0x508] sm:$0xff] }
 0x179   : > { %v5588_v36 = vpop.f32.mrf.mxu0  ;;  %v286_v37 = vld [vmem:[%s19732_s7 + $0x160] sm:$0xff]  ;;  %v20556_v56 = vld.sshfl [vmem:[#allocation1 + $0x38] sm:$0xff pattern:$0x73625140] }
 0x17a   : > { %6985 = vmatpush.xpose.msra.mxu2 %v1356_v12  ;;  %6945 = vmatpush.xpose.msra.mxu0 %v1354_v39  ;;  %v5569_v46 = vadd.f32 %v5568_v34, %v5549_v18  ;;  %v5608_v47 = vpop.f32.mrf.mxu1  ;;  %v597_v39 = vld [vmem:[%s19739_s9 + $0x518] sm:$0xff]  ;;  %2383 = vst [vmem:[#allocation1] ss:$4 sm:$0xff] %v286_v37  ;;  %v1367_v34 = vld [vmem:[%s19739_s9 + $0x1d28] sm:$0x3] }
 0x17b   : > { %7005 = vmatpush.xpose.msra.mxu3 %v1357_v15  ;;  %6965 = vmatpush.xpose.msra.mxu1 %v1355_v42  ;;  %v1368_v15 = vld [vmem:[%s19739_s9 + $0x1d30] sm:$0x3]  ;;  %v1366_v42 = vld [vmem:[%s19739_s9 + $0x1d20] sm:$0x3]  ;;  %v1369_v18 = vld [vmem:[%s19739_s9 + $0x1d38] sm:$0x3] }
 0x17c   : > { %v5589_v30 = vadd.f32 %v5588_v36, %v5569_v46  ;;  %6907 = vmatmul.f32.vlgmr.msrb.gmra.mxu2 %v20426_v43  ;;  %6867 = vmatmul.f32.vlgmr.msrb.gmra.mxu0 %v20428_v48 }
 0x17d   : > { %6927 = vmatmul.f32.vlgmr.msrb.gmra.mxu3 %v20430_v51  ;;  %6887 = vmatmul.f32.vlgmr.msrb.gmra.mxu1 %v20433_v49  ;;  %v592_v49 = vld [vmem:[%s19739_s9 + $0x4f0] sm:$0xff] }
 0x17e   : > { %v5609_v62 = vadd.f32 %v5608_v47, %v5589_v30  ;;  %6986 = vmatpush.xpose.msra.mxu2 %v588_v27  ;;  %6946 = vmatpush.xpose.msra.mxu0 %v586_v38  ;;  %v20552_v27 = vld.sshfl [vmem:[#allocation1 + $0x30] sm:$0xff pattern:$0x73625140]  ;;  %v20554_v38 = vld.sshfl [vmem:[#allocation1 + $0x20] sm:$0xff pattern:$0x73625140] }
 0x17f   : > { %v5628_v1 = vpop.f32.mrf.mxu2  ;;  %7006 = vmatpush.xpose.msra.mxu3 %v589_v57  ;;  %6966 = vmatpush.xpose.msra.mxu1 %v587_v59  ;;  %v598_v30 = vld [vmem:[%s19739_s9 + $0x520] sm:$0xff]  ;;  %v287_v59 = vld [vmem:[%s19732_s7 + $0x168] sm:$0xff] }
 0x180   : > { %v5629_v43 = vadd.f32 %v5628_v1, %v5609_v62  ;;  %v5648_v48 = vpop.f32.mrf.mxu3  ;;  %v20559_v57 = vld.sshfl [vmem:[#allocation1 + $0x28] sm:$0xff pattern:$0x73625140]  ;;  %v599_v62 = vld [vmem:[%s19739_s9 + $0x528] sm:$0xff] }
 0x181   : > { %v5668_v51 = vpop.f32.mrf.mxu0  ;;  %2384 = vst [vmem:[#allocation1 + $0x20] ss:$4 sm:$0xff] %v287_v59  ;;  %v20577_v13 = vld.sshfl [vmem:[#allocation1 + $0x18] sm:$0xff pattern:$0x73625140] }
 0x182   : > { %7065 = vmatpush.xpose.msrb.mxu2 %v1360_v33  ;;  %7025 = vmatpush.xpose.msrb.mxu0 %v1358_v60  ;;  %v5649_v4 = vadd.f32 %v5648_v48, %v5629_v43  ;;  %v5688_v5 = vpop.f32.mrf.mxu1  ;;  %v601_v60 = vld [vmem:[%s19739_s9 + $0x538] sm:$0xff]  ;;  %v1371_v48 = vld [vmem:[%s19739_s9 + $0x1d48] sm:$0x3] }
 0x183   : > { %7085 = vmatpush.xpose.msrb.mxu3 %v1361_v40  ;;  %7045 = vmatpush.xpose.msrb.mxu1 %v1359_v63  ;;  %v1372_v40 = vld [vmem:[%s19739_s9 + $0x1d50] sm:$0x3]  ;;  %v1370_v63 = vld [vmem:[%s19739_s9 + $0x1d40] sm:$0x3]  ;;  %v1373_v43 = vld [vmem:[%s19739_s9 + $0x1d58] sm:$0x3] }
 0x184   : > { %v5669_v55 = vadd.f32 %v5668_v51, %v5649_v4  ;;  %6987 = vmatmul.f32.vlgmr.msra.gmra.mxu2 %v20447_v0  ;;  %6947 = vmatmul.f32.vlgmr.msra.gmra.mxu0 %v20449_v3 }
 0x185   : > { %7007 = vmatmul.f32.vlgmr.msra.gmra.mxu3 %v20451_v7  ;;  %6967 = vmatmul.f32.vlgmr.msra.gmra.mxu1 %v20454_v8  ;;  %v596_v8 = vld [vmem:[%s19739_s9 + $0x510] sm:$0xff] }
 0x186   : > { %v5689_v19 = vadd.f32 %v5688_v5, %v5669_v55  ;;  %7066 = vmatpush.xpose.msrb.mxu2 %v592_v49  ;;  %7026 = vmatpush.xpose.msrb.mxu0 %v590_v53  ;;  %v20573_v49 = vld.sshfl [vmem:[#allocation1 + $0x10] sm:$0xff pattern:$0x73625140]  ;;  %v20575_v53 = vld.sshfl [vmem:[#allocation1] sm:$0xff pattern:$0x73625140] }
 0x187   : > { %v5708_v22 = vpop.f32.mrf.mxu2  ;;  %7086 = vmatpush.xpose.msrb.mxu3 %v593_v14  ;;  %7046 = vmatpush.xpose.msrb.mxu1 %v591_v16  ;;  %v602_v55 = vld [vmem:[%s19739_s9 + $0x540] sm:$0xff]  ;;  %v288_v16 = vld [vmem:[%s19732_s7 + $0x170] sm:$0xff] }
 0x188   : > { %v5709_v0 = vadd.f32 %v5708_v22, %v5689_v19  ;;  %v5728_v3 = vpop.f32.mrf.mxu3  ;;  %v20580_v14 = vld.sshfl [vmem:[#allocation1 + $0x8] sm:$0xff pattern:$0x73625140]  ;;  %v603_v19 = vld [vmem:[%s19739_s9 + $0x548] sm:$0xff] }
 0x189   : > { %v5748_v7 = vpop.f32.mrf.mxu0  ;;  %2393 = vst [vmem:[#allocation1] ss:$4 sm:$0xff] %v288_v16  ;;  %v20598_v37 = vld.sshfl [vmem:[#allocation1 + $0x38] sm:$0xff pattern:$0x73625140] }
 0x18a   : > { %7145 = vmatpush.xpose.msra.mxu2 %v1364_v58  ;;  %7105 = vmatpush.xpose.msra.mxu0 %v1362_v17  ;;  %v5729_v25 = vadd.f32 %v5728_v3, %v5709_v0  ;;  %v5768_v26 = vpop.f32.mrf.mxu1  ;;  %v605_v17 = vld [vmem:[%s19739_s9 + $0x558] sm:$0xff]  ;;  %v1375_v3 = vld [vmem:[%s19739_s9 + $0x1d68] sm:$0x3] }
 0x18b   : > { %7165 = vmatpush.xpose.msra.mxu3 %v1365_v61  ;;  %7125 = vmatpush.xpose.msra.mxu1 %v1363_v20  ;;  %v1376_v61 = vld [vmem:[%s19739_s9 + $0x1d70] sm:$0x3]  ;;  %v1374_v20 = vld [vmem:[%s19739_s9 + $0x1d60] sm:$0x3]  ;;  %v1377_v0 = vld [vmem:[%s19739_s9 + $0x1d78] sm:$0x3] }
 0x18c   : > { %v5749_v12 = vadd.f32 %v5748_v7, %v5729_v25  ;;  %7067 = vmatmul.f32.vlgmr.msrb.gmra.mxu2 %v20468_v21  ;;  %7027 = vmatmul.f32.vlgmr.msrb.gmra.mxu0 %v20470_v24 }
 0x18d   : > { %7087 = vmatmul.f32.vlgmr.msrb.gmra.mxu3 %v20472_v28  ;;  %7047 = vmatmul.f32.vlgmr.msrb.gmra.mxu1 %v20475_v29  ;;  %v600_v29 = vld [vmem:[%s19739_s9 + $0x530] sm:$0xff] }
 0x18e   : > { %v5769_v44 = vadd.f32 %v5768_v26, %v5749_v12  ;;  %7146 = vmatpush.xpose.msra.mxu2 %v596_v8  ;;  %7106 = vmatpush.xpose.msra.mxu0 %v594_v9  ;;  %v20594_v8 = vld.sshfl [vmem:[#allocation1 + $0x30] sm:$0xff pattern:$0x73625140]  ;;  %v20596_v9 = vld.sshfl [vmem:[#allocation1 + $0x20] sm:$0xff pattern:$0x73625140] }
 0x18f   : > { %v5788_v36 = vpop.f32.mrf.mxu2  ;;  %7166 = vmatpush.xpose.msra.mxu3 %v597_v39  ;;  %7126 = vmatpush.xpose.msra.mxu1 %v595_v41  ;;  %v606_v12 = vld [vmem:[%s19739_s9 + $0x560] sm:$0xff]  ;;  %v289_v41 = vld [vmem:[%s19732_s7 + $0x178] sm:$0xff] }
 0x190   : > { %v5789_v21 = vadd.f32 %v5788_v36, %v5769_v44  ;;  %v5808_v24 = vpop.f32.mrf.mxu3  ;;  %v20601_v39 = vld.sshfl [vmem:[#allocation1 + $0x28] sm:$0xff pattern:$0x73625140]  ;;  %v607_v44 = vld [vmem:[%s19739_s9 + $0x568] sm:$0xff] }
 0x191   : > { %v5828_v28 = vpop.f32.mrf.mxu0  ;;  %2394 = vst [vmem:[#allocation1 + $0x20] ss:$4 sm:$0xff] %v289_v41  ;;  %v20619_v59 = vld.sshfl [vmem:[#allocation1 + $0x18] sm:$0xff pattern:$0x73625140] }
 0x192   : > { %7225 = vmatpush.xpose.msrb.mxu2 %v1368_v15  ;;  %7185 = vmatpush.xpose.msrb.mxu0 %v1366_v42  ;;  %v5809_v46 = vadd.f32 %v5808_v24, %v5789_v21  ;;  %v5848_v47 = vpop.f32.mrf.mxu1  ;;  %v609_v42 = vld [vmem:[%s19739_s9 + $0x578] sm:$0xff]  ;;  %v1379_v24 = vld [vmem:[%s19739_s9 + $0x1d88] sm:$0x3] }
 0x193   : > { %7245 = vmatpush.xpose.msrb.mxu3 %v1369_v18  ;;  %7205 = vmatpush.xpose.msrb.mxu1 %v1367_v34  ;;  %v1380_v18 = vld [vmem:[%s19739_s9 + $0x1d90] sm:$0x3]  ;;  %v1378_v34 = vld [vmem:[%s19739_s9 + $0x1d80] sm:$0x3]  ;;  %v1381_v21 = vld [vmem:[%s19739_s9 + $0x1d98] sm:$0x3] }
 0x194   : > { %v5829_v33 = vadd.f32 %v5828_v28, %v5809_v46  ;;  %7147 = vmatmul.f32.vlgmr.msra.gmra.mxu2 %v20489_v35  ;;  %7107 = vmatmul.f32.vlgmr.msra.gmra.mxu0 %v20491_v45 }
 0x195   : > { %7167 = vmatmul.f32.vlgmr.msra.gmra.mxu3 %v20493_v52  ;;  %7127 = vmatmul.f32.vlgmr.msra.gmra.mxu1 %v20496_v54  ;;  %v604_v54 = vld [vmem:[%s19739_s9 + $0x550] sm:$0xff] }
 0x196   : > { %v5849_v1 = vadd.f32 %v5848_v47, %v5829_v33  ;;  %7226 = vmatpush.xpose.msrb.mxu2 %v600_v29  ;;  %7186 = vmatpush.xpose.msrb.mxu0 %v598_v30  ;;  %v20615_v29 = vld.sshfl [vmem:[#allocation1 + $0x10] sm:$0xff pattern:$0x73625140]  ;;  %v20617_v30 = vld.sshfl [vmem:[#allocation1] sm:$0xff pattern:$0x73625140] }
 0x197   : > { %v5868_v51 = vpop.f32.mrf.mxu2  ;;  %7246 = vmatpush.xpose.msrb.mxu3 %v601_v60  ;;  %7206 = vmatpush.xpose.msrb.mxu1 %v599_v62  ;;  %v610_v33 = vld [vmem:[%s19739_s9 + $0x580] sm:$0xff] }
 0x198   : > { %v5869_v35 = vadd.f32 %v5868_v51, %v5849_v1  ;;  %v5888_v45 = vpop.f32.mrf.mxu3  ;;  %v20622_v60 = vld.sshfl [vmem:[#allocation1 + $0x8] sm:$0xff pattern:$0x73625140]  ;;  %v611_v1 = vld [vmem:[%s19739_s9 + $0x588] sm:$0xff] }
 0x199   : > { %v5908_v52 = vpop.f32.mrf.mxu0  ;;  %v290_v62 = vld [vmem:[%s19732_s7 + $0x180] sm:$0xff]  ;;  %v20640_v16 = vld.sshfl [vmem:[#allocation1 + $0x38] sm:$0xff pattern:$0x73625140] }
 0x19a   : > { %7305 = vmatpush.xpose.msra.mxu2 %v1372_v40  ;;  %7265 = vmatpush.xpose.msra.mxu0 %v1370_v63  ;;  %v5889_v4 = vadd.f32 %v5888_v45, %v5869_v35  ;;  %v5928_v5 = vpop.f32.mrf.mxu1  ;;  %v613_v63 = vld [vmem:[%s19739_s9 + $0x598] sm:$0xff]  ;;  %2403 = vst [vmem:[#allocation1] ss:$4 sm:$0xff] %v290_v62  ;;  %v1383_v45 = vld [vmem:[%s19739_s9 + $0x1da8] sm:$0x3] }
 0x19b   : > { %7325 = vmatpush.xpose.msra.mxu3 %v1373_v43  ;;  %7285 = vmatpush.xpose.msra.mxu1 %v1371_v48  ;;  %v1384_v43 = vld [vmem:[%s19739_s9 + $0x1db0] sm:$0x3]  ;;  %v1382_v48 = vld [vmem:[%s19739_s9 + $0x1da0] sm:$0x3]  ;;  %v1385_v35 = vld [vmem:[%s19739_s9 + $0x1db8] sm:$0x3] }
 0x19c   : > { %v5909_v58 = vadd.f32 %v5908_v52, %v5889_v4  ;;  %7227 = vmatmul.f32.vlgmr.msrb.gmra.mxu2 %v20510_v50  ;;  %7187 = vmatmul.f32.vlgmr.msrb.gmra.mxu0 %v20512_v2 }
 0x19d   : > { %7247 = vmatmul.f32.vlgmr.msrb.gmra.mxu3 %v20514_v10  ;;  %7207 = vmatmul.f32.vlgmr.msrb.gmra.mxu1 %v20517_v11  ;;  %v608_v11 = vld [vmem:[%s19739_s9 + $0x570] sm:$0xff] }
 0x19e   : > { %v5929_v22 = vadd.f32 %v5928_v5, %v5909_v58  ;;  %7306 = vmatpush.xpose.msra.mxu2 %v604_v54  ;;  %7266 = vmatpush.xpose.msra.mxu0 %v602_v55  ;;  %v20636_v54 = vld.sshfl [vmem:[#allocation1 + $0x30] sm:$0xff pattern:$0x73625140]  ;;  %v20638_v55 = vld.sshfl [vmem:[#allocation1 + $0x20] sm:$0xff pattern:$0x73625140] }
 0x19f   : > { %v5948_v7 = vpop.f32.mrf.mxu2  ;;  %7326 = vmatpush.xpose.msra.mxu3 %v605_v17  ;;  %7286 = vmatpush.xpose.msra.mxu1 %v603_v19  ;;  %v614_v58 = vld [vmem:[%s19739_s9 + $0x5a0] sm:$0xff]  ;;  %v291_v19 = vld [vmem:[%s19732_s7 + $0x188] sm:$0xff] }
 0x1a0   : > { %v5949_v50 = vadd.f32 %v5948_v7, %v5929_v22  ;;  %v5968_v2 = vpop.f32.mrf.mxu3  ;;  %v20643_v17 = vld.sshfl [vmem:[#allocation1 + $0x28] sm:$0xff pattern:$0x73625140]  ;;  %v615_v22 = vld [vmem:[%s19739_s9 + $0x5a8] sm:$0xff] }
 0x1a1   : > { %v5988_v10 = vpop.f32.mrf.mxu0  ;;  %2404 = vst [vmem:[#allocation1 + $0x20] ss:$4 sm:$0xff] %v291_v19  ;;  %v20661_v41 = vld.sshfl [vmem:[#allocation1 + $0x18] sm:$0xff pattern:$0x73625140] }
 0x1a2   : > { %7385 = vmatpush.xpose.msrb.mxu2 %v1376_v61  ;;  %7345 = vmatpush.xpose.msrb.mxu0 %v1374_v20  ;;  %v5969_v25 = vadd.f32 %v5968_v2, %v5949_v50  ;;  %v6008_v26 = vpop.f32.mrf.mxu1  ;;  %v617_v20 = vld [vmem:[%s19739_s9 + $0x5b8] sm:$0xff]  ;;  %v1387_v2 = vld [vmem:[%s19739_s9 + $0x1dc8] sm:$0x3] }
 0x1a3   : > { %7405 = vmatpush.xpose.msrb.mxu3 %v1377_v0  ;;  %7365 = vmatpush.xpose.msrb.mxu1 %v1375_v3  ;;  %v1388_v0 = vld [vmem:[%s19739_s9 + $0x1dd0] sm:$0x3]  ;;  %v1386_v3 = vld [vmem:[%s19739_s9 + $0x1dc0] sm:$0x3]  ;;  %v1389_v50 = vld [vmem:[%s19739_s9 + $0x1dd8] sm:$0x3] }
 0x1a4   : > { %v5989_v15 = vadd.f32 %v5988_v10, %v5969_v25  ;;  %7307 = vmatmul.f32.vlgmr.msra.gmra.mxu2 %v20531_v6  ;;  %7267 = vmatmul.f32.vlgmr.msra.gmra.mxu0 %v20533_v23 }
 0x1a5   : > { %7327 = vmatmul.f32.vlgmr.msra.gmra.mxu3 %v20535_v31  ;;  %7287 = vmatmul.f32.vlgmr.msra.gmra.mxu1 %v20538_v32  ;;  %v612_v32 = vld [vmem:[%s19739_s9 + $0x590] sm:$0xff] }
 0x1a6   : > { %v6009_v36 = vadd.f32 %v6008_v26, %v5989_v15  ;;  %7386 = vmatpush.xpose.msrb.mxu2 %v608_v11  ;;  %7346 = vmatpush.xpose.msrb.mxu0 %v606_v12  ;;  %v20657_v11 = vld.sshfl [vmem:[#allocation1 + $0x10] sm:$0xff pattern:$0x73625140]  ;;  %v20659_v12 = vld.sshfl [vmem:[#allocation1] sm:$0xff pattern:$0x73625140] }
 0x1a7   : > { %v6028_v28 = vpop.f32.mrf.mxu2  ;;  %7406 = vmatpush.xpose.msrb.mxu3 %v609_v42  ;;  %7366 = vmatpush.xpose.msrb.mxu1 %v607_v44  ;;  %v618_v15 = vld [vmem:[%s19739_s9 + $0x5c0] sm:$0xff]  ;;  %v292_v44 = vld [vmem:[%s19732_s7 + $0x190] sm:$0xff] }
 0x1a8   : > { %v6029_v6 = vadd.f32 %v6028_v28, %v6009_v36  ;;  %v6048_v23 = vpop.f32.mrf.mxu3  ;;  %v20664_v42 = vld.sshfl [vmem:[#allocation1 + $0x8] sm:$0xff pattern:$0x73625140]  ;;  %v619_v36 = vld [vmem:[%s19739_s9 + $0x5c8] sm:$0xff] }
 0x1a9   : > { %v6068_v31 = vpop.f32.mrf.mxu0  ;;  %2413 = vst [vmem:[#allocation1] ss:$4 sm:$0xff] %v292_v44  ;;  %v20682_v62 = vld.sshfl [vmem:[#allocation1 + $0x38] sm:$0xff pattern:$0x73625140] }
 0x1aa   : > { %7465 = vmatpush.xpose.msra.mxu2 %v1380_v18  ;;  %7425 = vmatpush.xpose.msra.mxu0 %v1378_v34  ;;  %v6049_v46 = vadd.f32 %v6048_v23, %v6029_v6  ;;  %v6088_v47 = vpop.f32.mrf.mxu1  ;;  %v621_v34 = vld [vmem:[%s19739_s9 + $0x5d8] sm:$0xff]  ;;  %v1391_v23 = vld [vmem:[%s19739_s9 + $0x1de8] sm:$0x3] }
 0x1ab   : > { %7485 = vmatpush.xpose.msra.mxu3 %v1381_v21  ;;  %7445 = vmatpush.xpose.msra.mxu1 %v1379_v24  ;;  %v1392_v21 = vld [vmem:[%s19739_s9 + $0x1df0] sm:$0x3]  ;;  %v1390_v24 = vld [vmem:[%s19739_s9 + $0x1de0] sm:$0x3]  ;;  %v1393_v6 = vld [vmem:[%s19739_s9 + $0x1df8] sm:$0x3] }
 0x1ac   : > { %v6069_v40 = vadd.f32 %v6068_v31, %v6049_v46  ;;  %7387 = vmatmul.f32.vlgmr.msrb.gmra.mxu2 %v20552_v27  ;;  %7347 = vmatmul.f32.vlgmr.msrb.gmra.mxu0 %v20554_v38 }
 0x1ad   : > { %7407 = vmatmul.f32.vlgmr.msrb.gmra.mxu3 %v20556_v56  ;;  %7367 = vmatmul.f32.vlgmr.msrb.gmra.mxu1 %v20559_v57  ;;  %v616_v57 = vld [vmem:[%s19739_s9 + $0x5b0] sm:$0xff] }
 0x1ae   : > { %v6089_v51 = vadd.f32 %v6088_v47, %v6069_v40  ;;  %7466 = vmatpush.xpose.msra.mxu2 %v612_v32  ;;  %7426 = vmatpush.xpose.msra.mxu0 %v610_v33  ;;  %v20678_v32 = vld.sshfl [vmem:[#allocation1 + $0x30] sm:$0xff pattern:$0x73625140]  ;;  %v20680_v33 = vld.sshfl [vmem:[#allocation1 + $0x20] sm:$0xff pattern:$0x73625140] }
 0x1af   : > { %v6108_v52 = vpop.f32.mrf.mxu2  ;;  %7486 = vmatpush.xpose.msra.mxu3 %v613_v63  ;;  %7446 = vmatpush.xpose.msra.mxu1 %v611_v1  ;;  %v622_v40 = vld [vmem:[%s19739_s9 + $0x5e0] sm:$0xff]  ;;  %v293_v1 = vld [vmem:[%s19732_s7 + $0x198] sm:$0xff] }
 0x1b0   : > { %v6109_v27 = vadd.f32 %v6108_v52, %v6089_v51  ;;  %v6128_v38 = vpop.f32.mrf.mxu3  ;;  %v20685_v63 = vld.sshfl [vmem:[#allocation1 + $0x28] sm:$0xff pattern:$0x73625140]  ;;  %v623_v51 = vld [vmem:[%s19739_s9 + $0x5e8] sm:$0xff] }
 0x1b1   : > { %v6148_v56 = vpop.f32.mrf.mxu0  ;;  %2414 = vst [vmem:[#allocation1 + $0x20] ss:$4 sm:$0xff] %v293_v1  ;;  %v20703_v19 = vld.sshfl [vmem:[#allocation1 + $0x18] sm:$0xff pattern:$0x73625140] }
 0x1b2   : > { %7545 = vmatpush.xpose.msrb.mxu2 %v1384_v43  ;;  %7505 = vmatpush.xpose.msrb.mxu0 %v1382_v48  ;;  %v6129_v4 = vadd.f32 %v6128_v38, %v6109_v27  ;;  %v6168_v5 = vpop.f32.mrf.mxu1  ;;  %v625_v48 = vld [vmem:[%s19739_s9 + $0x5f8] sm:$0xff]  ;;  %v1395_v38 = vld [vmem:[%s19739_s9 + $0x1e08] sm:$0x3] }
 0x1b3   : > { %7565 = vmatpush.xpose.msrb.mxu3 %v1385_v35  ;;  %7525 = vmatpush.xpose.msrb.mxu1 %v1383_v45  ;;  %v1396_v35 = vld [vmem:[%s19739_s9 + $0x1e10] sm:$0x3]  ;;  %v1394_v45 = vld [vmem:[%s19739_s9 + $0x1e00] sm:$0x3]  ;;  %v1397_v27 = vld [vmem:[%s19739_s9 + $0x1e18] sm:$0x3] }
 0x1b4   : > { %v6149_v61 = vadd.f32 %v6148_v56, %v6129_v4  ;;  %7467 = vmatmul.f32.vlgmr.msra.gmra.mxu2 %v20573_v49  ;;  %7427 = vmatmul.f32.vlgmr.msra.gmra.mxu0 %v20575_v53 }
 0x1b5   : > { %7487 = vmatmul.f32.vlgmr.msra.gmra.mxu3 %v20577_v13  ;;  %7447 = vmatmul.f32.vlgmr.msra.gmra.mxu1 %v20580_v14  ;;  %v620_v14 = vld [vmem:[%s19739_s9 + $0x5d0] sm:$0xff] }
 0x1b6   : > { %v6169_v7 = vadd.f32 %v6168_v5, %v6149_v61  ;;  %7546 = vmatpush.xpose.msrb.mxu2 %v616_v57  ;;  %7506 = vmatpush.xpose.msrb.mxu0 %v614_v58  ;;  %v20699_v57 = vld.sshfl [vmem:[#allocation1 + $0x10] sm:$0xff pattern:$0x73625140]  ;;  %v20701_v58 = vld.sshfl [vmem:[#allocation1] sm:$0xff pattern:$0x73625140] }
 0x1b7   : > { %v6188_v10 = vpop.f32.mrf.mxu2  ;;  %7566 = vmatpush.xpose.msrb.mxu3 %v617_v20  ;;  %7526 = vmatpush.xpose.msrb.mxu1 %v615_v22  ;;  %v626_v61 = vld [vmem:[%s19739_s9 + $0x600] sm:$0xff] }
 0x1b8   : > { %v6189_v49 = vadd.f32 %v6188_v10, %v6169_v7  ;;  %v6208_v53 = vpop.f32.mrf.mxu3  ;;  %v20706_v20 = vld.sshfl [vmem:[#allocation1 + $0x8] sm:$0xff pattern:$0x73625140]  ;;  %v627_v7 = vld [vmem:[%s19739_s9 + $0x608] sm:$0xff] }
 0x1b9   : > { %v6228_v13 = vpop.f32.mrf.mxu0  ;;  %v294_v22 = vld [vmem:[%s19732_s7 + $0x1a0] sm:$0xff]  ;;  %v20724_v44 = vld.sshfl [vmem:[#allocation1 + $0x38] sm:$0xff pattern:$0x73625140] }
 0x1ba   : > { %7625 = vmatpush.xpose.msra.mxu2 %v1388_v0  ;;  %7585 = vmatpush.xpose.msra.mxu0 %v1386_v3  ;;  %v6209_v25 = vadd.f32 %v6208_v53, %v6189_v49  ;;  %v6248_v26 = vpop.f32.mrf.mxu1  ;;  %v629_v3 = vld [vmem:[%s19739_s9 + $0x618] sm:$0xff]  ;;  %2423 = vst [vmem:[#allocation1] ss:$4 sm:$0xff] %v294_v22  ;;  %v1399_v53 = vld [vmem:[%s19739_s9 + $0x1e28] sm:$0x3] }
 0x1bb   : > { %7645 = vmatpush.xpose.msra.mxu3 %v1389_v50  ;;  %7605 = vmatpush.xpose.msra.mxu1 %v1387_v2  ;;  %v1400_v50 = vld [vmem:[%s19739_s9 + $0x1e30] sm:$0x3]  ;;  %v1398_v2 = vld [vmem:[%s19739_s9 + $0x1e20] sm:$0x3]  ;;  %v1401_v49 = vld [vmem:[%s19739_s9 + $0x1e38] sm:$0x3] }
 0x1bc   : > { %v6229_v18 = vadd.f32 %v6228_v13, %v6209_v25  ;;  %7547 = vmatmul.f32.vlgmr.msrb.gmra.mxu2 %v20594_v8  ;;  %7507 = vmatmul.f32.vlgmr.msrb.gmra.mxu0 %v20596_v9 }
 0x1bd   : > { %7567 = vmatmul.f32.vlgmr.msrb.gmra.mxu3 %v20598_v37  ;;  %7527 = vmatmul.f32.vlgmr.msrb.gmra.mxu1 %v20601_v39  ;;  %v624_v39 = vld [vmem:[%s19739_s9 + $0x5f0] sm:$0xff] }
 0x1be   : > { %v6249_v28 = vadd.f32 %v6248_v26, %v6229_v18  ;;  %7626 = vmatpush.xpose.msra.mxu2 %v620_v14  ;;  %7586 = vmatpush.xpose.msra.mxu0 %v618_v15  ;;  %v20720_v14 = vld.sshfl [vmem:[#allocation1 + $0x30] sm:$0xff pattern:$0x73625140]  ;;  %v20722_v15 = vld.sshfl [vmem:[#allocation1 + $0x20] sm:$0xff pattern:$0x73625140] }
 0x1bf   : > { %v6268_v31 = vpop.f32.mrf.mxu2  ;;  %7646 = vmatpush.xpose.msra.mxu3 %v621_v34  ;;  %7606 = vmatpush.xpose.msra.mxu1 %v619_v36  ;;  %v630_v18 = vld [vmem:[%s19739_s9 + $0x620] sm:$0xff]  ;;  %v295_v36 = vld [vmem:[%s19732_s7 + $0x1a8] sm:$0xff] }
 0x1c0   : > { %v6269_v8 = vadd.f32 %v6268_v31, %v6249_v28  ;;  %v6288_v9 = vpop.f32.mrf.mxu3  ;;  %v20727_v34 = vld.sshfl [vmem:[#allocation1 + $0x28] sm:$0xff pattern:$0x73625140]  ;;  %v631_v28 = vld [vmem:[%s19739_s9 + $0x628] sm:$0xff] }
 0x1c1   : > { %v6308_v37 = vpop.f32.mrf.mxu0  ;;  %2424 = vst [vmem:[#allocation1 + $0x20] ss:$4 sm:$0xff] %v295_v36  ;;  %v20745_v1 = vld.sshfl [vmem:[#allocation1 + $0x18] sm:$0xff pattern:$0x73625140] }
 0x1c2   : > { %7705 = vmatpush.xpose.msrb.mxu2 %v1392_v21  ;;  %7665 = vmatpush.xpose.msrb.mxu0 %v1390_v24  ;;  %v6289_v46 = vadd.f32 %v6288_v9, %v6269_v8  ;;  %v6328_v47 = vpop.f32.mrf.mxu1  ;;  %v633_v24 = vld [vmem:[%s19739_s9 + $0x638] sm:$0xff]  ;;  %v1403_v9 = vld [vmem:[%s19739_s9 + $0x1e48] sm:$0x3] }
 0x1c3   : > { %7725 = vmatpush.xpose.msrb.mxu3 %v1393_v6  ;;  %7685 = vmatpush.xpose.msrb.mxu1 %v1391_v23  ;;  %v1404_v6 = vld [vmem:[%s19739_s9 + $0x1e50] sm:$0x3]  ;;  %v1402_v23 = vld [vmem:[%s19739_s9 + $0x1e40] sm:$0x3]  ;;  %v1405_v8 = vld [vmem:[%s19739_s9 + $0x1e58] sm:$0x3] }
 0x1c4   : > { %v6309_v43 = vadd.f32 %v6308_v37, %v6289_v46  ;;  %7627 = vmatmul.f32.vlgmr.msra.gmra.mxu2 %v20615_v29  ;;  %7587 = vmatmul.f32.vlgmr.msra.gmra.mxu0 %v20617_v30 }
 0x1c5   : > { %7647 = vmatmul.f32.vlgmr.msra.gmra.mxu3 %v20619_v59  ;;  %7607 = vmatmul.f32.vlgmr.msra.gmra.mxu1 %v20622_v60  ;;  %v628_v60 = vld [vmem:[%s19739_s9 + $0x610] sm:$0xff] }
 0x1c6   : > { %v6329_v52 = vadd.f32 %v6328_v47, %v6309_v43  ;;  %7706 = vmatpush.xpose.msrb.mxu2 %v624_v39  ;;  %7666 = vmatpush.xpose.msrb.mxu0 %v622_v40  ;;  %v20741_v39 = vld.sshfl [vmem:[#allocation1 + $0x10] sm:$0xff pattern:$0x73625140]  ;;  %v20743_v40 = vld.sshfl [vmem:[#allocation1] sm:$0xff pattern:$0x73625140] }
 0x1c7   : > { %v6348_v56 = vpop.f32.mrf.mxu2  ;;  %7726 = vmatpush.xpose.msrb.mxu3 %v625_v48  ;;  %7686 = vmatpush.xpose.msrb.mxu1 %v623_v51  ;;  %v634_v43 = vld [vmem:[%s19739_s9 + $0x640] sm:$0xff]  ;;  %v296_v51 = vld [vmem:[%s19732_s7 + $0x1b0] sm:$0xff] }
 0x1c8   : > { %v6349_v29 = vadd.f32 %v6348_v56, %v6329_v52  ;;  %v6368_v30 = vpop.f32.mrf.mxu3  ;;  %v20748_v48 = vld.sshfl [vmem:[#allocation1 + $0x8] sm:$0xff pattern:$0x73625140]  ;;  %v635_v52 = vld [vmem:[%s19739_s9 + $0x648] sm:$0xff] }
 0x1c9   : > { %v6388_v59 = vpop.f32.mrf.mxu0  ;;  %2433 = vst [vmem:[#allocation1] ss:$4 sm:$0xff] %v296_v51  ;;  %v20766_v22 = vld.sshfl [vmem:[#allocation1 + $0x38] sm:$0xff pattern:$0x73625140] }
 0x1ca   : > { %7785 = vmatpush.xpose.msra.mxu2 %v1396_v35  ;;  %7745 = vmatpush.xpose.msra.mxu0 %v1394_v45  ;;  %v6369_v4 = vadd.f32 %v6368_v30, %v6349_v29  ;;  %v6408_v5 = vpop.f32.mrf.mxu1  ;;  %v637_v45 = vld [vmem:[%s19739_s9 + $0x658] sm:$0xff]  ;;  %v1407_v30 = vld [vmem:[%s19739_s9 + $0x1e68] sm:$0x3] }
 0x1cb   : > { %7805 = vmatpush.xpose.msra.mxu3 %v1397_v27  ;;  %7765 = vmatpush.xpose.msra.mxu1 %v1395_v38  ;;  %v1408_v27 = vld [vmem:[%s19739_s9 + $0x1e70] sm:$0x3]  ;;  %v1406_v38 = vld [vmem:[%s19739_s9 + $0x1e60] sm:$0x3]  ;;  %v1409_v29 = vld [vmem:[%s19739_s9 + $0x1e78] sm:$0x3] }
 0x1cc   : > { %v6389_v0 = vadd.f32 %v6388_v59, %v6369_v4  ;;  %7707 = vmatmul.f32.vlgmr.msrb.gmra.mxu2 %v20636_v54  ;;  %7667 = vmatmul.f32.vlgmr.msrb.gmra.mxu0 %v20638_v55 }
 0x1cd   : > { %7727 = vmatmul.f32.vlgmr.msrb.gmra.mxu3 %v20640_v16  ;;  %7687 = vmatmul.f32.vlgmr.msrb.gmra.mxu1 %v20643_v17  ;;  %v632_v17 = vld [vmem:[%s19739_s9 + $0x630] sm:$0xff] }
 0x1ce   : > { %v6409_v10 = vadd.f32 %v6408_v5, %v6389_v0  ;;  %7786 = vmatpush.xpose.msra.mxu2 %v628_v60  ;;  %7746 = vmatpush.xpose.msra.mxu0 %v626_v61  ;;  %v20762_v60 = vld.sshfl [vmem:[#allocation1 + $0x30] sm:$0xff pattern:$0x73625140]  ;;  %v20764_v61 = vld.sshfl [vmem:[#allocation1 + $0x20] sm:$0xff pattern:$0x73625140] }
 0x1cf   : > { %v6428_v13 = vpop.f32.mrf.mxu2  ;;  %7806 = vmatpush.xpose.msra.mxu3 %v629_v3  ;;  %7766 = vmatpush.xpose.msra.mxu1 %v627_v7  ;;  %v638_v0 = vld [vmem:[%s19739_s9 + $0x660] sm:$0xff]  ;;  %v297_v7 = vld [vmem:[%s19732_s7 + $0x1b8] sm:$0xff] }
 0x1d0   : > { %v6429_v54 = vadd.f32 %v6428_v13, %v6409_v10  ;;  %v6448_v55 = vpop.f32.mrf.mxu3  ;;  %v20769_v3 = vld.sshfl [vmem:[#allocation1 + $0x28] sm:$0xff pattern:$0x73625140]  ;;  %v639_v10 = vld [vmem:[%s19739_s9 + $0x668] sm:$0xff] }
 0x1d1   : > { %v6468_v16 = vpop.f32.mrf.mxu0  ;;  %2434 = vst [vmem:[#allocation1 + $0x20] ss:$4 sm:$0xff] %v297_v7  ;;  %v20787_v36 = vld.sshfl [vmem:[#allocation1 + $0x18] sm:$0xff pattern:$0x73625140] }
 0x1d2   : > { %7865 = vmatpush.xpose.msrb.mxu2 %v1400_v50  ;;  %7825 = vmatpush.xpose.msrb.mxu0 %v1398_v2  ;;  %v6449_v25 = vadd.f32 %v6448_v55, %v6429_v54  ;;  %v6488_v26 = vpop.f32.mrf.mxu1  ;;  %v641_v2 = vld [vmem:[%s19739_s9 + $0x678] sm:$0xff]  ;;  %v1411_v55 = vld [vmem:[%s19739_s9 + $0x1e88] sm:$0x3] }
 0x1d3   : > { %7885 = vmatpush.xpose.msrb.mxu3 %v1401_v49  ;;  %7845 = vmatpush.xpose.msrb.mxu1 %v1399_v53  ;;  %v1412_v49 = vld [vmem:[%s19739_s9 + $0x1e90] sm:$0x3]  ;;  %v1410_v53 = vld [vmem:[%s19739_s9 + $0x1e80] sm:$0x3]  ;;  %v1413_v54 = vld [vmem:[%s19739_s9 + $0x1e98] sm:$0x3] }
 0x1d4   : > { %v6469_v21 = vadd.f32 %v6468_v16, %v6449_v25  ;;  %7787 = vmatmul.f32.vlgmr.msra.gmra.mxu2 %v20657_v11  ;;  %7747 = vmatmul.f32.vlgmr.msra.gmra.mxu0 %v20659_v12 }
 0x1d5   : > { %7807 = vmatmul.f32.vlgmr.msra.gmra.mxu3 %v20661_v41  ;;  %7767 = vmatmul.f32.vlgmr.msra.gmra.mxu1 %v20664_v42  ;;  %v636_v42 = vld [vmem:[%s19739_s9 + $0x650] sm:$0xff] }
 0x1d6   : > { %v6489_v31 = vadd.f32 %v6488_v26, %v6469_v21  ;;  %7866 = vmatpush.xpose.msrb.mxu2 %v632_v17  ;;  %7826 = vmatpush.xpose.msrb.mxu0 %v630_v18  ;;  %v20783_v17 = vld.sshfl [vmem:[#allocation1 + $0x10] sm:$0xff pattern:$0x73625140]  ;;  %v20785_v18 = vld.sshfl [vmem:[#allocation1] sm:$0xff pattern:$0x73625140] }
 0x1d7   : > { %v6508_v37 = vpop.f32.mrf.mxu2  ;;  %7886 = vmatpush.xpose.msrb.mxu3 %v633_v24  ;;  %7846 = vmatpush.xpose.msrb.mxu1 %v631_v28  ;;  %v642_v21 = vld [vmem:[%s19739_s9 + $0x680] sm:$0xff] }
 0x1d8   : > { %v6509_v11 = vadd.f32 %v6508_v37, %v6489_v31  ;;  %v6528_v12 = vpop.f32.mrf.mxu3  ;;  %v20790_v24 = vld.sshfl [vmem:[#allocation1 + $0x8] sm:$0xff pattern:$0x73625140]  ;;  %v643_v31 = vld [vmem:[%s19739_s9 + $0x688] sm:$0xff] }
 0x1d9   : > { %v6548_v41 = vpop.f32.mrf.mxu0  ;;  %v298_v28 = vld [vmem:[%s19732_s7 + $0x1c0] sm:$0xff]  ;;  %v20808_v51 = vld.sshfl [vmem:[#allocation1 + $0x38] sm:$0xff pattern:$0x73625140] }
 0x1da   : > { %7945 = vmatpush.xpose.msra.mxu2 %v1404_v6  ;;  %7905 = vmatpush.xpose.msra.mxu0 %v1402_v23  ;;  %v6529_v46 = vadd.f32 %v6528_v12, %v6509_v11  ;;  %v6568_v47 = vpop.f32.mrf.mxu1  ;;  %v645_v23 = vld [vmem:[%s19739_s9 + $0x698] sm:$0xff]  ;;  %2443 = vst [vmem:[#allocation1] ss:$4 sm:$0xff] %v298_v28  ;;  %v1415_v12 = vld [vmem:[%s19739_s9 + $0x1ea8] sm:$0x3] }
 0x1db   : > { %7965 = vmatpush.xpose.msra.mxu3 %v1405_v8  ;;  %7925 = vmatpush.xpose.msra.mxu1 %v1403_v9  ;;  %v1416_v8 = vld [vmem:[%s19739_s9 + $0x1eb0] sm:$0x3]  ;;  %v1414_v9 = vld [vmem:[%s19739_s9 + $0x1ea0] sm:$0x3]  ;;  %v1417_v11 = vld [vmem:[%s19739_s9 + $0x1eb8] sm:$0x3] }
 0x1dc   : > { %v6549_v35 = vadd.f32 %v6548_v41, %v6529_v46  ;;  %7867 = vmatmul.f32.vlgmr.msrb.gmra.mxu2 %v20678_v32  ;;  %7827 = vmatmul.f32.vlgmr.msrb.gmra.mxu0 %v20680_v33 }
 0x1dd   : > { %7887 = vmatmul.f32.vlgmr.msrb.gmra.mxu3 %v20682_v62  ;;  %7847 = vmatmul.f32.vlgmr.msrb.gmra.mxu1 %v20685_v63  ;;  %v640_v63 = vld [vmem:[%s19739_s9 + $0x670] sm:$0xff] }
 0x1de   : > { %v6569_v56 = vadd.f32 %v6568_v47, %v6549_v35  ;;  %7946 = vmatpush.xpose.msra.mxu2 %v636_v42  ;;  %7906 = vmatpush.xpose.msra.mxu0 %v634_v43  ;;  %v20804_v42 = vld.sshfl [vmem:[#allocation1 + $0x30] sm:$0xff pattern:$0x73625140]  ;;  %v20806_v43 = vld.sshfl [vmem:[#allocation1 + $0x20] sm:$0xff pattern:$0x73625140] }
 0x1df   : > { %v6588_v59 = vpop.f32.mrf.mxu2  ;;  %7966 = vmatpush.xpose.msra.mxu3 %v637_v45  ;;  %7926 = vmatpush.xpose.msra.mxu1 %v635_v52  ;;  %v646_v35 = vld [vmem:[%s19739_s9 + $0x6a0] sm:$0xff]  ;;  %v299_v52 = vld [vmem:[%s19732_s7 + $0x1c8] sm:$0xff] }
 0x1e0   : > { %v6589_v32 = vadd.f32 %v6588_v59, %v6569_v56  ;;  %v6608_v33 = vpop.f32.mrf.mxu3  ;;  %v20811_v45 = vld.sshfl [vmem:[#allocation1 + $0x28] sm:$0xff pattern:$0x73625140]  ;;  %v647_v56 = vld [vmem:[%s19739_s9 + $0x6a8] sm:$0xff] }
 0x1e1   : > { %v6628_v62 = vpop.f32.mrf.mxu0  ;;  %2444 = vst [vmem:[#allocation1 + $0x20] ss:$4 sm:$0xff] %v299_v52  ;;  %v20829_v7 = vld.sshfl [vmem:[#allocation1 + $0x18] sm:$0xff pattern:$0x73625140] }
 0x1e2   : > { %8025 = vmatpush.xpose.msrb.mxu2 %v1408_v27  ;;  %7985 = vmatpush.xpose.msrb.mxu0 %v1406_v38  ;;  %v6609_v4 = vadd.f32 %v6608_v33, %v6589_v32  ;;  %v6648_v5 = vpop.f32.mrf.mxu1  ;;  %v649_v38 = vld [vmem:[%s19739_s9 + $0x6b8] sm:$0xff]  ;;  %v1419_v33 = vld [vmem:[%s19739_s9 + $0x1ec8] sm:$0x3] }
 0x1e3   : > { %8045 = vmatpush.xpose.msrb.mxu3 %v1409_v29  ;;  %8005 = vmatpush.xpose.msrb.mxu1 %v1407_v30  ;;  %v1420_v29 = vld [vmem:[%s19739_s9 + $0x1ed0] sm:$0x3]  ;;  %v1418_v30 = vld [vmem:[%s19739_s9 + $0x1ec0] sm:$0x3]  ;;  %v1421_v32 = vld [vmem:[%s19739_s9 + $0x1ed8] sm:$0x3] }
 0x1e4   : > { %v6629_v50 = vadd.f32 %v6628_v62, %v6609_v4  ;;  %7947 = vmatmul.f32.vlgmr.msra.gmra.mxu2 %v20699_v57  ;;  %7907 = vmatmul.f32.vlgmr.msra.gmra.mxu0 %v20701_v58 }
 0x1e5   : > { %7967 = vmatmul.f32.vlgmr.msra.gmra.mxu3 %v20703_v19  ;;  %7927 = vmatmul.f32.vlgmr.msra.gmra.mxu1 %v20706_v20  ;;  %v644_v20 = vld [vmem:[%s19739_s9 + $0x690] sm:$0xff] }
 0x1e6   : > { %v6649_v13 = vadd.f32 %v6648_v5, %v6629_v50  ;;  %8026 = vmatpush.xpose.msrb.mxu2 %v640_v63  ;;  %7986 = vmatpush.xpose.msrb.mxu0 %v638_v0  ;;  %v20825_v63 = vld.sshfl [vmem:[#allocation1 + $0x10] sm:$0xff pattern:$0x73625140]  ;;  %v20827_v0 = vld.sshfl [vmem:[#allocation1] sm:$0xff pattern:$0x73625140] }
 0x1e7   : > { %v6668_v16 = vpop.f32.mrf.mxu2  ;;  %8046 = vmatpush.xpose.msrb.mxu3 %v641_v2  ;;  %8006 = vmatpush.xpose.msrb.mxu1 %v639_v10  ;;  %v650_v50 = vld [vmem:[%s19739_s9 + $0x6c0] sm:$0xff]  ;;  %v300_v10 = vld [vmem:[%s19732_s7 + $0x1d0] sm:$0xff] }
 0x1e8   : > { %v6669_v57 = vadd.f32 %v6668_v16, %v6649_v13  ;;  %v6688_v58 = vpop.f32.mrf.mxu3  ;;  %v20832_v2 = vld.sshfl [vmem:[#allocation1 + $0x8] sm:$0xff pattern:$0x73625140]  ;;  %v651_v13 = vld [vmem:[%s19739_s9 + $0x6c8] sm:$0xff] }
 0x1e9   : > { %v6708_v19 = vpop.f32.mrf.mxu0  ;;  %2453 = vst [vmem:[#allocation1] ss:$4 sm:$0xff] %v300_v10  ;;  %v20850_v28 = vld.sshfl [vmem:[#allocation1 + $0x38] sm:$0xff pattern:$0x73625140] }
 0x1ea   : > { %8105 = vmatpush.xpose.msra.mxu2 %v1412_v49  ;;  %8065 = vmatpush.xpose.msra.mxu0 %v1410_v53  ;;  %v6689_v25 = vadd.f32 %v6688_v58, %v6669_v57  ;;  %v6728_v26 = vpop.f32.mrf.mxu1  ;;  %v653_v53 = vld [vmem:[%s19739_s9 + $0x6d8] sm:$0xff]  ;;  %v1423_v58 = vld [vmem:[%s19739_s9 + $0x1ee8] sm:$0x3] }
 0x1eb   : > { %8125 = vmatpush.xpose.msra.mxu3 %v1413_v54  ;;  %8085 = vmatpush.xpose.msra.mxu1 %v1411_v55  ;;  %v1424_v54 = vld [vmem:[%s19739_s9 + $0x1ef0] sm:$0x3]  ;;  %v1422_v55 = vld [vmem:[%s19739_s9 + $0x1ee0] sm:$0x3]  ;;  %v1425_v57 = vld [vmem:[%s19739_s9 + $0x1ef8] sm:$0x3] }
 0x1ec   : > { %v6709_v6 = vadd.f32 %v6708_v19, %v6689_v25  ;;  %8027 = vmatmul.f32.vlgmr.msrb.gmra.mxu2 %v20720_v14  ;;  %7987 = vmatmul.f32.vlgmr.msrb.gmra.mxu0 %v20722_v15 }
 0x1ed   : > { %8047 = vmatmul.f32.vlgmr.msrb.gmra.mxu3 %v20724_v44  ;;  %8007 = vmatmul.f32.vlgmr.msrb.gmra.mxu1 %v20727_v34  ;;  %v648_v34 = vld [vmem:[%s19739_s9 + $0x6b0] sm:$0xff] }
 0x1ee   : > { %v6729_v37 = vadd.f32 %v6728_v26, %v6709_v6  ;;  %8106 = vmatpush.xpose.msra.mxu2 %v644_v20  ;;  %8066 = vmatpush.xpose.msra.mxu0 %v642_v21  ;;  %v20846_v20 = vld.sshfl [vmem:[#allocation1 + $0x30] sm:$0xff pattern:$0x73625140]  ;;  %v20848_v21 = vld.sshfl [vmem:[#allocation1 + $0x20] sm:$0xff pattern:$0x73625140] }
 0x1ef   : > { %v6748_v41 = vpop.f32.mrf.mxu2  ;;  %8126 = vmatpush.xpose.msra.mxu3 %v645_v23  ;;  %8086 = vmatpush.xpose.msra.mxu1 %v643_v31  ;;  %v654_v6 = vld [vmem:[%s19739_s9 + $0x6e0] sm:$0xff]  ;;  %v301_v31 = vld [vmem:[%s19732_s7 + $0x1d8] sm:$0xff] }
 0x1f0   : > { %v6749_v14 = vadd.f32 %v6748_v41, %v6729_v37  ;;  %v6768_v15 = vpop.f32.mrf.mxu3  ;;  %v20853_v23 = vld.sshfl [vmem:[#allocation1 + $0x28] sm:$0xff pattern:$0x73625140]  ;;  %v655_v37 = vld [vmem:[%s19739_s9 + $0x6e8] sm:$0xff] }
 0x1f1   : > { %v6788_v44 = vpop.f32.mrf.mxu0  ;;  %2454 = vst [vmem:[#allocation1 + $0x20] ss:$4 sm:$0xff] %v301_v31  ;;  %v20871_v52 = vld.sshfl [vmem:[#allocation1 + $0x18] sm:$0xff pattern:$0x73625140] }
 0x1f2   : > { %8185 = vmatpush.xpose.msrb.mxu2 %v1416_v8  ;;  %8145 = vmatpush.xpose.msrb.mxu0 %v1414_v9  ;;  %v6769_v46 = vadd.f32 %v6768_v15, %v6749_v14  ;;  %v6808_v47 = vpop.f32.mrf.mxu1  ;;  %v657_v9 = vld [vmem:[%s19739_s9 + $0x6f8] sm:$0xff]  ;;  %v1427_v15 = vld [vmem:[%s19739_s9 + $0x1f08] sm:$0x3] }
 0x1f3   : > { %8205 = vmatpush.xpose.msrb.mxu3 %v1417_v11  ;;  %8165 = vmatpush.xpose.msrb.mxu1 %v1415_v12  ;;  %v1428_v11 = vld [vmem:[%s19739_s9 + $0x1f10] sm:$0x3]  ;;  %v1426_v12 = vld [vmem:[%s19739_s9 + $0x1f00] sm:$0x3]  ;;  %v1429_v14 = vld [vmem:[%s19739_s9 + $0x1f18] sm:$0x3] }
 0x1f4   : > { %v6789_v27 = vadd.f32 %v6788_v44, %v6769_v46  ;;  %8107 = vmatmul.f32.vlgmr.msra.gmra.mxu2 %v20741_v39  ;;  %8067 = vmatmul.f32.vlgmr.msra.gmra.mxu0 %v20743_v40 }
 0x1f5   : > { %8127 = vmatmul.f32.vlgmr.msra.gmra.mxu3 %v20745_v1  ;;  %8087 = vmatmul.f32.vlgmr.msra.gmra.mxu1 %v20748_v48  ;;  %v652_v48 = vld [vmem:[%s19739_s9 + $0x6d0] sm:$0xff] }
 0x1f6   : > { %v6809_v59 = vadd.f32 %v6808_v47, %v6789_v27  ;;  %8186 = vmatpush.xpose.msrb.mxu2 %v648_v34  ;;  %8146 = vmatpush.xpose.msrb.mxu0 %v646_v35  ;;  %v20867_v34 = vld.sshfl [vmem:[#allocation1 + $0x10] sm:$0xff pattern:$0x73625140]  ;;  %v20869_v35 = vld.sshfl [vmem:[#allocation1] sm:$0xff pattern:$0x73625140] }
 0x1f7   : > { %v6828_v62 = vpop.f32.mrf.mxu2  ;;  %8206 = vmatpush.xpose.msrb.mxu3 %v649_v38  ;;  %8166 = vmatpush.xpose.msrb.mxu1 %v647_v56  ;;  %v658_v27 = vld [vmem:[%s19739_s9 + $0x700] sm:$0xff] }
 0x1f8   : > { %v6829_v39 = vadd.f32 %v6828_v62, %v6809_v59  ;;  %v6848_v40 = vpop.f32.mrf.mxu3  ;;  %v20874_v38 = vld.sshfl [vmem:[#allocation1 + $0x8] sm:$0xff pattern:$0x73625140]  ;;  %v659_v59 = vld [vmem:[%s19739_s9 + $0x708] sm:$0xff] }
 0x1f9   : > { %v6868_v1 = vpop.f32.mrf.mxu0  ;;  %v302_v56 = vld [vmem:[%s19732_s7 + $0x1e0] sm:$0xff]  ;;  %v20892_v10 = vld.sshfl [vmem:[#allocation1 + $0x38] sm:$0xff pattern:$0x73625140] }
 0x1fa   : > { %8265 = vmatpush.xpose.msra.mxu2 %v1420_v29  ;;  %8225 = vmatpush.xpose.msra.mxu0 %v1418_v30  ;;  %v6849_v4 = vadd.f32 %v6848_v40, %v6829_v39  ;;  %v6888_v5 = vpop.f32.mrf.mxu1  ;;  %v661_v30 = vld [vmem:[%s19739_s9 + $0x718] sm:$0xff]  ;;  %2463 = vst [vmem:[#allocation1] ss:$4 sm:$0xff] %v302_v56  ;;  %v1431_v40 = vld [vmem:[%s19739_s9 + $0x1f28] sm:$0x3] }
 0x1fb   : > { %8285 = vmatpush.xpose.msra.mxu3 %v1421_v32  ;;  %8245 = vmatpush.xpose.msra.mxu1 %v1419_v33  ;;  %v1432_v32 = vld [vmem:[%s19739_s9 + $0x1f30] sm:$0x3]  ;;  %v1430_v33 = vld [vmem:[%s19739_s9 + $0x1f20] sm:$0x3]  ;;  %v1433_v39 = vld [vmem:[%s19739_s9 + $0x1f38] sm:$0x3] }
 0x1fc   : > { %v6869_v49 = vadd.f32 %v6868_v1, %v6849_v4  ;;  %8187 = vmatmul.f32.vlgmr.msrb.gmra.mxu2 %v20762_v60  ;;  %8147 = vmatmul.f32.vlgmr.msrb.gmra.mxu0 %v20764_v61 }
 0x1fd   : > { %8207 = vmatmul.f32.vlgmr.msrb.gmra.mxu3 %v20766_v22  ;;  %8167 = vmatmul.f32.vlgmr.msrb.gmra.mxu1 %v20769_v3  ;;  %v656_v3 = vld [vmem:[%s19739_s9 + $0x6f0] sm:$0xff] }
 0x1fe   : > { %v6889_v16 = vadd.f32 %v6888_v5, %v6869_v49  ;;  %8266 = vmatpush.xpose.msra.mxu2 %v652_v48  ;;  %8226 = vmatpush.xpose.msra.mxu0 %v650_v50  ;;  %v20888_v48 = vld.sshfl [vmem:[#allocation1 + $0x30] sm:$0xff pattern:$0x73625140]  ;;  %v20890_v50 = vld.sshfl [vmem:[#allocation1 + $0x20] sm:$0xff pattern:$0x73625140] }
 0x1ff   : > { %v6908_v19 = vpop.f32.mrf.mxu2  ;;  %8286 = vmatpush.xpose.msra.mxu3 %v653_v53  ;;  %8246 = vmatpush.xpose.msra.mxu1 %v651_v13  ;;  %v662_v49 = vld [vmem:[%s19739_s9 + $0x720] sm:$0xff]  ;;  %v303_v13 = vld [vmem:[%s19732_s7 + $0x1e8] sm:$0xff] }
 0x200   : > { %v6909_v60 = vadd.f32 %v6908_v19, %v6889_v16  ;;  %v6928_v61 = vpop.f32.mrf.mxu3  ;;  %v20895_v53 = vld.sshfl [vmem:[#allocation1 + $0x28] sm:$0xff pattern:$0x73625140]  ;;  %v663_v16 = vld [vmem:[%s19739_s9 + $0x728] sm:$0xff] }
 0x201   : > { %v6948_v22 = vpop.f32.mrf.mxu0  ;;  %2464 = vst [vmem:[#allocation1 + $0x20] ss:$4 sm:$0xff] %v303_v13  ;;  %v20913_v31 = vld.sshfl [vmem:[#allocation1 + $0x18] sm:$0xff pattern:$0x73625140] }
 0x202   : > { %8345 = vmatpush.xpose.msrb.mxu2 %v1424_v54  ;;  %8305 = vmatpush.xpose.msrb.mxu0 %v1422_v55  ;;  %v6929_v25 = vadd.f32 %v6928_v61, %v6909_v60  ;;  %v6968_v26 = vpop.f32.mrf.mxu1  ;;  %v665_v55 = vld [vmem:[%s19739_s9 + $0x738] sm:$0xff]  ;;  %v1435_v61 = vld [vmem:[%s19739_s9 + $0x1f48] sm:$0x3] }
 0x203   : > { %8365 = vmatpush.xpose.msrb.mxu3 %v1425_v57  ;;  %8325 = vmatpush.xpose.msrb.mxu1 %v1423_v58  ;;  %v1436_v57 = vld [vmem:[%s19739_s9 + $0x1f50] sm:$0x3]  ;;  %v1434_v58 = vld [vmem:[%s19739_s9 + $0x1f40] sm:$0x3]  ;;  %v1437_v60 = vld [vmem:[%s19739_s9 + $0x1f58] sm:$0x3] }
 0x204   : > { %v6949_v8 = vadd.f32 %v6948_v22, %v6929_v25  ;;  %8267 = vmatmul.f32.vlgmr.msra.gmra.mxu2 %v20783_v17  ;;  %8227 = vmatmul.f32.vlgmr.msra.gmra.mxu0 %v20785_v18 }
 0x205   : > { %8287 = vmatmul.f32.vlgmr.msra.gmra.mxu3 %v20787_v36  ;;  %8247 = vmatmul.f32.vlgmr.msra.gmra.mxu1 %v20790_v24  ;;  %v660_v24 = vld [vmem:[%s19739_s9 + $0x710] sm:$0xff] }
 0x206   : > { %v6969_v41 = vadd.f32 %v6968_v26, %v6949_v8  ;;  %8346 = vmatpush.xpose.msrb.mxu2 %v656_v3  ;;  %8306 = vmatpush.xpose.msrb.mxu0 %v654_v6  ;;  %v20909_v3 = vld.sshfl [vmem:[#allocation1 + $0x10] sm:$0xff pattern:$0x73625140]  ;;  %v20911_v6 = vld.sshfl [vmem:[#allocation1] sm:$0xff pattern:$0x73625140] }
 0x207   : > { %v6988_v44 = vpop.f32.mrf.mxu2  ;;  %8366 = vmatpush.xpose.msrb.mxu3 %v657_v9  ;;  %8326 = vmatpush.xpose.msrb.mxu1 %v655_v37  ;;  %v666_v8 = vld [vmem:[%s19739_s9 + $0x740] sm:$0xff]  ;;  %v304_v37 = vld [vmem:[%s19732_s7 + $0x1f0] sm:$0xff] }
 0x208   : > { %v6989_v17 = vadd.f32 %v6988_v44, %v6969_v41  ;;  %v7008_v18 = vpop.f32.mrf.mxu3  ;;  %v20916_v9 = vld.sshfl [vmem:[#allocation1 + $0x8] sm:$0xff pattern:$0x73625140]  ;;  %v667_v41 = vld [vmem:[%s19739_s9 + $0x748] sm:$0xff] }
 0x209   : > { %v7028_v36 = vpop.f32.mrf.mxu0  ;;  %2473 = vst [vmem:[#allocation1] ss:$4 sm:$0xff] %v304_v37  ;;  %v20934_v56 = vld.sshfl [vmem:[#allocation1 + $0x38] sm:$0xff pattern:$0x73625140] }
 0x20a   : > { %8425 = vmatpush.xpose.msra.mxu2 %v1428_v11  ;;  %8385 = vmatpush.xpose.msra.mxu0 %v1426_v12  ;;  %v7009_v46 = vadd.f32 %v7008_v18, %v6989_v17  ;;  %v7048_v47 = vpop.f32.mrf.mxu1  ;;  %v669_v12 = vld [vmem:[%s19739_s9 + $0x758] sm:$0xff]  ;;  %v1439_v18 = vld [vmem:[%s19739_s9 + $0x1f68] sm:$0x3] }
 0x20b   : > { %8445 = vmatpush.xpose.msra.mxu3 %v1429_v14  ;;  %8405 = vmatpush.xpose.msra.mxu1 %v1427_v15  ;;  %v1440_v14 = vld [vmem:[%s19739_s9 + $0x1f70] sm:$0x3]  ;;  %v1438_v15 = vld [vmem:[%s19739_s9 + $0x1f60] sm:$0x3]  ;;  %v1441_v17 = vld [vmem:[%s19739_s9 + $0x1f78] sm:$0x3] }
 0x20c   : > { %v7029_v29 = vadd.f32 %v7028_v36, %v7009_v46  ;;  %8347 = vmatmul.f32.vlgmr.msrb.gmra.mxu2 %v20804_v42  ;;  %8307 = vmatmul.f32.vlgmr.msrb.gmra.mxu0 %v20806_v43 }
 0x20d   : > { %8367 = vmatmul.f32.vlgmr.msrb.gmra.mxu3 %v20808_v51  ;;  %8327 = vmatmul.f32.vlgmr.msrb.gmra.mxu1 %v20811_v45  ;;  %v664_v45 = vld [vmem:[%s19739_s9 + $0x730] sm:$0xff] }
 0x20e   : > { %v7049_v62 = vadd.f32 %v7048_v47, %v7029_v29  ;;  %8426 = vmatpush.xpose.msra.mxu2 %v660_v24  ;;  %8386 = vmatpush.xpose.msra.mxu0 %v658_v27  ;;  %v20930_v24 = vld.sshfl [vmem:[#allocation1 + $0x30] sm:$0xff pattern:$0x73625140]  ;;  %v20932_v27 = vld.sshfl [vmem:[#allocation1 + $0x20] sm:$0xff pattern:$0x73625140] }
 0x20f   : > { %v7068_v1 = vpop.f32.mrf.mxu2  ;;  %8446 = vmatpush.xpose.msra.mxu3 %v661_v30  ;;  %8406 = vmatpush.xpose.msra.mxu1 %v659_v59  ;;  %v670_v29 = vld [vmem:[%s19739_s9 + $0x760] sm:$0xff]  ;;  %v305_v59 = vld [vmem:[%s19732_s7 + $0x1f8] sm:$0xff] }
 0x210   : > { %v7069_v42 = vadd.f32 %v7068_v1, %v7049_v62  ;;  %v7088_v43 = vpop.f32.mrf.mxu3  ;;  %v20937_v30 = vld.sshfl [vmem:[#allocation1 + $0x28] sm:$0xff pattern:$0x73625140]  ;;  %v671_v62 = vld [vmem:[%s19739_s9 + $0x768] sm:$0xff] }
 0x211   : > { %v7108_v51 = vpop.f32.mrf.mxu0  ;;  %2474 = vst [vmem:[#allocation1 + $0x20] ss:$4 sm:$0xff] %v305_v59  ;;  %v20955_v13 = vld.sshfl [vmem:[#allocation1 + $0x18] sm:$0xff pattern:$0x73625140] }
 0x212   : > { %8505 = vmatpush.xpose.msrb.mxu2 %v1432_v32  ;;  %8465 = vmatpush.xpose.msrb.mxu0 %v1430_v33  ;;  %v7089_v4 = vadd.f32 %v7088_v43, %v7069_v42  ;;  %v7128_v5 = vpop.f32.mrf.mxu1  ;;  %v673_v33 = vld [vmem:[%s19739_s9 + $0x778] sm:$0xff]  ;;  %v1443_v43 = vld [vmem:[%s19739_s9 + $0x1f88] sm:$0x3] }
 0x213   : > { %8525 = vmatpush.xpose.msrb.mxu3 %v1433_v39  ;;  %8485 = vmatpush.xpose.msrb.mxu1 %v1431_v40  ;;  %v1444_v39 = vld [vmem:[%s19739_s9 + $0x1f90] sm:$0x3]  ;;  %v1442_v40 = vld [vmem:[%s19739_s9 + $0x1f80] sm:$0x3]  ;;  %v1445_v42 = vld [vmem:[%s19739_s9 + $0x1f98] sm:$0x3] }
 0x214   : > { %v7109_v54 = vadd.f32 %v7108_v51, %v7089_v4  ;;  %8427 = vmatmul.f32.vlgmr.msra.gmra.mxu2 %v20825_v63  ;;  %8387 = vmatmul.f32.vlgmr.msra.gmra.mxu0 %v20827_v0 }
 0x215   : > { %8447 = vmatmul.f32.vlgmr.msra.gmra.mxu3 %v20829_v7  ;;  %8407 = vmatmul.f32.vlgmr.msra.gmra.mxu1 %v20832_v2  ;;  %v668_v2 = vld [vmem:[%s19739_s9 + $0x750] sm:$0xff] }
 0x216   : > { %v7129_v19 = vadd.f32 %v7128_v5, %v7109_v54  ;;  %8506 = vmatpush.xpose.msrb.mxu2 %v664_v45  ;;  %8466 = vmatpush.xpose.msrb.mxu0 %v662_v49  ;;  %v20951_v45 = vld.sshfl [vmem:[#allocation1 + $0x10] sm:$0xff pattern:$0x73625140]  ;;  %v20953_v49 = vld.sshfl [vmem:[#allocation1] sm:$0xff pattern:$0x73625140] }
 0x217   : > { %v7148_v22 = vpop.f32.mrf.mxu2  ;;  %8526 = vmatpush.xpose.msrb.mxu3 %v665_v55  ;;  %8486 = vmatpush.xpose.msrb.mxu1 %v663_v16  ;;  %v674_v54 = vld [vmem:[%s19739_s9 + $0x780] sm:$0xff] }
 0x218   : > { %v7149_v63 = vadd.f32 %v7148_v22, %v7129_v19  ;;  %v7168_v0 = vpop.f32.mrf.mxu3  ;;  %v20958_v55 = vld.sshfl [vmem:[#allocation1 + $0x8] sm:$0xff pattern:$0x73625140]  ;;  %v675_v19 = vld [vmem:[%s19739_s9 + $0x788] sm:$0xff] }
 0x219   : > { %v7188_v7 = vpop.f32.mrf.mxu0  ;;  %v306_v16 = vld [vmem:[%s19732_s7 + $0x200] sm:$0xff]  ;;  %v20976_v37 = vld.sshfl [vmem:[#allocation1 + $0x38] sm:$0xff pattern:$0x73625140] }
 0x21a   : > { %8585 = vmatpush.xpose.msra.mxu2 %v1436_v57  ;;  %8545 = vmatpush.xpose.msra.mxu0 %v1434_v58  ;;  %v7169_v25 = vadd.f32 %v7168_v0, %v7149_v63  ;;  %v7208_v26 = vpop.f32.mrf.mxu1  ;;  %v677_v58 = vld [vmem:[%s19739_s9 + $0x798] sm:$0xff]  ;;  %2483 = vst [vmem:[#allocation1] ss:$4 sm:$0xff] %v306_v16  ;;  %v1447_v0 = vld [vmem:[%s19739_s9 + $0x1fa8] sm:$0x3] }
 0x21b   : > { %8605 = vmatpush.xpose.msra.mxu3 %v1437_v60  ;;  %8565 = vmatpush.xpose.msra.mxu1 %v1435_v61  ;;  %v1448_v60 = vld [vmem:[%s19739_s9 + $0x1fb0] sm:$0x3]  ;;  %v1446_v61 = vld [vmem:[%s19739_s9 + $0x1fa0] sm:$0x3]  ;;  %v1449_v63 = vld [vmem:[%s19739_s9 + $0x1fb8] sm:$0x3] }
 0x21c   : > { %v7189_v11 = vadd.f32 %v7188_v7, %v7169_v25  ;;  %8507 = vmatmul.f32.vlgmr.msrb.gmra.mxu2 %v20846_v20  ;;  %8467 = vmatmul.f32.vlgmr.msrb.gmra.mxu0 %v20848_v21 }
 0x21d   : > { %8527 = vmatmul.f32.vlgmr.msrb.gmra.mxu3 %v20850_v28  ;;  %8487 = vmatmul.f32.vlgmr.msrb.gmra.mxu1 %v20853_v23  ;;  %v672_v23 = vld [vmem:[%s19739_s9 + $0x770] sm:$0xff] }
 0x21e   : > { %v7209_v44 = vadd.f32 %v7208_v26, %v7189_v11  ;;  %8586 = vmatpush.xpose.msra.mxu2 %v668_v2  ;;  %8546 = vmatpush.xpose.msra.mxu0 %v666_v8  ;;  %v20972_v2 = vld.sshfl [vmem:[#allocation1 + $0x30] sm:$0xff pattern:$0x73625140]  ;;  %v20974_v8 = vld.sshfl [vmem:[#allocation1 + $0x20] sm:$0xff pattern:$0x73625140] }
 0x21f   : > { %v7228_v36 = vpop.f32.mrf.mxu2  ;;  %8606 = vmatpush.xpose.msra.mxu3 %v669_v12  ;;  %8566 = vmatpush.xpose.msra.mxu1 %v667_v41  ;;  %v678_v11 = vld [vmem:[%s19739_s9 + $0x7a0] sm:$0xff]  ;;  %v307_v41 = vld [vmem:[%s19732_s7 + $0x208] sm:$0xff] }
 0x220   : > { %v7229_v20 = vadd.f32 %v7228_v36, %v7209_v44  ;;  %v7248_v21 = vpop.f32.mrf.mxu3  ;;  %v20979_v12 = vld.sshfl [vmem:[#allocation1 + $0x28] sm:$0xff pattern:$0x73625140]  ;;  %v679_v44 = vld [vmem:[%s19739_s9 + $0x7a8] sm:$0xff] }
 0x221   : > { %v7268_v28 = vpop.f32.mrf.mxu0  ;;  %2484 = vst [vmem:[#allocation1 + $0x20] ss:$4 sm:$0xff] %v307_v41  ;;  %v20997_v59 = vld.sshfl [vmem:[#allocation1 + $0x18] sm:$0xff pattern:$0x73625140] }
 0x222   : > { %8665 = vmatpush.xpose.msrb.mxu2 %v1440_v14  ;;  %8625 = vmatpush.xpose.msrb.mxu0 %v1438_v15  ;;  %v7249_v46 = vadd.f32 %v7248_v21, %v7229_v20  ;;  %v7288_v47 = vpop.f32.mrf.mxu1  ;;  %v681_v15 = vld [vmem:[%s19739_s9 + $0x7b8] sm:$0xff]  ;;  %v1451_v21 = vld [vmem:[%s19739_s9 + $0x1fc8] sm:$0x3] }
 0x223   : > { %8685 = vmatpush.xpose.msrb.mxu3 %v1441_v17  ;;  %8645 = vmatpush.xpose.msrb.mxu1 %v1439_v18  ;;  %v1452_v17 = vld [vmem:[%s19739_s9 + $0x1fd0] sm:$0x3]  ;;  %v1450_v18 = vld [vmem:[%s19739_s9 + $0x1fc0] sm:$0x3]  ;;  %v1453_v20 = vld [vmem:[%s19739_s9 + $0x1fd8] sm:$0x3] }
 0x224   : > { %v7269_v32 = vadd.f32 %v7268_v28, %v7249_v46  ;;  %8587 = vmatmul.f32.vlgmr.msra.gmra.mxu2 %v20867_v34  ;;  %8547 = vmatmul.f32.vlgmr.msra.gmra.mxu0 %v20869_v35 }
 0x225   : > { %8607 = vmatmul.f32.vlgmr.msra.gmra.mxu3 %v20871_v52  ;;  %8567 = vmatmul.f32.vlgmr.msra.gmra.mxu1 %v20874_v38  ;;  %v676_v38 = vld [vmem:[%s19739_s9 + $0x790] sm:$0xff] }
 0x226   : > { %v7289_v1 = vadd.f32 %v7288_v47, %v7269_v32  ;;  %8666 = vmatpush.xpose.msrb.mxu2 %v672_v23  ;;  %8626 = vmatpush.xpose.msrb.mxu0 %v670_v29  ;;  %v20993_v23 = vld.sshfl [vmem:[#allocation1 + $0x10] sm:$0xff pattern:$0x73625140]  ;;  %v20995_v29 = vld.sshfl [vmem:[#allocation1] sm:$0xff pattern:$0x73625140] }
 0x227   : > { %v7308_v51 = vpop.f32.mrf.mxu2  ;;  %8686 = vmatpush.xpose.msrb.mxu3 %v673_v33  ;;  %8646 = vmatpush.xpose.msrb.mxu1 %v671_v62  ;;  %v682_v32 = vld [vmem:[%s19739_s9 + $0x7c0] sm:$0xff]  ;;  %v308_v62 = vld [vmem:[%s19732_s7 + $0x210] sm:$0xff] }
 0x228   : > { %v7309_v34 = vadd.f32 %v7308_v51, %v7289_v1  ;;  %v7328_v35 = vpop.f32.mrf.mxu3  ;;  %v21000_v33 = vld.sshfl [vmem:[#allocation1 + $0x8] sm:$0xff pattern:$0x73625140]  ;;  %v683_v1 = vld [vmem:[%s19739_s9 + $0x7c8] sm:$0xff] }
 0x229   : > { %v7348_v52 = vpop.f32.mrf.mxu0  ;;  %2493 = vst [vmem:[#allocation1] ss:$4 sm:$0xff] %v308_v62  ;;  %v21018_v16 = vld.sshfl [vmem:[#allocation1 + $0x38] sm:$0xff pattern:$0x73625140] }
 0x22a   : > { %8745 = vmatpush.xpose.msra.mxu2 %v1444_v39  ;;  %8705 = vmatpush.xpose.msra.mxu0 %v1442_v40  ;;  %v7329_v4 = vadd.f32 %v7328_v35, %v7309_v34  ;;  %v7368_v5 = vpop.f32.mrf.mxu1  ;;  %v685_v40 = vld [vmem:[%s19739_s9 + $0x7d8] sm:$0xff]  ;;  %v1455_v35 = vld [vmem:[%s19739_s9 + $0x1fe8] sm:$0x3] }
 0x22b   : > { %8765 = vmatpush.xpose.msra.mxu3 %v1445_v42  ;;  %8725 = vmatpush.xpose.msra.mxu1 %v1443_v43  ;;  %v1456_v42 = vld [vmem:[%s19739_s9 + $0x1ff0] sm:$0x3]  ;;  %v1454_v43 = vld [vmem:[%s19739_s9 + $0x1fe0] sm:$0x3]  ;;  %v1457_v34 = vld [vmem:[%s19739_s9 + $0x1ff8] sm:$0x3] }
 0x22c   : > { %v7349_v57 = vadd.f32 %v7348_v52, %v7329_v4  ;;  %8667 = vmatmul.f32.vlgmr.msrb.gmra.mxu2 %v20888_v48  ;;  %8627 = vmatmul.f32.vlgmr.msrb.gmra.mxu0 %v20890_v50 }
 0x22d   : > { %8687 = vmatmul.f32.vlgmr.msrb.gmra.mxu3 %v20892_v10  ;;  %8647 = vmatmul.f32.vlgmr.msrb.gmra.mxu1 %v20895_v53  ;;  %v680_v53 = vld [vmem:[%s19739_s9 + $0x7b0] sm:$0xff] }
 0x22e   : > { %v7369_v22 = vadd.f32 %v7368_v5, %v7349_v57  ;;  %8746 = vmatpush.xpose.msra.mxu2 %v676_v38  ;;  %8706 = vmatpush.xpose.msra.mxu0 %v674_v54  ;;  %v21014_v38 = vld.sshfl [vmem:[#allocation1 + $0x30] sm:$0xff pattern:$0x73625140]  ;;  %v21016_v54 = vld.sshfl [vmem:[#allocation1 + $0x20] sm:$0xff pattern:$0x73625140] }
 0x22f   : > { %v7388_v7 = vpop.f32.mrf.mxu2  ;;  %8766 = vmatpush.xpose.msra.mxu3 %v677_v58  ;;  %8726 = vmatpush.xpose.msra.mxu1 %v675_v19  ;;  %v686_v57 = vld [vmem:[%s19739_s9 + $0x7e0] sm:$0xff]  ;;  %v309_v19 = vld [vmem:[%s19732_s7 + $0x218] sm:$0xff] }
 0x230   : > { %v7389_v48 = vadd.f32 %v7388_v7, %v7369_v22  ;;  %v7408_v50 = vpop.f32.mrf.mxu3  ;;  %v21021_v58 = vld.sshfl [vmem:[#allocation1 + $0x28] sm:$0xff pattern:$0x73625140]  ;;  %v687_v22 = vld [vmem:[%s19739_s9 + $0x7e8] sm:$0xff] }
 0x231   : > { %v7428_v10 = vpop.f32.mrf.mxu0  ;;  %2494 = vst [vmem:[#allocation1 + $0x20] ss:$4 sm:$0xff] %v309_v19  ;;  %v21039_v41 = vld.sshfl [vmem:[#allocation1 + $0x18] sm:$0xff pattern:$0x73625140] }
 0x232   : > { %8825 = vmatpush.xpose.msrb.mxu2 %v1448_v60  ;;  %8785 = vmatpush.xpose.msrb.mxu0 %v1446_v61  ;;  %v7409_v25 = vadd.f32 %v7408_v50, %v7389_v48  ;;  %v7448_v26 = vpop.f32.mrf.mxu1  ;;  %v689_v61 = vld [vmem:[%s19739_s9 + $0x7f8] sm:$0xff]  ;;  %v1459_v50 = vld [vmem:[%s19739_s9 + $0x2008] sm:$0x3] }
 0x233   : > { %8845 = vmatpush.xpose.msrb.mxu3 %v1449_v63  ;;  %8805 = vmatpush.xpose.msrb.mxu1 %v1447_v0  ;;  %v1460_v63 = vld [vmem:[%s19739_s9 + $0x2010] sm:$0x3]  ;;  %v1458_v0 = vld [vmem:[%s19739_s9 + $0x2000] sm:$0x3]  ;;  %v1461_v48 = vld [vmem:[%s19739_s9 + $0x2018] sm:$0x3] }
 0x234   : > { %v7429_v14 = vadd.f32 %v7428_v10, %v7409_v25  ;;  %8747 = vmatmul.f32.vlgmr.msra.gmra.mxu2 %v20909_v3  ;;  %8707 = vmatmul.f32.vlgmr.msra.gmra.mxu0 %v20911_v6 }
 0x235   : > { %8767 = vmatmul.f32.vlgmr.msra.gmra.mxu3 %v20913_v31  ;;  %8727 = vmatmul.f32.vlgmr.msra.gmra.mxu1 %v20916_v9  ;;  %v684_v9 = vld [vmem:[%s19739_s9 + $0x7d0] sm:$0xff] }
 0x236   : > { %v7449_v36 = vadd.f32 %v7448_v26, %v7429_v14  ;;  %8826 = vmatpush.xpose.msrb.mxu2 %v680_v53  ;;  %8786 = vmatpush.xpose.msrb.mxu0 %v678_v11  ;;  %v21035_v53 = vld.sshfl [vmem:[#allocation1 + $0x10] sm:$0xff pattern:$0x73625140]  ;;  %v21037_v11 = vld.sshfl [vmem:[#allocation1] sm:$0xff pattern:$0x73625140] }
 0x237   : > { %v7468_v28 = vpop.f32.mrf.mxu2  ;;  %8846 = vmatpush.xpose.msrb.mxu3 %v681_v15  ;;  %8806 = vmatpush.xpose.msrb.mxu1 %v679_v44  ;;  %v690_v14 = vld [vmem:[%s19739_s9 + $0x800] sm:$0xff] }
 0x238   : > { %v7469_v3 = vadd.f32 %v7468_v28, %v7449_v36  ;;  %v7488_v6 = vpop.f32.mrf.mxu3  ;;  %v21042_v15 = vld.sshfl [vmem:[#allocation1 + $0x8] sm:$0xff pattern:$0x73625140]  ;;  %v691_v36 = vld [vmem:[%s19739_s9 + $0x808] sm:$0xff] }
 0x239   : > { %v7508_v31 = vpop.f32.mrf.mxu0  ;;  %v310_v44 = vld [vmem:[%s19732_s7 + $0x220] sm:$0xff]  ;;  %v21060_v62 = vld.sshfl [vmem:[#allocation1 + $0x38] sm:$0xff pattern:$0x73625140] }
 0x23a   : > { %8905 = vmatpush.xpose.msra.mxu2 %v1452_v17  ;;  %8865 = vmatpush.xpose.msra.mxu0 %v1450_v18  ;;  %v7489_v46 = vadd.f32 %v7488_v6, %v7469_v3  ;;  %v7528_v47 = vpop.f32.mrf.mxu1  ;;  %v693_v18 = vld [vmem:[%s19739_s9 + $0x818] sm:$0xff]  ;;  %2503 = vst [vmem:[#allocation1] ss:$4 sm:$0xff] %v310_v44  ;;  %v1463_v6 = vld [vmem:[%s19739_s9 + $0x2028] sm:$0x3] }
 0x23b   : > { %8925 = vmatpush.xpose.msra.mxu3 %v1453_v20  ;;  %8885 = vmatpush.xpose.msra.mxu1 %v1451_v21  ;;  %v1464_v20 = vld [vmem:[%s19739_s9 + $0x2030] sm:$0x3]  ;;  %v1462_v21 = vld [vmem:[%s19739_s9 + $0x2020] sm:$0x3]  ;;  %v1465_v3 = vld [vmem:[%s19739_s9 + $0x2038] sm:$0x3] }
 0x23c   : > { %v7509_v39 = vadd.f32 %v7508_v31, %v7489_v46  ;;  %8827 = vmatmul.f32.vlgmr.msrb.gmra.mxu2 %v20930_v24  ;;  %8787 = vmatmul.f32.vlgmr.msrb.gmra.mxu0 %v20932_v27 }
 0x23d   : > { %8847 = vmatmul.f32.vlgmr.msrb.gmra.mxu3 %v20934_v56  ;;  %8807 = vmatmul.f32.vlgmr.msrb.gmra.mxu1 %v20937_v30  ;;  %v688_v30 = vld [vmem:[%s19739_s9 + $0x7f0] sm:$0xff] }
 0x23e   : > { %v7529_v51 = vadd.f32 %v7528_v47, %v7509_v39  ;;  %8906 = vmatpush.xpose.msra.mxu2 %v684_v9  ;;  %8866 = vmatpush.xpose.msra.mxu0 %v682_v32  ;;  %v21056_v9 = vld.sshfl [vmem:[#allocation1 + $0x30] sm:$0xff pattern:$0x73625140]  ;;  %v21058_v32 = vld.sshfl [vmem:[#allocation1 + $0x20] sm:$0xff pattern:$0x73625140] }
 0x23f   : > { %v7548_v52 = vpop.f32.mrf.mxu2  ;;  %8926 = vmatpush.xpose.msra.mxu3 %v685_v40  ;;  %8886 = vmatpush.xpose.msra.mxu1 %v683_v1  ;;  %v694_v39 = vld [vmem:[%s19739_s9 + $0x820] sm:$0xff]  ;;  %v311_v1 = vld [vmem:[%s19732_s7 + $0x228] sm:$0xff] }
 0x240   : > { %v7549_v24 = vadd.f32 %v7548_v52, %v7529_v51  ;;  %v7568_v27 = vpop.f32.mrf.mxu3  ;;  %v21063_v40 = vld.sshfl [vmem:[#allocation1 + $0x28] sm:$0xff pattern:$0x73625140]  ;;  %v695_v51 = vld [vmem:[%s19739_s9 + $0x828] sm:$0xff] }
 0x241   : > { %v7588_v56 = vpop.f32.mrf.mxu0  ;;  %2504 = vst [vmem:[#allocation1 + $0x20] ss:$4 sm:$0xff] %v311_v1  ;;  %v21081_v19 = vld.sshfl [vmem:[#allocation1 + $0x18] sm:$0xff pattern:$0x73625140] }
 0x242   : > { %8985 = vmatpush.xpose.msrb.mxu2 %v1456_v42  ;;  %8945 = vmatpush.xpose.msrb.mxu0 %v1454_v43  ;;  %v7569_v4 = vadd.f32 %v7568_v27, %v7549_v24  ;;  %v7608_v5 = vpop.f32.mrf.mxu1  ;;  %v697_v43 = vld [vmem:[%s19739_s9 + $0x838] sm:$0xff]  ;;  %v1467_v27 = vld [vmem:[%s19739_s9 + $0x2048] sm:$0x3] }
 0x243   : > { %9005 = vmatpush.xpose.msrb.mxu3 %v1457_v34  ;;  %8965 = vmatpush.xpose.msrb.mxu1 %v1455_v35  ;;  %v1468_v34 = vld [vmem:[%s19739_s9 + $0x2050] sm:$0x3]  ;;  %v1466_v35 = vld [vmem:[%s19739_s9 + $0x2040] sm:$0x3]  ;;  %v1469_v24 = vld [vmem:[%s19739_s9 + $0x2058] sm:$0x3] }
 0x244   : > { %v7589_v60 = vadd.f32 %v7588_v56, %v7569_v4  ;;  %8907 = vmatmul.f32.vlgmr.msra.gmra.mxu2 %v20951_v45  ;;  %8867 = vmatmul.f32.vlgmr.msra.gmra.mxu0 %v20953_v49 }
 0x245   : > { %8927 = vmatmul.f32.vlgmr.msra.gmra.mxu3 %v20955_v13  ;;  %8887 = vmatmul.f32.vlgmr.msra.gmra.mxu1 %v20958_v55  ;;  %v692_v55 = vld [vmem:[%s19739_s9 + $0x810] sm:$0xff] }
 0x246   : > { %v7609_v7 = vadd.f32 %v7608_v5, %v7589_v60  ;;  %8986 = vmatpush.xpose.msrb.mxu2 %v688_v30  ;;  %8946 = vmatpush.xpose.msrb.mxu0 %v686_v57  ;;  %v21077_v30 = vld.sshfl [vmem:[#allocation1 + $0x10] sm:$0xff pattern:$0x73625140]  ;;  %v21079_v57 = vld.sshfl [vmem:[#allocation1] sm:$0xff pattern:$0x73625140] }
 0x247   : > { %v7628_v10 = vpop.f32.mrf.mxu2  ;;  %9006 = vmatpush.xpose.msrb.mxu3 %v689_v61  ;;  %8966 = vmatpush.xpose.msrb.mxu1 %v687_v22  ;;  %v698_v60 = vld [vmem:[%s19739_s9 + $0x840] sm:$0xff]  ;;  %v312_v22 = vld [vmem:[%s19732_s7 + $0x230] sm:$0xff] }
 0x248   : > { %v7629_v45 = vadd.f32 %v7628_v10, %v7609_v7  ;;  %v7648_v49 = vpop.f32.mrf.mxu3  ;;  %v21084_v61 = vld.sshfl [vmem:[#allocation1 + $0x8] sm:$0xff pattern:$0x73625140]  ;;  %v699_v7 = vld [vmem:[%s19739_s9 + $0x848] sm:$0xff] }
 0x249   : > { %v7668_v13 = vpop.f32.mrf.mxu0  ;;  %2513 = vst [vmem:[#allocation1] ss:$4 sm:$0xff] %v312_v22  ;;  %v21102_v44 = vld.sshfl [vmem:[#allocation1 + $0x38] sm:$0xff pattern:$0x73625140] }
 0x24a   : > { %9065 = vmatpush.xpose.msra.mxu2 %v1460_v63  ;;  %9025 = vmatpush.xpose.msra.mxu0 %v1458_v0  ;;  %v7649_v25 = vadd.f32 %v7648_v49, %v7629_v45  ;;  %v7688_v26 = vpop.f32.mrf.mxu1  ;;  %v701_v0 = vld [vmem:[%s19739_s9 + $0x858] sm:$0xff]  ;;  %v1471_v49 = vld [vmem:[%s19739_s9 + $0x2068] sm:$0x3] }
 0x24b   : > { %9085 = vmatpush.xpose.msra.mxu3 %v1461_v48  ;;  %9045 = vmatpush.xpose.msra.mxu1 %v1459_v50  ;;  %v1472_v48 = vld [vmem:[%s19739_s9 + $0x2070] sm:$0x3]  ;;  %v1470_v50 = vld [vmem:[%s19739_s9 + $0x2060] sm:$0x3]  ;;  %v1473_v45 = vld [vmem:[%s19739_s9 + $0x2078] sm:$0x3] }
 0x24c   : > { %v7669_v17 = vadd.f32 %v7668_v13, %v7649_v25  ;;  %8987 = vmatmul.f32.vlgmr.msrb.gmra.mxu2 %v20972_v2  ;;  %8947 = vmatmul.f32.vlgmr.msrb.gmra.mxu0 %v20974_v8 }
 0x24d   : > { %9007 = vmatmul.f32.vlgmr.msrb.gmra.mxu3 %v20976_v37  ;;  %8967 = vmatmul.f32.vlgmr.msrb.gmra.mxu1 %v20979_v12  ;;  %v696_v12 = vld [vmem:[%s19739_s9 + $0x830] sm:$0xff] }
 0x24e   : > { %v7689_v28 = vadd.f32 %v7688_v26, %v7669_v17  ;;  %9066 = vmatpush.xpose.msra.mxu2 %v692_v55  ;;  %9026 = vmatpush.xpose.msra.mxu0 %v690_v14  ;;  %v21098_v55 = vld.sshfl [vmem:[#allocation1 + $0x30] sm:$0xff pattern:$0x73625140]  ;;  %v21100_v14 = vld.sshfl [vmem:[#allocation1 + $0x20] sm:$0xff pattern:$0x73625140] }
 0x24f   : > { %v7708_v31 = vpop.f32.mrf.mxu2  ;;  %9086 = vmatpush.xpose.msra.mxu3 %v693_v18  ;;  %9046 = vmatpush.xpose.msra.mxu1 %v691_v36  ;;  %v702_v17 = vld [vmem:[%s19739_s9 + $0x860] sm:$0xff]  ;;  %v313_v36 = vld [vmem:[%s19732_s7 + $0x238] sm:$0xff] }
 0x250   : > { %v7709_v2 = vadd.f32 %v7708_v31, %v7689_v28  ;;  %v7728_v8 = vpop.f32.mrf.mxu3  ;;  %v21105_v18 = vld.sshfl [vmem:[#allocation1 + $0x28] sm:$0xff pattern:$0x73625140]  ;;  %v703_v28 = vld [vmem:[%s19739_s9 + $0x868] sm:$0xff] }
 0x251   : > { %v7748_v37 = vpop.f32.mrf.mxu0  ;;  %2514 = vst [vmem:[#allocation1 + $0x20] ss:$4 sm:$0xff] %v313_v36  ;;  %v21123_v1 = vld.sshfl [vmem:[#allocation1 + $0x18] sm:$0xff pattern:$0x73625140] }
 0x252   : > { %9145 = vmatpush.xpose.msrb.mxu2 %v1464_v20  ;;  %9105 = vmatpush.xpose.msrb.mxu0 %v1462_v21  ;;  %v7729_v46 = vadd.f32 %v7728_v8, %v7709_v2  ;;  %v7768_v47 = vpop.f32.mrf.mxu1  ;;  %v705_v21 = vld [vmem:[%s19739_s9 + $0x878] sm:$0xff]  ;;  %v1475_v8 = vld [vmem:[%s19739_s9 + $0x2088] sm:$0x3] }
 0x253   : > { %9165 = vmatpush.xpose.msrb.mxu3 %v1465_v3  ;;  %9125 = vmatpush.xpose.msrb.mxu1 %v1463_v6  ;;  %v1476_v3 = vld [vmem:[%s19739_s9 + $0x2090] sm:$0x3]  ;;  %v1474_v6 = vld [vmem:[%s19739_s9 + $0x2080] sm:$0x3]  ;;  %v1477_v2 = vld [vmem:[%s19739_s9 + $0x2098] sm:$0x3] }
 0x254   : > { %v7749_v42 = vadd.f32 %v7748_v37, %v7729_v46  ;;  %9067 = vmatmul.f32.vlgmr.msra.gmra.mxu2 %v20993_v23  ;;  %9027 = vmatmul.f32.vlgmr.msra.gmra.mxu0 %v20995_v29 }
 0x255   : > { %9087 = vmatmul.f32.vlgmr.msra.gmra.mxu3 %v20997_v59  ;;  %9047 = vmatmul.f32.vlgmr.msra.gmra.mxu1 %v21000_v33  ;;  %v700_v33 = vld [vmem:[%s19739_s9 + $0x850] sm:$0xff] }
 0x256   : > { %v7769_v52 = vadd.f32 %v7768_v47, %v7749_v42  ;;  %9146 = vmatpush.xpose.msrb.mxu2 %v696_v12  ;;  %9106 = vmatpush.xpose.msrb.mxu0 %v694_v39  ;;  %v21119_v12 = vld.sshfl [vmem:[#allocation1 + $0x10] sm:$0xff pattern:$0x73625140]  ;;  %v21121_v39 = vld.sshfl [vmem:[#allocation1] sm:$0xff pattern:$0x73625140] }
 0x257   : > { %v7788_v56 = vpop.f32.mrf.mxu2  ;;  %9166 = vmatpush.xpose.msrb.mxu3 %v697_v43  ;;  %9126 = vmatpush.xpose.msrb.mxu1 %v695_v51  ;;  %v706_v42 = vld [vmem:[%s19739_s9 + $0x880] sm:$0xff] }
 0x258   : > { %v7789_v23 = vadd.f32 %v7788_v56, %v7769_v52  ;;  %v7808_v29 = vpop.f32.mrf.mxu3  ;;  %v21126_v43 = vld.sshfl [vmem:[#allocation1 + $0x8] sm:$0xff pattern:$0x73625140]  ;;  %v707_v52 = vld [vmem:[%s19739_s9 + $0x888] sm:$0xff] }
 0x259   : > { %v7828_v59 = vpop.f32.mrf.mxu0  ;;  %v314_v51 = vld [vmem:[%s19732_s7 + $0x240] sm:$0xff]  ;;  %v21144_v22 = vld.sshfl [vmem:[#allocation1 + $0x38] sm:$0xff pattern:$0x73625140] }
 0x25a   : > { %9225 = vmatpush.xpose.msra.mxu2 %v1468_v34  ;;  %9185 = vmatpush.xpose.msra.mxu0 %v1466_v35  ;;  %v7809_v4 = vadd.f32 %v7808_v29, %v7789_v23  ;;  %v7848_v5 = vpop.f32.mrf.mxu1  ;;  %v709_v35 = vld [vmem:[%s19739_s9 + $0x898] sm:$0xff]  ;;  %2523 = vst [vmem:[#allocation1] ss:$4 sm:$0xff] %v314_v51  ;;  %v1479_v29 = vld [vmem:[%s19739_s9 + $0x20a8] sm:$0x3] }
 0x25b   : > { %9245 = vmatpush.xpose.msra.mxu3 %v1469_v24  ;;  %9205 = vmatpush.xpose.msra.mxu1 %v1467_v27  ;;  %v1480_v24 = vld [vmem:[%s19739_s9 + $0x20b0] sm:$0x3]  ;;  %v1478_v27 = vld [vmem:[%s19739_s9 + $0x20a0] sm:$0x3]  ;;  %v1481_v23 = vld [vmem:[%s19739_s9 + $0x20b8] sm:$0x3] }
 0x25c   : > { %v7829_v63 = vadd.f32 %v7828_v59, %v7809_v4  ;;  %9147 = vmatmul.f32.vlgmr.msrb.gmra.mxu2 %v21014_v38  ;;  %9107 = vmatmul.f32.vlgmr.msrb.gmra.mxu0 %v21016_v54 }
 0x25d   : > { %9167 = vmatmul.f32.vlgmr.msrb.gmra.mxu3 %v21018_v16  ;;  %9127 = vmatmul.f32.vlgmr.msrb.gmra.mxu1 %v21021_v58  ;;  %v704_v58 = vld [vmem:[%s19739_s9 + $0x870] sm:$0xff] }
 0x25e   : > { %v7849_v10 = vadd.f32 %v7848_v5, %v7829_v63  ;;  %9226 = vmatpush.xpose.msra.mxu2 %v700_v33  ;;  %9186 = vmatpush.xpose.msra.mxu0 %v698_v60  ;;  %v21140_v33 = vld.sshfl [vmem:[#allocation1 + $0x30] sm:$0xff pattern:$0x73625140]  ;;  %v21142_v60 = vld.sshfl [vmem:[#allocation1 + $0x20] sm:$0xff pattern:$0x73625140] }
 0x25f   : > { %v7868_v13 = vpop.f32.mrf.mxu2  ;;  %9246 = vmatpush.xpose.msra.mxu3 %v701_v0  ;;  %9206 = vmatpush.xpose.msra.mxu1 %v699_v7  ;;  %v710_v63 = vld [vmem:[%s19739_s9 + $0x8a0] sm:$0xff]  ;;  %v315_v7 = vld [vmem:[%s19732_s7 + $0x248] sm:$0xff] }
 0x260   : > { %v7869_v38 = vadd.f32 %v7868_v13, %v7849_v10  ;;  %v7888_v54 = vpop.f32.mrf.mxu3  ;;  %v21147_v0 = vld.sshfl [vmem:[#allocation1 + $0x28] sm:$0xff pattern:$0x73625140]  ;;  %v711_v10 = vld [vmem:[%s19739_s9 + $0x8a8] sm:$0xff] }
 0x261   : > { %v7908_v16 = vpop.f32.mrf.mxu0  ;;  %2524 = vst [vmem:[#allocation1 + $0x20] ss:$4 sm:$0xff] %v315_v7  ;;  %v21165_v36 = vld.sshfl [vmem:[#allocation1 + $0x18] sm:$0xff pattern:$0x73625140] }
 0x262   : > { %9305 = vmatpush.xpose.msrb.mxu2 %v1472_v48  ;;  %9265 = vmatpush.xpose.msrb.mxu0 %v1470_v50  ;;  %v7889_v25 = vadd.f32 %v7888_v54, %v7869_v38  ;;  %v7928_v26 = vpop.f32.mrf.mxu1  ;;  %v713_v50 = vld [vmem:[%s19739_s9 + $0x8b8] sm:$0xff]  ;;  %v1483_v54 = vld [vmem:[%s19739_s9 + $0x20c8] sm:$0x3] }
 0x263   : > { %9325 = vmatpush.xpose.msrb.mxu3 %v1473_v45  ;;  %9285 = vmatpush.xpose.msrb.mxu1 %v1471_v49  ;;  %v1484_v45 = vld [vmem:[%s19739_s9 + $0x20d0] sm:$0x3]  ;;  %v1482_v49 = vld [vmem:[%s19739_s9 + $0x20c0] sm:$0x3]  ;;  %v1485_v38 = vld [vmem:[%s19739_s9 + $0x20d8] sm:$0x3] }
 0x264   : > { %v7909_v20 = vadd.f32 %v7908_v16, %v7889_v25  ;;  %9227 = vmatmul.f32.vlgmr.msra.gmra.mxu2 %v21035_v53  ;;  %9187 = vmatmul.f32.vlgmr.msra.gmra.mxu0 %v21037_v11 }
 0x265   : > { %9247 = vmatmul.f32.vlgmr.msra.gmra.mxu3 %v21039_v41  ;;  %9207 = vmatmul.f32.vlgmr.msra.gmra.mxu1 %v21042_v15  ;;  %v708_v15 = vld [vmem:[%s19739_s9 + $0x890] sm:$0xff] }
 0x266   : > { %v7929_v31 = vadd.f32 %v7928_v26, %v7909_v20  ;;  %9306 = vmatpush.xpose.msrb.mxu2 %v704_v58  ;;  %9266 = vmatpush.xpose.msrb.mxu0 %v702_v17  ;;  %v21161_v58 = vld.sshfl [vmem:[#allocation1 + $0x10] sm:$0xff pattern:$0x73625140]  ;;  %v21163_v17 = vld.sshfl [vmem:[#allocation1] sm:$0xff pattern:$0x73625140] }
 0x267   : > { %v7948_v37 = vpop.f32.mrf.mxu2  ;;  %9326 = vmatpush.xpose.msrb.mxu3 %v705_v21  ;;  %9286 = vmatpush.xpose.msrb.mxu1 %v703_v28  ;;  %v714_v20 = vld [vmem:[%s19739_s9 + $0x8c0] sm:$0xff]  ;;  %v316_v28 = vld [vmem:[%s19732_s7 + $0x250] sm:$0xff] }
 0x268   : > { %v7949_v53 = vadd.f32 %v7948_v37, %v7929_v31  ;;  %v7968_v11 = vpop.f32.mrf.mxu3  ;;  %v21168_v21 = vld.sshfl [vmem:[#allocation1 + $0x8] sm:$0xff pattern:$0x73625140]  ;;  %v715_v31 = vld [vmem:[%s19739_s9 + $0x8c8] sm:$0xff] }
 0x269   : > { %v7988_v41 = vpop.f32.mrf.mxu0  ;;  %2533 = vst [vmem:[#allocation1] ss:$4 sm:$0xff] %v316_v28  ;;  %v21186_v51 = vld.sshfl [vmem:[#allocation1 + $0x38] sm:$0xff pattern:$0x73625140] }
 0x26a   : > { %9385 = vmatpush.xpose.msra.mxu2 %v1476_v3  ;;  %9345 = vmatpush.xpose.msra.mxu0 %v1474_v6  ;;  %v7969_v46 = vadd.f32 %v7968_v11, %v7949_v53  ;;  %v8008_v47 = vpop.f32.mrf.mxu1  ;;  %v717_v6 = vld [vmem:[%s19739_s9 + $0x8d8] sm:$0xff]  ;;  %v1487_v11 = vld [vmem:[%s19739_s9 + $0x20e8] sm:$0x3] }
 0x26b   : > { %9405 = vmatpush.xpose.msra.mxu3 %v1477_v2  ;;  %9365 = vmatpush.xpose.msra.mxu1 %v1475_v8  ;;  %v1488_v2 = vld [vmem:[%s19739_s9 + $0x20f0] sm:$0x3]  ;;  %v1486_v8 = vld [vmem:[%s19739_s9 + $0x20e0] sm:$0x3]  ;;  %v1489_v53 = vld [vmem:[%s19739_s9 + $0x20f8] sm:$0x3] }
 0x26c   : > { %v7989_v34 = vadd.f32 %v7988_v41, %v7969_v46  ;;  %9307 = vmatmul.f32.vlgmr.msrb.gmra.mxu2 %v21056_v9  ;;  %9267 = vmatmul.f32.vlgmr.msrb.gmra.mxu0 %v21058_v32 }
 0x26d   : > { %9327 = vmatmul.f32.vlgmr.msrb.gmra.mxu3 %v21060_v62  ;;  %9287 = vmatmul.f32.vlgmr.msrb.gmra.mxu1 %v21063_v40  ;;  %v712_v40 = vld [vmem:[%s19739_s9 + $0x8b0] sm:$0xff] }
 0x26e   : > { %v8009_v56 = vadd.f32 %v8008_v47, %v7989_v34  ;;  %9386 = vmatpush.xpose.msra.mxu2 %v708_v15  ;;  %9346 = vmatpush.xpose.msra.mxu0 %v706_v42  ;;  %v21182_v15 = vld.sshfl [vmem:[#allocation1 + $0x30] sm:$0xff pattern:$0x73625140]  ;;  %v21184_v42 = vld.sshfl [vmem:[#allocation1 + $0x20] sm:$0xff pattern:$0x73625140] }
 0x26f   : > { %v8028_v59 = vpop.f32.mrf.mxu2  ;;  %9406 = vmatpush.xpose.msra.mxu3 %v709_v35  ;;  %9366 = vmatpush.xpose.msra.mxu1 %v707_v52  ;;  %v718_v34 = vld [vmem:[%s19739_s9 + $0x8e0] sm:$0xff]  ;;  %v317_v52 = vld [vmem:[%s19732_s7 + $0x258] sm:$0xff] }
 0x270   : > { %v8029_v9 = vadd.f32 %v8028_v59, %v8009_v56  ;;  %v8048_v32 = vpop.f32.mrf.mxu3  ;;  %v21189_v35 = vld.sshfl [vmem:[#allocation1 + $0x28] sm:$0xff pattern:$0x73625140]  ;;  %v719_v56 = vld [vmem:[%s19739_s9 + $0x8e8] sm:$0xff] }
 0x271   : > { %v8068_v62 = vpop.f32.mrf.mxu0  ;;  %2534 = vst [vmem:[#allocation1 + $0x20] ss:$4 sm:$0xff] %v317_v52  ;;  %v21207_v7 = vld.sshfl [vmem:[#allocation1 + $0x18] sm:$0xff pattern:$0x73625140] }
 0x272   : > { %9465 = vmatpush.xpose.msrb.mxu2 %v1480_v24  ;;  %9425 = vmatpush.xpose.msrb.mxu0 %v1478_v27  ;;  %v8049_v4 = vadd.f32 %v8048_v32, %v8029_v9  ;;  %v8088_v5 = vpop.f32.mrf.mxu1  ;;  %v721_v27 = vld [vmem:[%s19739_s9 + $0x8f8] sm:$0xff]  ;;  %v1491_v32 = vld [vmem:[%s19739_s9 + $0x2108] sm:$0x3] }
 0x273   : > { %9485 = vmatpush.xpose.msrb.mxu3 %v1481_v23  ;;  %9445 = vmatpush.xpose.msrb.mxu1 %v1479_v29  ;;  %v1492_v23 = vld [vmem:[%s19739_s9 + $0x2110] sm:$0x3]  ;;  %v1490_v29 = vld [vmem:[%s19739_s9 + $0x2100] sm:$0x3]  ;;  %v1493_v9 = vld [vmem:[%s19739_s9 + $0x2118] sm:$0x3] }
 0x274   : > { %v8069_v48 = vadd.f32 %v8068_v62, %v8049_v4  ;;  %9387 = vmatmul.f32.vlgmr.msra.gmra.mxu2 %v21077_v30  ;;  %9347 = vmatmul.f32.vlgmr.msra.gmra.mxu0 %v21079_v57 }
 0x275   : > { %9407 = vmatmul.f32.vlgmr.msra.gmra.mxu3 %v21081_v19  ;;  %9367 = vmatmul.f32.vlgmr.msra.gmra.mxu1 %v21084_v61  ;;  %v716_v61 = vld [vmem:[%s19739_s9 + $0x8d0] sm:$0xff] }
 0x276   : > { %v8089_v13 = vadd.f32 %v8088_v5, %v8069_v48  ;;  %9466 = vmatpush.xpose.msrb.mxu2 %v712_v40  ;;  %9426 = vmatpush.xpose.msrb.mxu0 %v710_v63  ;;  %v21203_v40 = vld.sshfl [vmem:[#allocation1 + $0x10] sm:$0xff pattern:$0x73625140]  ;;  %v21205_v63 = vld.sshfl [vmem:[#allocation1] sm:$0xff pattern:$0x73625140] }
 0x277   : > { %v8108_v16 = vpop.f32.mrf.mxu2  ;;  %9486 = vmatpush.xpose.msrb.mxu3 %v713_v50  ;;  %9446 = vmatpush.xpose.msrb.mxu1 %v711_v10  ;;  %v722_v48 = vld [vmem:[%s19739_s9 + $0x900] sm:$0xff] }
 0x278   : > { %v8109_v30 = vadd.f32 %v8108_v16, %v8089_v13  ;;  %v8128_v57 = vpop.f32.mrf.mxu3  ;;  %v21210_v50 = vld.sshfl [vmem:[#allocation1 + $0x8] sm:$0xff pattern:$0x73625140]  ;;  %v723_v13 = vld [vmem:[%s19739_s9 + $0x908] sm:$0xff] }
 0x279   : > { %v8148_v19 = vpop.f32.mrf.mxu0  ;;  %v318_v10 = vld [vmem:[%s19732_s7 + $0x260] sm:$0xff]  ;;  %v21228_v28 = vld.sshfl [vmem:[#allocation1 + $0x38] sm:$0xff pattern:$0x73625140] }
 0x27a   : > { %9545 = vmatpush.xpose.msra.mxu2 %v1484_v45  ;;  %9505 = vmatpush.xpose.msra.mxu0 %v1482_v49  ;;  %v8129_v25 = vadd.f32 %v8128_v57, %v8109_v30  ;;  %v8168_v26 = vpop.f32.mrf.mxu1  ;;  %v725_v49 = vld [vmem:[%s19739_s9 + $0x918] sm:$0xff]  ;;  %2543 = vst [vmem:[#allocation1] ss:$4 sm:$0xff] %v318_v10  ;;  %v1495_v57 = vld [vmem:[%s19739_s9 + $0x2128] sm:$0x3] }
 0x27b   : > { %9565 = vmatpush.xpose.msra.mxu3 %v1485_v38  ;;  %9525 = vmatpush.xpose.msra.mxu1 %v1483_v54  ;;  %v1496_v38 = vld [vmem:[%s19739_s9 + $0x2130] sm:$0x3]  ;;  %v1494_v54 = vld [vmem:[%s19739_s9 + $0x2120] sm:$0x3]  ;;  %v1497_v30 = vld [vmem:[%s19739_s9 + $0x2138] sm:$0x3] }
 0x27c   : > { %v8149_v3 = vadd.f32 %v8148_v19, %v8129_v25  ;;  %9467 = vmatmul.f32.vlgmr.msrb.gmra.mxu2 %v21098_v55  ;;  %9427 = vmatmul.f32.vlgmr.msrb.gmra.mxu0 %v21100_v14 }
 0x27d   : > { %9487 = vmatmul.f32.vlgmr.msrb.gmra.mxu3 %v21102_v44  ;;  %9447 = vmatmul.f32.vlgmr.msrb.gmra.mxu1 %v21105_v18  ;;  %v720_v18 = vld [vmem:[%s19739_s9 + $0x8f0] sm:$0xff] }
 0x27e   : > { %v8169_v37 = vadd.f32 %v8168_v26, %v8149_v3  ;;  %9546 = vmatpush.xpose.msra.mxu2 %v716_v61  ;;  %9506 = vmatpush.xpose.msra.mxu0 %v714_v20  ;;  %v21224_v61 = vld.sshfl [vmem:[#allocation1 + $0x30] sm:$0xff pattern:$0x73625140]  ;;  %v21226_v20 = vld.sshfl [vmem:[#allocation1 + $0x20] sm:$0xff pattern:$0x73625140] }
 0x27f   : > { %v8188_v41 = vpop.f32.mrf.mxu2  ;;  %9566 = vmatpush.xpose.msra.mxu3 %v717_v6  ;;  %9526 = vmatpush.xpose.msra.mxu1 %v715_v31  ;;  %v726_v3 = vld [vmem:[%s19739_s9 + $0x920] sm:$0xff]  ;;  %v319_v31 = vld [vmem:[%s19732_s7 + $0x268] sm:$0xff] }
 0x280   : > { %v8189_v55 = vadd.f32 %v8188_v41, %v8169_v37  ;;  %v8208_v14 = vpop.f32.mrf.mxu3  ;;  %v21231_v6 = vld.sshfl [vmem:[#allocation1 + $0x28] sm:$0xff pattern:$0x73625140]  ;;  %v727_v37 = vld [vmem:[%s19739_s9 + $0x928] sm:$0xff] }
 0x281   : > { %v8228_v44 = vpop.f32.mrf.mxu0  ;;  %2544 = vst [vmem:[#allocation1 + $0x20] ss:$4 sm:$0xff] %v319_v31  ;;  %v21249_v52 = vld.sshfl [vmem:[#allocation1 + $0x18] sm:$0xff pattern:$0x73625140] }
 0x282   : > { %9625 = vmatpush.xpose.msrb.mxu2 %v1488_v2  ;;  %9585 = vmatpush.xpose.msrb.mxu0 %v1486_v8  ;;  %v8209_v46 = vadd.f32 %v8208_v14, %v8189_v55  ;;  %v8248_v47 = vpop.f32.mrf.mxu1  ;;  %v729_v8 = vld [vmem:[%s19739_s9 + $0x938] sm:$0xff]  ;;  %v1499_v14 = vld [vmem:[%s19739_s9 + $0x2148] sm:$0x3] }
 0x283   : > { %9645 = vmatpush.xpose.msrb.mxu3 %v1489_v53  ;;  %9605 = vmatpush.xpose.msrb.mxu1 %v1487_v11  ;;  %v1500_v53 = vld [vmem:[%s19739_s9 + $0x2150] sm:$0x3]  ;;  %v1498_v11 = vld [vmem:[%s19739_s9 + $0x2140] sm:$0x3]  ;;  %v1501_v55 = vld [vmem:[%s19739_s9 + $0x2158] sm:$0x3] }
 0x284   : > { %v8229_v24 = vadd.f32 %v8228_v44, %v8209_v46  ;;  %9547 = vmatmul.f32.vlgmr.msra.gmra.mxu2 %v21119_v12  ;;  %9507 = vmatmul.f32.vlgmr.msra.gmra.mxu0 %v21121_v39 }
 0x285   : > { %9567 = vmatmul.f32.vlgmr.msra.gmra.mxu3 %v21123_v1  ;;  %9527 = vmatmul.f32.vlgmr.msra.gmra.mxu1 %v21126_v43  ;;  %v724_v43 = vld [vmem:[%s19739_s9 + $0x910] sm:$0xff] }
 0x286   : > { %v8249_v59 = vadd.f32 %v8248_v47, %v8229_v24  ;;  %9626 = vmatpush.xpose.msrb.mxu2 %v720_v18  ;;  %9586 = vmatpush.xpose.msrb.mxu0 %v718_v34  ;;  %v21245_v18 = vld.sshfl [vmem:[#allocation1 + $0x10] sm:$0xff pattern:$0x73625140]  ;;  %v21247_v34 = vld.sshfl [vmem:[#allocation1] sm:$0xff pattern:$0x73625140] }
 0x287   : > { %v8268_v62 = vpop.f32.mrf.mxu2  ;;  %9646 = vmatpush.xpose.msrb.mxu3 %v721_v27  ;;  %9606 = vmatpush.xpose.msrb.mxu1 %v719_v56  ;;  %v730_v24 = vld [vmem:[%s19739_s9 + $0x940] sm:$0xff]  ;;  %v320_v56 = vld [vmem:[%s19732_s7 + $0x270] sm:$0xff] }
 0x288   : > { %v8269_v12 = vadd.f32 %v8268_v62, %v8249_v59  ;;  %v8288_v39 = vpop.f32.mrf.mxu3  ;;  %v21252_v27 = vld.sshfl [vmem:[#allocation1 + $0x8] sm:$0xff pattern:$0x73625140]  ;;  %v731_v59 = vld [vmem:[%s19739_s9 + $0x948] sm:$0xff] }
 0x289   : > { %v8308_v1 = vpop.f32.mrf.mxu0  ;;  %2553 = vst [vmem:[#allocation1] ss:$4 sm:$0xff] %v320_v56  ;;  %v21270_v10 = vld.sshfl [vmem:[#allocation1 + $0x38] sm:$0xff pattern:$0x73625140] }
 0x28a   : > { %9705 = vmatpush.xpose.msra.mxu2 %v1492_v23  ;;  %9665 = vmatpush.xpose.msra.mxu0 %v1490_v29  ;;  %v8289_v4 = vadd.f32 %v8288_v39, %v8269_v12  ;;  %v8328_v5 = vpop.f32.mrf.mxu1  ;;  %v733_v29 = vld [vmem:[%s19739_s9 + $0x958] sm:$0xff]  ;;  %v1503_v39 = vld [vmem:[%s19739_s9 + $0x2168] sm:$0x3] }
 0x28b   : > { %9725 = vmatpush.xpose.msra.mxu3 %v1493_v9  ;;  %9685 = vmatpush.xpose.msra.mxu1 %v1491_v32  ;;  %v1504_v9 = vld [vmem:[%s19739_s9 + $0x2170] sm:$0x3]  ;;  %v1502_v32 = vld [vmem:[%s19739_s9 + $0x2160] sm:$0x3]  ;;  %v1505_v12 = vld [vmem:[%s19739_s9 + $0x2178] sm:$0x3] }
 0x28c   : > { %v8309_v45 = vadd.f32 %v8308_v1, %v8289_v4  ;;  %9627 = vmatmul.f32.vlgmr.msrb.gmra.mxu2 %v21140_v33  ;;  %9587 = vmatmul.f32.vlgmr.msrb.gmra.mxu0 %v21142_v60 }
 0x28d   : > { %9647 = vmatmul.f32.vlgmr.msrb.gmra.mxu3 %v21144_v22  ;;  %9607 = vmatmul.f32.vlgmr.msrb.gmra.mxu1 %v21147_v0  ;;  %v728_v0 = vld [vmem:[%s19739_s9 + $0x930] sm:$0xff] }
 0x28e   : > { %v8329_v16 = vadd.f32 %v8328_v5, %v8309_v45  ;;  %9706 = vmatpush.xpose.msra.mxu2 %v724_v43  ;;  %9666 = vmatpush.xpose.msra.mxu0 %v722_v48  ;;  %v21266_v43 = vld.sshfl [vmem:[#allocation1 + $0x30] sm:$0xff pattern:$0x73625140]  ;;  %v21268_v48 = vld.sshfl [vmem:[#allocation1 + $0x20] sm:$0xff pattern:$0x73625140] }
 0x28f   : > { %v8348_v19 = vpop.f32.mrf.mxu2  ;;  %9726 = vmatpush.xpose.msra.mxu3 %v725_v49  ;;  %9686 = vmatpush.xpose.msra.mxu1 %v723_v13  ;;  %v734_v45 = vld [vmem:[%s19739_s9 + $0x960] sm:$0xff]  ;;  %v321_v13 = vld [vmem:[%s19732_s7 + $0x278] sm:$0xff] }
 0x290   : > { %v8349_v33 = vadd.f32 %v8348_v19, %v8329_v16  ;;  %v8368_v60 = vpop.f32.mrf.mxu3  ;;  %v21273_v49 = vld.sshfl [vmem:[#allocation1 + $0x28] sm:$0xff pattern:$0x73625140]  ;;  %v735_v16 = vld [vmem:[%s19739_s9 + $0x968] sm:$0xff] }
 0x291   : > { %v8388_v22 = vpop.f32.mrf.mxu0  ;;  %2554 = vst [vmem:[#allocation1 + $0x20] ss:$4 sm:$0xff] %v321_v13  ;;  %v21291_v31 = vld.sshfl [vmem:[#allocation1 + $0x18] sm:$0xff pattern:$0x73625140] }
 0x292   : > { %9785 = vmatpush.xpose.msrb.mxu2 %v1496_v38  ;;  %9745 = vmatpush.xpose.msrb.mxu0 %v1494_v54  ;;  %v8369_v25 = vadd.f32 %v8368_v60, %v8349_v33  ;;  %v8408_v26 = vpop.f32.mrf.mxu1  ;;  %v737_v54 = vld [vmem:[%s19739_s9 + $0x978] sm:$0xff]  ;;  %v1507_v60 = vld [vmem:[%s19739_s9 + $0x2188] sm:$0x3] }
 0x293   : > { %9805 = vmatpush.xpose.msrb.mxu3 %v1497_v30  ;;  %9765 = vmatpush.xpose.msrb.mxu1 %v1495_v57  ;;  %v1508_v30 = vld [vmem:[%s19739_s9 + $0x2190] sm:$0x3]  ;;  %v1506_v57 = vld [vmem:[%s19739_s9 + $0x2180] sm:$0x3]  ;;  %v1509_v33 = vld [vmem:[%s19739_s9 + $0x2198] sm:$0x3] }
 0x294   : > { %v8389_v2 = vadd.f32 %v8388_v22, %v8369_v25  ;;  %9707 = vmatmul.f32.vlgmr.msra.gmra.mxu2 %v21161_v58  ;;  %9667 = vmatmul.f32.vlgmr.msra.gmra.mxu0 %v21163_v17 }
 0x295   : > { %9727 = vmatmul.f32.vlgmr.msra.gmra.mxu3 %v21165_v36  ;;  %9687 = vmatmul.f32.vlgmr.msra.gmra.mxu1 %v21168_v21  ;;  %v732_v21 = vld [vmem:[%s19739_s9 + $0x950] sm:$0xff] }
 0x296   : > { %v8409_v41 = vadd.f32 %v8408_v26, %v8389_v2  ;;  %9786 = vmatpush.xpose.msrb.mxu2 %v728_v0  ;;  %9746 = vmatpush.xpose.msrb.mxu0 %v726_v3  ;;  %v21287_v0 = vld.sshfl [vmem:[#allocation1 + $0x10] sm:$0xff pattern:$0x73625140]  ;;  %v21289_v3 = vld.sshfl [vmem:[#allocation1] sm:$0xff pattern:$0x73625140] }
 0x297   : > { %v8428_v44 = vpop.f32.mrf.mxu2  ;;  %9806 = vmatpush.xpose.msrb.mxu3 %v729_v8  ;;  %9766 = vmatpush.xpose.msrb.mxu1 %v727_v37  ;;  %v738_v2 = vld [vmem:[%s19739_s9 + $0x980] sm:$0xff] }
 0x298   : > { %v8429_v58 = vadd.f32 %v8428_v44, %v8409_v41  ;;  %v8448_v17 = vpop.f32.mrf.mxu3  ;;  %v21294_v8 = vld.sshfl [vmem:[#allocation1 + $0x8] sm:$0xff pattern:$0x73625140]  ;;  %v739_v41 = vld [vmem:[%s19739_s9 + $0x988] sm:$0xff] }
 0x299   : > { %v8468_v36 = vpop.f32.mrf.mxu0  ;;  %v322_v37 = vld [vmem:[%s19732_s7 + $0x280] sm:$0xff]  ;;  %v21312_v56 = vld.sshfl [vmem:[#allocation1 + $0x38] sm:$0xff pattern:$0x73625140] }
 0x29a   : > { %9865 = vmatpush.xpose.msra.mxu2 %v1500_v53  ;;  %9825 = vmatpush.xpose.msra.mxu0 %v1498_v11  ;;  %v8449_v46 = vadd.f32 %v8448_v17, %v8429_v58  ;;  %v8488_v47 = vpop.f32.mrf.mxu1  ;;  %v741_v11 = vld [vmem:[%s19739_s9 + $0x998] sm:$0xff]  ;;  %2563 = vst [vmem:[#allocation1] ss:$4 sm:$0xff] %v322_v37  ;;  %v1511_v17 = vld [vmem:[%s19739_s9 + $0x21a8] sm:$0x3] }
 0x29b   : > { %9885 = vmatpush.xpose.msra.mxu3 %v1501_v55  ;;  %9845 = vmatpush.xpose.msra.mxu1 %v1499_v14  ;;  %v1512_v55 = vld [vmem:[%s19739_s9 + $0x21b0] sm:$0x3]  ;;  %v1510_v14 = vld [vmem:[%s19739_s9 + $0x21a0] sm:$0x3]  ;;  %v1513_v58 = vld [vmem:[%s19739_s9 + $0x21b8] sm:$0x3] }
 0x29c   : > { %v8469_v23 = vadd.f32 %v8468_v36, %v8449_v46  ;;  %9787 = vmatmul.f32.vlgmr.msrb.gmra.mxu2 %v21182_v15  ;;  %9747 = vmatmul.f32.vlgmr.msrb.gmra.mxu0 %v21184_v42 }
 0x29d   : > { %9807 = vmatmul.f32.vlgmr.msrb.gmra.mxu3 %v21186_v51  ;;  %9767 = vmatmul.f32.vlgmr.msrb.gmra.mxu1 %v21189_v35  ;;  %v736_v35 = vld [vmem:[%s19739_s9 + $0x970] sm:$0xff] }
 0x29e   : > { %v8489_v62 = vadd.f32 %v8488_v47, %v8469_v23  ;;  %9866 = vmatpush.xpose.msra.mxu2 %v732_v21  ;;  %9826 = vmatpush.xpose.msra.mxu0 %v730_v24  ;;  %v21308_v21 = vld.sshfl [vmem:[#allocation1 + $0x30] sm:$0xff pattern:$0x73625140]  ;;  %v21310_v24 = vld.sshfl [vmem:[#allocation1 + $0x20] sm:$0xff pattern:$0x73625140] }
 0x29f   : > { %v8508_v1 = vpop.f32.mrf.mxu2  ;;  %9886 = vmatpush.xpose.msra.mxu3 %v733_v29  ;;  %9846 = vmatpush.xpose.msra.mxu1 %v731_v59  ;;  %v742_v23 = vld [vmem:[%s19739_s9 + $0x9a0] sm:$0xff]  ;;  %v323_v59 = vld [vmem:[%s19732_s7 + $0x288] sm:$0xff] }
 0x2a0   : > { %v8509_v15 = vadd.f32 %v8508_v1, %v8489_v62  ;;  %v8528_v42 = vpop.f32.mrf.mxu3  ;;  %v21315_v29 = vld.sshfl [vmem:[#allocation1 + $0x28] sm:$0xff pattern:$0x73625140]  ;;  %v743_v62 = vld [vmem:[%s19739_s9 + $0x9a8] sm:$0xff] }
 0x2a1   : > { %v8548_v51 = vpop.f32.mrf.mxu0  ;;  %2564 = vst [vmem:[#allocation1 + $0x20] ss:$4 sm:$0xff] %v323_v59  ;;  %v21333_v13 = vld.sshfl [vmem:[#allocation1 + $0x18] sm:$0xff pattern:$0x73625140] }
 0x2a2   : > { %9945 = vmatpush.xpose.msrb.mxu2 %v1504_v9  ;;  %9905 = vmatpush.xpose.msrb.mxu0 %v1502_v32  ;;  %v8529_v4 = vadd.f32 %v8528_v42, %v8509_v15  ;;  %v8568_v5 = vpop.f32.mrf.mxu1  ;;  %v745_v32 = vld [vmem:[%s19739_s9 + $0x9b8] sm:$0xff]  ;;  %v1515_v42 = vld [vmem:[%s19739_s9 + $0x21c8] sm:$0x3] }
 0x2a3   : > { %9965 = vmatpush.xpose.msrb.mxu3 %v1505_v12  ;;  %9925 = vmatpush.xpose.msrb.mxu1 %v1503_v39  ;;  %v1516_v12 = vld [vmem:[%s19739_s9 + $0x21d0] sm:$0x3]  ;;  %v1514_v39 = vld [vmem:[%s19739_s9 + $0x21c0] sm:$0x3]  ;;  %v1517_v15 = vld [vmem:[%s19739_s9 + $0x21d8] sm:$0x3] }
 0x2a4   : > { %v8549_v38 = vadd.f32 %v8548_v51, %v8529_v4  ;;  %9867 = vmatmul.f32.vlgmr.msra.gmra.mxu2 %v21203_v40  ;;  %9827 = vmatmul.f32.vlgmr.msra.gmra.mxu0 %v21205_v63 }
 0x2a5   : > { %9887 = vmatmul.f32.vlgmr.msra.gmra.mxu3 %v21207_v7  ;;  %9847 = vmatmul.f32.vlgmr.msra.gmra.mxu1 %v21210_v50  ;;  %v740_v50 = vld [vmem:[%s19739_s9 + $0x990] sm:$0xff] }
 0x2a6   : > { %v8569_v19 = vadd.f32 %v8568_v5, %v8549_v38  ;;  %9946 = vmatpush.xpose.msrb.mxu2 %v736_v35  ;;  %9906 = vmatpush.xpose.msrb.mxu0 %v734_v45  ;;  %v21329_v35 = vld.sshfl [vmem:[#allocation1 + $0x10] sm:$0xff pattern:$0x73625140]  ;;  %v21331_v45 = vld.sshfl [vmem:[#allocation1] sm:$0xff pattern:$0x73625140] }
 0x2a7   : > { %v8588_v22 = vpop.f32.mrf.mxu2  ;;  %9966 = vmatpush.xpose.msrb.mxu3 %v737_v54  ;;  %9926 = vmatpush.xpose.msrb.mxu1 %v735_v16  ;;  %v746_v38 = vld [vmem:[%s19739_s9 + $0x9c0] sm:$0xff]  ;;  %v324_v16 = vld [vmem:[%s19732_s7 + $0x290] sm:$0xff] }
 0x2a8   : > { %v8589_v40 = vadd.f32 %v8588_v22, %v8569_v19  ;;  %v8608_v63 = vpop.f32.mrf.mxu3  ;;  %v21336_v54 = vld.sshfl [vmem:[#allocation1 + $0x8] sm:$0xff pattern:$0x73625140]  ;;  %v747_v19 = vld [vmem:[%s19739_s9 + $0x9c8] sm:$0xff] }
 0x2a9   : > { %v8628_v7 = vpop.f32.mrf.mxu0  ;;  %2573 = vst [vmem:[#allocation1] ss:$4 sm:$0xff] %v324_v16  ;;  %v21354_v37 = vld.sshfl [vmem:[#allocation1 + $0x38] sm:$0xff pattern:$0x73625140] }
 0x2aa   : > { %10025 = vmatpush.xpose.msra.mxu2 %v1508_v30  ;;  %9985 = vmatpush.xpose.msra.mxu0 %v1506_v57  ;;  %v8609_v25 = vadd.f32 %v8608_v63, %v8589_v40  ;;  %v8648_v26 = vpop.f32.mrf.mxu1  ;;  %v749_v57 = vld [vmem:[%s19739_s9 + $0x9d8] sm:$0xff]  ;;  %v1519_v63 = vld [vmem:[%s19739_s9 + $0x21e8] sm:$0x3] }
 0x2ab   : > { %10045 = vmatpush.xpose.msra.mxu3 %v1509_v33  ;;  %10005 = vmatpush.xpose.msra.mxu1 %v1507_v60  ;;  %v1520_v33 = vld [vmem:[%s19739_s9 + $0x21f0] sm:$0x3]  ;;  %v1518_v60 = vld [vmem:[%s19739_s9 + $0x21e0] sm:$0x3]  ;;  %v1521_v40 = vld [vmem:[%s19739_s9 + $0x21f8] sm:$0x3] }
 0x2ac   : > { %v8629_v53 = vadd.f32 %v8628_v7, %v8609_v25  ;;  %9947 = vmatmul.f32.vlgmr.msrb.gmra.mxu2 %v21224_v61  ;;  %9907 = vmatmul.f32.vlgmr.msrb.gmra.mxu0 %v21226_v20 }
 0x2ad   : > { %9967 = vmatmul.f32.vlgmr.msrb.gmra.mxu3 %v21228_v28  ;;  %9927 = vmatmul.f32.vlgmr.msrb.gmra.mxu1 %v21231_v6  ;;  %v744_v6 = vld [vmem:[%s19739_s9 + $0x9b0] sm:$0xff] }
 0x2ae   : > { %v8649_v44 = vadd.f32 %v8648_v26, %v8629_v53  ;;  %10026 = vmatpush.xpose.msra.mxu2 %v740_v50  ;;  %9986 = vmatpush.xpose.msra.mxu0 %v738_v2  ;;  %v21350_v50 = vld.sshfl [vmem:[#allocation1 + $0x30] sm:$0xff pattern:$0x73625140]  ;;  %v21352_v2 = vld.sshfl [vmem:[#allocation1 + $0x20] sm:$0xff pattern:$0x73625140] }
 0x2af   : > { %v8668_v36 = vpop.f32.mrf.mxu2  ;;  %10046 = vmatpush.xpose.msra.mxu3 %v741_v11  ;;  %10006 = vmatpush.xpose.msra.mxu1 %v739_v41  ;;  %v750_v53 = vld [vmem:[%s19739_s9 + $0x9e0] sm:$0xff]  ;;  %v325_v41 = vld [vmem:[%s19732_s7 + $0x298] sm:$0xff] }
 0x2b0   : > { %v8669_v61 = vadd.f32 %v8668_v36, %v8649_v44  ;;  %v8688_v20 = vpop.f32.mrf.mxu3  ;;  %v21357_v11 = vld.sshfl [vmem:[#allocation1 + $0x28] sm:$0xff pattern:$0x73625140]  ;;  %v751_v44 = vld [vmem:[%s19739_s9 + $0x9e8] sm:$0xff] }
 0x2b1   : > { %v8708_v28 = vpop.f32.mrf.mxu0  ;;  %2574 = vst [vmem:[#allocation1 + $0x20] ss:$4 sm:$0xff] %v325_v41  ;;  %v21375_v59 = vld.sshfl [vmem:[#allocation1 + $0x18] sm:$0xff pattern:$0x73625140] }
 0x2b2   : > { %10105 = vmatpush.xpose.msrb.mxu2 %v1512_v55  ;;  %10065 = vmatpush.xpose.msrb.mxu0 %v1510_v14  ;;  %v8689_v46 = vadd.f32 %v8688_v20, %v8669_v61  ;;  %v8728_v47 = vpop.f32.mrf.mxu1  ;;  %v753_v14 = vld [vmem:[%s19739_s9 + $0x9f8] sm:$0xff]  ;;  %v1523_v20 = vld [vmem:[%s19739_s9 + $0x2208] sm:$0x3] }
 0x2b3   : > { %10125 = vmatpush.xpose.msrb.mxu3 %v1513_v58  ;;  %10085 = vmatpush.xpose.msrb.mxu1 %v1511_v17  ;;  %v1524_v58 = vld [vmem:[%s19739_s9 + $0x2210] sm:$0x3]  ;;  %v1522_v17 = vld [vmem:[%s19739_s9 + $0x2200] sm:$0x3]  ;;  %v1525_v61 = vld [vmem:[%s19739_s9 + $0x2218] sm:$0x3] }
 0x2b4   : > { %v8709_v9 = vadd.f32 %v8708_v28, %v8689_v46  ;;  %10027 = vmatmul.f32.vlgmr.msra.gmra.mxu2 %v21245_v18  ;;  %9987 = vmatmul.f32.vlgmr.msra.gmra.mxu0 %v21247_v34 }
 0x2b5   : > { %10047 = vmatmul.f32.vlgmr.msra.gmra.mxu3 %v21249_v52  ;;  %10007 = vmatmul.f32.vlgmr.msra.gmra.mxu1 %v21252_v27  ;;  %v748_v27 = vld [vmem:[%s19739_s9 + $0x9d0] sm:$0xff] }
 0x2b6   : > { %v8729_v1 = vadd.f32 %v8728_v47, %v8709_v9  ;;  %10106 = vmatpush.xpose.msrb.mxu2 %v744_v6  ;;  %10066 = vmatpush.xpose.msrb.mxu0 %v742_v23  ;;  %v21371_v6 = vld.sshfl [vmem:[#allocation1 + $0x10] sm:$0xff pattern:$0x73625140]  ;;  %v21373_v23 = vld.sshfl [vmem:[#allocation1] sm:$0xff pattern:$0x73625140] }
 0x2b7   : > { %v8748_v51 = vpop.f32.mrf.mxu2  ;;  %10126 = vmatpush.xpose.msrb.mxu3 %v745_v32  ;;  %10086 = vmatpush.xpose.msrb.mxu1 %v743_v62  ;;  %v754_v9 = vld [vmem:[%s19739_s9 + $0xa00] sm:$0xff] }
 0x2b8   : > { %v8749_v18 = vadd.f32 %v8748_v51, %v8729_v1  ;;  %v8768_v34 = vpop.f32.mrf.mxu3  ;;  %v21378_v32 = vld.sshfl [vmem:[#allocation1 + $0x8] sm:$0xff pattern:$0x73625140]  ;;  %v755_v1 = vld [vmem:[%s19739_s9 + $0xa08] sm:$0xff] }
 0x2b9   : > { %v8788_v52 = vpop.f32.mrf.mxu0  ;;  %v326_v62 = vld [vmem:[%s19732_s7 + $0x2a0] sm:$0xff]  ;;  %v21396_v16 = vld.sshfl [vmem:[#allocation1 + $0x38] sm:$0xff pattern:$0x73625140] }
 0x2ba   : > { %10185 = vmatpush.xpose.msra.mxu2 %v1516_v12  ;;  %10145 = vmatpush.xpose.msra.mxu0 %v1514_v39  ;;  %v8769_v4 = vadd.f32 %v8768_v34, %v8749_v18  ;;  %v8808_v5 = vpop.f32.mrf.mxu1  ;;  %v757_v39 = vld [vmem:[%s19739_s9 + $0xa18] sm:$0xff]  ;;  %2583 = vst [vmem:[#allocation1] ss:$4 sm:$0xff] %v326_v62  ;;  %v1527_v34 = vld [vmem:[%s19739_s9 + $0x2228] sm:$0x3] }
 0x2bb   : > { %10205 = vmatpush.xpose.msra.mxu3 %v1517_v15  ;;  %10165 = vmatpush.xpose.msra.mxu1 %v1515_v42  ;;  %v1528_v15 = vld [vmem:[%s19739_s9 + $0x2230] sm:$0x3]  ;;  %v1526_v42 = vld [vmem:[%s19739_s9 + $0x2220] sm:$0x3]  ;;  %v1529_v18 = vld [vmem:[%s19739_s9 + $0x2238] sm:$0x3] }
 0x2bc   : > { %v8789_v30 = vadd.f32 %v8788_v52, %v8769_v4  ;;  %10107 = vmatmul.f32.vlgmr.msrb.gmra.mxu2 %v21266_v43  ;;  %10067 = vmatmul.f32.vlgmr.msrb.gmra.mxu0 %v21268_v48 }
 0x2bd   : > { %10127 = vmatmul.f32.vlgmr.msrb.gmra.mxu3 %v21270_v10  ;;  %10087 = vmatmul.f32.vlgmr.msrb.gmra.mxu1 %v21273_v49  ;;  %v752_v49 = vld [vmem:[%s19739_s9 + $0x9f0] sm:$0xff] }
 0x2be   : > { %v8809_v22 = vadd.f32 %v8808_v5, %v8789_v30  ;;  %10186 = vmatpush.xpose.msra.mxu2 %v748_v27  ;;  %10146 = vmatpush.xpose.msra.mxu0 %v746_v38  ;;  %v21392_v27 = vld.sshfl [vmem:[#allocation1 + $0x30] sm:$0xff pattern:$0x73625140]  ;;  %v21394_v38 = vld.sshfl [vmem:[#allocation1 + $0x20] sm:$0xff pattern:$0x73625140] }
 0x2bf   : > { %v8828_v7 = vpop.f32.mrf.mxu2  ;;  %10206 = vmatpush.xpose.msra.mxu3 %v749_v57  ;;  %10166 = vmatpush.xpose.msra.mxu1 %v747_v19  ;;  %v758_v30 = vld [vmem:[%s19739_s9 + $0xa20] sm:$0xff]  ;;  %v327_v19 = vld [vmem:[%s19732_s7 + $0x2a8] sm:$0xff] }
 0x2c0   : > { %v8829_v43 = vadd.f32 %v8828_v7, %v8809_v22  ;;  %v8848_v48 = vpop.f32.mrf.mxu3  ;;  %v21399_v57 = vld.sshfl [vmem:[#allocation1 + $0x28] sm:$0xff pattern:$0x73625140]  ;;  %v759_v22 = vld [vmem:[%s19739_s9 + $0xa28] sm:$0xff] }
 0x2c1   : > { %v8868_v10 = vpop.f32.mrf.mxu0  ;;  %2584 = vst [vmem:[#allocation1 + $0x20] ss:$4 sm:$0xff] %v327_v19  ;;  %v21417_v41 = vld.sshfl [vmem:[#allocation1 + $0x18] sm:$0xff pattern:$0x73625140] }
 0x2c2   : > { %10265 = vmatpush.xpose.msrb.mxu2 %v1520_v33  ;;  %10225 = vmatpush.xpose.msrb.mxu0 %v1518_v60  ;;  %v8849_v25 = vadd.f32 %v8848_v48, %v8829_v43  ;;  %v8888_v26 = vpop.f32.mrf.mxu1  ;;  %v761_v60 = vld [vmem:[%s19739_s9 + $0xa38] sm:$0xff]  ;;  %v1531_v48 = vld [vmem:[%s19739_s9 + $0x2248] sm:$0x3] }
 0x2c3   : > { %10285 = vmatpush.xpose.msrb.mxu3 %v1521_v40  ;;  %10245 = vmatpush.xpose.msrb.mxu1 %v1519_v63  ;;  %v1532_v40 = vld [vmem:[%s19739_s9 + $0x2250] sm:$0x3]  ;;  %v1530_v63 = vld [vmem:[%s19739_s9 + $0x2240] sm:$0x3]  ;;  %v1533_v43 = vld [vmem:[%s19739_s9 + $0x2258] sm:$0x3] }
 0x2c4   : > { %v8869_v55 = vadd.f32 %v8868_v10, %v8849_v25  ;;  %10187 = vmatmul.f32.vlgmr.msra.gmra.mxu2 %v21287_v0  ;;  %10147 = vmatmul.f32.vlgmr.msra.gmra.mxu0 %v21289_v3 }
 0x2c5   : > { %10207 = vmatmul.f32.vlgmr.msra.gmra.mxu3 %v21291_v31  ;;  %10167 = vmatmul.f32.vlgmr.msra.gmra.mxu1 %v21294_v8  ;;  %v756_v8 = vld [vmem:[%s19739_s9 + $0xa10] sm:$0xff] }
 0x2c6   : > { %v8889_v36 = vadd.f32 %v8888_v26, %v8869_v55  ;;  %10266 = vmatpush.xpose.msrb.mxu2 %v752_v49  ;;  %10226 = vmatpush.xpose.msrb.mxu0 %v750_v53  ;;  %v21413_v49 = vld.sshfl [vmem:[#allocation1 + $0x10] sm:$0xff pattern:$0x73625140]  ;;  %v21415_v53 = vld.sshfl [vmem:[#allocation1] sm:$0xff pattern:$0x73625140] }
 0x2c7   : > { %v8908_v28 = vpop.f32.mrf.mxu2  ;;  %10286 = vmatpush.xpose.msrb.mxu3 %v753_v14  ;;  %10246 = vmatpush.xpose.msrb.mxu1 %v751_v44  ;;  %v762_v55 = vld [vmem:[%s19739_s9 + $0xa40] sm:$0xff]  ;;  %v328_v44 = vld [vmem:[%s19732_s7 + $0x2b0] sm:$0xff] }
 0x2c8   : > { %v8909_v0 = vadd.f32 %v8908_v28, %v8889_v36  ;;  %v8928_v3 = vpop.f32.mrf.mxu3  ;;  %v21420_v14 = vld.sshfl [vmem:[#allocation1 + $0x8] sm:$0xff pattern:$0x73625140]  ;;  %v763_v36 = vld [vmem:[%s19739_s9 + $0xa48] sm:$0xff] }
 0x2c9   : > { %v8948_v31 = vpop.f32.mrf.mxu0  ;;  %2593 = vst [vmem:[#allocation1] ss:$4 sm:$0xff] %v328_v44  ;;  %v21438_v62 = vld.sshfl [vmem:[#allocation1 + $0x38] sm:$0xff pattern:$0x73625140] }
 0x2ca   : > { %10345 = vmatpush.xpose.msra.mxu2 %v1524_v58  ;;  %10305 = vmatpush.xpose.msra.mxu0 %v1522_v17  ;;  %v8929_v46 = vadd.f32 %v8928_v3, %v8909_v0  ;;  %v8968_v47 = vpop.f32.mrf.mxu1  ;;  %v765_v17 = vld [vmem:[%s19739_s9 + $0xa58] sm:$0xff]  ;;  %v1535_v3 = vld [vmem:[%s19739_s9 + $0x2268] sm:$0x3] }
 0x2cb   : > { %10365 = vmatpush.xpose.msra.mxu3 %v1525_v61  ;;  %10325 = vmatpush.xpose.msra.mxu1 %v1523_v20  ;;  %v1536_v61 = vld [vmem:[%s19739_s9 + $0x2270] sm:$0x3]  ;;  %v1534_v20 = vld [vmem:[%s19739_s9 + $0x2260] sm:$0x3]  ;;  %v1537_v0 = vld [vmem:[%s19739_s9 + $0x2278] sm:$0x3] }
 0x2cc   : > { %v8949_v12 = vadd.f32 %v8948_v31, %v8929_v46  ;;  %10267 = vmatmul.f32.vlgmr.msrb.gmra.mxu2 %v21308_v21  ;;  %10227 = vmatmul.f32.vlgmr.msrb.gmra.mxu0 %v21310_v24 }
 0x2cd   : > { %10287 = vmatmul.f32.vlgmr.msrb.gmra.mxu3 %v21312_v56  ;;  %10247 = vmatmul.f32.vlgmr.msrb.gmra.mxu1 %v21315_v29  ;;  %v760_v29 = vld [vmem:[%s19739_s9 + $0xa30] sm:$0xff] }
 0x2ce   : > { %v8969_v51 = vadd.f32 %v8968_v47, %v8949_v12  ;;  %10346 = vmatpush.xpose.msra.mxu2 %v756_v8  ;;  %10306 = vmatpush.xpose.msra.mxu0 %v754_v9  ;;  %v21434_v8 = vld.sshfl [vmem:[#allocation1 + $0x30] sm:$0xff pattern:$0x73625140]  ;;  %v21436_v9 = vld.sshfl [vmem:[#allocation1 + $0x20] sm:$0xff pattern:$0x73625140] }
 0x2cf   : > { %v8988_v52 = vpop.f32.mrf.mxu2  ;;  %10366 = vmatpush.xpose.msra.mxu3 %v757_v39  ;;  %10326 = vmatpush.xpose.msra.mxu1 %v755_v1  ;;  %v766_v12 = vld [vmem:[%s19739_s9 + $0xa60] sm:$0xff]  ;;  %v329_v1 = vld [vmem:[%s19732_s7 + $0x2b8] sm:$0xff] }
 0x2d0   : > { %v8989_v21 = vadd.f32 %v8988_v52, %v8969_v51  ;;  %v9008_v24 = vpop.f32.mrf.mxu3  ;;  %v21441_v39 = vld.sshfl [vmem:[#allocation1 + $0x28] sm:$0xff pattern:$0x73625140]  ;;  %v767_v51 = vld [vmem:[%s19739_s9 + $0xa68] sm:$0xff] }
 0x2d1   : > { %v9028_v56 = vpop.f32.mrf.mxu0  ;;  %2594 = vst [vmem:[#allocation1 + $0x20] ss:$4 sm:$0xff] %v329_v1  ;;  %v21459_v19 = vld.sshfl [vmem:[#allocation1 + $0x18] sm:$0xff pattern:$0x73625140] }
 0x2d2   : > { %10425 = vmatpush.xpose.msrb.mxu2 %v1528_v15  ;;  %10385 = vmatpush.xpose.msrb.mxu0 %v1526_v42  ;;  %v9009_v4 = vadd.f32 %v9008_v24, %v8989_v21  ;;  %v9048_v5 = vpop.f32.mrf.mxu1  ;;  %v769_v42 = vld [vmem:[%s19739_s9 + $0xa78] sm:$0xff]  ;;  %v1539_v24 = vld [vmem:[%s19739_s9 + $0x2288] sm:$0x3] }
 0x2d3   : > { %10445 = vmatpush.xpose.msrb.mxu3 %v1529_v18  ;;  %10405 = vmatpush.xpose.msrb.mxu1 %v1527_v34  ;;  %v1540_v18 = vld [vmem:[%s19739_s9 + $0x2290] sm:$0x3]  ;;  %v1538_v34 = vld [vmem:[%s19739_s9 + $0x2280] sm:$0x3]  ;;  %v1541_v21 = vld [vmem:[%s19739_s9 + $0x2298] sm:$0x3] }
 0x2d4   : > { %v9029_v33 = vadd.f32 %v9028_v56, %v9009_v4  ;;  %10347 = vmatmul.f32.vlgmr.msra.gmra.mxu2 %v21329_v35  ;;  %10307 = vmatmul.f32.vlgmr.msra.gmra.mxu0 %v21331_v45 }
 0x2d5   : > { %10367 = vmatmul.f32.vlgmr.msra.gmra.mxu3 %v21333_v13  ;;  %10327 = vmatmul.f32.vlgmr.msra.gmra.mxu1 %v21336_v54  ;;  %v764_v54 = vld [vmem:[%s19739_s9 + $0xa50] sm:$0xff] }
 0x2d6   : > { %v9049_v7 = vadd.f32 %v9048_v5, %v9029_v33  ;;  %10426 = vmatpush.xpose.msrb.mxu2 %v760_v29  ;;  %10386 = vmatpush.xpose.msrb.mxu0 %v758_v30  ;;  %v21455_v29 = vld.sshfl [vmem:[#allocation1 + $0x10] sm:$0xff pattern:$0x73625140]  ;;  %v21457_v30 = vld.sshfl [vmem:[#allocation1] sm:$0xff pattern:$0x73625140] }
 0x2d7   : > { %v9068_v10 = vpop.f32.mrf.mxu2  ;;  %10446 = vmatpush.xpose.msrb.mxu3 %v761_v60  ;;  %10406 = vmatpush.xpose.msrb.mxu1 %v759_v22  ;;  %v770_v33 = vld [vmem:[%s19739_s9 + $0xa80] sm:$0xff] }
 0x2d8   : > { %v9069_v35 = vadd.f32 %v9068_v10, %v9049_v7  ;;  %v9088_v45 = vpop.f32.mrf.mxu3  ;;  %v21462_v60 = vld.sshfl [vmem:[#allocation1 + $0x8] sm:$0xff pattern:$0x73625140]  ;;  %v771_v7 = vld [vmem:[%s19739_s9 + $0xa88] sm:$0xff] }
 0x2d9   : > { %v9108_v13 = vpop.f32.mrf.mxu0  ;;  %v330_v22 = vld [vmem:[%s19732_s7 + $0x2c0] sm:$0xff]  ;;  %v21480_v44 = vld.sshfl [vmem:[#allocation1 + $0x38] sm:$0xff pattern:$0x73625140] }
 0x2da   : > { %10505 = vmatpush.xpose.msra.mxu2 %v1532_v40  ;;  %10465 = vmatpush.xpose.msra.mxu0 %v1530_v63  ;;  %v9089_v25 = vadd.f32 %v9088_v45, %v9069_v35  ;;  %v9128_v26 = vpop.f32.mrf.mxu1  ;;  %v773_v63 = vld [vmem:[%s19739_s9 + $0xa98] sm:$0xff]  ;;  %2603 = vst [vmem:[#allocation1] ss:$4 sm:$0xff] %v330_v22  ;;  %v1543_v45 = vld [vmem:[%s19739_s9 + $0x22a8] sm:$0x3] }
 0x2db   : > { %10525 = vmatpush.xpose.msra.mxu3 %v1533_v43  ;;  %10485 = vmatpush.xpose.msra.mxu1 %v1531_v48  ;;  %v1544_v43 = vld [vmem:[%s19739_s9 + $0x22b0] sm:$0x3]  ;;  %v1542_v48 = vld [vmem:[%s19739_s9 + $0x22a0] sm:$0x3]  ;;  %v1545_v35 = vld [vmem:[%s19739_s9 + $0x22b8] sm:$0x3] }
 0x2dc   : > { %v9109_v58 = vadd.f32 %v9108_v13, %v9089_v25  ;;  %10427 = vmatmul.f32.vlgmr.msrb.gmra.mxu2 %v21350_v50  ;;  %10387 = vmatmul.f32.vlgmr.msrb.gmra.mxu0 %v21352_v2 }
 0x2dd   : > { %10447 = vmatmul.f32.vlgmr.msrb.gmra.mxu3 %v21354_v37  ;;  %10407 = vmatmul.f32.vlgmr.msrb.gmra.mxu1 %v21357_v11  ;;  %v768_v11 = vld [vmem:[%s19739_s9 + $0xa70] sm:$0xff] }
 0x2de   : > { %v9129_v28 = vadd.f32 %v9128_v26, %v9109_v58  ;;  %10506 = vmatpush.xpose.msra.mxu2 %v764_v54  ;;  %10466 = vmatpush.xpose.msra.mxu0 %v762_v55  ;;  %v21476_v54 = vld.sshfl [vmem:[#allocation1 + $0x30] sm:$0xff pattern:$0x73625140]  ;;  %v21478_v55 = vld.sshfl [vmem:[#allocation1 + $0x20] sm:$0xff pattern:$0x73625140] }
 0x2df   : > { %v9148_v31 = vpop.f32.mrf.mxu2  ;;  %10526 = vmatpush.xpose.msra.mxu3 %v765_v17  ;;  %10486 = vmatpush.xpose.msra.mxu1 %v763_v36  ;;  %v774_v58 = vld [vmem:[%s19739_s9 + $0xaa0] sm:$0xff]  ;;  %v331_v36 = vld [vmem:[%s19732_s7 + $0x2c8] sm:$0xff] }
 0x2e0   : > { %v9149_v50 = vadd.f32 %v9148_v31, %v9129_v28  ;;  %v9168_v2 = vpop.f32.mrf.mxu3  ;;  %v21483_v17 = vld.sshfl [vmem:[#allocation1 + $0x28] sm:$0xff pattern:$0x73625140]  ;;  %v775_v28 = vld [vmem:[%s19739_s9 + $0xaa8] sm:$0xff] }
 0x2e1   : > { %v9188_v37 = vpop.f32.mrf.mxu0  ;;  %2604 = vst [vmem:[#allocation1 + $0x20] ss:$4 sm:$0xff] %v331_v36  ;;  %v21501_v1 = vld.sshfl [vmem:[#allocation1 + $0x18] sm:$0xff pattern:$0x73625140] }
 0x2e2   : > { %10585 = vmatpush.xpose.msrb.mxu2 %v1536_v61  ;;  %10545 = vmatpush.xpose.msrb.mxu0 %v1534_v20  ;;  %v9169_v46 = vadd.f32 %v9168_v2, %v9149_v50  ;;  %v9208_v47 = vpop.f32.mrf.mxu1  ;;  %v777_v20 = vld [vmem:[%s19739_s9 + $0xab8] sm:$0xff]  ;;  %v1547_v2 = vld [vmem:[%s19739_s9 + $0x22c8] sm:$0x3] }
 0x2e3   : > { %10605 = vmatpush.xpose.msrb.mxu3 %v1537_v0  ;;  %10565 = vmatpush.xpose.msrb.mxu1 %v1535_v3  ;;  %v1548_v0 = vld [vmem:[%s19739_s9 + $0x22d0] sm:$0x3]  ;;  %v1546_v3 = vld [vmem:[%s19739_s9 + $0x22c0] sm:$0x3]  ;;  %v1549_v50 = vld [vmem:[%s19739_s9 + $0x22d8] sm:$0x3] }
 0x2e4   : > { %v9189_v15 = vadd.f32 %v9188_v37, %v9169_v46  ;;  %10507 = vmatmul.f32.vlgmr.msra.gmra.mxu2 %v21371_v6  ;;  %10467 = vmatmul.f32.vlgmr.msra.gmra.mxu0 %v21373_v23 }
 0x2e5   : > { %10527 = vmatmul.f32.vlgmr.msra.gmra.mxu3 %v21375_v59  ;;  %10487 = vmatmul.f32.vlgmr.msra.gmra.mxu1 %v21378_v32  ;;  %v772_v32 = vld [vmem:[%s19739_s9 + $0xa90] sm:$0xff] }
 0x2e6   : > { %v9209_v52 = vadd.f32 %v9208_v47, %v9189_v15  ;;  %10586 = vmatpush.xpose.msrb.mxu2 %v768_v11  ;;  %10546 = vmatpush.xpose.msrb.mxu0 %v766_v12  ;;  %v21497_v11 = vld.sshfl [vmem:[#allocation1 + $0x10] sm:$0xff pattern:$0x73625140]  ;;  %v21499_v12 = vld.sshfl [vmem:[#allocation1] sm:$0xff pattern:$0x73625140] }
 0x2e7   : > { %v9228_v56 = vpop.f32.mrf.mxu2  ;;  %10606 = vmatpush.xpose.msrb.mxu3 %v769_v42  ;;  %10566 = vmatpush.xpose.msrb.mxu1 %v767_v51  ;;  %v778_v15 = vld [vmem:[%s19739_s9 + $0xac0] sm:$0xff]  ;;  %v332_v51 = vld [vmem:[%s19732_s7 + $0x2d0] sm:$0xff] }
 0x2e8   : > { %v9229_v6 = vadd.f32 %v9228_v56, %v9209_v52  ;;  %v9248_v23 = vpop.f32.mrf.mxu3  ;;  %v21504_v42 = vld.sshfl [vmem:[#allocation1 + $0x8] sm:$0xff pattern:$0x73625140]  ;;  %v779_v52 = vld [vmem:[%s19739_s9 + $0xac8] sm:$0xff] }
 0x2e9   : > { %v9268_v59 = vpop.f32.mrf.mxu0  ;;  %2613 = vst [vmem:[#allocation1] ss:$4 sm:$0xff] %v332_v51  ;;  %v21522_v22 = vld.sshfl [vmem:[#allocation1 + $0x38] sm:$0xff pattern:$0x73625140] }
 0x2ea   : > { %10665 = vmatpush.xpose.msra.mxu2 %v1540_v18  ;;  %10625 = vmatpush.xpose.msra.mxu0 %v1538_v34  ;;  %v9249_v4 = vadd.f32 %v9248_v23, %v9229_v6  ;;  %v9288_v5 = vpop.f32.mrf.mxu1  ;;  %v781_v34 = vld [vmem:[%s19739_s9 + $0xad8] sm:$0xff]  ;;  %v1551_v23 = vld [vmem:[%s19739_s9 + $0x22e8] sm:$0x3] }
 0x2eb   : > { %10685 = vmatpush.xpose.msra.mxu3 %v1541_v21  ;;  %10645 = vmatpush.xpose.msra.mxu1 %v1539_v24  ;;  %v1552_v21 = vld [vmem:[%s19739_s9 + $0x22f0] sm:$0x3]  ;;  %v1550_v24 = vld [vmem:[%s19739_s9 + $0x22e0] sm:$0x3]  ;;  %v1553_v6 = vld [vmem:[%s19739_s9 + $0x22f8] sm:$0x3] }
 0x2ec   : > { %v9269_v40 = vadd.f32 %v9268_v59, %v9249_v4  ;;  %10587 = vmatmul.f32.vlgmr.msrb.gmra.mxu2 %v21392_v27  ;;  %10547 = vmatmul.f32.vlgmr.msrb.gmra.mxu0 %v21394_v38 }
 0x2ed   : > { %10607 = vmatmul.f32.vlgmr.msrb.gmra.mxu3 %v21396_v16  ;;  %10567 = vmatmul.f32.vlgmr.msrb.gmra.mxu1 %v21399_v57  ;;  %v776_v57 = vld [vmem:[%s19739_s9 + $0xab0] sm:$0xff] }
 0x2ee   : > { %v9289_v10 = vadd.f32 %v9288_v5, %v9269_v40  ;;  %10666 = vmatpush.xpose.msra.mxu2 %v772_v32  ;;  %10626 = vmatpush.xpose.msra.mxu0 %v770_v33  ;;  %v21518_v32 = vld.sshfl [vmem:[#allocation1 + $0x30] sm:$0xff pattern:$0x73625140]  ;;  %v21520_v33 = vld.sshfl [vmem:[#allocation1 + $0x20] sm:$0xff pattern:$0x73625140] }
 0x2ef   : > { %v9308_v13 = vpop.f32.mrf.mxu2  ;;  %10686 = vmatpush.xpose.msra.mxu3 %v773_v63  ;;  %10646 = vmatpush.xpose.msra.mxu1 %v771_v7  ;;  %v782_v40 = vld [vmem:[%s19739_s9 + $0xae0] sm:$0xff]  ;;  %v333_v7 = vld [vmem:[%s19732_s7 + $0x2d8] sm:$0xff] }
 0x2f0   : > { %v9309_v27 = vadd.f32 %v9308_v13, %v9289_v10  ;;  %v9328_v38 = vpop.f32.mrf.mxu3  ;;  %v21525_v63 = vld.sshfl [vmem:[#allocation1 + $0x28] sm:$0xff pattern:$0x73625140]  ;;  %v783_v10 = vld [vmem:[%s19739_s9 + $0xae8] sm:$0xff] }
 0x2f1   : > { %v9348_v16 = vpop.f32.mrf.mxu0  ;;  %2614 = vst [vmem:[#allocation1 + $0x20] ss:$4 sm:$0xff] %v333_v7  ;;  %v21543_v36 = vld.sshfl [vmem:[#allocation1 + $0x18] sm:$0xff pattern:$0x73625140] }
 0x2f2   : > { %10745 = vmatpush.xpose.msrb.mxu2 %v1544_v43  ;;  %10705 = vmatpush.xpose.msrb.mxu0 %v1542_v48  ;;  %v9329_v25 = vadd.f32 %v9328_v38, %v9309_v27  ;;  %v9368_v26 = vpop.f32.mrf.mxu1  ;;  %v785_v48 = vld [vmem:[%s19739_s9 + $0xaf8] sm:$0xff]  ;;  %v1555_v38 = vld [vmem:[%s19739_s9 + $0x2308] sm:$0x3] }
 0x2f3   : > { %10765 = vmatpush.xpose.msrb.mxu3 %v1545_v35  ;;  %10725 = vmatpush.xpose.msrb.mxu1 %v1543_v45  ;;  %v1556_v35 = vld [vmem:[%s19739_s9 + $0x2310] sm:$0x3]  ;;  %v1554_v45 = vld [vmem:[%s19739_s9 + $0x2300] sm:$0x3]  ;;  %v1557_v27 = vld [vmem:[%s19739_s9 + $0x2318] sm:$0x3] }
 0x2f4   : > { %v9349_v61 = vadd.f32 %v9348_v16, %v9329_v25  ;;  %10667 = vmatmul.f32.vlgmr.msra.gmra.mxu2 %v21413_v49  ;;  %10627 = vmatmul.f32.vlgmr.msra.gmra.mxu0 %v21415_v53 }
 0x2f5   : > { %10687 = vmatmul.f32.vlgmr.msra.gmra.mxu3 %v21417_v41  ;;  %10647 = vmatmul.f32.vlgmr.msra.gmra.mxu1 %v21420_v14  ;;  %v780_v14 = vld [vmem:[%s19739_s9 + $0xad0] sm:$0xff] }
 0x2f6   : > { %v9369_v31 = vadd.f32 %v9368_v26, %v9349_v61  ;;  %10746 = vmatpush.xpose.msrb.mxu2 %v776_v57  ;;  %10706 = vmatpush.xpose.msrb.mxu0 %v774_v58  ;;  %v21539_v57 = vld.sshfl [vmem:[#allocation1 + $0x10] sm:$0xff pattern:$0x73625140]  ;;  %v21541_v58 = vld.sshfl [vmem:[#allocation1] sm:$0xff pattern:$0x73625140] }
 0x2f7   : > { %v9388_v37 = vpop.f32.mrf.mxu2  ;;  %10766 = vmatpush.xpose.msrb.mxu3 %v777_v20  ;;  %10726 = vmatpush.xpose.msrb.mxu1 %v775_v28  ;;  %v786_v61 = vld [vmem:[%s19739_s9 + $0xb00] sm:$0xff] }
 0x2f8   : > { %v9389_v49 = vadd.f32 %v9388_v37, %v9369_v31  ;;  %v9408_v53 = vpop.f32.mrf.mxu3  ;;  %v21546_v20 = vld.sshfl [vmem:[#allocation1 + $0x8] sm:$0xff pattern:$0x73625140]  ;;  %v787_v31 = vld [vmem:[%s19739_s9 + $0xb08] sm:$0xff] }
 0x2f9   : > { %v9428_v41 = vpop.f32.mrf.mxu0  ;;  %v334_v28 = vld [vmem:[%s19732_s7 + $0x2e0] sm:$0xff]  ;;  %v21564_v51 = vld.sshfl [vmem:[#allocation1 + $0x38] sm:$0xff pattern:$0x73625140] }
 0x2fa   : > { %10825 = vmatpush.xpose.msra.mxu2 %v1548_v0  ;;  %10785 = vmatpush.xpose.msra.mxu0 %v1546_v3  ;;  %v9409_v46 = vadd.f32 %v9408_v53, %v9389_v49  ;;  %v9448_v47 = vpop.f32.mrf.mxu1  ;;  %v789_v3 = vld [vmem:[%s19739_s9 + $0xb18] sm:$0xff]  ;;  %2623 = vst [vmem:[#allocation1] ss:$4 sm:$0xff] %v334_v28  ;;  %v1559_v53 = vld [vmem:[%s19739_s9 + $0x2328] sm:$0x3] }
 0x2fb   : > { %10845 = vmatpush.xpose.msra.mxu3 %v1549_v50  ;;  %10805 = vmatpush.xpose.msra.mxu1 %v1547_v2  ;;  %v1560_v50 = vld [vmem:[%s19739_s9 + $0x2330] sm:$0x3]  ;;  %v1558_v2 = vld [vmem:[%s19739_s9 + $0x2320] sm:$0x3]  ;;  %v1561_v49 = vld [vmem:[%s19739_s9 + $0x2338] sm:$0x3] }
 0x2fc   : > { %v9429_v18 = vadd.f32 %v9428_v41, %v9409_v46  ;;  %10747 = vmatmul.f32.vlgmr.msrb.gmra.mxu2 %v21434_v8  ;;  %10707 = vmatmul.f32.vlgmr.msrb.gmra.mxu0 %v21436_v9 }
 0x2fd   : > { %10767 = vmatmul.f32.vlgmr.msrb.gmra.mxu3 %v21438_v62  ;;  %10727 = vmatmul.f32.vlgmr.msrb.gmra.mxu1 %v21441_v39  ;;  %v784_v39 = vld [vmem:[%s19739_s9 + $0xaf0] sm:$0xff] }
 0x2fe   : > { %v9449_v56 = vadd.f32 %v9448_v47, %v9429_v18  ;;  %10826 = vmatpush.xpose.msra.mxu2 %v780_v14  ;;  %10786 = vmatpush.xpose.msra.mxu0 %v778_v15  ;;  %v21560_v14 = vld.sshfl [vmem:[#allocation1 + $0x30] sm:$0xff pattern:$0x73625140]  ;;  %v21562_v15 = vld.sshfl [vmem:[#allocation1 + $0x20] sm:$0xff pattern:$0x73625140] }
 0x2ff   : > { %v9468_v59 = vpop.f32.mrf.mxu2  ;;  %10846 = vmatpush.xpose.msra.mxu3 %v781_v34  ;;  %10806 = vmatpush.xpose.msra.mxu1 %v779_v52  ;;  %v790_v18 = vld [vmem:[%s19739_s9 + $0xb20] sm:$0xff]  ;;  %v335_v52 = vld [vmem:[%s19732_s7 + $0x2e8] sm:$0xff] }
 0x300   : > { %v9469_v8 = vadd.f32 %v9468_v59, %v9449_v56  ;;  %v9488_v9 = vpop.f32.mrf.mxu3  ;;  %v21567_v34 = vld.sshfl [vmem:[#allocation1 + $0x28] sm:$0xff pattern:$0x73625140]  ;;  %v791_v56 = vld [vmem:[%s19739_s9 + $0xb28] sm:$0xff] }
 0x301   : > { %v9508_v62 = vpop.f32.mrf.mxu0  ;;  %2624 = vst [vmem:[#allocation1 + $0x20] ss:$4 sm:$0xff] %v335_v52  ;;  %v21585_v7 = vld.sshfl [vmem:[#allocation1 + $0x18] sm:$0xff pattern:$0x73625140] }
 0x302   : > { %10905 = vmatpush.xpose.msrb.mxu2 %v1552_v21  ;;  %10865 = vmatpush.xpose.msrb.mxu0 %v1550_v24  ;;  %v9489_v4 = vadd.f32 %v9488_v9, %v9469_v8  ;;  %v9528_v5 = vpop.f32.mrf.mxu1  ;;  %v793_v24 = vld [vmem:[%s19739_s9 + $0xb38] sm:$0xff]  ;;  %v1563_v9 = vld [vmem:[%s19739_s9 + $0x2348] sm:$0x3] }
 0x303   : > { %10925 = vmatpush.xpose.msrb.mxu3 %v1553_v6  ;;  %10885 = vmatpush.xpose.msrb.mxu1 %v1551_v23  ;;  %v1564_v6 = vld [vmem:[%s19739_s9 + $0x2350] sm:$0x3]  ;;  %v1562_v23 = vld [vmem:[%s19739_s9 + $0x2340] sm:$0x3]  ;;  %v1565_v8 = vld [vmem:[%s19739_s9 + $0x2358] sm:$0x3] }
 0x304   : > { %v9509_v43 = vadd.f32 %v9508_v62, %v9489_v4  ;;  %10827 = vmatmul.f32.vlgmr.msra.gmra.mxu2 %v21455_v29  ;;  %10787 = vmatmul.f32.vlgmr.msra.gmra.mxu0 %v21457_v30 }
 0x305   : > { %10847 = vmatmul.f32.vlgmr.msra.gmra.mxu3 %v21459_v19  ;;  %10807 = vmatmul.f32.vlgmr.msra.gmra.mxu1 %v21462_v60  ;;  %v788_v60 = vld [vmem:[%s19739_s9 + $0xb10] sm:$0xff] }
 0x306   : > { %v9529_v13 = vadd.f32 %v9528_v5, %v9509_v43  ;;  %10906 = vmatpush.xpose.msrb.mxu2 %v784_v39  ;;  %10866 = vmatpush.xpose.msrb.mxu0 %v782_v40  ;;  %v21581_v39 = vld.sshfl [vmem:[#allocation1 + $0x10] sm:$0xff pattern:$0x73625140]  ;;  %v21583_v40 = vld.sshfl [vmem:[#allocation1] sm:$0xff pattern:$0x73625140] }
 0x307   : > { %v9548_v16 = vpop.f32.mrf.mxu2  ;;  %10926 = vmatpush.xpose.msrb.mxu3 %v785_v48  ;;  %10886 = vmatpush.xpose.msrb.mxu1 %v783_v10  ;;  %v794_v43 = vld [vmem:[%s19739_s9 + $0xb40] sm:$0xff]  ;;  %v336_v10 = vld [vmem:[%s19732_s7 + $0x2f0] sm:$0xff] }
 0x308   : > { %v9549_v29 = vadd.f32 %v9548_v16, %v9529_v13  ;;  %v9568_v30 = vpop.f32.mrf.mxu3  ;;  %v21588_v48 = vld.sshfl [vmem:[#allocation1 + $0x8] sm:$0xff pattern:$0x73625140]  ;;  %v795_v13 = vld [vmem:[%s19739_s9 + $0xb48] sm:$0xff] }
 0x309   : > { %v9588_v19 = vpop.f32.mrf.mxu0  ;;  %2633 = vst [vmem:[#allocation1] ss:$4 sm:$0xff] %v336_v10  ;;  %v21606_v28 = vld.sshfl [vmem:[#allocation1 + $0x38] sm:$0xff pattern:$0x73625140] }
 0x30a   : > { %10985 = vmatpush.xpose.msra.mxu2 %v1556_v35  ;;  %10945 = vmatpush.xpose.msra.mxu0 %v1554_v45  ;;  %v9569_v25 = vadd.f32 %v9568_v30, %v9549_v29  ;;  %v9608_v26 = vpop.f32.mrf.mxu1  ;;  %v797_v45 = vld [vmem:[%s19739_s9 + $0xb58] sm:$0xff]  ;;  %v1567_v30 = vld [vmem:[%s19739_s9 + $0x2368] sm:$0x3] }
 0x30b   : > { %11005 = vmatpush.xpose.msra.mxu3 %v1557_v27  ;;  %10965 = vmatpush.xpose.msra.mxu1 %v1555_v38  ;;  %v1568_v27 = vld [vmem:[%s19739_s9 + $0x2370] sm:$0x3]  ;;  %v1566_v38 = vld [vmem:[%s19739_s9 + $0x2360] sm:$0x3]  ;;  %v1569_v29 = vld [vmem:[%s19739_s9 + $0x2378] sm:$0x3] }
 0x30c   : > { %v9589_v0 = vadd.f32 %v9588_v19, %v9569_v25  ;;  %10907 = vmatmul.f32.vlgmr.msrb.gmra.mxu2 %v21476_v54  ;;  %10867 = vmatmul.f32.vlgmr.msrb.gmra.mxu0 %v21478_v55 }
 0x30d   : > { %10927 = vmatmul.f32.vlgmr.msrb.gmra.mxu3 %v21480_v44  ;;  %10887 = vmatmul.f32.vlgmr.msrb.gmra.mxu1 %v21483_v17  ;;  %v792_v17 = vld [vmem:[%s19739_s9 + $0xb30] sm:$0xff] }
 0x30e   : > { %v9609_v37 = vadd.f32 %v9608_v26, %v9589_v0  ;;  %10986 = vmatpush.xpose.msra.mxu2 %v788_v60  ;;  %10946 = vmatpush.xpose.msra.mxu0 %v786_v61  ;;  %v21602_v60 = vld.sshfl [vmem:[#allocation1 + $0x30] sm:$0xff pattern:$0x73625140]  ;;  %v21604_v61 = vld.sshfl [vmem:[#allocation1 + $0x20] sm:$0xff pattern:$0x73625140] }
 0x30f   : > { %v9628_v41 = vpop.f32.mrf.mxu2  ;;  %11006 = vmatpush.xpose.msra.mxu3 %v789_v3  ;;  %10966 = vmatpush.xpose.msra.mxu1 %v787_v31  ;;  %v798_v0 = vld [vmem:[%s19739_s9 + $0xb60] sm:$0xff]  ;;  %v337_v31 = vld [vmem:[%s19732_s7 + $0x2f8] sm:$0xff] }
 0x310   : > { %v9629_v54 = vadd.f32 %v9628_v41, %v9609_v37  ;;  %v9648_v55 = vpop.f32.mrf.mxu3  ;;  %v21609_v3 = vld.sshfl [vmem:[#allocation1 + $0x28] sm:$0xff pattern:$0x73625140]  ;;  %v799_v37 = vld [vmem:[%s19739_s9 + $0xb68] sm:$0xff] }
 0x311   : > { %v9668_v44 = vpop.f32.mrf.mxu0  ;;  %2634 = vst [vmem:[#allocation1 + $0x20] ss:$4 sm:$0xff] %v337_v31  ;;  %v21627_v52 = vld.sshfl [vmem:[#allocation1 + $0x18] sm:$0xff pattern:$0x73625140] }
 0x312   : > { %11065 = vmatpush.xpose.msrb.mxu2 %v1560_v50  ;;  %11025 = vmatpush.xpose.msrb.mxu0 %v1558_v2  ;;  %v9649_v46 = vadd.f32 %v9648_v55, %v9629_v54  ;;  %v9688_v47 = vpop.f32.mrf.mxu1  ;;  %v801_v2 = vld [vmem:[%s19739_s9 + $0xb78] sm:$0xff]  ;;  %v1571_v55 = vld [vmem:[%s19739_s9 + $0x2388] sm:$0x3] }
 0x313   : > { %11085 = vmatpush.xpose.msrb.mxu3 %v1561_v49  ;;  %11045 = vmatpush.xpose.msrb.mxu1 %v1559_v53  ;;  %v1572_v49 = vld [vmem:[%s19739_s9 + $0x2390] sm:$0x3]  ;;  %v1570_v53 = vld [vmem:[%s19739_s9 + $0x2380] sm:$0x3]  ;;  %v1573_v54 = vld [vmem:[%s19739_s9 + $0x2398] sm:$0x3] }
 0x314   : > { %v9669_v21 = vadd.f32 %v9668_v44, %v9649_v46  ;;  %10987 = vmatmul.f32.vlgmr.msra.gmra.mxu2 %v21497_v11  ;;  %10947 = vmatmul.f32.vlgmr.msra.gmra.mxu0 %v21499_v12 }
 0x315   : > { %11007 = vmatmul.f32.vlgmr.msra.gmra.mxu3 %v21501_v1  ;;  %10967 = vmatmul.f32.vlgmr.msra.gmra.mxu1 %v21504_v42  ;;  %v796_v42 = vld [vmem:[%s19739_s9 + $0xb50] sm:$0xff] }
 0x316   : > { %v9689_v59 = vadd.f32 %v9688_v47, %v9669_v21  ;;  %11066 = vmatpush.xpose.msrb.mxu2 %v792_v17  ;;  %11026 = vmatpush.xpose.msrb.mxu0 %v790_v18  ;;  %v21623_v17 = vld.sshfl [vmem:[#allocation1 + $0x10] sm:$0xff pattern:$0x73625140]  ;;  %v21625_v18 = vld.sshfl [vmem:[#allocation1] sm:$0xff pattern:$0x73625140] }
 0x317   : > { %v9708_v62 = vpop.f32.mrf.mxu2  ;;  %11086 = vmatpush.xpose.msrb.mxu3 %v793_v24  ;;  %11046 = vmatpush.xpose.msrb.mxu1 %v791_v56  ;;  %v802_v21 = vld [vmem:[%s19739_s9 + $0xb80] sm:$0xff] }
 0x318   : > { %v9709_v11 = vadd.f32 %v9708_v62, %v9689_v59  ;;  %v9728_v12 = vpop.f32.mrf.mxu3  ;;  %v21630_v24 = vld.sshfl [vmem:[#allocation1 + $0x8] sm:$0xff pattern:$0x73625140]  ;;  %v803_v59 = vld [vmem:[%s19739_s9 + $0xb88] sm:$0xff] }
 0x319   : > { %v9748_v1 = vpop.f32.mrf.mxu0  ;;  %v338_v56 = vld [vmem:[%s19732_s7 + $0x300] sm:$0xff]  ;;  %v21648_v10 = vld.sshfl [vmem:[#allocation1 + $0x38] sm:$0xff pattern:$0x73625140] }
 0x31a   : > { %11145 = vmatpush.xpose.msra.mxu2 %v1564_v6  ;;  %11105 = vmatpush.xpose.msra.mxu0 %v1562_v23  ;;  %v9729_v4 = vadd.f32 %v9728_v12, %v9709_v11  ;;  %v9768_v5 = vpop.f32.mrf.mxu1  ;;  %v805_v23 = vld [vmem:[%s19739_s9 + $0xb98] sm:$0xff]  ;;  %2643 = vst [vmem:[#allocation1] ss:$4 sm:$0xff] %v338_v56  ;;  %v1575_v12 = vld [vmem:[%s19739_s9 + $0x23a8] sm:$0x3] }
 0x31b   : > { %11165 = vmatpush.xpose.msra.mxu3 %v1565_v8  ;;  %11125 = vmatpush.xpose.msra.mxu1 %v1563_v9  ;;  %v1576_v8 = vld [vmem:[%s19739_s9 + $0x23b0] sm:$0x3]  ;;  %v1574_v9 = vld [vmem:[%s19739_s9 + $0x23a0] sm:$0x3]  ;;  %v1577_v11 = vld [vmem:[%s19739_s9 + $0x23b8] sm:$0x3] }
 0x31c   : > { %v9749_v35 = vadd.f32 %v9748_v1, %v9729_v4  ;;  %11067 = vmatmul.f32.vlgmr.msrb.gmra.mxu2 %v21518_v32  ;;  %11027 = vmatmul.f32.vlgmr.msrb.gmra.mxu0 %v21520_v33 }
 0x31d   : > { %11087 = vmatmul.f32.vlgmr.msrb.gmra.mxu3 %v21522_v22  ;;  %11047 = vmatmul.f32.vlgmr.msrb.gmra.mxu1 %v21525_v63  ;;  %v800_v63 = vld [vmem:[%s19739_s9 + $0xb70] sm:$0xff] }
 0x31e   : > { %v9769_v16 = vadd.f32 %v9768_v5, %v9749_v35  ;;  %11146 = vmatpush.xpose.msra.mxu2 %v796_v42  ;;  %11106 = vmatpush.xpose.msra.mxu0 %v794_v43  ;;  %v21644_v42 = vld.sshfl [vmem:[#allocation1 + $0x30] sm:$0xff pattern:$0x73625140]  ;;  %v21646_v43 = vld.sshfl [vmem:[#allocation1 + $0x20] sm:$0xff pattern:$0x73625140] }
 0x31f   : > { %v9788_v19 = vpop.f32.mrf.mxu2  ;;  %11166 = vmatpush.xpose.msra.mxu3 %v797_v45  ;;  %11126 = vmatpush.xpose.msra.mxu1 %v795_v13  ;;  %v806_v35 = vld [vmem:[%s19739_s9 + $0xba0] sm:$0xff]  ;;  %v339_v13 = vld [vmem:[%s19732_s7 + $0x308] sm:$0xff] }
 0x320   : > { %v9789_v32 = vadd.f32 %v9788_v19, %v9769_v16  ;;  %v9808_v33 = vpop.f32.mrf.mxu3  ;;  %v21651_v45 = vld.sshfl [vmem:[#allocation1 + $0x28] sm:$0xff pattern:$0x73625140]  ;;  %v807_v16 = vld [vmem:[%s19739_s9 + $0xba8] sm:$0xff] }
 0x321   : > { %v9828_v22 = vpop.f32.mrf.mxu0  ;;  %2644 = vst [vmem:[#allocation1 + $0x20] ss:$4 sm:$0xff] %v339_v13  ;;  %v21669_v31 = vld.sshfl [vmem:[#allocation1 + $0x18] sm:$0xff pattern:$0x73625140] }
 0x322   : > { %11225 = vmatpush.xpose.msrb.mxu2 %v1568_v27  ;;  %11185 = vmatpush.xpose.msrb.mxu0 %v1566_v38  ;;  %v9809_v25 = vadd.f32 %v9808_v33, %v9789_v32  ;;  %v9848_v26 = vpop.f32.mrf.mxu1  ;;  %v809_v38 = vld [vmem:[%s19739_s9 + $0xbb8] sm:$0xff]  ;;  %v1579_v33 = vld [vmem:[%s19739_s9 + $0x23c8] sm:$0x3] }
 0x323   : > { %11245 = vmatpush.xpose.msrb.mxu3 %v1569_v29  ;;  %11205 = vmatpush.xpose.msrb.mxu1 %v1567_v30  ;;  %v1580_v29 = vld [vmem:[%s19739_s9 + $0x23d0] sm:$0x3]  ;;  %v1578_v30 = vld [vmem:[%s19739_s9 + $0x23c0] sm:$0x3]  ;;  %v1581_v32 = vld [vmem:[%s19739_s9 + $0x23d8] sm:$0x3] }
 0x324   : > { %v9829_v50 = vadd.f32 %v9828_v22, %v9809_v25  ;;  %11147 = vmatmul.f32.vlgmr.msra.gmra.mxu2 %v21539_v57  ;;  %11107 = vmatmul.f32.vlgmr.msra.gmra.mxu0 %v21541_v58 }
 0x325   : > { %11167 = vmatmul.f32.vlgmr.msra.gmra.mxu3 %v21543_v36  ;;  %11127 = vmatmul.f32.vlgmr.msra.gmra.mxu1 %v21546_v20  ;;  %v804_v20 = vld [vmem:[%s19739_s9 + $0xb90] sm:$0xff] }
 0x326   : > { %v9849_v41 = vadd.f32 %v9848_v26, %v9829_v50  ;;  %11226 = vmatpush.xpose.msrb.mxu2 %v800_v63  ;;  %11186 = vmatpush.xpose.msrb.mxu0 %v798_v0  ;;  %v21665_v63 = vld.sshfl [vmem:[#allocation1 + $0x10] sm:$0xff pattern:$0x73625140]  ;;  %v21667_v0 = vld.sshfl [vmem:[#allocation1] sm:$0xff pattern:$0x73625140] }
 0x327   : > { %v9868_v44 = vpop.f32.mrf.mxu2  ;;  %11246 = vmatpush.xpose.msrb.mxu3 %v801_v2  ;;  %11206 = vmatpush.xpose.msrb.mxu1 %v799_v37  ;;  %v810_v50 = vld [vmem:[%s19739_s9 + $0xbc0] sm:$0xff]  ;;  %v340_v37 = vld [vmem:[%s19732_s7 + $0x310] sm:$0xff] }
 0x328   : > { %v9869_v57 = vadd.f32 %v9868_v44, %v9849_v41  ;;  %v9888_v58 = vpop.f32.mrf.mxu3  ;;  %v21672_v2 = vld.sshfl [vmem:[#allocation1 + $0x8] sm:$0xff pattern:$0x73625140]  ;;  %v811_v41 = vld [vmem:[%s19739_s9 + $0xbc8] sm:$0xff] }
 0x329   : > { %v9908_v36 = vpop.f32.mrf.mxu0  ;;  %2653 = vst [vmem:[#allocation1] ss:$4 sm:$0xff] %v340_v37  ;;  %v21690_v56 = vld.sshfl [vmem:[#allocation1 + $0x38] sm:$0xff pattern:$0x73625140] }
 0x32a   : > { %11305 = vmatpush.xpose.msra.mxu2 %v1572_v49  ;;  %11265 = vmatpush.xpose.msra.mxu0 %v1570_v53  ;;  %v9889_v46 = vadd.f32 %v9888_v58, %v9869_v57  ;;  %v9928_v47 = vpop.f32.mrf.mxu1  ;;  %v813_v53 = vld [vmem:[%s19739_s9 + $0xbd8] sm:$0xff]  ;;  %v1583_v58 = vld [vmem:[%s19739_s9 + $0x23e8] sm:$0x3] }
 0x32b   : > { %11325 = vmatpush.xpose.msra.mxu3 %v1573_v54  ;;  %11285 = vmatpush.xpose.msra.mxu1 %v1571_v55  ;;  %v1584_v54 = vld [vmem:[%s19739_s9 + $0x23f0] sm:$0x3]  ;;  %v1582_v55 = vld [vmem:[%s19739_s9 + $0x23e0] sm:$0x3]  ;;  %v1585_v57 = vld [vmem:[%s19739_s9 + $0x23f8] sm:$0x3] }
 0x32c   : > { %v9909_v6 = vadd.f32 %v9908_v36, %v9889_v46  ;;  %11227 = vmatmul.f32.vlgmr.msrb.gmra.mxu2 %v21560_v14  ;;  %11187 = vmatmul.f32.vlgmr.msrb.gmra.mxu0 %v21562_v15 }
 0x32d   : > { %11247 = vmatmul.f32.vlgmr.msrb.gmra.mxu3 %v21564_v51  ;;  %11207 = vmatmul.f32.vlgmr.msrb.gmra.mxu1 %v21567_v34  ;;  %v808_v34 = vld [vmem:[%s19739_s9 + $0xbb0] sm:$0xff] }
 0x32e   : > { %v9929_v62 = vadd.f32 %v9928_v47, %v9909_v6  ;;  %11306 = vmatpush.xpose.msra.mxu2 %v804_v20  ;;  %11266 = vmatpush.xpose.msra.mxu0 %v802_v21  ;;  %v21686_v20 = vld.sshfl [vmem:[#allocation1 + $0x30] sm:$0xff pattern:$0x73625140]  ;;  %v21688_v21 = vld.sshfl [vmem:[#allocation1 + $0x20] sm:$0xff pattern:$0x73625140] }
 0x32f   : > { %v9948_v1 = vpop.f32.mrf.mxu2  ;;  %11326 = vmatpush.xpose.msra.mxu3 %v805_v23  ;;  %11286 = vmatpush.xpose.msra.mxu1 %v803_v59  ;;  %v814_v6 = vld [vmem:[%s19739_s9 + $0xbe0] sm:$0xff]  ;;  %v341_v59 = vld [vmem:[%s19732_s7 + $0x318] sm:$0xff] }
 0x330   : > { %v9949_v14 = vadd.f32 %v9948_v1, %v9929_v62  ;;  %v9968_v15 = vpop.f32.mrf.mxu3  ;;  %v21693_v23 = vld.sshfl [vmem:[#allocation1 + $0x28] sm:$0xff pattern:$0x73625140]  ;;  %v815_v62 = vld [vmem:[%s19739_s9 + $0xbe8] sm:$0xff] }
 0x331   : > { %v9988_v51 = vpop.f32.mrf.mxu0  ;;  %2654 = vst [vmem:[#allocation1 + $0x20] ss:$4 sm:$0xff] %v341_v59  ;;  %v21711_v13 = vld.sshfl [vmem:[#allocation1 + $0x18] sm:$0xff pattern:$0x73625140] }
 0x332   : > { %11385 = vmatpush.xpose.msrb.mxu2 %v1576_v8  ;;  %11345 = vmatpush.xpose.msrb.mxu0 %v1574_v9  ;;  %v9969_v4 = vadd.f32 %v9968_v15, %v9949_v14  ;;  %v10008_v5 = vpop.f32.mrf.mxu1  ;;  %v817_v9 = vld [vmem:[%s19739_s9 + $0xbf8] sm:$0xff]  ;;  %v1587_v15 = vld [vmem:[%s19739_s9 + $0x2408] sm:$0x3] }
 0x333   : > { %11405 = vmatpush.xpose.msrb.mxu3 %v1577_v11  ;;  %11365 = vmatpush.xpose.msrb.mxu1 %v1575_v12  ;;  %v1588_v11 = vld [vmem:[%s19739_s9 + $0x2410] sm:$0x3]  ;;  %v1586_v12 = vld [vmem:[%s19739_s9 + $0x2400] sm:$0x3]  ;;  %v1589_v14 = vld [vmem:[%s19739_s9 + $0x2418] sm:$0x3] }
 0x334   : > { %v9989_v27 = vadd.f32 %v9988_v51, %v9969_v4  ;;  %11307 = vmatmul.f32.vlgmr.msra.gmra.mxu2 %v21581_v39  ;;  %11267 = vmatmul.f32.vlgmr.msra.gmra.mxu0 %v21583_v40 }
 0x335   : > { %11327 = vmatmul.f32.vlgmr.msra.gmra.mxu3 %v21585_v7  ;;  %11287 = vmatmul.f32.vlgmr.msra.gmra.mxu1 %v21588_v48  ;;  %v812_v48 = vld [vmem:[%s19739_s9 + $0xbd0] sm:$0xff] }
 0x336   : > { %v10009_v19 = vadd.f32 %v10008_v5, %v9989_v27  ;;  %11386 = vmatpush.xpose.msrb.mxu2 %v808_v34  ;;  %11346 = vmatpush.xpose.msrb.mxu0 %v806_v35  ;;  %v21707_v34 = vld.sshfl [vmem:[#allocation1 + $0x10] sm:$0xff pattern:$0x73625140]  ;;  %v21709_v35 = vld.sshfl [vmem:[#allocation1] sm:$0xff pattern:$0x73625140] }
 0x337   : > { %v10028_v22 = vpop.f32.mrf.mxu2  ;;  %11406 = vmatpush.xpose.msrb.mxu3 %v809_v38  ;;  %11366 = vmatpush.xpose.msrb.mxu1 %v807_v16  ;;  %v818_v27 = vld [vmem:[%s19739_s9 + $0xc00] sm:$0xff] }
 0x338   : > { %v10029_v39 = vadd.f32 %v10028_v22, %v10009_v19  ;;  %v10048_v40 = vpop.f32.mrf.mxu3  ;;  %v21714_v38 = vld.sshfl [vmem:[#allocation1 + $0x8] sm:$0xff pattern:$0x73625140]  ;;  %v819_v19 = vld [vmem:[%s19739_s9 + $0xc08] sm:$0xff] }
 0x339   : > { %v10068_v7 = vpop.f32.mrf.mxu0  ;;  %v342_v16 = vld [vmem:[%s19732_s7 + $0x320] sm:$0xff]  ;;  %v21732_v37 = vld.sshfl [vmem:[#allocation1 + $0x38] sm:$0xff pattern:$0x73625140] }
 0x33a   : > { %11465 = vmatpush.xpose.msra.mxu2 %v1580_v29  ;;  %11425 = vmatpush.xpose.msra.mxu0 %v1578_v30  ;;  %v10049_v25 = vadd.f32 %v10048_v40, %v10029_v39  ;;  %v10088_v26 = vpop.f32.mrf.mxu1  ;;  %v821_v30 = vld [vmem:[%s19739_s9 + $0xc18] sm:$0xff]  ;;  %2663 = vst [vmem:[#allocation1] ss:$4 sm:$0xff] %v342_v16  ;;  %v1591_v40 = vld [vmem:[%s19739_s9 + $0x2428] sm:$0x3] }
 0x33b   : > { %11485 = vmatpush.xpose.msra.mxu3 %v1581_v32  ;;  %11445 = vmatpush.xpose.msra.mxu1 %v1579_v33  ;;  %v1592_v32 = vld [vmem:[%s19739_s9 + $0x2430] sm:$0x3]  ;;  %v1590_v33 = vld [vmem:[%s19739_s9 + $0x2420] sm:$0x3]  ;;  %v1593_v39 = vld [vmem:[%s19739_s9 + $0x2438] sm:$0x3] }
 0x33c   : > { %v10069_v49 = vadd.f32 %v10068_v7, %v10049_v25  ;;  %11387 = vmatmul.f32.vlgmr.msrb.gmra.mxu2 %v21602_v60  ;;  %11347 = vmatmul.f32.vlgmr.msrb.gmra.mxu0 %v21604_v61 }
 0x33d   : > { %11407 = vmatmul.f32.vlgmr.msrb.gmra.mxu3 %v21606_v28  ;;  %11367 = vmatmul.f32.vlgmr.msrb.gmra.mxu1 %v21609_v3  ;;  %v816_v3 = vld [vmem:[%s19739_s9 + $0xbf0] sm:$0xff] }
 0x33e   : > { %v10089_v44 = vadd.f32 %v10088_v26, %v10069_v49  ;;  %11466 = vmatpush.xpose.msra.mxu2 %v812_v48  ;;  %11426 = vmatpush.xpose.msra.mxu0 %v810_v50  ;;  %v21728_v48 = vld.sshfl [vmem:[#allocation1 + $0x30] sm:$0xff pattern:$0x73625140]  ;;  %v21730_v50 = vld.sshfl [vmem:[#allocation1 + $0x20] sm:$0xff pattern:$0x73625140] }
 0x33f   : > { %v10108_v36 = vpop.f32.mrf.mxu2  ;;  %11486 = vmatpush.xpose.msra.mxu3 %v813_v53  ;;  %11446 = vmatpush.xpose.msra.mxu1 %v811_v41  ;;  %v822_v49 = vld [vmem:[%s19739_s9 + $0xc20] sm:$0xff]  ;;  %v343_v41 = vld [vmem:[%s19732_s7 + $0x328] sm:$0xff] }
 0x340   : > { %v10109_v60 = vadd.f32 %v10108_v36, %v10089_v44  ;;  %v10128_v61 = vpop.f32.mrf.mxu3  ;;  %v21735_v53 = vld.sshfl [vmem:[#allocation1 + $0x28] sm:$0xff pattern:$0x73625140]  ;;  %v823_v44 = vld [vmem:[%s19739_s9 + $0xc28] sm:$0xff] }
 0x341   : > { %v10148_v28 = vpop.f32.mrf.mxu0  ;;  %2664 = vst [vmem:[#allocation1 + $0x20] ss:$4 sm:$0xff] %v343_v41  ;;  %v21753_v59 = vld.sshfl [vmem:[#allocation1 + $0x18] sm:$0xff pattern:$0x73625140] }
 0x342   : > { %11545 = vmatpush.xpose.msrb.mxu2 %v1584_v54  ;;  %11505 = vmatpush.xpose.msrb.mxu0 %v1582_v55  ;;  %v10129_v46 = vadd.f32 %v10128_v61, %v10109_v60  ;;  %v10168_v47 = vpop.f32.mrf.mxu1  ;;  %v825_v55 = vld [vmem:[%s19739_s9 + $0xc38] sm:$0xff]  ;;  %v1595_v61 = vld [vmem:[%s19739_s9 + $0x2448] sm:$0x3] }
 0x343   : > { %11565 = vmatpush.xpose.msrb.mxu3 %v1585_v57  ;;  %11525 = vmatpush.xpose.msrb.mxu1 %v1583_v58  ;;  %v1596_v57 = vld [vmem:[%s19739_s9 + $0x2450] sm:$0x3]  ;;  %v1594_v58 = vld [vmem:[%s19739_s9 + $0x2440] sm:$0x3]  ;;  %v1597_v60 = vld [vmem:[%s19739_s9 + $0x2458] sm:$0x3] }
 0x344   : > { %v10149_v8 = vadd.f32 %v10148_v28, %v10129_v46  ;;  %11467 = vmatmul.f32.vlgmr.msra.gmra.mxu2 %v21623_v17  ;;  %11427 = vmatmul.f32.vlgmr.msra.gmra.mxu0 %v21625_v18 }
 0x345   : > { %11487 = vmatmul.f32.vlgmr.msra.gmra.mxu3 %v21627_v52  ;;  %11447 = vmatmul.f32.vlgmr.msra.gmra.mxu1 %v21630_v24  ;;  %v820_v24 = vld [vmem:[%s19739_s9 + $0xc10] sm:$0xff] }
 0x346   : > { %v10169_v1 = vadd.f32 %v10168_v47, %v10149_v8  ;;  %11546 = vmatpush.xpose.msrb.mxu2 %v816_v3  ;;  %11506 = vmatpush.xpose.msrb.mxu0 %v814_v6  ;;  %v21749_v3 = vld.sshfl [vmem:[#allocation1 + $0x10] sm:$0xff pattern:$0x73625140]  ;;  %v21751_v6 = vld.sshfl [vmem:[#allocation1] sm:$0xff pattern:$0x73625140] }
 0x347   : > { %v10188_v51 = vpop.f32.mrf.mxu2  ;;  %11566 = vmatpush.xpose.msrb.mxu3 %v817_v9  ;;  %11526 = vmatpush.xpose.msrb.mxu1 %v815_v62  ;;  %v826_v8 = vld [vmem:[%s19739_s9 + $0xc40] sm:$0xff]  ;;  %v344_v62 = vld [vmem:[%s19732_s7 + $0x330] sm:$0xff] }
 0x348   : > { %v10189_v17 = vadd.f32 %v10188_v51, %v10169_v1  ;;  %v10208_v18 = vpop.f32.mrf.mxu3  ;;  %v21756_v9 = vld.sshfl [vmem:[#allocation1 + $0x8] sm:$0xff pattern:$0x73625140]  ;;  %v827_v1 = vld [vmem:[%s19739_s9 + $0xc48] sm:$0xff] }
 0x349   : > { %v10228_v52 = vpop.f32.mrf.mxu0  ;;  %2673 = vst [vmem:[#allocation1] ss:$4 sm:$0xff] %v344_v62  ;;  %v21774_v16 = vld.sshfl [vmem:[#allocation1 + $0x38] sm:$0xff pattern:$0x73625140] }
 0x34a   : > { %11625 = vmatpush.xpose.msra.mxu2 %v1588_v11  ;;  %11585 = vmatpush.xpose.msra.mxu0 %v1586_v12  ;;  %v10209_v4 = vadd.f32 %v10208_v18, %v10189_v17  ;;  %v10248_v5 = vpop.f32.mrf.mxu1  ;;  %v829_v12 = vld [vmem:[%s19739_s9 + $0xc58] sm:$0xff]  ;;  %v1599_v18 = vld [vmem:[%s19739_s9 + $0x2468] sm:$0x3] }
 0x34b   : > { %11645 = vmatpush.xpose.msra.mxu3 %v1589_v14  ;;  %11605 = vmatpush.xpose.msra.mxu1 %v1587_v15  ;;  %v1600_v14 = vld [vmem:[%s19739_s9 + $0x2470] sm:$0x3]  ;;  %v1598_v15 = vld [vmem:[%s19739_s9 + $0x2460] sm:$0x3]  ;;  %v1601_v17 = vld [vmem:[%s19739_s9 + $0x2478] sm:$0x3] }
 0x34c   : > { %v10229_v29 = vadd.f32 %v10228_v52, %v10209_v4  ;;  %11547 = vmatmul.f32.vlgmr.msrb.gmra.mxu2 %v21644_v42  ;;  %11507 = vmatmul.f32.vlgmr.msrb.gmra.mxu0 %v21646_v43 }
 0x34d   : > { %11567 = vmatmul.f32.vlgmr.msrb.gmra.mxu3 %v21648_v10  ;;  %11527 = vmatmul.f32.vlgmr.msrb.gmra.mxu1 %v21651_v45  ;;  %v824_v45 = vld [vmem:[%s19739_s9 + $0xc30] sm:$0xff] }
 0x34e   : > { %v10249_v22 = vadd.f32 %v10248_v5, %v10229_v29  ;;  %11626 = vmatpush.xpose.msra.mxu2 %v820_v24  ;;  %11586 = vmatpush.xpose.msra.mxu0 %v818_v27  ;;  %v21770_v24 = vld.sshfl [vmem:[#allocation1 + $0x30] sm:$0xff pattern:$0x73625140]  ;;  %v21772_v27 = vld.sshfl [vmem:[#allocation1 + $0x20] sm:$0xff pattern:$0x73625140] }
 0x34f   : > { %v10268_v7 = vpop.f32.mrf.mxu2  ;;  %11646 = vmatpush.xpose.msra.mxu3 %v821_v30  ;;  %11606 = vmatpush.xpose.msra.mxu1 %v819_v19  ;;  %v830_v29 = vld [vmem:[%s19739_s9 + $0xc60] sm:$0xff]  ;;  %v345_v19 = vld [vmem:[%s19732_s7 + $0x338] sm:$0xff] }
 0x350   : > { %v10269_v42 = vadd.f32 %v10268_v7, %v10249_v22  ;;  %v10288_v43 = vpop.f32.mrf.mxu3  ;;  %v21777_v30 = vld.sshfl [vmem:[#allocation1 + $0x28] sm:$0xff pattern:$0x73625140]  ;;  %v831_v22 = vld [vmem:[%s19739_s9 + $0xc68] sm:$0xff] }
 0x351   : > { %v10308_v10 = vpop.f32.mrf.mxu0  ;;  %2674 = vst [vmem:[#allocation1 + $0x20] ss:$4 sm:$0xff] %v345_v19  ;;  %v21795_v41 = vld.sshfl [vmem:[#allocation1 + $0x18] sm:$0xff pattern:$0x73625140] }
 0x352   : > { %11705 = vmatpush.xpose.msrb.mxu2 %v1592_v32  ;;  %11665 = vmatpush.xpose.msrb.mxu0 %v1590_v33  ;;  %v10289_v25 = vadd.f32 %v10288_v43, %v10269_v42  ;;  %v10328_v26 = vpop.f32.mrf.mxu1  ;;  %v833_v33 = vld [vmem:[%s19739_s9 + $0xc78] sm:$0xff]  ;;  %v1603_v43 = vld [vmem:[%s19739_s9 + $0x2488] sm:$0x3] }
 0x353   : > { %11725 = vmatpush.xpose.msrb.mxu3 %v1593_v39  ;;  %11685 = vmatpush.xpose.msrb.mxu1 %v1591_v40  ;;  %v1604_v39 = vld [vmem:[%s19739_s9 + $0x2490] sm:$0x3]  ;;  %v1602_v40 = vld [vmem:[%s19739_s9 + $0x2480] sm:$0x3]  ;;  %v1605_v42 = vld [vmem:[%s19739_s9 + $0x2498] sm:$0x3] }
 0x354   : > { %v10309_v54 = vadd.f32 %v10308_v10, %v10289_v25  ;;  %11627 = vmatmul.f32.vlgmr.msra.gmra.mxu2 %v21665_v63  ;;  %11587 = vmatmul.f32.vlgmr.msra.gmra.mxu0 %v21667_v0 }
 0x355   : > { %11647 = vmatmul.f32.vlgmr.msra.gmra.mxu3 %v21669_v31  ;;  %11607 = vmatmul.f32.vlgmr.msra.gmra.mxu1 %v21672_v2  ;;  %v828_v2 = vld [vmem:[%s19739_s9 + $0xc50] sm:$0xff] }
 0x356   : > { %v10329_v36 = vadd.f32 %v10328_v26, %v10309_v54  ;;  %11706 = vmatpush.xpose.msrb.mxu2 %v824_v45  ;;  %11666 = vmatpush.xpose.msrb.mxu0 %v822_v49  ;;  %v21791_v45 = vld.sshfl [vmem:[#allocation1 + $0x10] sm:$0xff pattern:$0x73625140]  ;;  %v21793_v49 = vld.sshfl [vmem:[#allocation1] sm:$0xff pattern:$0x73625140] }
 0x357   : > { %v10348_v28 = vpop.f32.mrf.mxu2  ;;  %11726 = vmatpush.xpose.msrb.mxu3 %v825_v55  ;;  %11686 = vmatpush.xpose.msrb.mxu1 %v823_v44  ;;  %v834_v54 = vld [vmem:[%s19739_s9 + $0xc80] sm:$0xff] }
 0x358   : > { %v10349_v63 = vadd.f32 %v10348_v28, %v10329_v36  ;;  %v10368_v0 = vpop.f32.mrf.mxu3  ;;  %v21798_v55 = vld.sshfl [vmem:[#allocation1 + $0x8] sm:$0xff pattern:$0x73625140]  ;;  %v835_v36 = vld [vmem:[%s19739_s9 + $0xc88] sm:$0xff] }
 0x359   : > { %v10388_v31 = vpop.f32.mrf.mxu0  ;;  %v346_v44 = vld [vmem:[%s19732_s7 + $0x340] sm:$0xff]  ;;  %v21816_v62 = vld.sshfl [vmem:[#allocation1 + $0x38] sm:$0xff pattern:$0x73625140] }
 0x35a   : > { %11785 = vmatpush.xpose.msra.mxu2 %v1596_v57  ;;  %11745 = vmatpush.xpose.msra.mxu0 %v1594_v58  ;;  %v10369_v46 = vadd.f32 %v10368_v0, %v10349_v63  ;;  %v10408_v47 = vpop.f32.mrf.mxu1  ;;  %v837_v58 = vld [vmem:[%s19739_s9 + $0xc98] sm:$0xff]  ;;  %2683 = vst [vmem:[#allocation1] ss:$4 sm:$0xff] %v346_v44  ;;  %v1607_v0 = vld [vmem:[%s19739_s9 + $0x24a8] sm:$0x3] }
 0x35b   : > { %11805 = vmatpush.xpose.msra.mxu3 %v1597_v60  ;;  %11765 = vmatpush.xpose.msra.mxu1 %v1595_v61  ;;  %v1608_v60 = vld [vmem:[%s19739_s9 + $0x24b0] sm:$0x3]  ;;  %v1606_v61 = vld [vmem:[%s19739_s9 + $0x24a0] sm:$0x3]  ;;  %v1609_v63 = vld [vmem:[%s19739_s9 + $0x24b8] sm:$0x3] }
 0x35c   : > { %v10389_v11 = vadd.f32 %v10388_v31, %v10369_v46  ;;  %11707 = vmatmul.f32.vlgmr.msrb.gmra.mxu2 %v21686_v20  ;;  %11667 = vmatmul.f32.vlgmr.msrb.gmra.mxu0 %v21688_v21 }
 0x35d   : > { %11727 = vmatmul.f32.vlgmr.msrb.gmra.mxu3 %v21690_v56  ;;  %11687 = vmatmul.f32.vlgmr.msrb.gmra.mxu1 %v21693_v23  ;;  %v832_v23 = vld [vmem:[%s19739_s9 + $0xc70] sm:$0xff] }
 0x35e   : > { %v10409_v51 = vadd.f32 %v10408_v47, %v10389_v11  ;;  %11786 = vmatpush.xpose.msra.mxu2 %v828_v2  ;;  %11746 = vmatpush.xpose.msra.mxu0 %v826_v8  ;;  %v21812_v2 = vld.sshfl [vmem:[#allocation1 + $0x30] sm:$0xff pattern:$0x73625140]  ;;  %v21814_v8 = vld.sshfl [vmem:[#allocation1 + $0x20] sm:$0xff pattern:$0x73625140] }
 0x35f   : > { %v10428_v52 = vpop.f32.mrf.mxu2  ;;  %11806 = vmatpush.xpose.msra.mxu3 %v829_v12  ;;  %11766 = vmatpush.xpose.msra.mxu1 %v827_v1  ;;  %v838_v11 = vld [vmem:[%s19739_s9 + $0xca0] sm:$0xff]  ;;  %v347_v1 = vld [vmem:[%s19732_s7 + $0x348] sm:$0xff] }
 0x360   : > { %v10429_v20 = vadd.f32 %v10428_v52, %v10409_v51  ;;  %v10448_v21 = vpop.f32.mrf.mxu3  ;;  %v21819_v12 = vld.sshfl [vmem:[#allocation1 + $0x28] sm:$0xff pattern:$0x73625140]  ;;  %v839_v51 = vld [vmem:[%s19739_s9 + $0xca8] sm:$0xff] }
 0x361   : > { %v10468_v56 = vpop.f32.mrf.mxu0  ;;  %2684 = vst [vmem:[#allocation1 + $0x20] ss:$4 sm:$0xff] %v347_v1  ;;  %v21837_v19 = vld.sshfl [vmem:[#allocation1 + $0x18] sm:$0xff pattern:$0x73625140] }
 0x362   : > { %11865 = vmatpush.xpose.msrb.mxu2 %v1600_v14  ;;  %11825 = vmatpush.xpose.msrb.mxu0 %v1598_v15  ;;  %v10449_v4 = vadd.f32 %v10448_v21, %v10429_v20  ;;  %v10488_v5 = vpop.f32.mrf.mxu1  ;;  %v841_v15 = vld [vmem:[%s19739_s9 + $0xcb8] sm:$0xff]  ;;  %v1611_v21 = vld [vmem:[%s19739_s9 + $0x24c8] sm:$0x3] }
 0x363   : > { %11885 = vmatpush.xpose.msrb.mxu3 %v1601_v17  ;;  %11845 = vmatpush.xpose.msrb.mxu1 %v1599_v18  ;;  %v1612_v17 = vld [vmem:[%s19739_s9 + $0x24d0] sm:$0x3]  ;;  %v1610_v18 = vld [vmem:[%s19739_s9 + $0x24c0] sm:$0x3]  ;;  %v1613_v20 = vld [vmem:[%s19739_s9 + $0x24d8] sm:$0x3] }
 0x364   : > { %v10469_v32 = vadd.f32 %v10468_v56, %v10449_v4  ;;  %11787 = vmatmul.f32.vlgmr.msra.gmra.mxu2 %v21707_v34  ;;  %11747 = vmatmul.f32.vlgmr.msra.gmra.mxu0 %v21709_v35 }
 0x365   : > { %11807 = vmatmul.f32.vlgmr.msra.gmra.mxu3 %v21711_v13  ;;  %11767 = vmatmul.f32.vlgmr.msra.gmra.mxu1 %v21714_v38  ;;  %v836_v38 = vld [vmem:[%s19739_s9 + $0xc90] sm:$0xff] }
 0x366   : > { %v10489_v7 = vadd.f32 %v10488_v5, %v10469_v32  ;;  %11866 = vmatpush.xpose.msrb.mxu2 %v832_v23  ;;  %11826 = vmatpush.xpose.msrb.mxu0 %v830_v29  ;;  %v21833_v23 = vld.sshfl [vmem:[#allocation1 + $0x10] sm:$0xff pattern:$0x73625140]  ;;  %v21835_v29 = vld.sshfl [vmem:[#allocation1] sm:$0xff pattern:$0x73625140] }
 0x367   : > { %v10508_v10 = vpop.f32.mrf.mxu2  ;;  %11886 = vmatpush.xpose.msrb.mxu3 %v833_v33  ;;  %11846 = vmatpush.xpose.msrb.mxu1 %v831_v22  ;;  %v842_v32 = vld [vmem:[%s19739_s9 + $0xcc0] sm:$0xff]  ;;  %v348_v22 = vld [vmem:[%s19732_s7 + $0x350] sm:$0xff] }
 0x368   : > { %v10509_v34 = vadd.f32 %v10508_v10, %v10489_v7  ;;  %v10528_v35 = vpop.f32.mrf.mxu3  ;;  %v21840_v33 = vld.sshfl [vmem:[#allocation1 + $0x8] sm:$0xff pattern:$0x73625140]  ;;  %v843_v7 = vld [vmem:[%s19739_s9 + $0xcc8] sm:$0xff] }
 0x369   : > { %v10548_v13 = vpop.f32.mrf.mxu0  ;;  %2693 = vst [vmem:[#allocation1] ss:$4 sm:$0xff] %v348_v22  ;;  %v21858_v44 = vld.sshfl [vmem:[#allocation1 + $0x38] sm:$0xff pattern:$0x73625140] }
 0x36a   : > { %11945 = vmatpush.xpose.msra.mxu2 %v1604_v39  ;;  %11905 = vmatpush.xpose.msra.mxu0 %v1602_v40  ;;  %v10529_v25 = vadd.f32 %v10528_v35, %v10509_v34  ;;  %v10568_v26 = vpop.f32.mrf.mxu1  ;;  %v845_v40 = vld [vmem:[%s19739_s9 + $0xcd8] sm:$0xff]  ;;  %v1615_v35 = vld [vmem:[%s19739_s9 + $0x24e8] sm:$0x3] }
 0x36b   : > { %11965 = vmatpush.xpose.msra.mxu3 %v1605_v42  ;;  %11925 = vmatpush.xpose.msra.mxu1 %v1603_v43  ;;  %v1616_v42 = vld [vmem:[%s19739_s9 + $0x24f0] sm:$0x3]  ;;  %v1614_v43 = vld [vmem:[%s19739_s9 + $0x24e0] sm:$0x3]  ;;  %v1617_v34 = vld [vmem:[%s19739_s9 + $0x24f8] sm:$0x3] }
 0x36c   : > { %v10549_v57 = vadd.f32 %v10548_v13, %v10529_v25  ;;  %11867 = vmatmul.f32.vlgmr.msrb.gmra.mxu2 %v21728_v48  ;;  %11827 = vmatmul.f32.vlgmr.msrb.gmra.mxu0 %v21730_v50 }
 0x36d   : > { %11887 = vmatmul.f32.vlgmr.msrb.gmra.mxu3 %v21732_v37  ;;  %11847 = vmatmul.f32.vlgmr.msrb.gmra.mxu1 %v21735_v53  ;;  %v840_v53 = vld [vmem:[%s19739_s9 + $0xcb0] sm:$0xff] }
 0x36e   : > { %v10569_v28 = vadd.f32 %v10568_v26, %v10549_v57  ;;  %11946 = vmatpush.xpose.msra.mxu2 %v836_v38  ;;  %11906 = vmatpush.xpose.msra.mxu0 %v834_v54  ;;  %v21854_v38 = vld.sshfl [vmem:[#allocation1 + $0x30] sm:$0xff pattern:$0x73625140]  ;;  %v21856_v54 = vld.sshfl [vmem:[#allocation1 + $0x20] sm:$0xff pattern:$0x73625140] }
 0x36f   : > { %v10588_v31 = vpop.f32.mrf.mxu2  ;;  %11966 = vmatpush.xpose.msra.mxu3 %v837_v58  ;;  %11926 = vmatpush.xpose.msra.mxu1 %v835_v36  ;;  %v846_v57 = vld [vmem:[%s19739_s9 + $0xce0] sm:$0xff]  ;;  %v349_v36 = vld [vmem:[%s19732_s7 + $0x358] sm:$0xff] }
 0x370   : > { %v10589_v48 = vadd.f32 %v10588_v31, %v10569_v28  ;;  %v10608_v50 = vpop.f32.mrf.mxu3  ;;  %v21861_v58 = vld.sshfl [vmem:[#allocation1 + $0x28] sm:$0xff pattern:$0x73625140]  ;;  %v847_v28 = vld [vmem:[%s19739_s9 + $0xce8] sm:$0xff] }
 0x371   : > { %v10628_v37 = vpop.f32.mrf.mxu0  ;;  %2694 = vst [vmem:[#allocation1 + $0x20] ss:$4 sm:$0xff] %v349_v36  ;;  %v21879_v1 = vld.sshfl [vmem:[#allocation1 + $0x18] sm:$0xff pattern:$0x73625140] }
 0x372   : > { %12025 = vmatpush.xpose.msrb.mxu2 %v1608_v60  ;;  %11985 = vmatpush.xpose.msrb.mxu0 %v1606_v61  ;;  %v10609_v46 = vadd.f32 %v10608_v50, %v10589_v48  ;;  %v10648_v47 = vpop.f32.mrf.mxu1  ;;  %v849_v61 = vld [vmem:[%s19739_s9 + $0xcf8] sm:$0xff]  ;;  %v1619_v50 = vld [vmem:[%s19739_s9 + $0x2508] sm:$0x3] }
 0x373   : > { %12045 = vmatpush.xpose.msrb.mxu3 %v1609_v63  ;;  %12005 = vmatpush.xpose.msrb.mxu1 %v1607_v0  ;;  %v1620_v63 = vld [vmem:[%s19739_s9 + $0x2510] sm:$0x3]  ;;  %v1618_v0 = vld [vmem:[%s19739_s9 + $0x2500] sm:$0x3]  ;;  %v1621_v48 = vld [vmem:[%s19739_s9 + $0x2518] sm:$0x3] }
 0x374   : > { %v10629_v14 = vadd.f32 %v10628_v37, %v10609_v46  ;;  %11947 = vmatmul.f32.vlgmr.msra.gmra.mxu2 %v21749_v3  ;;  %11907 = vmatmul.f32.vlgmr.msra.gmra.mxu0 %v21751_v6 }
 0x375   : > { %11967 = vmatmul.f32.vlgmr.msra.gmra.mxu3 %v21753_v59  ;;  %11927 = vmatmul.f32.vlgmr.msra.gmra.mxu1 %v21756_v9  ;;  %v844_v9 = vld [vmem:[%s19739_s9 + $0xcd0] sm:$0xff] }
 0x376   : > { %v10649_v52 = vadd.f32 %v10648_v47, %v10629_v14  ;;  %12026 = vmatpush.xpose.msrb.mxu2 %v840_v53  ;;  %11986 = vmatpush.xpose.msrb.mxu0 %v838_v11  ;;  %v21875_v53 = vld.sshfl [vmem:[#allocation1 + $0x10] sm:$0xff pattern:$0x73625140]  ;;  %v21877_v11 = vld.sshfl [vmem:[#allocation1] sm:$0xff pattern:$0x73625140] }
 0x377   : > { %v10668_v56 = vpop.f32.mrf.mxu2  ;;  %12046 = vmatpush.xpose.msrb.mxu3 %v841_v15  ;;  %12006 = vmatpush.xpose.msrb.mxu1 %v839_v51  ;;  %v850_v14 = vld [vmem:[%s19739_s9 + $0xd00] sm:$0xff] }
 0x378   : > { %v10669_v3 = vadd.f32 %v10668_v56, %v10649_v52  ;;  %v10688_v6 = vpop.f32.mrf.mxu3  ;;  %v21882_v15 = vld.sshfl [vmem:[#allocation1 + $0x8] sm:$0xff pattern:$0x73625140]  ;;  %v851_v52 = vld [vmem:[%s19739_s9 + $0xd08] sm:$0xff] }
 0x379   : > { %v10708_v59 = vpop.f32.mrf.mxu0  ;;  %v350_v51 = vld [vmem:[%s19732_s7 + $0x360] sm:$0xff]  ;;  %v21900_v22 = vld.sshfl [vmem:[#allocation1 + $0x38] sm:$0xff pattern:$0x73625140] }
 0x37a   : > { %12105 = vmatpush.xpose.msra.mxu2 %v1612_v17  ;;  %12065 = vmatpush.xpose.msra.mxu0 %v1610_v18  ;;  %v10689_v4 = vadd.f32 %v10688_v6, %v10669_v3  ;;  %v10728_v5 = vpop.f32.mrf.mxu1  ;;  %v853_v18 = vld [vmem:[%s19739_s9 + $0xd18] sm:$0xff]  ;;  %2703 = vst [vmem:[#allocation1] ss:$4 sm:$0xff] %v350_v51  ;;  %v1623_v6 = vld [vmem:[%s19739_s9 + $0x2528] sm:$0x3] }
 0x37b   : > { %12125 = vmatpush.xpose.msra.mxu3 %v1613_v20  ;;  %12085 = vmatpush.xpose.msra.mxu1 %v1611_v21  ;;  %v1624_v20 = vld [vmem:[%s19739_s9 + $0x2530] sm:$0x3]  ;;  %v1622_v21 = vld [vmem:[%s19739_s9 + $0x2520] sm:$0x3]  ;;  %v1625_v3 = vld [vmem:[%s19739_s9 + $0x2538] sm:$0x3] }
 0x37c   : > { %v10709_v39 = vadd.f32 %v10708_v59, %v10689_v4  ;;  %12027 = vmatmul.f32.vlgmr.msrb.gmra.mxu2 %v21770_v24  ;;  %11987 = vmatmul.f32.vlgmr.msrb.gmra.mxu0 %v21772_v27 }
 0x37d   : > { %12047 = vmatmul.f32.vlgmr.msrb.gmra.mxu3 %v21774_v16  ;;  %12007 = vmatmul.f32.vlgmr.msrb.gmra.mxu1 %v21777_v30  ;;  %v848_v30 = vld [vmem:[%s19739_s9 + $0xcf0] sm:$0xff] }
 0x37e   : > { %v10729_v10 = vadd.f32 %v10728_v5, %v10709_v39  ;;  %12106 = vmatpush.xpose.msra.mxu2 %v844_v9  ;;  %12066 = vmatpush.xpose.msra.mxu0 %v842_v32  ;;  %v21896_v9 = vld.sshfl [vmem:[#allocation1 + $0x30] sm:$0xff pattern:$0x73625140]  ;;  %v21898_v32 = vld.sshfl [vmem:[#allocation1 + $0x20] sm:$0xff pattern:$0x73625140] }
 0x37f   : > { %v10748_v13 = vpop.f32.mrf.mxu2  ;;  %12126 = vmatpush.xpose.msra.mxu3 %v845_v40  ;;  %12086 = vmatpush.xpose.msra.mxu1 %v843_v7  ;;  %v854_v39 = vld [vmem:[%s19739_s9 + $0xd20] sm:$0xff]  ;;  %v351_v7 = vld [vmem:[%s19732_s7 + $0x368] sm:$0xff] }
 0x380   : > { %v10749_v24 = vadd.f32 %v10748_v13, %v10729_v10  ;;  %v10768_v27 = vpop.f32.mrf.mxu3  ;;  %v21903_v40 = vld.sshfl [vmem:[#allocation1 + $0x28] sm:$0xff pattern:$0x73625140]  ;;  %v855_v10 = vld [vmem:[%s19739_s9 + $0xd28] sm:$0xff] }
 0x381   : > { %v10788_v16 = vpop.f32.mrf.mxu0  ;;  %2704 = vst [vmem:[#allocation1 + $0x20] ss:$4 sm:$0xff] %v351_v7  ;;  %v21921_v36 = vld.sshfl [vmem:[#allocation1 + $0x18] sm:$0xff pattern:$0x73625140] }
 0x382   : > { %12185 = vmatpush.xpose.msrb.mxu2 %v1616_v42  ;;  %12145 = vmatpush.xpose.msrb.mxu0 %v1614_v43  ;;  %v10769_v25 = vadd.f32 %v10768_v27, %v10749_v24  ;;  %v10808_v26 = vpop.f32.mrf.mxu1  ;;  %v857_v43 = vld [vmem:[%s19739_s9 + $0xd38] sm:$0xff]  ;;  %v1627_v27 = vld [vmem:[%s19739_s9 + $0x2548] sm:$0x3] }
 0x383   : > { %12205 = vmatpush.xpose.msrb.mxu3 %v1617_v34  ;;  %12165 = vmatpush.xpose.msrb.mxu1 %v1615_v35  ;;  %v1628_v34 = vld [vmem:[%s19739_s9 + $0x2550] sm:$0x3]  ;;  %v1626_v35 = vld [vmem:[%s19739_s9 + $0x2540] sm:$0x3]  ;;  %v1629_v24 = vld [vmem:[%s19739_s9 + $0x2558] sm:$0x3] }
 0x384   : > { %v10789_v60 = vadd.f32 %v10788_v16, %v10769_v25  ;;  %12107 = vmatmul.f32.vlgmr.msra.gmra.mxu2 %v21791_v45  ;;  %12067 = vmatmul.f32.vlgmr.msra.gmra.mxu0 %v21793_v49 }
 0x385   : > { %12127 = vmatmul.f32.vlgmr.msra.gmra.mxu3 %v21795_v41  ;;  %12087 = vmatmul.f32.vlgmr.msra.gmra.mxu1 %v21798_v55  ;;  %v852_v55 = vld [vmem:[%s19739_s9 + $0xd10] sm:$0xff] }
 0x386   : > { %v10809_v31 = vadd.f32 %v10808_v26, %v10789_v60  ;;  %12186 = vmatpush.xpose.msrb.mxu2 %v848_v30  ;;  %12146 = vmatpush.xpose.msrb.mxu0 %v846_v57  ;;  %v21917_v30 = vld.sshfl [vmem:[#allocation1 + $0x10] sm:$0xff pattern:$0x73625140]  ;;  %v21919_v57 = vld.sshfl [vmem:[#allocation1] sm:$0xff pattern:$0x73625140] }
 0x387   : > { %v10828_v37 = vpop.f32.mrf.mxu2  ;;  %12206 = vmatpush.xpose.msrb.mxu3 %v849_v61  ;;  %12166 = vmatpush.xpose.msrb.mxu1 %v847_v28  ;;  %v858_v60 = vld [vmem:[%s19739_s9 + $0xd40] sm:$0xff]  ;;  %v352_v28 = vld [vmem:[%s19732_s7 + $0x370] sm:$0xff] }
 0x388   : > { %v10829_v45 = vadd.f32 %v10828_v37, %v10809_v31  ;;  %v10848_v49 = vpop.f32.mrf.mxu3  ;;  %v21924_v61 = vld.sshfl [vmem:[#allocation1 + $0x8] sm:$0xff pattern:$0x73625140]  ;;  %v859_v31 = vld [vmem:[%s19739_s9 + $0xd48] sm:$0xff] }
 0x389   : > { %v10868_v41 = vpop.f32.mrf.mxu0  ;;  %2713 = vst [vmem:[#allocation1] ss:$4 sm:$0xff] %v352_v28  ;;  %v21942_v51 = vld.sshfl [vmem:[#allocation1 + $0x38] sm:$0xff pattern:$0x73625140] }
 0x38a   : > { %12265 = vmatpush.xpose.msra.mxu2 %v1620_v63  ;;  %12225 = vmatpush.xpose.msra.mxu0 %v1618_v0  ;;  %v10849_v46 = vadd.f32 %v10848_v49, %v10829_v45  ;;  %v10888_v47 = vpop.f32.mrf.mxu1  ;;  %v861_v0 = vld [vmem:[%s19739_s9 + $0xd58] sm:$0xff]  ;;  %v1631_v49 = vld [vmem:[%s19739_s9 + $0x2568] sm:$0x3] }
 0x38b   : > { %12285 = vmatpush.xpose.msra.mxu3 %v1621_v48  ;;  %12245 = vmatpush.xpose.msra.mxu1 %v1619_v50  ;;  %v1632_v48 = vld [vmem:[%s19739_s9 + $0x2570] sm:$0x3]  ;;  %v1630_v50 = vld [vmem:[%s19739_s9 + $0x2560] sm:$0x3]  ;;  %v1633_v45 = vld [vmem:[%s19739_s9 + $0x2578] sm:$0x3] }
 0x38c   : > { %v10869_v17 = vadd.f32 %v10868_v41, %v10849_v46  ;;  %12187 = vmatmul.f32.vlgmr.msrb.gmra.mxu2 %v21812_v2  ;;  %12147 = vmatmul.f32.vlgmr.msrb.gmra.mxu0 %v21814_v8 }
 0x38d   : > { %12207 = vmatmul.f32.vlgmr.msrb.gmra.mxu3 %v21816_v62  ;;  %12167 = vmatmul.f32.vlgmr.msrb.gmra.mxu1 %v21819_v12  ;;  %v856_v12 = vld [vmem:[%s19739_s9 + $0xd30] sm:$0xff] }
 0x38e   : > { %v10889_v56 = vadd.f32 %v10888_v47, %v10869_v17  ;;  %12266 = vmatpush.xpose.msra.mxu2 %v852_v55  ;;  %12226 = vmatpush.xpose.msra.mxu0 %v850_v14  ;;  %v21938_v55 = vld.sshfl [vmem:[#allocation1 + $0x30] sm:$0xff pattern:$0x73625140]  ;;  %v21940_v14 = vld.sshfl [vmem:[#allocation1 + $0x20] sm:$0xff pattern:$0x73625140] }
 0x38f   : > { %v10908_v59 = vpop.f32.mrf.mxu2  ;;  %12286 = vmatpush.xpose.msra.mxu3 %v853_v18  ;;  %12246 = vmatpush.xpose.msra.mxu1 %v851_v52  ;;  %v862_v17 = vld [vmem:[%s19739_s9 + $0xd60] sm:$0xff]  ;;  %v353_v52 = vld [vmem:[%s19732_s7 + $0x378] sm:$0xff] }
 0x390   : > { %v10909_v2 = vadd.f32 %v10908_v59, %v10889_v56  ;;  %v10928_v8 = vpop.f32.mrf.mxu3  ;;  %v21945_v18 = vld.sshfl [vmem:[#allocation1 + $0x28] sm:$0xff pattern:$0x73625140]  ;;  %v863_v56 = vld [vmem:[%s19739_s9 + $0xd68] sm:$0xff] }
 0x391   : > { %v10948_v62 = vpop.f32.mrf.mxu0  ;;  %2714 = vst [vmem:[#allocation1 + $0x20] ss:$4 sm:$0xff] %v353_v52  ;;  %v21963_v7 = vld.sshfl [vmem:[#allocation1 + $0x18] sm:$0xff pattern:$0x73625140] }
 0x392   : > { %12345 = vmatpush.xpose.msrb.mxu2 %v1624_v20  ;;  %12305 = vmatpush.xpose.msrb.mxu0 %v1622_v21  ;;  %v10929_v4 = vadd.f32 %v10928_v8, %v10909_v2  ;;  %v10968_v5 = vpop.f32.mrf.mxu1  ;;  %v865_v21 = vld [vmem:[%s19739_s9 + $0xd78] sm:$0xff]  ;;  %v1635_v8 = vld [vmem:[%s19739_s9 + $0x2588] sm:$0x3] }
 0x393   : > { %12365 = vmatpush.xpose.msrb.mxu3 %v1625_v3  ;;  %12325 = vmatpush.xpose.msrb.mxu1 %v1623_v6  ;;  %v1636_v3 = vld [vmem:[%s19739_s9 + $0x2590] sm:$0x3]  ;;  %v1634_v6 = vld [vmem:[%s19739_s9 + $0x2580] sm:$0x3]  ;;  %v1637_v2 = vld [vmem:[%s19739_s9 + $0x2598] sm:$0x3] }
 0x394   : > { %v10949_v42 = vadd.f32 %v10948_v62, %v10929_v4  ;;  %12267 = vmatmul.f32.vlgmr.msra.gmra.mxu2 %v21833_v23  ;;  %12227 = vmatmul.f32.vlgmr.msra.gmra.mxu0 %v21835_v29 }
 0x395   : > { %12287 = vmatmul.f32.vlgmr.msra.gmra.mxu3 %v21837_v19  ;;  %12247 = vmatmul.f32.vlgmr.msra.gmra.mxu1 %v21840_v33  ;;  %v860_v33 = vld [vmem:[%s19739_s9 + $0xd50] sm:$0xff] }
 0x396   : > { %v10969_v13 = vadd.f32 %v10968_v5, %v10949_v42  ;;  %12346 = vmatpush.xpose.msrb.mxu2 %v856_v12  ;;  %12306 = vmatpush.xpose.msrb.mxu0 %v854_v39  ;;  %v21959_v12 = vld.sshfl [vmem:[#allocation1 + $0x10] sm:$0xff pattern:$0x73625140]  ;;  %v21961_v39 = vld.sshfl [vmem:[#allocation1] sm:$0xff pattern:$0x73625140] }
 0x397   : > { %v10988_v16 = vpop.f32.mrf.mxu2  ;;  %12366 = vmatpush.xpose.msrb.mxu3 %v857_v43  ;;  %12326 = vmatpush.xpose.msrb.mxu1 %v855_v10  ;;  %v866_v42 = vld [vmem:[%s19739_s9 + $0xd80] sm:$0xff] }
 0x398   : > { %v10989_v23 = vadd.f32 %v10988_v16, %v10969_v13  ;;  %v11008_v29 = vpop.f32.mrf.mxu3  ;;  %v21966_v43 = vld.sshfl [vmem:[#allocation1 + $0x8] sm:$0xff pattern:$0x73625140]  ;;  %v867_v13 = vld [vmem:[%s19739_s9 + $0xd88] sm:$0xff] }
 0x399   : > { %v11028_v19 = vpop.f32.mrf.mxu0  ;;  %v354_v10 = vld [vmem:[%s19732_s7 + $0x380] sm:$0xff]  ;;  %v21984_v28 = vld.sshfl [vmem:[#allocation1 + $0x38] sm:$0xff pattern:$0x73625140] }
 0x39a   : > { %12425 = vmatpush.xpose.msra.mxu2 %v1628_v34  ;;  %12385 = vmatpush.xpose.msra.mxu0 %v1626_v35  ;;  %v11009_v25 = vadd.f32 %v11008_v29, %v10989_v23  ;;  %v11048_v26 = vpop.f32.mrf.mxu1  ;;  %v869_v35 = vld [vmem:[%s19739_s9 + $0xd98] sm:$0xff]  ;;  %2723 = vst [vmem:[#allocation1] ss:$4 sm:$0xff] %v354_v10  ;;  %v1639_v29 = vld [vmem:[%s19739_s9 + $0x25a8] sm:$0x3] }
 0x39b   : > { %12445 = vmatpush.xpose.msra.mxu3 %v1629_v24  ;;  %12405 = vmatpush.xpose.msra.mxu1 %v1627_v27  ;;  %v1640_v24 = vld [vmem:[%s19739_s9 + $0x25b0] sm:$0x3]  ;;  %v1638_v27 = vld [vmem:[%s19739_s9 + $0x25a0] sm:$0x3]  ;;  %v1641_v23 = vld [vmem:[%s19739_s9 + $0x25b8] sm:$0x3] }
 0x39c   : > { %v11029_v63 = vadd.f32 %v11028_v19, %v11009_v25  ;;  %12347 = vmatmul.f32.vlgmr.msrb.gmra.mxu2 %v21854_v38  ;;  %12307 = vmatmul.f32.vlgmr.msrb.gmra.mxu0 %v21856_v54 }
 0x39d   : > { %12367 = vmatmul.f32.vlgmr.msrb.gmra.mxu3 %v21858_v44  ;;  %12327 = vmatmul.f32.vlgmr.msrb.gmra.mxu1 %v21861_v58  ;;  %v864_v58 = vld [vmem:[%s19739_s9 + $0xd70] sm:$0xff] }
 0x39e   : > { %v11049_v37 = vadd.f32 %v11048_v26, %v11029_v63  ;;  %12426 = vmatpush.xpose.msra.mxu2 %v860_v33  ;;  %12386 = vmatpush.xpose.msra.mxu0 %v858_v60  ;;  %v21980_v33 = vld.sshfl [vmem:[#allocation1 + $0x30] sm:$0xff pattern:$0x73625140]  ;;  %v21982_v60 = vld.sshfl [vmem:[#allocation1 + $0x20] sm:$0xff pattern:$0x73625140] }
 0x39f   : > { %v11068_v41 = vpop.f32.mrf.mxu2  ;;  %12446 = vmatpush.xpose.msra.mxu3 %v861_v0  ;;  %12406 = vmatpush.xpose.msra.mxu1 %v859_v31  ;;  %v870_v63 = vld [vmem:[%s19739_s9 + $0xda0] sm:$0xff]  ;;  %v355_v31 = vld [vmem:[%s19732_s7 + $0x388] sm:$0xff] }
 0x3a0   : > { %v11069_v38 = vadd.f32 %v11068_v41, %v11049_v37  ;;  %v11088_v54 = vpop.f32.mrf.mxu3  ;;  %v21987_v0 = vld.sshfl [vmem:[#allocation1 + $0x28] sm:$0xff pattern:$0x73625140]  ;;  %v871_v37 = vld [vmem:[%s19739_s9 + $0xda8] sm:$0xff] }
 0x3a1   : > { %v11108_v44 = vpop.f32.mrf.mxu0  ;;  %2724 = vst [vmem:[#allocation1 + $0x20] ss:$4 sm:$0xff] %v355_v31  ;;  %v22005_v52 = vld.sshfl [vmem:[#allocation1 + $0x18] sm:$0xff pattern:$0x73625140] }
 0x3a2   : > { %12505 = vmatpush.xpose.msrb.mxu2 %v1632_v48  ;;  %12465 = vmatpush.xpose.msrb.mxu0 %v1630_v50  ;;  %v11089_v46 = vadd.f32 %v11088_v54, %v11069_v38  ;;  %v11128_v47 = vpop.f32.mrf.mxu1  ;;  %v873_v50 = vld [vmem:[%s19739_s9 + $0xdb8] sm:$0xff]  ;;  %v1643_v54 = vld [vmem:[%s19739_s9 + $0x25c8] sm:$0x3] }
 0x3a3   : > { %12525 = vmatpush.xpose.msrb.mxu3 %v1633_v45  ;;  %12485 = vmatpush.xpose.msrb.mxu1 %v1631_v49  ;;  %v1644_v45 = vld [vmem:[%s19739_s9 + $0x25d0] sm:$0x3]  ;;  %v1642_v49 = vld [vmem:[%s19739_s9 + $0x25c0] sm:$0x3]  ;;  %v1645_v38 = vld [vmem:[%s19739_s9 + $0x25d8] sm:$0x3] }
 0x3a4   : > { %v11109_v20 = vadd.f32 %v11108_v44, %v11089_v46  ;;  %12427 = vmatmul.f32.vlgmr.msra.gmra.mxu2 %v21875_v53  ;;  %12387 = vmatmul.f32.vlgmr.msra.gmra.mxu0 %v21877_v11 }
 0x3a5   : > { %12447 = vmatmul.f32.vlgmr.msra.gmra.mxu3 %v21879_v1  ;;  %12407 = vmatmul.f32.vlgmr.msra.gmra.mxu1 %v21882_v15  ;;  %v868_v15 = vld [vmem:[%s19739_s9 + $0xd90] sm:$0xff] }
 0x3a6   : > { %v11129_v59 = vadd.f32 %v11128_v47, %v11109_v20  ;;  %12506 = vmatpush.xpose.msrb.mxu2 %v864_v58  ;;  %12466 = vmatpush.xpose.msrb.mxu0 %v862_v17  ;;  %v22001_v58 = vld.sshfl [vmem:[#allocation1 + $0x10] sm:$0xff pattern:$0x73625140]  ;;  %v22003_v17 = vld.sshfl [vmem:[#allocation1] sm:$0xff pattern:$0x73625140] }
 0x3a7   : > { %v11148_v62 = vpop.f32.mrf.mxu2  ;;  %12526 = vmatpush.xpose.msrb.mxu3 %v865_v21  ;;  %12486 = vmatpush.xpose.msrb.mxu1 %v863_v56  ;;  %v874_v20 = vld [vmem:[%s19739_s9 + $0xdc0] sm:$0xff]  ;;  %v356_v56 = vld [vmem:[%s19732_s7 + $0x390] sm:$0xff] }
 0x3a8   : > { %v11149_v53 = vadd.f32 %v11148_v62, %v11129_v59  ;;  %v11168_v11 = vpop.f32.mrf.mxu3  ;;  %v22008_v21 = vld.sshfl [vmem:[#allocation1 + $0x8] sm:$0xff pattern:$0x73625140]  ;;  %v875_v59 = vld [vmem:[%s19739_s9 + $0xdc8] sm:$0xff] }
 0x3a9   : > { %v11188_v1 = vpop.f32.mrf.mxu0  ;;  %2733 = vst [vmem:[#allocation1] ss:$4 sm:$0xff] %v356_v56  ;;  %v22026_v10 = vld.sshfl [vmem:[#allocation1 + $0x38] sm:$0xff pattern:$0x73625140] }
 0x3aa   : > { %12585 = vmatpush.xpose.msra.mxu2 %v1636_v3  ;;  %12545 = vmatpush.xpose.msra.mxu0 %v1634_v6  ;;  %v11169_v4 = vadd.f32 %v11168_v11, %v11149_v53  ;;  %v11208_v5 = vpop.f32.mrf.mxu1  ;;  %v877_v6 = vld [vmem:[%s19739_s9 + $0xdd8] sm:$0xff]  ;;  %v1647_v11 = vld [vmem:[%s19739_s9 + $0x25e8] sm:$0x3] }
 0x3ab   : > { %12605 = vmatpush.xpose.msra.mxu3 %v1637_v2  ;;  %12565 = vmatpush.xpose.msra.mxu1 %v1635_v8  ;;  %v1648_v2 = vld [vmem:[%s19739_s9 + $0x25f0] sm:$0x3]  ;;  %v1646_v8 = vld [vmem:[%s19739_s9 + $0x25e0] sm:$0x3]  ;;  %v1649_v53 = vld [vmem:[%s19739_s9 + $0x25f8] sm:$0x3] }
 0x3ac   : > { %v11189_v34 = vadd.f32 %v11188_v1, %v11169_v4  ;;  %12507 = vmatmul.f32.vlgmr.msrb.gmra.mxu2 %v21896_v9  ;;  %12467 = vmatmul.f32.vlgmr.msrb.gmra.mxu0 %v21898_v32 }
 0x3ad   : > { %12527 = vmatmul.f32.vlgmr.msrb.gmra.mxu3 %v21900_v22  ;;  %12487 = vmatmul.f32.vlgmr.msrb.gmra.mxu1 %v21903_v40  ;;  %v872_v40 = vld [vmem:[%s19739_s9 + $0xdb0] sm:$0xff] }
 0x3ae   : > { %v11209_v16 = vadd.f32 %v11208_v5, %v11189_v34  ;;  %12586 = vmatpush.xpose.msra.mxu2 %v868_v15  ;;  %12546 = vmatpush.xpose.msra.mxu0 %v866_v42  ;;  %v22022_v15 = vld.sshfl [vmem:[#allocation1 + $0x30] sm:$0xff pattern:$0x73625140]  ;;  %v22024_v42 = vld.sshfl [vmem:[#allocation1 + $0x20] sm:$0xff pattern:$0x73625140] }
 0x3af   : > { %v11228_v19 = vpop.f32.mrf.mxu2  ;;  %12606 = vmatpush.xpose.msra.mxu3 %v869_v35  ;;  %12566 = vmatpush.xpose.msra.mxu1 %v867_v13  ;;  %v878_v34 = vld [vmem:[%s19739_s9 + $0xde0] sm:$0xff]  ;;  %v357_v13 = vld [vmem:[%s19732_s7 + $0x398] sm:$0xff] }
 0x3b0   : > { %v11229_v9 = vadd.f32 %v11228_v19, %v11209_v16  ;;  %v11248_v32 = vpop.f32.mrf.mxu3  ;;  %v22029_v35 = vld.sshfl [vmem:[#allocation1 + $0x28] sm:$0xff pattern:$0x73625140]  ;;  %v879_v16 = vld [vmem:[%s19739_s9 + $0xde8] sm:$0xff] }
 0x3b1   : > { %v11268_v22 = vpop.f32.mrf.mxu0  ;;  %2734 = vst [vmem:[#allocation1 + $0x20] ss:$4 sm:$0xff] %v357_v13  ;;  %v22047_v31 = vld.sshfl [vmem:[#allocation1 + $0x18] sm:$0xff pattern:$0x73625140] }
 0x3b2   : > { %12665 = vmatpush.xpose.msrb.mxu2 %v1640_v24  ;;  %12625 = vmatpush.xpose.msrb.mxu0 %v1638_v27  ;;  %v11249_v25 = vadd.f32 %v11248_v32, %v11229_v9  ;;  %v11288_v26 = vpop.f32.mrf.mxu1  ;;  %v881_v27 = vld [vmem:[%s19739_s9 + $0xdf8] sm:$0xff]  ;;  %v1651_v32 = vld [vmem:[%s19739_s9 + $0x2608] sm:$0x3] }
 0x3b3   : > { %12685 = vmatpush.xpose.msrb.mxu3 %v1641_v23  ;;  %12645 = vmatpush.xpose.msrb.mxu1 %v1639_v29  ;;  %v1652_v23 = vld [vmem:[%s19739_s9 + $0x2610] sm:$0x3]  ;;  %v1650_v29 = vld [vmem:[%s19739_s9 + $0x2600] sm:$0x3]  ;;  %v1653_v9 = vld [vmem:[%s19739_s9 + $0x2618] sm:$0x3] }
 0x3b4   : > { %v11269_v48 = vadd.f32 %v11268_v22, %v11249_v25  ;;  %12587 = vmatmul.f32.vlgmr.msra.gmra.mxu2 %v21917_v30  ;;  %12547 = vmatmul.f32.vlgmr.msra.gmra.mxu0 %v21919_v57 }
 0x3b5   : > { %12607 = vmatmul.f32.vlgmr.msra.gmra.mxu3 %v21921_v36  ;;  %12567 = vmatmul.f32.vlgmr.msra.gmra.mxu1 %v21924_v61  ;;  %v876_v61 = vld [vmem:[%s19739_s9 + $0xdd0] sm:$0xff] }
 0x3b6   : > { %v11289_v41 = vadd.f32 %v11288_v26, %v11269_v48  ;;  %12666 = vmatpush.xpose.msrb.mxu2 %v872_v40  ;;  %12626 = vmatpush.xpose.msrb.mxu0 %v870_v63  ;;  %v22043_v40 = vld.sshfl [vmem:[#allocation1 + $0x10] sm:$0xff pattern:$0x73625140]  ;;  %v22045_v63 = vld.sshfl [vmem:[#allocation1] sm:$0xff pattern:$0x73625140] }
 0x3b7   : > { %v11308_v44 = vpop.f32.mrf.mxu2  ;;  %12686 = vmatpush.xpose.msrb.mxu3 %v873_v50  ;;  %12646 = vmatpush.xpose.msrb.mxu1 %v871_v37  ;;  %v882_v48 = vld [vmem:[%s19739_s9 + $0xe00] sm:$0xff] }
 0x3b8   : > { %v11309_v30 = vadd.f32 %v11308_v44, %v11289_v41  ;;  %v11328_v57 = vpop.f32.mrf.mxu3  ;;  %v22050_v50 = vld.sshfl [vmem:[#allocation1 + $0x8] sm:$0xff pattern:$0x73625140]  ;;  %v883_v41 = vld [vmem:[%s19739_s9 + $0xe08] sm:$0xff] }
 0x3b9   : > { %v11348_v36 = vpop.f32.mrf.mxu0  ;;  %v358_v37 = vld [vmem:[%s19732_s7 + $0x3a0] sm:$0xff]  ;;  %v22068_v56 = vld.sshfl [vmem:[#allocation1 + $0x38] sm:$0xff pattern:$0x73625140] }
 0x3ba   : > { %12745 = vmatpush.xpose.msra.mxu2 %v1644_v45  ;;  %12705 = vmatpush.xpose.msra.mxu0 %v1642_v49  ;;  %v11329_v46 = vadd.f32 %v11328_v57, %v11309_v30  ;;  %v11368_v47 = vpop.f32.mrf.mxu1  ;;  %v885_v49 = vld [vmem:[%s19739_s9 + $0xe18] sm:$0xff]  ;;  %2743 = vst [vmem:[#allocation1] ss:$4 sm:$0xff] %v358_v37  ;;  %v1655_v57 = vld [vmem:[%s19739_s9 + $0x2628] sm:$0x3] }
 0x3bb   : > { %12765 = vmatpush.xpose.msra.mxu3 %v1645_v38  ;;  %12725 = vmatpush.xpose.msra.mxu1 %v1643_v54  ;;  %v1656_v38 = vld [vmem:[%s19739_s9 + $0x2630] sm:$0x3]  ;;  %v1654_v54 = vld [vmem:[%s19739_s9 + $0x2620] sm:$0x3]  ;;  %v1657_v30 = vld [vmem:[%s19739_s9 + $0x2638] sm:$0x3] }
 0x3bc   : > { %v11349_v3 = vadd.f32 %v11348_v36, %v11329_v46  ;;  %12667 = vmatmul.f32.vlgmr.msrb.gmra.mxu2 %v21938_v55  ;;  %12627 = vmatmul.f32.vlgmr.msrb.gmra.mxu0 %v21940_v14 }
 0x3bd   : > { %12687 = vmatmul.f32.vlgmr.msrb.gmra.mxu3 %v21942_v51  ;;  %12647 = vmatmul.f32.vlgmr.msrb.gmra.mxu1 %v21945_v18  ;;  %v880_v18 = vld [vmem:[%s19739_s9 + $0xdf0] sm:$0xff] }
 0x3be   : > { %v11369_v62 = vadd.f32 %v11368_v47, %v11349_v3  ;;  %12746 = vmatpush.xpose.msra.mxu2 %v876_v61  ;;  %12706 = vmatpush.xpose.msra.mxu0 %v874_v20  ;;  %v22064_v61 = vld.sshfl [vmem:[#allocation1 + $0x30] sm:$0xff pattern:$0x73625140]  ;;  %v22066_v20 = vld.sshfl [vmem:[#allocation1 + $0x20] sm:$0xff pattern:$0x73625140] }
 0x3bf   : > { %v11388_v1 = vpop.f32.mrf.mxu2  ;;  %12766 = vmatpush.xpose.msra.mxu3 %v877_v6  ;;  %12726 = vmatpush.xpose.msra.mxu1 %v875_v59  ;;  %v886_v3 = vld [vmem:[%s19739_s9 + $0xe20] sm:$0xff]  ;;  %v359_v59 = vld [vmem:[%s19732_s7 + $0x3a8] sm:$0xff] }
 0x3c0   : > { %v11389_v55 = vadd.f32 %v11388_v1, %v11369_v62  ;;  %v11408_v14 = vpop.f32.mrf.mxu3  ;;  %v22071_v6 = vld.sshfl [vmem:[#allocation1 + $0x28] sm:$0xff pattern:$0x73625140]  ;;  %v887_v62 = vld [vmem:[%s19739_s9 + $0xe28] sm:$0xff] }
 0x3c1   : > { %v11428_v51 = vpop.f32.mrf.mxu0  ;;  %2744 = vst [vmem:[#allocation1 + $0x20] ss:$4 sm:$0xff] %v359_v59  ;;  %v22089_v13 = vld.sshfl [vmem:[#allocation1 + $0x18] sm:$0xff pattern:$0x73625140] }
 0x3c2   : > { %12825 = vmatpush.xpose.msrb.mxu2 %v1648_v2  ;;  %12785 = vmatpush.xpose.msrb.mxu0 %v1646_v8  ;;  %v11409_v4 = vadd.f32 %v11408_v14, %v11389_v55  ;;  %v11448_v5 = vpop.f32.mrf.mxu1  ;;  %v889_v8 = vld [vmem:[%s19739_s9 + $0xe38] sm:$0xff]  ;;  %v1659_v14 = vld [vmem:[%s19739_s9 + $0x2648] sm:$0x3] }
 0x3c3   : > { %12845 = vmatpush.xpose.msrb.mxu3 %v1649_v53  ;;  %12805 = vmatpush.xpose.msrb.mxu1 %v1647_v11  ;;  %v1660_v53 = vld [vmem:[%s19739_s9 + $0x2650] sm:$0x3]  ;;  %v1658_v11 = vld [vmem:[%s19739_s9 + $0x2640] sm:$0x3]  ;;  %v1661_v55 = vld [vmem:[%s19739_s9 + $0x2658] sm:$0x3] }
 0x3c4   : > { %v11429_v24 = vadd.f32 %v11428_v51, %v11409_v4  ;;  %12747 = vmatmul.f32.vlgmr.msra.gmra.mxu2 %v21959_v12  ;;  %12707 = vmatmul.f32.vlgmr.msra.gmra.mxu0 %v21961_v39 }
 0x3c5   : > { %12767 = vmatmul.f32.vlgmr.msra.gmra.mxu3 %v21963_v7  ;;  %12727 = vmatmul.f32.vlgmr.msra.gmra.mxu1 %v21966_v43  ;;  %v884_v43 = vld [vmem:[%s19739_s9 + $0xe10] sm:$0xff] }
 0x3c6   : > { %v11449_v19 = vadd.f32 %v11448_v5, %v11429_v24  ;;  %12826 = vmatpush.xpose.msrb.mxu2 %v880_v18  ;;  %12786 = vmatpush.xpose.msrb.mxu0 %v878_v34  ;;  %v22085_v18 = vld.sshfl [vmem:[#allocation1 + $0x10] sm:$0xff pattern:$0x73625140]  ;;  %v22087_v34 = vld.sshfl [vmem:[#allocation1] sm:$0xff pattern:$0x73625140] }
 0x3c7   : > { %v11468_v22 = vpop.f32.mrf.mxu2  ;;  %12846 = vmatpush.xpose.msrb.mxu3 %v881_v27  ;;  %12806 = vmatpush.xpose.msrb.mxu1 %v879_v16  ;;  %v890_v24 = vld [vmem:[%s19739_s9 + $0xe40] sm:$0xff]  ;;  %v360_v16 = vld [vmem:[%s19732_s7 + $0x3b0] sm:$0xff] }
 0x3c8   : > { %v11469_v12 = vadd.f32 %v11468_v22, %v11449_v19  ;;  %v11488_v39 = vpop.f32.mrf.mxu3  ;;  %v22092_v27 = vld.sshfl [vmem:[#allocation1 + $0x8] sm:$0xff pattern:$0x73625140]  ;;  %v891_v19 = vld [vmem:[%s19739_s9 + $0xe48] sm:$0xff] }
 0x3c9   : > { %v11508_v7 = vpop.f32.mrf.mxu0  ;;  %2753 = vst [vmem:[#allocation1] ss:$4 sm:$0xff] %v360_v16  ;;  %v22110_v37 = vld.sshfl [vmem:[#allocation1 + $0x38] sm:$0xff pattern:$0x73625140] }
 0x3ca   : > { %12905 = vmatpush.xpose.msra.mxu2 %v1652_v23  ;;  %12865 = vmatpush.xpose.msra.mxu0 %v1650_v29  ;;  %v11489_v25 = vadd.f32 %v11488_v39, %v11469_v12  ;;  %v11528_v26 = vpop.f32.mrf.mxu1  ;;  %v893_v29 = vld [vmem:[%s19739_s9 + $0xe58] sm:$0xff]  ;;  %v1663_v39 = vld [vmem:[%s19739_s9 + $0x2668] sm:$0x3] }
 0x3cb   : > { %12925 = vmatpush.xpose.msra.mxu3 %v1653_v9  ;;  %12885 = vmatpush.xpose.msra.mxu1 %v1651_v32  ;;  %v1664_v9 = vld [vmem:[%s19739_s9 + $0x2670] sm:$0x3]  ;;  %v1662_v32 = vld [vmem:[%s19739_s9 + $0x2660] sm:$0x3]  ;;  %v1665_v12 = vld [vmem:[%s19739_s9 + $0x2678] sm:$0x3] }
 0x3cc   : > { %v11509_v45 = vadd.f32 %v11508_v7, %v11489_v25  ;;  %12827 = vmatmul.f32.vlgmr.msrb.gmra.mxu2 %v21980_v33  ;;  %12787 = vmatmul.f32.vlgmr.msrb.gmra.mxu0 %v21982_v60 }
 0x3cd   : > { %12847 = vmatmul.f32.vlgmr.msrb.gmra.mxu3 %v21984_v28  ;;  %12807 = vmatmul.f32.vlgmr.msrb.gmra.mxu1 %v21987_v0  ;;  %v888_v0 = vld [vmem:[%s19739_s9 + $0xe30] sm:$0xff] }
 0x3ce   : > { %v11529_v44 = vadd.f32 %v11528_v26, %v11509_v45  ;;  %12906 = vmatpush.xpose.msra.mxu2 %v884_v43  ;;  %12866 = vmatpush.xpose.msra.mxu0 %v882_v48  ;;  %v22106_v43 = vld.sshfl [vmem:[#allocation1 + $0x30] sm:$0xff pattern:$0x73625140]  ;;  %v22108_v48 = vld.sshfl [vmem:[#allocation1 + $0x20] sm:$0xff pattern:$0x73625140] }
 0x3cf   : > { %v11548_v36 = vpop.f32.mrf.mxu2  ;;  %12926 = vmatpush.xpose.msra.mxu3 %v885_v49  ;;  %12886 = vmatpush.xpose.msra.mxu1 %v883_v41  ;;  %v894_v45 = vld [vmem:[%s19739_s9 + $0xe60] sm:$0xff]  ;;  %v361_v41 = vld [vmem:[%s19732_s7 + $0x3b8] sm:$0xff] }
 0x3d0   : > { %v11549_v33 = vadd.f32 %v11548_v36, %v11529_v44  ;;  %v11568_v60 = vpop.f32.mrf.mxu3  ;;  %v22113_v49 = vld.sshfl [vmem:[#allocation1 + $0x28] sm:$0xff pattern:$0x73625140]  ;;  %v895_v44 = vld [vmem:[%s19739_s9 + $0xe68] sm:$0xff] }
 0x3d1   : > { %v11588_v28 = vpop.f32.mrf.mxu0  ;;  %2754 = vst [vmem:[#allocation1 + $0x20] ss:$4 sm:$0xff] %v361_v41  ;;  %v22131_v59 = vld.sshfl [vmem:[#allocation1 + $0x18] sm:$0xff pattern:$0x73625140] }
 0x3d2   : > { %12985 = vmatpush.xpose.msrb.mxu2 %v1656_v38  ;;  %12945 = vmatpush.xpose.msrb.mxu0 %v1654_v54  ;;  %v11569_v46 = vadd.f32 %v11568_v60, %v11549_v33  ;;  %v11608_v47 = vpop.f32.mrf.mxu1  ;;  %v897_v54 = vld [vmem:[%s19739_s9 + $0xe78] sm:$0xff]  ;;  %v1667_v60 = vld [vmem:[%s19739_s9 + $0x2688] sm:$0x3] }
 0x3d3   : > { %13005 = vmatpush.xpose.msrb.mxu3 %v1657_v30  ;;  %12965 = vmatpush.xpose.msrb.mxu1 %v1655_v57  ;;  %v1668_v30 = vld [vmem:[%s19739_s9 + $0x2690] sm:$0x3]  ;;  %v1666_v57 = vld [vmem:[%s19739_s9 + $0x2680] sm:$0x3]  ;;  %v1669_v33 = vld [vmem:[%s19739_s9 + $0x2698] sm:$0x3] }
 0x3d4   : > { %v11589_v2 = vadd.f32 %v11588_v28, %v11569_v46  ;;  %12907 = vmatmul.f32.vlgmr.msra.gmra.mxu2 %v22001_v58  ;;  %12867 = vmatmul.f32.vlgmr.msra.gmra.mxu0 %v22003_v17 }
 0x3d5   : > { %12927 = vmatmul.f32.vlgmr.msra.gmra.mxu3 %v22005_v52  ;;  %12887 = vmatmul.f32.vlgmr.msra.gmra.mxu1 %v22008_v21  ;;  %v892_v21 = vld [vmem:[%s19739_s9 + $0xe50] sm:$0xff] }
 0x3d6   : > { %v11609_v1 = vadd.f32 %v11608_v47, %v11589_v2  ;;  %12986 = vmatpush.xpose.msrb.mxu2 %v888_v0  ;;  %12946 = vmatpush.xpose.msrb.mxu0 %v886_v3  ;;  %v22127_v0 = vld.sshfl [vmem:[#allocation1 + $0x10] sm:$0xff pattern:$0x73625140]  ;;  %v22129_v3 = vld.sshfl [vmem:[#allocation1] sm:$0xff pattern:$0x73625140] }
 0x3d7   : > { %v11628_v51 = vpop.f32.mrf.mxu2  ;;  %13006 = vmatpush.xpose.msrb.mxu3 %v889_v8  ;;  %12966 = vmatpush.xpose.msrb.mxu1 %v887_v62  ;;  %v898_v2 = vld [vmem:[%s19739_s9 + $0xe80] sm:$0xff] }
 0x3d8   : > { %v11629_v58 = vadd.f32 %v11628_v51, %v11609_v1  ;;  %v11648_v17 = vpop.f32.mrf.mxu3  ;;  %v22134_v8 = vld.sshfl [vmem:[#allocation1 + $0x8] sm:$0xff pattern:$0x73625140]  ;;  %v899_v1 = vld [vmem:[%s19739_s9 + $0xe88] sm:$0xff] }
 0x3d9   : > { %v11668_v52 = vpop.f32.mrf.mxu0  ;;  %v362_v62 = vld [vmem:[%s19732_s7 + $0x3c0] sm:$0xff]  ;;  %v22152_v16 = vld.sshfl [vmem:[#allocation1 + $0x38] sm:$0xff pattern:$0x73625140] }
 0x3da   : > { %13065 = vmatpush.xpose.msra.mxu2 %v1660_v53  ;;  %13025 = vmatpush.xpose.msra.mxu0 %v1658_v11  ;;  %v11649_v4 = vadd.f32 %v11648_v17, %v11629_v58  ;;  %v11688_v5 = vpop.f32.mrf.mxu1  ;;  %v901_v11 = vld [vmem:[%s19739_s9 + $0xe98] sm:$0xff]  ;;  %2763 = vst [vmem:[#allocation1] ss:$4 sm:$0xff] %v362_v62  ;;  %v1671_v17 = vld [vmem:[%s19739_s9 + $0x26a8] sm:$0x3] }
 0x3db   : > { %13085 = vmatpush.xpose.msra.mxu3 %v1661_v55  ;;  %13045 = vmatpush.xpose.msra.mxu1 %v1659_v14  ;;  %v1672_v55 = vld [vmem:[%s19739_s9 + $0x26b0] sm:$0x3]  ;;  %v1670_v14 = vld [vmem:[%s19739_s9 + $0x26a0] sm:$0x3]  ;;  %v1673_v58 = vld [vmem:[%s19739_s9 + $0x26b8] sm:$0x3] }
 0x3dc   : > { %v11669_v23 = vadd.f32 %v11668_v52, %v11649_v4  ;;  %12987 = vmatmul.f32.vlgmr.msrb.gmra.mxu2 %v22022_v15  ;;  %12947 = vmatmul.f32.vlgmr.msrb.gmra.mxu0 %v22024_v42 }
 0x3dd   : > { %13007 = vmatmul.f32.vlgmr.msrb.gmra.mxu3 %v22026_v10  ;;  %12967 = vmatmul.f32.vlgmr.msrb.gmra.mxu1 %v22029_v35  ;;  %v896_v35 = vld [vmem:[%s19739_s9 + $0xe70] sm:$0xff] }
 0x3de   : > { %v11689_v22 = vadd.f32 %v11688_v5, %v11669_v23  ;;  %13066 = vmatpush.xpose.msra.mxu2 %v892_v21  ;;  %13026 = vmatpush.xpose.msra.mxu0 %v890_v24  ;;  %v22148_v21 = vld.sshfl [vmem:[#allocation1 + $0x30] sm:$0xff pattern:$0x73625140]  ;;  %v22150_v24 = vld.sshfl [vmem:[#allocation1 + $0x20] sm:$0xff pattern:$0x73625140] }
 0x3df   : > { %v11708_v7 = vpop.f32.mrf.mxu2  ;;  %13086 = vmatpush.xpose.msra.mxu3 %v893_v29  ;;  %13046 = vmatpush.xpose.msra.mxu1 %v891_v19  ;;  %v902_v23 = vld [vmem:[%s19739_s9 + $0xea0] sm:$0xff]  ;;  %v363_v19 = vld [vmem:[%s19732_s7 + $0x3c8] sm:$0xff] }
 0x3e0   : > { %v11709_v15 = vadd.f32 %v11708_v7, %v11689_v22  ;;  %v11728_v42 = vpop.f32.mrf.mxu3  ;;  %v22155_v29 = vld.sshfl [vmem:[#allocation1 + $0x28] sm:$0xff pattern:$0x73625140]  ;;  %v903_v22 = vld [vmem:[%s19739_s9 + $0xea8] sm:$0xff] }
 0x3e1   : > { %v11748_v10 = vpop.f32.mrf.mxu0  ;;  %2764 = vst [vmem:[#allocation1 + $0x20] ss:$4 sm:$0xff] %v363_v19  ;;  %v22173_v41 = vld.sshfl [vmem:[#allocation1 + $0x18] sm:$0xff pattern:$0x73625140] }
 0x3e2   : > { %13145 = vmatpush.xpose.msrb.mxu2 %v1664_v9  ;;  %13105 = vmatpush.xpose.msrb.mxu0 %v1662_v32  ;;  %v11729_v25 = vadd.f32 %v11728_v42, %v11709_v15  ;;  %v11768_v26 = vpop.f32.mrf.mxu1  ;;  %v905_v32 = vld [vmem:[%s19739_s9 + $0xeb8] sm:$0xff]  ;;  %v1675_v42 = vld [vmem:[%s19739_s9 + $0x26c8] sm:$0x3] }
 0x3e3   : > { %13165 = vmatpush.xpose.msrb.mxu3 %v1665_v12  ;;  %13125 = vmatpush.xpose.msrb.mxu1 %v1663_v39  ;;  %v1676_v12 = vld [vmem:[%s19739_s9 + $0x26d0] sm:$0x3]  ;;  %v1674_v39 = vld [vmem:[%s19739_s9 + $0x26c0] sm:$0x3]  ;;  %v1677_v15 = vld [vmem:[%s19739_s9 + $0x26d8] sm:$0x3] }
 0x3e4   : > { %v11749_v38 = vadd.f32 %v11748_v10, %v11729_v25  ;;  %13067 = vmatmul.f32.vlgmr.msra.gmra.mxu2 %v22043_v40  ;;  %13027 = vmatmul.f32.vlgmr.msra.gmra.mxu0 %v22045_v63 }
 0x3e5   : > { %13087 = vmatmul.f32.vlgmr.msra.gmra.mxu3 %v22047_v31  ;;  %13047 = vmatmul.f32.vlgmr.msra.gmra.mxu1 %v22050_v50  ;;  %v900_v50 = vld [vmem:[%s19739_s9 + $0xe90] sm:$0xff] }
 0x3e6   : > { %v11769_v36 = vadd.f32 %v11768_v26, %v11749_v38  ;;  %13146 = vmatpush.xpose.msrb.mxu2 %v896_v35  ;;  %13106 = vmatpush.xpose.msrb.mxu0 %v894_v45  ;;  %v22169_v35 = vld.sshfl [vmem:[#allocation1 + $0x10] sm:$0xff pattern:$0x73625140]  ;;  %v22171_v45 = vld.sshfl [vmem:[#allocation1] sm:$0xff pattern:$0x73625140] }
 0x3e7   : > { %v11788_v28 = vpop.f32.mrf.mxu2  ;;  %13166 = vmatpush.xpose.msrb.mxu3 %v897_v54  ;;  %13126 = vmatpush.xpose.msrb.mxu1 %v895_v44  ;;  %v906_v38 = vld [vmem:[%s19739_s9 + $0xec0] sm:$0xff]  ;;  %v364_v44 = vld [vmem:[%s19732_s7 + $0x3d0] sm:$0xff] }
 0x3e8   : > { %v11789_v40 = vadd.f32 %v11788_v28, %v11769_v36  ;;  %v11808_v63 = vpop.f32.mrf.mxu3  ;;  %v22176_v54 = vld.sshfl [vmem:[#allocation1 + $0x8] sm:$0xff pattern:$0x73625140]  ;;  %v907_v36 = vld [vmem:[%s19739_s9 + $0xec8] sm:$0xff] }
 0x3e9   : > { %v11828_v31 = vpop.f32.mrf.mxu0  ;;  %2773 = vst [vmem:[#allocation1] ss:$4 sm:$0xff] %v364_v44  ;;  %v22194_v62 = vld.sshfl [vmem:[#allocation1 + $0x38] sm:$0xff pattern:$0x73625140] }
 0x3ea   : > { %13225 = vmatpush.xpose.msra.mxu2 %v1668_v30  ;;  %13185 = vmatpush.xpose.msra.mxu0 %v1666_v57  ;;  %v11809_v46 = vadd.f32 %v11808_v63, %v11789_v40  ;;  %v11848_v47 = vpop.f32.mrf.mxu1  ;;  %v909_v57 = vld [vmem:[%s19739_s9 + $0xed8] sm:$0xff]  ;;  %v1679_v63 = vld [vmem:[%s19739_s9 + $0x26e8] sm:$0x3] }
 0x3eb   : > { %13245 = vmatpush.xpose.msra.mxu3 %v1669_v33  ;;  %13205 = vmatpush.xpose.msra.mxu1 %v1667_v60  ;;  %v1680_v33 = vld [vmem:[%s19739_s9 + $0x26f0] sm:$0x3]  ;;  %v1678_v60 = vld [vmem:[%s19739_s9 + $0x26e0] sm:$0x3]  ;;  %v1681_v40 = vld [vmem:[%s19739_s9 + $0x26f8] sm:$0x3] }
 0x3ec   : > { %v11829_v53 = vadd.f32 %v11828_v31, %v11809_v46  ;;  %13147 = vmatmul.f32.vlgmr.msrb.gmra.mxu2 %v22064_v61  ;;  %13107 = vmatmul.f32.vlgmr.msrb.gmra.mxu0 %v22066_v20 }
 0x3ed   : > { %13167 = vmatmul.f32.vlgmr.msrb.gmra.mxu3 %v22068_v56  ;;  %13127 = vmatmul.f32.vlgmr.msrb.gmra.mxu1 %v22071_v6  ;;  %v904_v6 = vld [vmem:[%s19739_s9 + $0xeb0] sm:$0xff] }
 0x3ee   : > { %v11849_v51 = vadd.f32 %v11848_v47, %v11829_v53  ;;  %13226 = vmatpush.xpose.msra.mxu2 %v900_v50  ;;  %13186 = vmatpush.xpose.msra.mxu0 %v898_v2  ;;  %v22190_v50 = vld.sshfl [vmem:[#allocation1 + $0x30] sm:$0xff pattern:$0x73625140]  ;;  %v22192_v2 = vld.sshfl [vmem:[#allocation1 + $0x20] sm:$0xff pattern:$0x73625140] }
 0x3ef   : > { %v11868_v52 = vpop.f32.mrf.mxu2  ;;  %13246 = vmatpush.xpose.msra.mxu3 %v901_v11  ;;  %13206 = vmatpush.xpose.msra.mxu1 %v899_v1  ;;  %v910_v53 = vld [vmem:[%s19739_s9 + $0xee0] sm:$0xff]  ;;  %v365_v1 = vld [vmem:[%s19732_s7 + $0x3d8] sm:$0xff] }
 0x3f0   : > { %v11869_v61 = vadd.f32 %v11868_v52, %v11849_v51  ;;  %v11888_v20 = vpop.f32.mrf.mxu3  ;;  %v22197_v11 = vld.sshfl [vmem:[#allocation1 + $0x28] sm:$0xff pattern:$0x73625140]  ;;  %v911_v51 = vld [vmem:[%s19739_s9 + $0xee8] sm:$0xff] }
 0x3f1   : > { %v11908_v56 = vpop.f32.mrf.mxu0  ;;  %2774 = vst [vmem:[#allocation1 + $0x20] ss:$4 sm:$0xff] %v365_v1  ;;  %v22215_v19 = vld.sshfl [vmem:[#allocation1 + $0x18] sm:$0xff pattern:$0x73625140] }
 0x3f2   : > { %13305 = vmatpush.xpose.msrb.mxu2 %v1672_v55  ;;  %13265 = vmatpush.xpose.msrb.mxu0 %v1670_v14  ;;  %v11889_v4 = vadd.f32 %v11888_v20, %v11869_v61  ;;  %v11928_v5 = vpop.f32.mrf.mxu1  ;;  %v913_v14 = vld [vmem:[%s19739_s9 + $0xef8] sm:$0xff]  ;;  %v1683_v20 = vld [vmem:[%s19739_s9 + $0x2708] sm:$0x3] }
 0x3f3   : > { %13325 = vmatpush.xpose.msrb.mxu3 %v1673_v58  ;;  %13285 = vmatpush.xpose.msrb.mxu1 %v1671_v17  ;;  %v1684_v58 = vld [vmem:[%s19739_s9 + $0x2710] sm:$0x3]  ;;  %v1682_v17 = vld [vmem:[%s19739_s9 + $0x2700] sm:$0x3]  ;;  %v1685_v61 = vld [vmem:[%s19739_s9 + $0x2718] sm:$0x3] }
 0x3f4   : > { %v11909_v9 = vadd.f32 %v11908_v56, %v11889_v4  ;;  %13227 = vmatmul.f32.vlgmr.msra.gmra.mxu2 %v22085_v18  ;;  %13187 = vmatmul.f32.vlgmr.msra.gmra.mxu0 %v22087_v34 }
 0x3f5   : > { %13247 = vmatmul.f32.vlgmr.msra.gmra.mxu3 %v22089_v13  ;;  %13207 = vmatmul.f32.vlgmr.msra.gmra.mxu1 %v22092_v27  ;;  %v908_v27 = vld [vmem:[%s19739_s9 + $0xed0] sm:$0xff] }
 0x3f6   : > { %v11929_v7 = vadd.f32 %v11928_v5, %v11909_v9  ;;  %13306 = vmatpush.xpose.msrb.mxu2 %v904_v6  ;;  %13266 = vmatpush.xpose.msrb.mxu0 %v902_v23  ;;  %v22211_v6 = vld.sshfl [vmem:[#allocation1 + $0x10] sm:$0xff pattern:$0x73625140]  ;;  %v22213_v23 = vld.sshfl [vmem:[#allocation1] sm:$0xff pattern:$0x73625140] }
 0x3f7   : > { %v11948_v10 = vpop.f32.mrf.mxu2  ;;  %13326 = vmatpush.xpose.msrb.mxu3 %v905_v32  ;;  %13286 = vmatpush.xpose.msrb.mxu1 %v903_v22  ;;  %v914_v9 = vld [vmem:[%s19739_s9 + $0xf00] sm:$0xff] }
 0x3f8   : > { %v11949_v18 = vadd.f32 %v11948_v10, %v11929_v7  ;;  %v11968_v34 = vpop.f32.mrf.mxu3  ;;  %v22218_v32 = vld.sshfl [vmem:[#allocation1 + $0x8] sm:$0xff pattern:$0x73625140]  ;;  %v915_v7 = vld [vmem:[%s19739_s9 + $0xf08] sm:$0xff] }
 0x3f9   : > { %v11988_v13 = vpop.f32.mrf.mxu0  ;;  %v366_v22 = vld [vmem:[%s19732_s7 + $0x3e0] sm:$0xff]  ;;  %v22236_v44 = vld.sshfl [vmem:[#allocation1 + $0x38] sm:$0xff pattern:$0x73625140] }
 0x3fa   : > { %13385 = vmatpush.xpose.msra.mxu2 %v1676_v12  ;;  %13345 = vmatpush.xpose.msra.mxu0 %v1674_v39  ;;  %v11969_v25 = vadd.f32 %v11968_v34, %v11949_v18  ;;  %v12008_v26 = vpop.f32.mrf.mxu1  ;;  %v917_v39 = vld [vmem:[%s19739_s9 + $0xf18] sm:$0xff]  ;;  %2783 = vst [vmem:[#allocation1] ss:$4 sm:$0xff] %v366_v22  ;;  %v1687_v34 = vld [vmem:[%s19739_s9 + $0x2728] sm:$0x3] }
 0x3fb   : > { %13405 = vmatpush.xpose.msra.mxu3 %v1677_v15  ;;  %13365 = vmatpush.xpose.msra.mxu1 %v1675_v42  ;;  %v1688_v15 = vld [vmem:[%s19739_s9 + $0x2730] sm:$0x3]  ;;  %v1686_v42 = vld [vmem:[%s19739_s9 + $0x2720] sm:$0x3]  ;;  %v1689_v18 = vld [vmem:[%s19739_s9 + $0x2738] sm:$0x3] }
 0x3fc   : > { %v11989_v30 = vadd.f32 %v11988_v13, %v11969_v25  ;;  %13307 = vmatmul.f32.vlgmr.msrb.gmra.mxu2 %v22106_v43  ;;  %13267 = vmatmul.f32.vlgmr.msrb.gmra.mxu0 %v22108_v48 }
 0x3fd   : > { %13327 = vmatmul.f32.vlgmr.msrb.gmra.mxu3 %v22110_v37  ;;  %13287 = vmatmul.f32.vlgmr.msrb.gmra.mxu1 %v22113_v49  ;;  %v912_v49 = vld [vmem:[%s19739_s9 + $0xef0] sm:$0xff] }
 0x3fe   : > { %v12009_v28 = vadd.f32 %v12008_v26, %v11989_v30  ;;  %13386 = vmatpush.xpose.msra.mxu2 %v908_v27  ;;  %13346 = vmatpush.xpose.msra.mxu0 %v906_v38  ;;  %v22232_v27 = vld.sshfl [vmem:[#allocation1 + $0x30] sm:$0xff pattern:$0x73625140]  ;;  %v22234_v38 = vld.sshfl [vmem:[#allocation1 + $0x20] sm:$0xff pattern:$0x73625140] }
 0x3ff   : > { %v12028_v31 = vpop.f32.mrf.mxu2  ;;  %13406 = vmatpush.xpose.msra.mxu3 %v909_v57  ;;  %13366 = vmatpush.xpose.msra.mxu1 %v907_v36  ;;  %v918_v30 = vld [vmem:[%s19739_s9 + $0xf20] sm:$0xff]  ;;  %v367_v36 = vld [vmem:[%s19732_s7 + $0x3e8] sm:$0xff] }
 0x400   : > { %v12029_v43 = vadd.f32 %v12028_v31, %v12009_v28  ;;  %v12048_v48 = vpop.f32.mrf.mxu3  ;;  %v22239_v57 = vld.sshfl [vmem:[#allocation1 + $0x28] sm:$0xff pattern:$0x73625140]  ;;  %v919_v28 = vld [vmem:[%s19739_s9 + $0xf28] sm:$0xff] }
 0x401   : > { %v12068_v37 = vpop.f32.mrf.mxu0  ;;  %2784 = vst [vmem:[#allocation1 + $0x20] ss:$4 sm:$0xff] %v367_v36  ;;  %v22257_v1 = vld.sshfl [vmem:[#allocation1 + $0x18] sm:$0xff pattern:$0x73625140] }
 0x402   : > { %13465 = vmatpush.xpose.msrb.mxu2 %v1680_v33  ;;  %13425 = vmatpush.xpose.msrb.mxu0 %v1678_v60  ;;  %v12049_v46 = vadd.f32 %v12048_v48, %v12029_v43  ;;  %v12088_v47 = vpop.f32.mrf.mxu1  ;;  %v921_v60 = vld [vmem:[%s19739_s9 + $0xf38] sm:$0xff]  ;;  %v1691_v48 = vld [vmem:[%s19739_s9 + $0x2748] sm:$0x3] }
 0x403   : > { %13485 = vmatpush.xpose.msrb.mxu3 %v1681_v40  ;;  %13445 = vmatpush.xpose.msrb.mxu1 %v1679_v63  ;;  %v1692_v40 = vld [vmem:[%s19739_s9 + $0x2750] sm:$0x3]  ;;  %v1690_v63 = vld [vmem:[%s19739_s9 + $0x2740] sm:$0x3]  ;;  %v1693_v43 = vld [vmem:[%s19739_s9 + $0x2758] sm:$0x3] }
 0x404   : > { %v12069_v55 = vadd.f32 %v12068_v37, %v12049_v46  ;;  %13387 = vmatmul.f32.vlgmr.msra.gmra.mxu2 %v22127_v0  ;;  %13347 = vmatmul.f32.vlgmr.msra.gmra.mxu0 %v22129_v3 }
 0x405   : > { %13407 = vmatmul.f32.vlgmr.msra.gmra.mxu3 %v22131_v59  ;;  %13367 = vmatmul.f32.vlgmr.msra.gmra.mxu1 %v22134_v8  ;;  %v916_v8 = vld [vmem:[%s19739_s9 + $0xf10] sm:$0xff] }
 0x406   : > { %v12089_v52 = vadd.f32 %v12088_v47, %v12069_v55  ;;  %13466 = vmatpush.xpose.msrb.mxu2 %v912_v49  ;;  %13426 = vmatpush.xpose.msrb.mxu0 %v910_v53  ;;  %v22253_v49 = vld.sshfl [vmem:[#allocation1 + $0x10] sm:$0xff pattern:$0x73625140]  ;;  %v22255_v53 = vld.sshfl [vmem:[#allocation1] sm:$0xff pattern:$0x73625140] }
 0x407   : > { %v12108_v56 = vpop.f32.mrf.mxu2  ;;  %13486 = vmatpush.xpose.msrb.mxu3 %v913_v14  ;;  %13446 = vmatpush.xpose.msrb.mxu1 %v911_v51  ;;  %v922_v55 = vld [vmem:[%s19739_s9 + $0xf40] sm:$0xff]  ;;  %v368_v51 = vld [vmem:[%s19732_s7 + $0x3f0] sm:$0xff] }
 0x408   : > { %v12109_v0 = vadd.f32 %v12108_v56, %v12089_v52  ;;  %v12128_v3 = vpop.f32.mrf.mxu3  ;;  %v22260_v14 = vld.sshfl [vmem:[#allocation1 + $0x8] sm:$0xff pattern:$0x73625140]  ;;  %v923_v52 = vld [vmem:[%s19739_s9 + $0xf48] sm:$0xff] }
 0x409   : > { %v12148_v59 = vpop.f32.mrf.mxu0  ;;  %2793 = vst [vmem:[#allocation1] ss:$4 sm:$0xff] %v368_v51  ;;  %v22278_v22 = vld.sshfl [vmem:[#allocation1 + $0x38] sm:$0xff pattern:$0x73625140] }
 0x40a   : > { %13545 = vmatpush.xpose.msra.mxu2 %v1684_v58  ;;  %13505 = vmatpush.xpose.msra.mxu0 %v1682_v17  ;;  %v12129_v4 = vadd.f32 %v12128_v3, %v12109_v0  ;;  %v12168_v5 = vpop.f32.mrf.mxu1  ;;  %v925_v17 = vld [vmem:[%s19739_s9 + $0xf58] sm:$0xff]  ;;  %v1695_v3 = vld [vmem:[%s19739_s9 + $0x2768] sm:$0x3] }
 0x40b   : > { %13565 = vmatpush.xpose.msra.mxu3 %v1685_v61  ;;  %13525 = vmatpush.xpose.msra.mxu1 %v1683_v20  ;;  %v1696_v61 = vld [vmem:[%s19739_s9 + $0x2770] sm:$0x3]  ;;  %v1694_v20 = vld [vmem:[%s19739_s9 + $0x2760] sm:$0x3]  ;;  %v1697_v0 = vld [vmem:[%s19739_s9 + $0x2778] sm:$0x3] }
 0x40c   : > { %v12149_v12 = vadd.f32 %v12148_v59, %v12129_v4  ;;  %13467 = vmatmul.f32.vlgmr.msrb.gmra.mxu2 %v22148_v21  ;;  %13427 = vmatmul.f32.vlgmr.msrb.gmra.mxu0 %v22150_v24 }
 0x40d   : > { %13487 = vmatmul.f32.vlgmr.msrb.gmra.mxu3 %v22152_v16  ;;  %13447 = vmatmul.f32.vlgmr.msrb.gmra.mxu1 %v22155_v29  ;;  %v920_v29 = vld [vmem:[%s19739_s9 + $0xf30] sm:$0xff] }
 0x40e   : > { %v12169_v10 = vadd.f32 %v12168_v5, %v12149_v12  ;;  %13546 = vmatpush.xpose.msra.mxu2 %v916_v8  ;;  %13506 = vmatpush.xpose.msra.mxu0 %v914_v9  ;;  %v22274_v8 = vld.sshfl [vmem:[#allocation1 + $0x30] sm:$0xff pattern:$0x73625140]  ;;  %v22276_v9 = vld.sshfl [vmem:[#allocation1 + $0x20] sm:$0xff pattern:$0x73625140] }
 0x40f   : > { %v12188_v13 = vpop.f32.mrf.mxu2  ;;  %13566 = vmatpush.xpose.msra.mxu3 %v917_v39  ;;  %13526 = vmatpush.xpose.msra.mxu1 %v915_v7  ;;  %v926_v12 = vld [vmem:[%s19739_s9 + $0xf60] sm:$0xff]  ;;  %v369_v7 = vld [vmem:[%s19732_s7 + $0x3f8] sm:$0xff] }
 0x410   : > { %v12189_v21 = vadd.f32 %v12188_v13, %v12169_v10  ;;  %v12208_v24 = vpop.f32.mrf.mxu3  ;;  %v22281_v39 = vld.sshfl [vmem:[#allocation1 + $0x28] sm:$0xff pattern:$0x73625140]  ;;  %v927_v10 = vld [vmem:[%s19739_s9 + $0xf68] sm:$0xff] }
 0x411   : > { %v12228_v16 = vpop.f32.mrf.mxu0  ;;  %2794 = vst [vmem:[#allocation1 + $0x20] ss:$4 sm:$0xff] %v369_v7  ;;  %v22299_v36 = vld.sshfl [vmem:[#allocation1 + $0x18] sm:$0xff pattern:$0x73625140] }
 0x412   : > { %13625 = vmatpush.xpose.msrb.mxu2 %v1688_v15  ;;  %13585 = vmatpush.xpose.msrb.mxu0 %v1686_v42  ;;  %v12209_v25 = vadd.f32 %v12208_v24, %v12189_v21  ;;  %v12248_v26 = vpop.f32.mrf.mxu1  ;;  %v929_v42 = vld [vmem:[%s19739_s9 + $0xf78] sm:$0xff]  ;;  %v1699_v24 = vld [vmem:[%s19739_s9 + $0x2788] sm:$0x3] }
 0x413   : > { %13645 = vmatpush.xpose.msrb.mxu3 %v1689_v18  ;;  %13605 = vmatpush.xpose.msrb.mxu1 %v1687_v34  ;;  %v1700_v18 = vld [vmem:[%s19739_s9 + $0x2790] sm:$0x3]  ;;  %v1698_v34 = vld [vmem:[%s19739_s9 + $0x2780] sm:$0x3]  ;;  %v1701_v21 = vld [vmem:[%s19739_s9 + $0x2798] sm:$0x3] }
 0x414   : > { %v12229_v33 = vadd.f32 %v12228_v16, %v12209_v25  ;;  %13547 = vmatmul.f32.vlgmr.msra.gmra.mxu2 %v22169_v35  ;;  %13507 = vmatmul.f32.vlgmr.msra.gmra.mxu0 %v22171_v45 }
 0x415   : > { %13567 = vmatmul.f32.vlgmr.msra.gmra.mxu3 %v22173_v41  ;;  %13527 = vmatmul.f32.vlgmr.msra.gmra.mxu1 %v22176_v54  ;;  %v924_v54 = vld [vmem:[%s19739_s9 + $0xf50] sm:$0xff] }
 0x416   : > { %v12249_v31 = vadd.f32 %v12248_v26, %v12229_v33  ;;  %13626 = vmatpush.xpose.msrb.mxu2 %v920_v29  ;;  %13586 = vmatpush.xpose.msrb.mxu0 %v918_v30  ;;  %v22295_v29 = vld.sshfl [vmem:[#allocation1 + $0x10] sm:$0xff pattern:$0x73625140]  ;;  %v22297_v30 = vld.sshfl [vmem:[#allocation1] sm:$0xff pattern:$0x73625140] }
 0x417   : > { %v12268_v37 = vpop.f32.mrf.mxu2  ;;  %13646 = vmatpush.xpose.msrb.mxu3 %v921_v60  ;;  %13606 = vmatpush.xpose.msrb.mxu1 %v919_v28  ;;  %v930_v33 = vld [vmem:[%s19739_s9 + $0xf80] sm:$0xff] }
 0x418   : > { %v12269_v35 = vadd.f32 %v12268_v37, %v12249_v31  ;;  %v12288_v45 = vpop.f32.mrf.mxu3  ;;  %v22302_v60 = vld.sshfl [vmem:[#allocation1 + $0x8] sm:$0xff pattern:$0x73625140]  ;;  %v931_v31 = vld [vmem:[%s19739_s9 + $0xf88] sm:$0xff] }
 0x419   : > { %v12308_v41 = vpop.f32.mrf.mxu0  ;;  %v370_v28 = vld [vmem:[%s19732_s7 + $0x400] sm:$0xff]  ;;  %v22320_v51 = vld.sshfl [vmem:[#allocation1 + $0x38] sm:$0xff pattern:$0x73625140] }
 0x41a   : > { %13705 = vmatpush.xpose.msra.mxu2 %v1692_v40  ;;  %13665 = vmatpush.xpose.msra.mxu0 %v1690_v63  ;;  %v12289_v46 = vadd.f32 %v12288_v45, %v12269_v35  ;;  %v12328_v47 = vpop.f32.mrf.mxu1  ;;  %v933_v63 = vld [vmem:[%s19739_s9 + $0xf98] sm:$0xff]  ;;  %2803 = vst [vmem:[#allocation1] ss:$4 sm:$0xff] %v370_v28  ;;  %v1703_v45 = vld [vmem:[%s19739_s9 + $0x27a8] sm:$0x3] }
 0x41b   : > { %13725 = vmatpush.xpose.msra.mxu3 %v1693_v43  ;;  %13685 = vmatpush.xpose.msra.mxu1 %v1691_v48  ;;  %v1704_v43 = vld [vmem:[%s19739_s9 + $0x27b0] sm:$0x3]  ;;  %v1702_v48 = vld [vmem:[%s19739_s9 + $0x27a0] sm:$0x3]  ;;  %v1705_v35 = vld [vmem:[%s19739_s9 + $0x27b8] sm:$0x3] }
 0x41c   : > { %v12309_v58 = vadd.f32 %v12308_v41, %v12289_v46  ;;  %13627 = vmatmul.f32.vlgmr.msrb.gmra.mxu2 %v22190_v50  ;;  %13587 = vmatmul.f32.vlgmr.msrb.gmra.mxu0 %v22192_v2 }
 0x41d   : > { %13647 = vmatmul.f32.vlgmr.msrb.gmra.mxu3 %v22194_v62  ;;  %13607 = vmatmul.f32.vlgmr.msrb.gmra.mxu1 %v22197_v11  ;;  %v928_v11 = vld [vmem:[%s19739_s9 + $0xf70] sm:$0xff] }
 0x41e   : > { %v12329_v56 = vadd.f32 %v12328_v47, %v12309_v58  ;;  %13706 = vmatpush.xpose.msra.mxu2 %v924_v54  ;;  %13666 = vmatpush.xpose.msra.mxu0 %v922_v55  ;;  %v22316_v54 = vld.sshfl [vmem:[#allocation1 + $0x30] sm:$0xff pattern:$0x73625140]  ;;  %v22318_v55 = vld.sshfl [vmem:[#allocation1 + $0x20] sm:$0xff pattern:$0x73625140] }
 0x41f   : > { %v12348_v59 = vpop.f32.mrf.mxu2  ;;  %13726 = vmatpush.xpose.msra.mxu3 %v925_v17  ;;  %13686 = vmatpush.xpose.msra.mxu1 %v923_v52  ;;  %v934_v58 = vld [vmem:[%s19739_s9 + $0xfa0] sm:$0xff]  ;;  %v371_v52 = vld [vmem:[%s19732_s7 + $0x408] sm:$0xff] }
 0x420   : > { %v12349_v50 = vadd.f32 %v12348_v59, %v12329_v56  ;;  %v12368_v2 = vpop.f32.mrf.mxu3  ;;  %v22323_v17 = vld.sshfl [vmem:[#allocation1 + $0x28] sm:$0xff pattern:$0x73625140]  ;;  %v935_v56 = vld [vmem:[%s19739_s9 + $0xfa8] sm:$0xff] }
 0x421   : > { %v12388_v62 = vpop.f32.mrf.mxu0  ;;  %2804 = vst [vmem:[#allocation1 + $0x20] ss:$4 sm:$0xff] %v371_v52  ;;  %v22341_v7 = vld.sshfl [vmem:[#allocation1 + $0x18] sm:$0xff pattern:$0x73625140] }
 0x422   : > { %13785 = vmatpush.xpose.msrb.mxu2 %v1696_v61  ;;  %13745 = vmatpush.xpose.msrb.mxu0 %v1694_v20  ;;  %v12369_v4 = vadd.f32 %v12368_v2, %v12349_v50  ;;  %v12408_v5 = vpop.f32.mrf.mxu1  ;;  %v937_v20 = vld [vmem:[%s19739_s9 + $0xfb8] sm:$0xff]  ;;  %v1707_v2 = vld [vmem:[%s19739_s9 + $0x27c8] sm:$0x3] }
 0x423   : > { %13805 = vmatpush.xpose.msrb.mxu3 %v1697_v0  ;;  %13765 = vmatpush.xpose.msrb.mxu1 %v1695_v3  ;;  %v1708_v0 = vld [vmem:[%s19739_s9 + $0x27d0] sm:$0x3]  ;;  %v1706_v3 = vld [vmem:[%s19739_s9 + $0x27c0] sm:$0x3]  ;;  %v1709_v50 = vld [vmem:[%s19739_s9 + $0x27d8] sm:$0x3] }
 0x424   : > { %v12389_v15 = vadd.f32 %v12388_v62, %v12369_v4  ;;  %13707 = vmatmul.f32.vlgmr.msra.gmra.mxu2 %v22211_v6  ;;  %13667 = vmatmul.f32.vlgmr.msra.gmra.mxu0 %v22213_v23 }
 0x425   : > { %13727 = vmatmul.f32.vlgmr.msra.gmra.mxu3 %v22215_v19  ;;  %13687 = vmatmul.f32.vlgmr.msra.gmra.mxu1 %v22218_v32  ;;  %v932_v32 = vld [vmem:[%s19739_s9 + $0xf90] sm:$0xff] }
 0x426   : > { %v12409_v13 = vadd.f32 %v12408_v5, %v12389_v15  ;;  %13786 = vmatpush.xpose.msrb.mxu2 %v928_v11  ;;  %13746 = vmatpush.xpose.msrb.mxu0 %v926_v12  ;;  %v22337_v11 = vld.sshfl [vmem:[#allocation1 + $0x10] sm:$0xff pattern:$0x73625140]  ;;  %v22339_v12 = vld.sshfl [vmem:[#allocation1] sm:$0xff pattern:$0x73625140] }
 0x427   : > { %v12428_v16 = vpop.f32.mrf.mxu2  ;;  %13806 = vmatpush.xpose.msrb.mxu3 %v929_v42  ;;  %13766 = vmatpush.xpose.msrb.mxu1 %v927_v10  ;;  %v938_v15 = vld [vmem:[%s19739_s9 + $0xfc0] sm:$0xff]  ;;  %v372_v10 = vld [vmem:[%s19732_s7 + $0x410] sm:$0xff] }
 0x428   : > { %v12429_v6 = vadd.f32 %v12428_v16, %v12409_v13  ;;  %v12448_v23 = vpop.f32.mrf.mxu3  ;;  %v22344_v42 = vld.sshfl [vmem:[#allocation1 + $0x8] sm:$0xff pattern:$0x73625140]  ;;  %v939_v13 = vld [vmem:[%s19739_s9 + $0xfc8] sm:$0xff] }
 0x429   : > { %v12468_v19 = vpop.f32.mrf.mxu0  ;;  %2813 = vst [vmem:[#allocation1] ss:$4 sm:$0xff] %v372_v10  ;;  %v22362_v28 = vld.sshfl [vmem:[#allocation1 + $0x38] sm:$0xff pattern:$0x73625140] }
 0x42a   : > { %13865 = vmatpush.xpose.msra.mxu2 %v1700_v18  ;;  %13825 = vmatpush.xpose.msra.mxu0 %v1698_v34  ;;  %v12449_v25 = vadd.f32 %v12448_v23, %v12429_v6  ;;  %v12488_v26 = vpop.f32.mrf.mxu1  ;;  %v941_v34 = vld [vmem:[%s19739_s9 + $0xfd8] sm:$0xff]  ;;  %v1711_v23 = vld [vmem:[%s19739_s9 + $0x27e8] sm:$0x3] }
 0x42b   : > { %13885 = vmatpush.xpose.msra.mxu3 %v1701_v21  ;;  %13845 = vmatpush.xpose.msra.mxu1 %v1699_v24  ;;  %v1712_v21 = vld [vmem:[%s19739_s9 + $0x27f0] sm:$0x3]  ;;  %v1710_v24 = vld [vmem:[%s19739_s9 + $0x27e0] sm:$0x3]  ;;  %v1713_v6 = vld [vmem:[%s19739_s9 + $0x27f8] sm:$0x3] }
 0x42c   : > { %v12469_v40 = vadd.f32 %v12468_v19, %v12449_v25  ;;  %13787 = vmatmul.f32.vlgmr.msrb.gmra.mxu2 %v22232_v27  ;;  %13747 = vmatmul.f32.vlgmr.msrb.gmra.mxu0 %v22234_v38 }
 0x42d   : > { %13807 = vmatmul.f32.vlgmr.msrb.gmra.mxu3 %v22236_v44  ;;  %13767 = vmatmul.f32.vlgmr.msrb.gmra.mxu1 %v22239_v57  ;;  %v936_v57 = vld [vmem:[%s19739_s9 + $0xfb0] sm:$0xff] }
 0x42e   : > { %v12489_v37 = vadd.f32 %v12488_v26, %v12469_v40  ;;  %13866 = vmatpush.xpose.msra.mxu2 %v932_v32  ;;  %13826 = vmatpush.xpose.msra.mxu0 %v930_v33  ;;  %v22358_v32 = vld.sshfl [vmem:[#allocation1 + $0x30] sm:$0xff pattern:$0x73625140]  ;;  %v22360_v33 = vld.sshfl [vmem:[#allocation1 + $0x20] sm:$0xff pattern:$0x73625140] }
 0x42f   : > { %v12508_v41 = vpop.f32.mrf.mxu2  ;;  %13886 = vmatpush.xpose.msra.mxu3 %v933_v63  ;;  %13846 = vmatpush.xpose.msra.mxu1 %v931_v31  ;;  %v942_v40 = vld [vmem:[%s19739_s9 + $0xfe0] sm:$0xff]  ;;  %v373_v31 = vld [vmem:[%s19732_s7 + $0x418] sm:$0xff] }
 0x430   : > { %v12509_v27 = vadd.f32 %v12508_v41, %v12489_v37  ;;  %v12528_v38 = vpop.f32.mrf.mxu3  ;;  %v22365_v63 = vld.sshfl [vmem:[#allocation1 + $0x28] sm:$0xff pattern:$0x73625140]  ;;  %v943_v37 = vld [vmem:[%s19739_s9 + $0xfe8] sm:$0xff] }
 0x431   : > { %v12548_v44 = vpop.f32.mrf.mxu0  ;;  %2814 = vst [vmem:[#allocation1 + $0x20] ss:$4 sm:$0xff] %v373_v31  ;;  %v22383_v52 = vld.sshfl [vmem:[#allocation1 + $0x18] sm:$0xff pattern:$0x73625140] }
 0x432   : > { %13945 = vmatpush.xpose.msrb.mxu2 %v1704_v43  ;;  %13905 = vmatpush.xpose.msrb.mxu0 %v1702_v48  ;;  %v12529_v46 = vadd.f32 %v12528_v38, %v12509_v27  ;;  %v12568_v47 = vpop.f32.mrf.mxu1  ;;  %v945_v48 = vld [vmem:[%s19739_s9 + $0xff8] sm:$0xff]  ;;  %v1715_v38 = vld [vmem:[%s19739_s9 + $0x2808] sm:$0x3] }
 0x433   : > { %13965 = vmatpush.xpose.msrb.mxu3 %v1705_v35  ;;  %13925 = vmatpush.xpose.msrb.mxu1 %v1703_v45  ;;  %v1716_v35 = vld [vmem:[%s19739_s9 + $0x2810] sm:$0x3]  ;;  %v1714_v45 = vld [vmem:[%s19739_s9 + $0x2800] sm:$0x3]  ;;  %v1717_v27 = vld [vmem:[%s19739_s9 + $0x2818] sm:$0x3] }
 0x434   : > { %v12549_v61 = vadd.f32 %v12548_v44, %v12529_v46  ;;  %13867 = vmatmul.f32.vlgmr.msra.gmra.mxu2 %v22253_v49  ;;  %13827 = vmatmul.f32.vlgmr.msra.gmra.mxu0 %v22255_v53 }
 0x435   : > { %13887 = vmatmul.f32.vlgmr.msra.gmra.mxu3 %v22257_v1  ;;  %13847 = vmatmul.f32.vlgmr.msra.gmra.mxu1 %v22260_v14  ;;  %v940_v14 = vld [vmem:[%s19739_s9 + $0xfd0] sm:$0xff] }
 0x436   : > { %v12569_v59 = vadd.f32 %v12568_v47, %v12549_v61  ;;  %13946 = vmatpush.xpose.msrb.mxu2 %v936_v57  ;;  %13906 = vmatpush.xpose.msrb.mxu0 %v934_v58  ;;  %v22379_v57 = vld.sshfl [vmem:[#allocation1 + $0x10] sm:$0xff pattern:$0x73625140]  ;;  %v22381_v58 = vld.sshfl [vmem:[#allocation1] sm:$0xff pattern:$0x73625140] }
 0x437   : > { %v12588_v62 = vpop.f32.mrf.mxu2  ;;  %13966 = vmatpush.xpose.msrb.mxu3 %v937_v20  ;;  %13926 = vmatpush.xpose.msrb.mxu1 %v935_v56  ;;  %v946_v61 = vld [vmem:[%s19739_s9 + $0x1000] sm:$0xff] }
 0x438   : > { %v12589_v49 = vadd.f32 %v12588_v62, %v12569_v59  ;;  %v12608_v53 = vpop.f32.mrf.mxu3  ;;  %v22386_v20 = vld.sshfl [vmem:[#allocation1 + $0x8] sm:$0xff pattern:$0x73625140]  ;;  %v947_v59 = vld [vmem:[%s19739_s9 + $0x1008] sm:$0xff] }
 0x439   : > { %v12628_v1 = vpop.f32.mrf.mxu0  ;;  %v374_v56 = vld [vmem:[%s19732_s7 + $0x420] sm:$0xff]  ;;  %v22404_v10 = vld.sshfl [vmem:[#allocation1 + $0x38] sm:$0xff pattern:$0x73625140] }
 0x43a   : > { %14025 = vmatpush.xpose.msra.mxu2 %v1708_v0  ;;  %13985 = vmatpush.xpose.msra.mxu0 %v1706_v3  ;;  %v12609_v4 = vadd.f32 %v12608_v53, %v12589_v49  ;;  %v12648_v5 = vpop.f32.mrf.mxu1  ;;  %v949_v3 = vld [vmem:[%s19739_s9 + $0x1018] sm:$0xff]  ;;  %2823 = vst [vmem:[#allocation1] ss:$4 sm:$0xff] %v374_v56  ;;  %v1719_v53 = vld [vmem:[%s19739_s9 + $0x2828] sm:$0x3] }
 0x43b   : > { %14045 = vmatpush.xpose.msra.mxu3 %v1709_v50  ;;  %14005 = vmatpush.xpose.msra.mxu1 %v1707_v2  ;;  %v1720_v50 = vld [vmem:[%s19739_s9 + $0x2830] sm:$0x3]  ;;  %v1718_v2 = vld [vmem:[%s19739_s9 + $0x2820] sm:$0x3]  ;;  %v1721_v49 = vld [vmem:[%s19739_s9 + $0x2838] sm:$0x3] }
 0x43c   : > { %v12629_v18 = vadd.f32 %v12628_v1, %v12609_v4  ;;  %13947 = vmatmul.f32.vlgmr.msrb.gmra.mxu2 %v22274_v8  ;;  %13907 = vmatmul.f32.vlgmr.msrb.gmra.mxu0 %v22276_v9 }
 0x43d   : > { %13967 = vmatmul.f32.vlgmr.msrb.gmra.mxu3 %v22278_v22  ;;  %13927 = vmatmul.f32.vlgmr.msrb.gmra.mxu1 %v22281_v39  ;;  %v944_v39 = vld [vmem:[%s19739_s9 + $0xff0] sm:$0xff] }
 0x43e   : > { %v12649_v16 = vadd.f32 %v12648_v5, %v12629_v18  ;;  %14026 = vmatpush.xpose.msra.mxu2 %v940_v14  ;;  %13986 = vmatpush.xpose.msra.mxu0 %v938_v15  ;;  %v22400_v14 = vld.sshfl [vmem:[#allocation1 + $0x30] sm:$0xff pattern:$0x73625140]  ;;  %v22402_v15 = vld.sshfl [vmem:[#allocation1 + $0x20] sm:$0xff pattern:$0x73625140] }
 0x43f   : > { %v12668_v19 = vpop.f32.mrf.mxu2  ;;  %14046 = vmatpush.xpose.msra.mxu3 %v941_v34  ;;  %14006 = vmatpush.xpose.msra.mxu1 %v939_v13  ;;  %v950_v18 = vld [vmem:[%s19739_s9 + $0x1020] sm:$0xff]  ;;  %v375_v13 = vld [vmem:[%s19732_s7 + $0x428] sm:$0xff] }
 0x440   : > { %v12669_v8 = vadd.f32 %v12668_v19, %v12649_v16  ;;  %v12688_v9 = vpop.f32.mrf.mxu3  ;;  %v22407_v34 = vld.sshfl [vmem:[#allocation1 + $0x28] sm:$0xff pattern:$0x73625140]  ;;  %v951_v16 = vld [vmem:[%s19739_s9 + $0x1028] sm:$0xff] }
 0x441   : > { %v12708_v22 = vpop.f32.mrf.mxu0  ;;  %2824 = vst [vmem:[#allocation1 + $0x20] ss:$4 sm:$0xff] %v375_v13  ;;  %v22425_v31 = vld.sshfl [vmem:[#allocation1 + $0x18] sm:$0xff pattern:$0x73625140] }
 0x442   : > { %14105 = vmatpush.xpose.msrb.mxu2 %v1712_v21  ;;  %14065 = vmatpush.xpose.msrb.mxu0 %v1710_v24  ;;  %v12689_v25 = vadd.f32 %v12688_v9, %v12669_v8  ;;  %v12728_v26 = vpop.f32.mrf.mxu1  ;;  %v953_v24 = vld [vmem:[%s19739_s9 + $0x1038] sm:$0xff]  ;;  %v1723_v9 = vld [vmem:[%s19739_s9 + $0x2848] sm:$0x3] }
 0x443   : > { %14125 = vmatpush.xpose.msrb.mxu3 %v1713_v6  ;;  %14085 = vmatpush.xpose.msrb.mxu1 %v1711_v23  ;;  %v1724_v6 = vld [vmem:[%s19739_s9 + $0x2850] sm:$0x3]  ;;  %v1722_v23 = vld [vmem:[%s19739_s9 + $0x2840] sm:$0x3]  ;;  %v1725_v8 = vld [vmem:[%s19739_s9 + $0x2858] sm:$0x3] }
 0x444   : > { %v12709_v43 = vadd.f32 %v12708_v22, %v12689_v25  ;;  %14027 = vmatmul.f32.vlgmr.msra.gmra.mxu2 %v22295_v29  ;;  %13987 = vmatmul.f32.vlgmr.msra.gmra.mxu0 %v22297_v30 }
 0x445   : > { %14047 = vmatmul.f32.vlgmr.msra.gmra.mxu3 %v22299_v36  ;;  %14007 = vmatmul.f32.vlgmr.msra.gmra.mxu1 %v22302_v60  ;;  %v948_v60 = vld [vmem:[%s19739_s9 + $0x1010] sm:$0xff] }
 0x446   : > { %v12729_v41 = vadd.f32 %v12728_v26, %v12709_v43  ;;  %14106 = vmatpush.xpose.msrb.mxu2 %v944_v39  ;;  %14066 = vmatpush.xpose.msrb.mxu0 %v942_v40  ;;  %v22421_v39 = vld.sshfl [vmem:[#allocation1 + $0x10] sm:$0xff pattern:$0x73625140]  ;;  %v22423_v40 = vld.sshfl [vmem:[#allocation1] sm:$0xff pattern:$0x73625140] }
 0x447   : > { %v12748_v44 = vpop.f32.mrf.mxu2  ;;  %14126 = vmatpush.xpose.msrb.mxu3 %v945_v48  ;;  %14086 = vmatpush.xpose.msrb.mxu1 %v943_v37  ;;  %v954_v43 = vld [vmem:[%s19739_s9 + $0x1040] sm:$0xff]  ;;  %v376_v37 = vld [vmem:[%s19732_s7 + $0x430] sm:$0xff] }
 0x448   : > { %v12749_v29 = vadd.f32 %v12748_v44, %v12729_v41  ;;  %v12768_v30 = vpop.f32.mrf.mxu3  ;;  %v22428_v48 = vld.sshfl [vmem:[#allocation1 + $0x8] sm:$0xff pattern:$0x73625140]  ;;  %v955_v41 = vld [vmem:[%s19739_s9 + $0x1048] sm:$0xff] }
 0x449   : > { %v12788_v36 = vpop.f32.mrf.mxu0  ;;  %2833 = vst [vmem:[#allocation1] ss:$4 sm:$0xff] %v376_v37  ;;  %v22446_v56 = vld.sshfl [vmem:[#allocation1 + $0x38] sm:$0xff pattern:$0x73625140] }
 0x44a   : > { %14185 = vmatpush.xpose.msra.mxu2 %v1716_v35  ;;  %14145 = vmatpush.xpose.msra.mxu0 %v1714_v45  ;;  %v12769_v46 = vadd.f32 %v12768_v30, %v12749_v29  ;;  %v12808_v47 = vpop.f32.mrf.mxu1  ;;  %v957_v45 = vld [vmem:[%s19739_s9 + $0x1058] sm:$0xff]  ;;  %v1727_v30 = vld [vmem:[%s19739_s9 + $0x2868] sm:$0x3] }
 0x44b   : > { %14205 = vmatpush.xpose.msra.mxu3 %v1717_v27  ;;  %14165 = vmatpush.xpose.msra.mxu1 %v1715_v38  ;;  %v1728_v27 = vld [vmem:[%s19739_s9 + $0x2870] sm:$0x3]  ;;  %v1726_v38 = vld [vmem:[%s19739_s9 + $0x2860] sm:$0x3]  ;;  %v1729_v29 = vld [vmem:[%s19739_s9 + $0x2878] sm:$0x3] }
 0x44c   : > { %v12789_v0 = vadd.f32 %v12788_v36, %v12769_v46  ;;  %14107 = vmatmul.f32.vlgmr.msrb.gmra.mxu2 %v22316_v54  ;;  %14067 = vmatmul.f32.vlgmr.msrb.gmra.mxu0 %v22318_v55 }
 0x44d   : > { %14127 = vmatmul.f32.vlgmr.msrb.gmra.mxu3 %v22320_v51  ;;  %14087 = vmatmul.f32.vlgmr.msrb.gmra.mxu1 %v22323_v17  ;;  %v952_v17 = vld [vmem:[%s19739_s9 + $0x1030] sm:$0xff] }
 0x44e   : > { %v12809_v62 = vadd.f32 %v12808_v47, %v12789_v0  ;;  %14186 = vmatpush.xpose.msra.mxu2 %v948_v60  ;;  %14146 = vmatpush.xpose.msra.mxu0 %v946_v61  ;;  %v22442_v60 = vld.sshfl [vmem:[#allocation1 + $0x30] sm:$0xff pattern:$0x73625140]  ;;  %v22444_v61 = vld.sshfl [vmem:[#allocation1 + $0x20] sm:$0xff pattern:$0x73625140] }
 0x44f   : > { %v12828_v1 = vpop.f32.mrf.mxu2  ;;  %14206 = vmatpush.xpose.msra.mxu3 %v949_v3  ;;  %14166 = vmatpush.xpose.msra.mxu1 %v947_v59  ;;  %v958_v0 = vld [vmem:[%s19739_s9 + $0x1060] sm:$0xff]  ;;  %v377_v59 = vld [vmem:[%s19732_s7 + $0x438] sm:$0xff] }
 0x450   : > { %v12829_v54 = vadd.f32 %v12828_v1, %v12809_v62  ;;  %v12848_v55 = vpop.f32.mrf.mxu3  ;;  %v22449_v3 = vld.sshfl [vmem:[#allocation1 + $0x28] sm:$0xff pattern:$0x73625140]  ;;  %v959_v62 = vld [vmem:[%s19739_s9 + $0x1068] sm:$0xff] }
 0x451   : > { %v12868_v51 = vpop.f32.mrf.mxu0  ;;  %2834 = vst [vmem:[#allocation1 + $0x20] ss:$4 sm:$0xff] %v377_v59  ;;  %v22467_v13 = vld.sshfl [vmem:[#allocation1 + $0x18] sm:$0xff pattern:$0x73625140] }
 0x452   : > { %14265 = vmatpush.xpose.msrb.mxu2 %v1720_v50  ;;  %14225 = vmatpush.xpose.msrb.mxu0 %v1718_v2  ;;  %v12849_v4 = vadd.f32 %v12848_v55, %v12829_v54  ;;  %v12888_v5 = vpop.f32.mrf.mxu1  ;;  %v961_v2 = vld [vmem:[%s19739_s9 + $0x1078] sm:$0xff]  ;;  %v1731_v55 = vld [vmem:[%s19739_s9 + $0x2888] sm:$0x3] }
 0x453   : > { %14285 = vmatpush.xpose.msrb.mxu3 %v1721_v49  ;;  %14245 = vmatpush.xpose.msrb.mxu1 %v1719_v53  ;;  %v1732_v49 = vld [vmem:[%s19739_s9 + $0x2890] sm:$0x3]  ;;  %v1730_v53 = vld [vmem:[%s19739_s9 + $0x2880] sm:$0x3]  ;;  %v1733_v54 = vld [vmem:[%s19739_s9 + $0x2898] sm:$0x3] }
 0x454   : > { %v12869_v21 = vadd.f32 %v12868_v51, %v12849_v4  ;;  %14187 = vmatmul.f32.vlgmr.msra.gmra.mxu2 %v22337_v11  ;;  %14147 = vmatmul.f32.vlgmr.msra.gmra.mxu0 %v22339_v12 }
 0x455   : > { %14207 = vmatmul.f32.vlgmr.msra.gmra.mxu3 %v22341_v7  ;;  %14167 = vmatmul.f32.vlgmr.msra.gmra.mxu1 %v22344_v42  ;;  %v956_v42 = vld [vmem:[%s19739_s9 + $0x1050] sm:$0xff] }
 0x456   : > { %v12889_v19 = vadd.f32 %v12888_v5, %v12869_v21  ;;  %14266 = vmatpush.xpose.msrb.mxu2 %v952_v17  ;;  %14226 = vmatpush.xpose.msrb.mxu0 %v950_v18  ;;  %v22463_v17 = vld.sshfl [vmem:[#allocation1 + $0x10] sm:$0xff pattern:$0x73625140]  ;;  %v22465_v18 = vld.sshfl [vmem:[#allocation1] sm:$0xff pattern:$0x73625140] }
 0x457   : > { %v12908_v22 = vpop.f32.mrf.mxu2  ;;  %14286 = vmatpush.xpose.msrb.mxu3 %v953_v24  ;;  %14246 = vmatpush.xpose.msrb.mxu1 %v951_v16  ;;  %v962_v21 = vld [vmem:[%s19739_s9 + $0x1080] sm:$0xff] }
 0x458   : > { %v12909_v11 = vadd.f32 %v12908_v22, %v12889_v19  ;;  %v12928_v12 = vpop.f32.mrf.mxu3  ;;  %v22470_v24 = vld.sshfl [vmem:[#allocation1 + $0x8] sm:$0xff pattern:$0x73625140]  ;;  %v963_v19 = vld [vmem:[%s19739_s9 + $0x1088] sm:$0xff] }
 0x459   : > { %v12948_v7 = vpop.f32.mrf.mxu0  ;;  %v378_v16 = vld [vmem:[%s19732_s7 + $0x440] sm:$0xff]  ;;  %v22488_v37 = vld.sshfl [vmem:[#allocation1 + $0x38] sm:$0xff pattern:$0x73625140] }
 0x45a   : > { %14345 = vmatpush.xpose.msra.mxu2 %v1724_v6  ;;  %14305 = vmatpush.xpose.msra.mxu0 %v1722_v23  ;;  %v12929_v25 = vadd.f32 %v12928_v12, %v12909_v11  ;;  %v12968_v26 = vpop.f32.mrf.mxu1  ;;  %v965_v23 = vld [vmem:[%s19739_s9 + $0x1098] sm:$0xff]  ;;  %2843 = vst [vmem:[#allocation1] ss:$4 sm:$0xff] %v378_v16  ;;  %v1735_v12 = vld [vmem:[%s19739_s9 + $0x28a8] sm:$0x3] }
 0x45b   : > { %14365 = vmatpush.xpose.msra.mxu3 %v1725_v8  ;;  %14325 = vmatpush.xpose.msra.mxu1 %v1723_v9  ;;  %v1736_v8 = vld [vmem:[%s19739_s9 + $0x28b0] sm:$0x3]  ;;  %v1734_v9 = vld [vmem:[%s19739_s9 + $0x28a0] sm:$0x3]  ;;  %v1737_v11 = vld [vmem:[%s19739_s9 + $0x28b8] sm:$0x3] }
 0x45c   : > { %v12949_v35 = vadd.f32 %v12948_v7, %v12929_v25  ;;  %14267 = vmatmul.f32.vlgmr.msrb.gmra.mxu2 %v22358_v32  ;;  %14227 = vmatmul.f32.vlgmr.msrb.gmra.mxu0 %v22360_v33 }
 0x45d   : > { %14287 = vmatmul.f32.vlgmr.msrb.gmra.mxu3 %v22362_v28  ;;  %14247 = vmatmul.f32.vlgmr.msrb.gmra.mxu1 %v22365_v63  ;;  %v960_v63 = vld [vmem:[%s19739_s9 + $0x1070] sm:$0xff] }
 0x45e   : > { %v12969_v44 = vadd.f32 %v12968_v26, %v12949_v35  ;;  %14346 = vmatpush.xpose.msra.mxu2 %v956_v42  ;;  %14306 = vmatpush.xpose.msra.mxu0 %v954_v43  ;;  %v22484_v42 = vld.sshfl [vmem:[#allocation1 + $0x30] sm:$0xff pattern:$0x73625140]  ;;  %v22486_v43 = vld.sshfl [vmem:[#allocation1 + $0x20] sm:$0xff pattern:$0x73625140] }
 0x45f   : > { %v12988_v36 = vpop.f32.mrf.mxu2  ;;  %14366 = vmatpush.xpose.msra.mxu3 %v957_v45  ;;  %14326 = vmatpush.xpose.msra.mxu1 %v955_v41  ;;  %v966_v35 = vld [vmem:[%s19739_s9 + $0x10a0] sm:$0xff]  ;;  %v379_v41 = vld [vmem:[%s19732_s7 + $0x448] sm:$0xff] }
 0x460   : > { %v12989_v32 = vadd.f32 %v12988_v36, %v12969_v44  ;;  %v13008_v33 = vpop.f32.mrf.mxu3  ;;  %v22491_v45 = vld.sshfl [vmem:[#allocation1 + $0x28] sm:$0xff pattern:$0x73625140]  ;;  %v967_v44 = vld [vmem:[%s19739_s9 + $0x10a8] sm:$0xff] }
 0x461   : > { %v13028_v28 = vpop.f32.mrf.mxu0  ;;  %2844 = vst [vmem:[#allocation1 + $0x20] ss:$4 sm:$0xff] %v379_v41  ;;  %v22509_v59 = vld.sshfl [vmem:[#allocation1 + $0x18] sm:$0xff pattern:$0x73625140] }
 0x462   : > { %14425 = vmatpush.xpose.msrb.mxu2 %v1728_v27  ;;  %14385 = vmatpush.xpose.msrb.mxu0 %v1726_v38  ;;  %v13009_v46 = vadd.f32 %v13008_v33, %v12989_v32  ;;  %v13048_v47 = vpop.f32.mrf.mxu1  ;;  %v969_v38 = vld [vmem:[%s19739_s9 + $0x10b8] sm:$0xff]  ;;  %v1739_v33 = vld [vmem:[%s19739_s9 + $0x28c8] sm:$0x3] }
 0x463   : > { %14445 = vmatpush.xpose.msrb.mxu3 %v1729_v29  ;;  %14405 = vmatpush.xpose.msrb.mxu1 %v1727_v30  ;;  %v1740_v29 = vld [vmem:[%s19739_s9 + $0x28d0] sm:$0x3]  ;;  %v1738_v30 = vld [vmem:[%s19739_s9 + $0x28c0] sm:$0x3]  ;;  %v1741_v32 = vld [vmem:[%s19739_s9 + $0x28d8] sm:$0x3] }
 0x464   : > { %v13029_v50 = vadd.f32 %v13028_v28, %v13009_v46  ;;  %14347 = vmatmul.f32.vlgmr.msra.gmra.mxu2 %v22379_v57  ;;  %14307 = vmatmul.f32.vlgmr.msra.gmra.mxu0 %v22381_v58 }
 0x465   : > { %14367 = vmatmul.f32.vlgmr.msra.gmra.mxu3 %v22383_v52  ;;  %14327 = vmatmul.f32.vlgmr.msra.gmra.mxu1 %v22386_v20  ;;  %v964_v20 = vld [vmem:[%s19739_s9 + $0x1090] sm:$0xff] }
 0x466   : > { %v13049_v1 = vadd.f32 %v13048_v47, %v13029_v50  ;;  %14426 = vmatpush.xpose.msrb.mxu2 %v960_v63  ;;  %14386 = vmatpush.xpose.msrb.mxu0 %v958_v0  ;;  %v22505_v63 = vld.sshfl [vmem:[#allocation1 + $0x10] sm:$0xff pattern:$0x73625140]  ;;  %v22507_v0 = vld.sshfl [vmem:[#allocation1] sm:$0xff pattern:$0x73625140] }
 0x467   : > { %v13068_v51 = vpop.f32.mrf.mxu2  ;;  %14446 = vmatpush.xpose.msrb.mxu3 %v961_v2  ;;  %14406 = vmatpush.xpose.msrb.mxu1 %v959_v62  ;;  %v970_v50 = vld [vmem:[%s19739_s9 + $0x10c0] sm:$0xff]  ;;  %v380_v62 = vld [vmem:[%s19732_s7 + $0x450] sm:$0xff] }
 0x468   : > { %v13069_v57 = vadd.f32 %v13068_v51, %v13049_v1  ;;  %v13088_v58 = vpop.f32.mrf.mxu3  ;;  %v22512_v2 = vld.sshfl [vmem:[#allocation1 + $0x8] sm:$0xff pattern:$0x73625140]  ;;  %v971_v1 = vld [vmem:[%s19739_s9 + $0x10c8] sm:$0xff] }
 0x469   : > { %v13108_v52 = vpop.f32.mrf.mxu0  ;;  %2853 = vst [vmem:[#allocation1] ss:$4 sm:$0xff] %v380_v62  ;;  %v22530_v16 = vld.sshfl [vmem:[#allocation1 + $0x38] sm:$0xff pattern:$0x73625140] }
 0x46a   : > { %14505 = vmatpush.xpose.msra.mxu2 %v1732_v49  ;;  %14465 = vmatpush.xpose.msra.mxu0 %v1730_v53  ;;  %v13089_v4 = vadd.f32 %v13088_v58, %v13069_v57  ;;  %v13128_v5 = vpop.f32.mrf.mxu1  ;;  %v973_v53 = vld [vmem:[%s19739_s9 + $0x10d8] sm:$0xff]  ;;  %v1743_v58 = vld [vmem:[%s19739_s9 + $0x28e8] sm:$0x3] }
 0x46b   : > { %14525 = vmatpush.xpose.msra.mxu3 %v1733_v54  ;;  %14485 = vmatpush.xpose.msra.mxu1 %v1731_v55  ;;  %v1744_v54 = vld [vmem:[%s19739_s9 + $0x28f0] sm:$0x3]  ;;  %v1742_v55 = vld [vmem:[%s19739_s9 + $0x28e0] sm:$0x3]  ;;  %v1745_v57 = vld [vmem:[%s19739_s9 + $0x28f8] sm:$0x3] }
 0x46c   : > { %v13109_v6 = vadd.f32 %v13108_v52, %v13089_v4  ;;  %14427 = vmatmul.f32.vlgmr.msrb.gmra.mxu2 %v22400_v14  ;;  %14387 = vmatmul.f32.vlgmr.msrb.gmra.mxu0 %v22402_v15 }
 0x46d   : > { %14447 = vmatmul.f32.vlgmr.msrb.gmra.mxu3 %v22404_v10  ;;  %14407 = vmatmul.f32.vlgmr.msrb.gmra.mxu1 %v22407_v34  ;;  %v968_v34 = vld [vmem:[%s19739_s9 + $0x10b0] sm:$0xff] }
 0x46e   : > { %v13129_v22 = vadd.f32 %v13128_v5, %v13109_v6  ;;  %14506 = vmatpush.xpose.msra.mxu2 %v964_v20  ;;  %14466 = vmatpush.xpose.msra.mxu0 %v962_v21  ;;  %v22526_v20 = vld.sshfl [vmem:[#allocation1 + $0x30] sm:$0xff pattern:$0x73625140]  ;;  %v22528_v21 = vld.sshfl [vmem:[#allocation1 + $0x20] sm:$0xff pattern:$0x73625140] }
 0x46f   : > { %v13148_v7 = vpop.f32.mrf.mxu2  ;;  %14526 = vmatpush.xpose.msra.mxu3 %v965_v23  ;;  %14486 = vmatpush.xpose.msra.mxu1 %v963_v19  ;;  %v974_v6 = vld [vmem:[%s19739_s9 + $0x10e0] sm:$0xff]  ;;  %v381_v19 = vld [vmem:[%s19732_s7 + $0x458] sm:$0xff] }
 0x470   : > { %v13149_v14 = vadd.f32 %v13148_v7, %v13129_v22  ;;  %v13168_v15 = vpop.f32.mrf.mxu3  ;;  %v22533_v23 = vld.sshfl [vmem:[#allocation1 + $0x28] sm:$0xff pattern:$0x73625140]  ;;  %v975_v22 = vld [vmem:[%s19739_s9 + $0x10e8] sm:$0xff] }
 0x471   : > { %v13188_v10 = vpop.f32.mrf.mxu0  ;;  %2854 = vst [vmem:[#allocation1 + $0x20] ss:$4 sm:$0xff] %v381_v19  ;;  %v22551_v41 = vld.sshfl [vmem:[#allocation1 + $0x18] sm:$0xff pattern:$0x73625140] }
 0x472   : > { %14585 = vmatpush.xpose.msrb.mxu2 %v1736_v8  ;;  %14545 = vmatpush.xpose.msrb.mxu0 %v1734_v9  ;;  %v13169_v25 = vadd.f32 %v13168_v15, %v13149_v14  ;;  %v13208_v26 = vpop.f32.mrf.mxu1  ;;  %v977_v9 = vld [vmem:[%s19739_s9 + $0x10f8] sm:$0xff]  ;;  %v1747_v15 = vld [vmem:[%s19739_s9 + $0x2908] sm:$0x3] }
 0x473   : > { %14605 = vmatpush.xpose.msrb.mxu3 %v1737_v11  ;;  %14565 = vmatpush.xpose.msrb.mxu1 %v1735_v12  ;;  %v1748_v11 = vld [vmem:[%s19739_s9 + $0x2910] sm:$0x3]  ;;  %v1746_v12 = vld [vmem:[%s19739_s9 + $0x2900] sm:$0x3]  ;;  %v1749_v14 = vld [vmem:[%s19739_s9 + $0x2918] sm:$0x3] }
 0x474   : > { %v13189_v27 = vadd.f32 %v13188_v10, %v13169_v25  ;;  %14507 = vmatmul.f32.vlgmr.msra.gmra.mxu2 %v22421_v39  ;;  %14467 = vmatmul.f32.vlgmr.msra.gmra.mxu0 %v22423_v40 }
 0x475   : > { %14527 = vmatmul.f32.vlgmr.msra.gmra.mxu3 %v22425_v31  ;;  %14487 = vmatmul.f32.vlgmr.msra.gmra.mxu1 %v22428_v48  ;;  %v972_v48 = vld [vmem:[%s19739_s9 + $0x10d0] sm:$0xff] }
 0x476   : > { %v13209_v36 = vadd.f32 %v13208_v26, %v13189_v27  ;;  %14586 = vmatpush.xpose.msrb.mxu2 %v968_v34  ;;  %14546 = vmatpush.xpose.msrb.mxu0 %v966_v35  ;;  %v22547_v34 = vld.sshfl [vmem:[#allocation1 + $0x10] sm:$0xff pattern:$0x73625140]  ;;  %v22549_v35 = vld.sshfl [vmem:[#allocation1] sm:$0xff pattern:$0x73625140] }
 0x477   : > { %v13228_v28 = vpop.f32.mrf.mxu2  ;;  %14606 = vmatpush.xpose.msrb.mxu3 %v969_v38  ;;  %14566 = vmatpush.xpose.msrb.mxu1 %v967_v44  ;;  %v978_v27 = vld [vmem:[%s19739_s9 + $0x1100] sm:$0xff] }
 0x478   : > { %v13229_v39 = vadd.f32 %v13228_v28, %v13209_v36  ;;  %v13248_v40 = vpop.f32.mrf.mxu3  ;;  %v22554_v38 = vld.sshfl [vmem:[#allocation1 + $0x8] sm:$0xff pattern:$0x73625140]  ;;  %v979_v36 = vld [vmem:[%s19739_s9 + $0x1108] sm:$0xff] }
 0x479   : > { %v13268_v31 = vpop.f32.mrf.mxu0  ;;  %v382_v44 = vld [vmem:[%s19732_s7 + $0x460] sm:$0xff]  ;;  %v22572_v62 = vld.sshfl [vmem:[#allocation1 + $0x38] sm:$0xff pattern:$0x73625140] }
 0x47a   : > { %14665 = vmatpush.xpose.msra.mxu2 %v1740_v29  ;;  %14625 = vmatpush.xpose.msra.mxu0 %v1738_v30  ;;  %v13249_v46 = vadd.f32 %v13248_v40, %v13229_v39  ;;  %v13288_v47 = vpop.f32.mrf.mxu1  ;;  %v981_v30 = vld [vmem:[%s19739_s9 + $0x1118] sm:$0xff]  ;;  %2863 = vst [vmem:[#allocation1] ss:$4 sm:$0xff] %v382_v44  ;;  %v1751_v40 = vld [vmem:[%s19739_s9 + $0x2928] sm:$0x3] }
 0x47b   : > { %14685 = vmatpush.xpose.msra.mxu3 %v1741_v32  ;;  %14645 = vmatpush.xpose.msra.mxu1 %v1739_v33  ;;  %v1752_v32 = vld [vmem:[%s19739_s9 + $0x2930] sm:$0x3]  ;;  %v1750_v33 = vld [vmem:[%s19739_s9 + $0x2920] sm:$0x3]  ;;  %v1753_v39 = vld [vmem:[%s19739_s9 + $0x2938] sm:$0x3] }
 0x47c   : > { %v13269_v49 = vadd.f32 %v13268_v31, %v13249_v46  ;;  %14587 = vmatmul.f32.vlgmr.msrb.gmra.mxu2 %v22442_v60  ;;  %14547 = vmatmul.f32.vlgmr.msrb.gmra.mxu0 %v22444_v61 }
 0x47d   : > { %14607 = vmatmul.f32.vlgmr.msrb.gmra.mxu3 %v22446_v56  ;;  %14567 = vmatmul.f32.vlgmr.msrb.gmra.mxu1 %v22449_v3  ;;  %v976_v3 = vld [vmem:[%s19739_s9 + $0x10f0] sm:$0xff] }
 0x47e   : > { %v13289_v51 = vadd.f32 %v13288_v47, %v13269_v49  ;;  %14666 = vmatpush.xpose.msra.mxu2 %v972_v48  ;;  %14626 = vmatpush.xpose.msra.mxu0 %v970_v50  ;;  %v22568_v48 = vld.sshfl [vmem:[#allocation1 + $0x30] sm:$0xff pattern:$0x73625140]  ;;  %v22570_v50 = vld.sshfl [vmem:[#allocation1 + $0x20] sm:$0xff pattern:$0x73625140] }
 0x47f   : > { %v13308_v52 = vpop.f32.mrf.mxu2  ;;  %14686 = vmatpush.xpose.msra.mxu3 %v973_v53  ;;  %14646 = vmatpush.xpose.msra.mxu1 %v971_v1  ;;  %v982_v49 = vld [vmem:[%s19739_s9 + $0x1120] sm:$0xff]  ;;  %v383_v1 = vld [vmem:[%s19732_s7 + $0x468] sm:$0xff] }
 0x480   : > { %v13309_v60 = vadd.f32 %v13308_v52, %v13289_v51  ;;  %v13328_v61 = vpop.f32.mrf.mxu3  ;;  %v22575_v53 = vld.sshfl [vmem:[#allocation1 + $0x28] sm:$0xff pattern:$0x73625140]  ;;  %v983_v51 = vld [vmem:[%s19739_s9 + $0x1128] sm:$0xff] }
 0x481   : > { %v13348_v56 = vpop.f32.mrf.mxu0  ;;  %2864 = vst [vmem:[#allocation1 + $0x20] ss:$4 sm:$0xff] %v383_v1  ;;  %v22593_v19 = vld.sshfl [vmem:[#allocation1 + $0x18] sm:$0xff pattern:$0x73625140] }
 0x482   : > { %14745 = vmatpush.xpose.msrb.mxu2 %v1744_v54  ;;  %14705 = vmatpush.xpose.msrb.mxu0 %v1742_v55  ;;  %v13329_v4 = vadd.f32 %v13328_v61, %v13309_v60  ;;  %v13368_v5 = vpop.f32.mrf.mxu1  ;;  %v985_v55 = vld [vmem:[%s19739_s9 + $0x1138] sm:$0xff]  ;;  %v1755_v61 = vld [vmem:[%s19739_s9 + $0x2948] sm:$0x3] }
 0x483   : > { %14765 = vmatpush.xpose.msrb.mxu3 %v1745_v57  ;;  %14725 = vmatpush.xpose.msrb.mxu1 %v1743_v58  ;;  %v1756_v57 = vld [vmem:[%s19739_s9 + $0x2950] sm:$0x3]  ;;  %v1754_v58 = vld [vmem:[%s19739_s9 + $0x2940] sm:$0x3]  ;;  %v1757_v60 = vld [vmem:[%s19739_s9 + $0x2958] sm:$0x3] }
 0x484   : > { %v13349_v8 = vadd.f32 %v13348_v56, %v13329_v4  ;;  %14667 = vmatmul.f32.vlgmr.msra.gmra.mxu2 %v22463_v17  ;;  %14627 = vmatmul.f32.vlgmr.msra.gmra.mxu0 %v22465_v18 }
 0x485   : > { %14687 = vmatmul.f32.vlgmr.msra.gmra.mxu3 %v22467_v13  ;;  %14647 = vmatmul.f32.vlgmr.msra.gmra.mxu1 %v22470_v24  ;;  %v980_v24 = vld [vmem:[%s19739_s9 + $0x1110] sm:$0xff] }
 0x486   : > { %v13369_v7 = vadd.f32 %v13368_v5, %v13349_v8  ;;  %14746 = vmatpush.xpose.msrb.mxu2 %v976_v3  ;;  %14706 = vmatpush.xpose.msrb.mxu0 %v974_v6  ;;  %v22589_v3 = vld.sshfl [vmem:[#allocation1 + $0x10] sm:$0xff pattern:$0x73625140]  ;;  %v22591_v6 = vld.sshfl [vmem:[#allocation1] sm:$0xff pattern:$0x73625140] }
 0x487   : > { %v13388_v10 = vpop.f32.mrf.mxu2  ;;  %14766 = vmatpush.xpose.msrb.mxu3 %v977_v9  ;;  %14726 = vmatpush.xpose.msrb.mxu1 %v975_v22  ;;  %v986_v8 = vld [vmem:[%s19739_s9 + $0x1140] sm:$0xff]  ;;  %v384_v22 = vld [vmem:[%s19732_s7 + $0x470] sm:$0xff] }
 0x488   : > { %v13389_v17 = vadd.f32 %v13388_v10, %v13369_v7  ;;  %v13408_v18 = vpop.f32.mrf.mxu3  ;;  %v22596_v9 = vld.sshfl [vmem:[#allocation1 + $0x8] sm:$0xff pattern:$0x73625140]  ;;  %v987_v7 = vld [vmem:[%s19739_s9 + $0x1148] sm:$0xff] }
 0x489   : > { %v13428_v13 = vpop.f32.mrf.mxu0  ;;  %2873 = vst [vmem:[#allocation1] ss:$4 sm:$0xff] %v384_v22  ;;  %v22614_v44 = vld.sshfl [vmem:[#allocation1 + $0x38] sm:$0xff pattern:$0x73625140] }
 0x48a   : > { %14825 = vmatpush.xpose.msra.mxu2 %v1748_v11  ;;  %14785 = vmatpush.xpose.msra.mxu0 %v1746_v12  ;;  %v13409_v25 = vadd.f32 %v13408_v18, %v13389_v17  ;;  %v13448_v26 = vpop.f32.mrf.mxu1  ;;  %v989_v12 = vld [vmem:[%s19739_s9 + $0x1158] sm:$0xff]  ;;  %v1759_v18 = vld [vmem:[%s19739_s9 + $0x2968] sm:$0x3] }
 0x48b   : > { %14845 = vmatpush.xpose.msra.mxu3 %v1749_v14  ;;  %14805 = vmatpush.xpose.msra.mxu1 %v1747_v15  ;;  %v1760_v14 = vld [vmem:[%s19739_s9 + $0x2970] sm:$0x3]  ;;  %v1758_v15 = vld [vmem:[%s19739_s9 + $0x2960] sm:$0x3]  ;;  %v1761_v17 = vld [vmem:[%s19739_s9 + $0x2978] sm:$0x3] }
 0x48c   : > { %v13429_v29 = vadd.f32 %v13428_v13, %v13409_v25  ;;  %14747 = vmatmul.f32.vlgmr.msrb.gmra.mxu2 %v22484_v42  ;;  %14707 = vmatmul.f32.vlgmr.msrb.gmra.mxu0 %v22486_v43 }
 0x48d   : > { %14767 = vmatmul.f32.vlgmr.msrb.gmra.mxu3 %v22488_v37  ;;  %14727 = vmatmul.f32.vlgmr.msrb.gmra.mxu1 %v22491_v45  ;;  %v984_v45 = vld [vmem:[%s19739_s9 + $0x1130] sm:$0xff] }
 0x48e   : > { %v13449_v28 = vadd.f32 %v13448_v26, %v13429_v29  ;;  %14826 = vmatpush.xpose.msra.mxu2 %v980_v24  ;;  %14786 = vmatpush.xpose.msra.mxu0 %v978_v27  ;;  %v22610_v24 = vld.sshfl [vmem:[#allocation1 + $0x30] sm:$0xff pattern:$0x73625140]  ;;  %v22612_v27 = vld.sshfl [vmem:[#allocation1 + $0x20] sm:$0xff pattern:$0x73625140] }
 0x48f   : > { %v13468_v31 = vpop.f32.mrf.mxu2  ;;  %14846 = vmatpush.xpose.msra.mxu3 %v981_v30  ;;  %14806 = vmatpush.xpose.msra.mxu1 %v979_v36  ;;  %v990_v29 = vld [vmem:[%s19739_s9 + $0x1160] sm:$0xff]  ;;  %v385_v36 = vld [vmem:[%s19732_s7 + $0x478] sm:$0xff] }
 0x490   : > { %v13469_v42 = vadd.f32 %v13468_v31, %v13449_v28  ;;  %v13488_v43 = vpop.f32.mrf.mxu3  ;;  %v22617_v30 = vld.sshfl [vmem:[#allocation1 + $0x28] sm:$0xff pattern:$0x73625140]  ;;  %v991_v28 = vld [vmem:[%s19739_s9 + $0x1168] sm:$0xff] }
 0x491   : > { %v13508_v37 = vpop.f32.mrf.mxu0  ;;  %2874 = vst [vmem:[#allocation1 + $0x20] ss:$4 sm:$0xff] %v385_v36  ;;  %v22635_v1 = vld.sshfl [vmem:[#allocation1 + $0x18] sm:$0xff pattern:$0x73625140] }
 0x492   : > { %14905 = vmatpush.xpose.msrb.mxu2 %v1752_v32  ;;  %14865 = vmatpush.xpose.msrb.mxu0 %v1750_v33  ;;  %v13489_v46 = vadd.f32 %v13488_v43, %v13469_v42  ;;  %v13528_v47 = vpop.f32.mrf.mxu1  ;;  %v993_v33 = vld [vmem:[%s19739_s9 + $0x1178] sm:$0xff]  ;;  %v1763_v43 = vld [vmem:[%s19739_s9 + $0x2988] sm:$0x3] }
 0x493   : > { %14925 = vmatpush.xpose.msrb.mxu3 %v1753_v39  ;;  %14885 = vmatpush.xpose.msrb.mxu1 %v1751_v40  ;;  %v1764_v39 = vld [vmem:[%s19739_s9 + $0x2990] sm:$0x3]  ;;  %v1762_v40 = vld [vmem:[%s19739_s9 + $0x2980] sm:$0x3]  ;;  %v1765_v42 = vld [vmem:[%s19739_s9 + $0x2998] sm:$0x3] }
 0x494   : > { %v13509_v54 = vadd.f32 %v13508_v37, %v13489_v46  ;;  %14827 = vmatmul.f32.vlgmr.msra.gmra.mxu2 %v22505_v63  ;;  %14787 = vmatmul.f32.vlgmr.msra.gmra.mxu0 %v22507_v0 }
 0x495   : > { %14847 = vmatmul.f32.vlgmr.msra.gmra.mxu3 %v22509_v59  ;;  %14807 = vmatmul.f32.vlgmr.msra.gmra.mxu1 %v22512_v2  ;;  %v988_v2 = vld [vmem:[%s19739_s9 + $0x1150] sm:$0xff] }
 0x496   : > { %v13529_v52 = vadd.f32 %v13528_v47, %v13509_v54  ;;  %14906 = vmatpush.xpose.msrb.mxu2 %v984_v45  ;;  %14866 = vmatpush.xpose.msrb.mxu0 %v982_v49  ;;  %v22631_v45 = vld.sshfl [vmem:[#allocation1 + $0x10] sm:$0xff pattern:$0x73625140]  ;;  %v22633_v49 = vld.sshfl [vmem:[#allocation1] sm:$0xff pattern:$0x73625140] }
 0x497   : > { %v13548_v56 = vpop.f32.mrf.mxu2  ;;  %14926 = vmatpush.xpose.msrb.mxu3 %v985_v55  ;;  %14886 = vmatpush.xpose.msrb.mxu1 %v983_v51  ;;  %v994_v54 = vld [vmem:[%s19739_s9 + $0x1180] sm:$0xff] }
 0x498   : > { %v13549_v63 = vadd.f32 %v13548_v56, %v13529_v52  ;;  %v13568_v0 = vpop.f32.mrf.mxu3  ;;  %v22638_v55 = vld.sshfl [vmem:[#allocation1 + $0x8] sm:$0xff pattern:$0x73625140]  ;;  %v995_v52 = vld [vmem:[%s19739_s9 + $0x1188] sm:$0xff] }
 0x499   : > { %v13588_v59 = vpop.f32.mrf.mxu0  ;;  %v386_v51 = vld [vmem:[%s19732_s7 + $0x480] sm:$0xff]  ;;  %v22656_v22 = vld.sshfl [vmem:[#allocation1 + $0x38] sm:$0xff pattern:$0x73625140] }
 0x49a   : > { %14985 = vmatpush.xpose.msra.mxu2 %v1756_v57  ;;  %14945 = vmatpush.xpose.msra.mxu0 %v1754_v58  ;;  %v13569_v4 = vadd.f32 %v13568_v0, %v13549_v63  ;;  %v13608_v5 = vpop.f32.mrf.mxu1  ;;  %v997_v58 = vld [vmem:[%s19739_s9 + $0x1198] sm:$0xff]  ;;  %2883 = vst [vmem:[#allocation1] ss:$4 sm:$0xff] %v386_v51  ;;  %v1767_v0 = vld [vmem:[%s19739_s9 + $0x29a8] sm:$0x3] }
 0x49b   : > { %15005 = vmatpush.xpose.msra.mxu3 %v1757_v60  ;;  %14965 = vmatpush.xpose.msra.mxu1 %v1755_v61  ;;  %v1768_v60 = vld [vmem:[%s19739_s9 + $0x29b0] sm:$0x3]  ;;  %v1766_v61 = vld [vmem:[%s19739_s9 + $0x29a0] sm:$0x3]  ;;  %v1769_v63 = vld [vmem:[%s19739_s9 + $0x29b8] sm:$0x3] }
 0x49c   : > { %v13589_v11 = vadd.f32 %v13588_v59, %v13569_v4  ;;  %14907 = vmatmul.f32.vlgmr.msrb.gmra.mxu2 %v22526_v20  ;;  %14867 = vmatmul.f32.vlgmr.msrb.gmra.mxu0 %v22528_v21 }
 0x49d   : > { %14927 = vmatmul.f32.vlgmr.msrb.gmra.mxu3 %v22530_v16  ;;  %14887 = vmatmul.f32.vlgmr.msrb.gmra.mxu1 %v22533_v23  ;;  %v992_v23 = vld [vmem:[%s19739_s9 + $0x1170] sm:$0xff] }
 0x49e   : > { %v13609_v10 = vadd.f32 %v13608_v5, %v13589_v11  ;;  %14986 = vmatpush.xpose.msra.mxu2 %v988_v2  ;;  %14946 = vmatpush.xpose.msra.mxu0 %v986_v8  ;;  %v22652_v2 = vld.sshfl [vmem:[#allocation1 + $0x30] sm:$0xff pattern:$0x73625140]  ;;  %v22654_v8 = vld.sshfl [vmem:[#allocation1 + $0x20] sm:$0xff pattern:$0x73625140] }
 0x49f   : > { %v13628_v13 = vpop.f32.mrf.mxu2  ;;  %15006 = vmatpush.xpose.msra.mxu3 %v989_v12  ;;  %14966 = vmatpush.xpose.msra.mxu1 %v987_v7  ;;  %v998_v11 = vld [vmem:[%s19739_s9 + $0x11a0] sm:$0xff]  ;;  %v387_v7 = vld [vmem:[%s19732_s7 + $0x488] sm:$0xff] }
 0x4a0   : > { %v13629_v20 = vadd.f32 %v13628_v13, %v13609_v10  ;;  %v13648_v21 = vpop.f32.mrf.mxu3  ;;  %v22659_v12 = vld.sshfl [vmem:[#allocation1 + $0x28] sm:$0xff pattern:$0x73625140]  ;;  %v999_v10 = vld [vmem:[%s19739_s9 + $0x11a8] sm:$0xff] }
 0x4a1   : > { %v13668_v16 = vpop.f32.mrf.mxu0  ;;  %2884 = vst [vmem:[#allocation1 + $0x20] ss:$4 sm:$0xff] %v387_v7  ;;  %v22677_v36 = vld.sshfl [vmem:[#allocation1 + $0x18] sm:$0xff pattern:$0x73625140] }
 0x4a2   : > { %15065 = vmatpush.xpose.msrb.mxu2 %v1760_v14  ;;  %15025 = vmatpush.xpose.msrb.mxu0 %v1758_v15  ;;  %v13649_v25 = vadd.f32 %v13648_v21, %v13629_v20  ;;  %v13688_v26 = vpop.f32.mrf.mxu1  ;;  %v1001_v15 = vld [vmem:[%s19739_s9 + $0x11b8] sm:$0xff]  ;;  %v1771_v21 = vld [vmem:[%s19739_s9 + $0x29c8] sm:$0x3] }
 0x4a3   : > { %15085 = vmatpush.xpose.msrb.mxu3 %v1761_v17  ;;  %15045 = vmatpush.xpose.msrb.mxu1 %v1759_v18  ;;  %v1772_v17 = vld [vmem:[%s19739_s9 + $0x29d0] sm:$0x3]  ;;  %v1770_v18 = vld [vmem:[%s19739_s9 + $0x29c0] sm:$0x3]  ;;  %v1773_v20 = vld [vmem:[%s19739_s9 + $0x29d8] sm:$0x3] }
 0x4a4   : > { %v13669_v32 = vadd.f32 %v13668_v16, %v13649_v25  ;;  %14987 = vmatmul.f32.vlgmr.msra.gmra.mxu2 %v22547_v34  ;;  %14947 = vmatmul.f32.vlgmr.msra.gmra.mxu0 %v22549_v35 }
 0x4a5   : > { %15007 = vmatmul.f32.vlgmr.msra.gmra.mxu3 %v22551_v41  ;;  %14967 = vmatmul.f32.vlgmr.msra.gmra.mxu1 %v22554_v38  ;;  %v996_v38 = vld [vmem:[%s19739_s9 + $0x1190] sm:$0xff] }
 0x4a6   : > { %v13689_v31 = vadd.f32 %v13688_v26, %v13669_v32  ;;  %15066 = vmatpush.xpose.msrb.mxu2 %v992_v23  ;;  %15026 = vmatpush.xpose.msrb.mxu0 %v990_v29  ;;  %v22673_v23 = vld.sshfl [vmem:[#allocation1 + $0x10] sm:$0xff pattern:$0x73625140]  ;;  %v22675_v29 = vld.sshfl [vmem:[#allocation1] sm:$0xff pattern:$0x73625140] }
 0x4a7   : > { %v13708_v37 = vpop.f32.mrf.mxu2  ;;  %15086 = vmatpush.xpose.msrb.mxu3 %v993_v33  ;;  %15046 = vmatpush.xpose.msrb.mxu1 %v991_v28  ;;  %v1002_v32 = vld [vmem:[%s19739_s9 + $0x11c0] sm:$0xff]  ;;  %v388_v28 = vld [vmem:[%s19732_s7 + $0x490] sm:$0xff] }
 0x4a8   : > { %v13709_v34 = vadd.f32 %v13708_v37, %v13689_v31  ;;  %v13728_v35 = vpop.f32.mrf.mxu3  ;;  %v22680_v33 = vld.sshfl [vmem:[#allocation1 + $0x8] sm:$0xff pattern:$0x73625140]  ;;  %v1003_v31 = vld [vmem:[%s19739_s9 + $0x11c8] sm:$0xff] }
 0x4a9   : > { %v13748_v41 = vpop.f32.mrf.mxu0  ;;  %2893 = vst [vmem:[#allocation1] ss:$4 sm:$0xff] %v388_v28  ;;  %v22698_v51 = vld.sshfl [vmem:[#allocation1 + $0x38] sm:$0xff pattern:$0x73625140] }
 0x4aa   : > { %15145 = vmatpush.xpose.msra.mxu2 %v1764_v39  ;;  %15105 = vmatpush.xpose.msra.mxu0 %v1762_v40  ;;  %v13729_v46 = vadd.f32 %v13728_v35, %v13709_v34  ;;  %v13768_v47 = vpop.f32.mrf.mxu1  ;;  %v1005_v40 = vld [vmem:[%s19739_s9 + $0x11d8] sm:$0xff]  ;;  %v1775_v35 = vld [vmem:[%s19739_s9 + $0x29e8] sm:$0x3] }
 0x4ab   : > { %15165 = vmatpush.xpose.msra.mxu3 %v1765_v42  ;;  %15125 = vmatpush.xpose.msra.mxu1 %v1763_v43  ;;  %v1776_v42 = vld [vmem:[%s19739_s9 + $0x29f0] sm:$0x3]  ;;  %v1774_v43 = vld [vmem:[%s19739_s9 + $0x29e0] sm:$0x3]  ;;  %v1777_v34 = vld [vmem:[%s19739_s9 + $0x29f8] sm:$0x3] }
 0x4ac   : > { %v13749_v57 = vadd.f32 %v13748_v41, %v13729_v46  ;;  %15067 = vmatmul.f32.vlgmr.msrb.gmra.mxu2 %v22568_v48  ;;  %15027 = vmatmul.f32.vlgmr.msrb.gmra.mxu0 %v22570_v50 }
 0x4ad   : > { %15087 = vmatmul.f32.vlgmr.msrb.gmra.mxu3 %v22572_v62  ;;  %15047 = vmatmul.f32.vlgmr.msrb.gmra.mxu1 %v22575_v53  ;;  %v1000_v53 = vld [vmem:[%s19739_s9 + $0x11b0] sm:$0xff] }
 0x4ae   : > { %v13769_v56 = vadd.f32 %v13768_v47, %v13749_v57  ;;  %15146 = vmatpush.xpose.msra.mxu2 %v996_v38  ;;  %15106 = vmatpush.xpose.msra.mxu0 %v994_v54  ;;  %v22694_v38 = vld.sshfl [vmem:[#allocation1 + $0x30] sm:$0xff pattern:$0x73625140]  ;;  %v22696_v54 = vld.sshfl [vmem:[#allocation1 + $0x20] sm:$0xff pattern:$0x73625140] }
 0x4af   : > { %v13788_v59 = vpop.f32.mrf.mxu2  ;;  %15166 = vmatpush.xpose.msra.mxu3 %v997_v58  ;;  %15126 = vmatpush.xpose.msra.mxu1 %v995_v52  ;;  %v1006_v57 = vld [vmem:[%s19739_s9 + $0x11e0] sm:$0xff]  ;;  %v389_v52 = vld [vmem:[%s19732_s7 + $0x498] sm:$0xff] }
 0x4b0   : > { %v13789_v48 = vadd.f32 %v13788_v59, %v13769_v56  ;;  %v13808_v50 = vpop.f32.mrf.mxu3  ;;  %v22701_v58 = vld.sshfl [vmem:[#allocation1 + $0x28] sm:$0xff pattern:$0x73625140]  ;;  %v1007_v56 = vld [vmem:[%s19739_s9 + $0x11e8] sm:$0xff] }
 0x4b1   : > { %v13828_v62 = vpop.f32.mrf.mxu0  ;;  %2894 = vst [vmem:[#allocation1 + $0x20] ss:$4 sm:$0xff] %v389_v52  ;;  %v22719_v7 = vld.sshfl [vmem:[#allocation1 + $0x18] sm:$0xff pattern:$0x73625140] }
 0x4b2   : > { %15225 = vmatpush.xpose.msrb.mxu2 %v1768_v60  ;;  %15185 = vmatpush.xpose.msrb.mxu0 %v1766_v61  ;;  %v13809_v4 = vadd.f32 %v13808_v50, %v13789_v48  ;;  %v13848_v5 = vpop.f32.mrf.mxu1  ;;  %v1009_v61 = vld [vmem:[%s19739_s9 + $0x11f8] sm:$0xff]  ;;  %v1779_v50 = vld [vmem:[%s19739_s9 + $0x2a08] sm:$0x3] }
 0x4b3   : > { %15245 = vmatpush.xpose.msrb.mxu3 %v1769_v63  ;;  %15205 = vmatpush.xpose.msrb.mxu1 %v1767_v0  ;;  %v1780_v63 = vld [vmem:[%s19739_s9 + $0x2a10] sm:$0x3]  ;;  %v1778_v0 = vld [vmem:[%s19739_s9 + $0x2a00] sm:$0x3]  ;;  %v1781_v48 = vld [vmem:[%s19739_s9 + $0x2a18] sm:$0x3] }
 0x4b4   : > { %v13829_v14 = vadd.f32 %v13828_v62, %v13809_v4  ;;  %15147 = vmatmul.f32.vlgmr.msra.gmra.mxu2 %v22589_v3  ;;  %15107 = vmatmul.f32.vlgmr.msra.gmra.mxu0 %v22591_v6 }
 0x4b5   : > { %15167 = vmatmul.f32.vlgmr.msra.gmra.mxu3 %v22593_v19  ;;  %15127 = vmatmul.f32.vlgmr.msra.gmra.mxu1 %v22596_v9  ;;  %v1004_v9 = vld [vmem:[%s19739_s9 + $0x11d0] sm:$0xff] }
 0x4b6   : > { %v13849_v13 = vadd.f32 %v13848_v5, %v13829_v14  ;;  %15226 = vmatpush.xpose.msrb.mxu2 %v1000_v53  ;;  %15186 = vmatpush.xpose.msrb.mxu0 %v998_v11  ;;  %v22715_v53 = vld.sshfl [vmem:[#allocation1 + $0x10] sm:$0xff pattern:$0x73625140]  ;;  %v22717_v11 = vld.sshfl [vmem:[#allocation1] sm:$0xff pattern:$0x73625140] }
 0x4b7   : > { %v13868_v16 = vpop.f32.mrf.mxu2  ;;  %15246 = vmatpush.xpose.msrb.mxu3 %v1001_v15  ;;  %15206 = vmatpush.xpose.msrb.mxu1 %v999_v10  ;;  %v1010_v14 = vld [vmem:[%s19739_s9 + $0x1200] sm:$0xff] }
 0x4b8   : > { %v13869_v3 = vadd.f32 %v13868_v16, %v13849_v13  ;;  %v13888_v6 = vpop.f32.mrf.mxu3  ;;  %v22722_v15 = vld.sshfl [vmem:[#allocation1 + $0x8] sm:$0xff pattern:$0x73625140]  ;;  %v1011_v13 = vld [vmem:[%s19739_s9 + $0x1208] sm:$0xff] }
 0x4b9   : > { %v13908_v19 = vpop.f32.mrf.mxu0  ;;  %v390_v10 = vld [vmem:[%s19732_s7 + $0x4a0] sm:$0xff]  ;;  %v22740_v28 = vld.sshfl [vmem:[#allocation1 + $0x38] sm:$0xff pattern:$0x73625140] }
 0x4ba   : > { %15305 = vmatpush.xpose.msra.mxu2 %v1772_v17  ;;  %15265 = vmatpush.xpose.msra.mxu0 %v1770_v18  ;;  %v13889_v25 = vadd.f32 %v13888_v6, %v13869_v3  ;;  %v13928_v26 = vpop.f32.mrf.mxu1  ;;  %v1013_v18 = vld [vmem:[%s19739_s9 + $0x1218] sm:$0xff]  ;;  %2903 = vst [vmem:[#allocation1] ss:$4 sm:$0xff] %v390_v10  ;;  %v1783_v6 = vld [vmem:[%s19739_s9 + $0x2a28] sm:$0x3] }
 0x4bb   : > { %15325 = vmatpush.xpose.msra.mxu3 %v1773_v20  ;;  %15285 = vmatpush.xpose.msra.mxu1 %v1771_v21  ;;  %v1784_v20 = vld [vmem:[%s19739_s9 + $0x2a30] sm:$0x3]  ;;  %v1782_v21 = vld [vmem:[%s19739_s9 + $0x2a20] sm:$0x3]  ;;  %v1785_v3 = vld [vmem:[%s19739_s9 + $0x2a38] sm:$0x3] }
 0x4bc   : > { %v13909_v39 = vadd.f32 %v13908_v19, %v13889_v25  ;;  %15227 = vmatmul.f32.vlgmr.msrb.gmra.mxu2 %v22610_v24  ;;  %15187 = vmatmul.f32.vlgmr.msrb.gmra.mxu0 %v22612_v27 }
 0x4bd   : > { %15247 = vmatmul.f32.vlgmr.msrb.gmra.mxu3 %v22614_v44  ;;  %15207 = vmatmul.f32.vlgmr.msrb.gmra.mxu1 %v22617_v30  ;;  %v1008_v30 = vld [vmem:[%s19739_s9 + $0x11f0] sm:$0xff] }
 0x4be   : > { %v13929_v37 = vadd.f32 %v13928_v26, %v13909_v39  ;;  %15306 = vmatpush.xpose.msra.mxu2 %v1004_v9  ;;  %15266 = vmatpush.xpose.msra.mxu0 %v1002_v32  ;;  %v22736_v9 = vld.sshfl [vmem:[#allocation1 + $0x30] sm:$0xff pattern:$0x73625140]  ;;  %v22738_v32 = vld.sshfl [vmem:[#allocation1 + $0x20] sm:$0xff pattern:$0x73625140] }
 0x4bf   : > { %v13948_v41 = vpop.f32.mrf.mxu2  ;;  %15326 = vmatpush.xpose.msra.mxu3 %v1005_v40  ;;  %15286 = vmatpush.xpose.msra.mxu1 %v1003_v31  ;;  %v1014_v39 = vld [vmem:[%s19739_s9 + $0x1220] sm:$0xff]  ;;  %v391_v31 = vld [vmem:[%s19732_s7 + $0x4a8] sm:$0xff] }
 0x4c0   : > { %v13949_v24 = vadd.f32 %v13948_v41, %v13929_v37  ;;  %v13968_v27 = vpop.f32.mrf.mxu3  ;;  %v22743_v40 = vld.sshfl [vmem:[#allocation1 + $0x28] sm:$0xff pattern:$0x73625140]  ;;  %v1015_v37 = vld [vmem:[%s19739_s9 + $0x1228] sm:$0xff] }
 0x4c1   : > { %v13988_v44 = vpop.f32.mrf.mxu0  ;;  %2904 = vst [vmem:[#allocation1 + $0x20] ss:$4 sm:$0xff] %v391_v31  ;;  %v22761_v52 = vld.sshfl [vmem:[#allocation1 + $0x18] sm:$0xff pattern:$0x73625140] }
 0x4c2   : > { %15385 = vmatpush.xpose.msrb.mxu2 %v1776_v42  ;;  %15345 = vmatpush.xpose.msrb.mxu0 %v1774_v43  ;;  %v13969_v46 = vadd.f32 %v13968_v27, %v13949_v24  ;;  %v14008_v47 = vpop.f32.mrf.mxu1  ;;  %v1017_v43 = vld [vmem:[%s19739_s9 + $0x1238] sm:$0xff]  ;;  %v1787_v27 = vld [vmem:[%s19739_s9 + $0x2a48] sm:$0x3] }
 0x4c3   : > { %15405 = vmatpush.xpose.msrb.mxu3 %v1777_v34  ;;  %15365 = vmatpush.xpose.msrb.mxu1 %v1775_v35  ;;  %v1788_v34 = vld [vmem:[%s19739_s9 + $0x2a50] sm:$0x3]  ;;  %v1786_v35 = vld [vmem:[%s19739_s9 + $0x2a40] sm:$0x3]  ;;  %v1789_v24 = vld [vmem:[%s19739_s9 + $0x2a58] sm:$0x3] }
 0x4c4   : > { %v13989_v60 = vadd.f32 %v13988_v44, %v13969_v46  ;;  %15307 = vmatmul.f32.vlgmr.msra.gmra.mxu2 %v22631_v45  ;;  %15267 = vmatmul.f32.vlgmr.msra.gmra.mxu0 %v22633_v49 }
 0x4c5   : > { %15327 = vmatmul.f32.vlgmr.msra.gmra.mxu3 %v22635_v1  ;;  %15287 = vmatmul.f32.vlgmr.msra.gmra.mxu1 %v22638_v55  ;;  %v1012_v55 = vld [vmem:[%s19739_s9 + $0x1210] sm:$0xff] }
 0x4c6   : > { %v14009_v59 = vadd.f32 %v14008_v47, %v13989_v60  ;;  %15386 = vmatpush.xpose.msrb.mxu2 %v1008_v30  ;;  %15346 = vmatpush.xpose.msrb.mxu0 %v1006_v57  ;;  %v22757_v30 = vld.sshfl [vmem:[#allocation1 + $0x10] sm:$0xff pattern:$0x73625140]  ;;  %v22759_v57 = vld.sshfl [vmem:[#allocation1] sm:$0xff pattern:$0x73625140] }
 0x4c7   : > { %v14028_v62 = vpop.f32.mrf.mxu2  ;;  %15406 = vmatpush.xpose.msrb.mxu3 %v1009_v61  ;;  %15366 = vmatpush.xpose.msrb.mxu1 %v1007_v56  ;;  %v1018_v60 = vld [vmem:[%s19739_s9 + $0x1240] sm:$0xff]  ;;  %v392_v56 = vld [vmem:[%s19732_s7 + $0x4b0] sm:$0xff] }
 0x4c8   : > { %v14029_v45 = vadd.f32 %v14028_v62, %v14009_v59  ;;  %v14048_v49 = vpop.f32.mrf.mxu3  ;;  %v22764_v61 = vld.sshfl [vmem:[#allocation1 + $0x8] sm:$0xff pattern:$0x73625140]  ;;  %v1019_v59 = vld [vmem:[%s19739_s9 + $0x1248] sm:$0xff] }
 0x4c9   : > { %v14068_v1 = vpop.f32.mrf.mxu0  ;;  %2913 = vst [vmem:[#allocation1] ss:$4 sm:$0xff] %v392_v56  ;;  %v22782_v10 = vld.sshfl [vmem:[#allocation1 + $0x38] sm:$0xff pattern:$0x73625140] }
 0x4ca   : > { %15465 = vmatpush.xpose.msra.mxu2 %v1780_v63  ;;  %15425 = vmatpush.xpose.msra.mxu0 %v1778_v0  ;;  %v14049_v4 = vadd.f32 %v14048_v49, %v14029_v45  ;;  %v14088_v5 = vpop.f32.mrf.mxu1  ;;  %v1021_v0 = vld [vmem:[%s19739_s9 + $0x1258] sm:$0xff]  ;;  %v1791_v49 = vld [vmem:[%s19739_s9 + $0x2a68] sm:$0x3] }
 0x4cb   : > { %15485 = vmatpush.xpose.msra.mxu3 %v1781_v48  ;;  %15445 = vmatpush.xpose.msra.mxu1 %v1779_v50  ;;  %v1792_v48 = vld [vmem:[%s19739_s9 + $0x2a70] sm:$0x3]  ;;  %v1790_v50 = vld [vmem:[%s19739_s9 + $0x2a60] sm:$0x3]  ;;  %v1793_v45 = vld [vmem:[%s19739_s9 + $0x2a78] sm:$0x3] }
 0x4cc   : > { %v14069_v17 = vadd.f32 %v14068_v1, %v14049_v4  ;;  %15387 = vmatmul.f32.vlgmr.msrb.gmra.mxu2 %v22652_v2  ;;  %15347 = vmatmul.f32.vlgmr.msrb.gmra.mxu0 %v22654_v8 }
 0x4cd   : > { %15407 = vmatmul.f32.vlgmr.msrb.gmra.mxu3 %v22656_v22  ;;  %15367 = vmatmul.f32.vlgmr.msrb.gmra.mxu1 %v22659_v12  ;;  %v1016_v12 = vld [vmem:[%s19739_s9 + $0x1230] sm:$0xff] }
 0x4ce   : > { %v14089_v16 = vadd.f32 %v14088_v5, %v14069_v17  ;;  %15466 = vmatpush.xpose.msra.mxu2 %v1012_v55  ;;  %15426 = vmatpush.xpose.msra.mxu0 %v1010_v14  ;;  %v22778_v55 = vld.sshfl [vmem:[#allocation1 + $0x30] sm:$0xff pattern:$0x73625140]  ;;  %v22780_v14 = vld.sshfl [vmem:[#allocation1 + $0x20] sm:$0xff pattern:$0x73625140] }
 0x4cf   : > { %v14108_v19 = vpop.f32.mrf.mxu2  ;;  %15486 = vmatpush.xpose.msra.mxu3 %v1013_v18  ;;  %15446 = vmatpush.xpose.msra.mxu1 %v1011_v13  ;;  %v1022_v17 = vld [vmem:[%s19739_s9 + $0x1260] sm:$0xff]  ;;  %v393_v13 = vld [vmem:[%s19732_s7 + $0x4b8] sm:$0xff] }
 0x4d0   : > { %v14109_v2 = vadd.f32 %v14108_v19, %v14089_v16  ;;  %v14128_v8 = vpop.f32.mrf.mxu3  ;;  %v22785_v18 = vld.sshfl [vmem:[#allocation1 + $0x28] sm:$0xff pattern:$0x73625140]  ;;  %v1023_v16 = vld [vmem:[%s19739_s9 + $0x1268] sm:$0xff] }
 0x4d1   : > { %v14148_v22 = vpop.f32.mrf.mxu0  ;;  %2914 = vst [vmem:[#allocation1 + $0x20] ss:$4 sm:$0xff] %v393_v13  ;;  %v22803_v31 = vld.sshfl [vmem:[#allocation1 + $0x18] sm:$0xff pattern:$0x73625140] }
 0x4d2   : > { %15545 = vmatpush.xpose.msrb.mxu2 %v1784_v20  ;;  %15505 = vmatpush.xpose.msrb.mxu0 %v1782_v21  ;;  %v14129_v25 = vadd.f32 %v14128_v8, %v14109_v2  ;;  %v14168_v26 = vpop.f32.mrf.mxu1  ;;  %v1025_v21 = vld [vmem:[%s19739_s9 + $0x1278] sm:$0xff]  ;;  %v1795_v8 = vld [vmem:[%s19739_s9 + $0x2a88] sm:$0x3] }
 0x4d3   : > { %15565 = vmatpush.xpose.msrb.mxu3 %v1785_v3  ;;  %15525 = vmatpush.xpose.msrb.mxu1 %v1783_v6  ;;  %v1796_v3 = vld [vmem:[%s19739_s9 + $0x2a90] sm:$0x3]  ;;  %v1794_v6 = vld [vmem:[%s19739_s9 + $0x2a80] sm:$0x3]  ;;  %v1797_v2 = vld [vmem:[%s19739_s9 + $0x2a98] sm:$0x3] }
 0x4d4   : > { %v14149_v42 = vadd.f32 %v14148_v22, %v14129_v25  ;;  %15467 = vmatmul.f32.vlgmr.msra.gmra.mxu2 %v22673_v23  ;;  %15427 = vmatmul.f32.vlgmr.msra.gmra.mxu0 %v22675_v29 }
 0x4d5   : > { %15487 = vmatmul.f32.vlgmr.msra.gmra.mxu3 %v22677_v36  ;;  %15447 = vmatmul.f32.vlgmr.msra.gmra.mxu1 %v22680_v33  ;;  %v1020_v33 = vld [vmem:[%s19739_s9 + $0x1250] sm:$0xff] }
 0x4d6   : > { %v14169_v41 = vadd.f32 %v14168_v26, %v14149_v42  ;;  %15546 = vmatpush.xpose.msrb.mxu2 %v1016_v12  ;;  %15506 = vmatpush.xpose.msrb.mxu0 %v1014_v39  ;;  %v22799_v12 = vld.sshfl [vmem:[#allocation1 + $0x10] sm:$0xff pattern:$0x73625140]  ;;  %v22801_v39 = vld.sshfl [vmem:[#allocation1] sm:$0xff pattern:$0x73625140] }
 0x4d7   : > { %v14188_v44 = vpop.f32.mrf.mxu2  ;;  %15566 = vmatpush.xpose.msrb.mxu3 %v1017_v43  ;;  %15526 = vmatpush.xpose.msrb.mxu1 %v1015_v37  ;;  %v1026_v42 = vld [vmem:[%s19739_s9 + $0x1280] sm:$0xff] }
 0x4d8   : > { %v14189_v23 = vadd.f32 %v14188_v44, %v14169_v41  ;;  %v14208_v29 = vpop.f32.mrf.mxu3  ;;  %v22806_v43 = vld.sshfl [vmem:[#allocation1 + $0x8] sm:$0xff pattern:$0x73625140]  ;;  %v1027_v41 = vld [vmem:[%s19739_s9 + $0x1288] sm:$0xff] }
 0x4d9   : > { %v14228_v36 = vpop.f32.mrf.mxu0  ;;  %v394_v37 = vld [vmem:[%s19732_s7 + $0x4c0] sm:$0xff]  ;;  %v22824_v56 = vld.sshfl [vmem:[#allocation1 + $0x38] sm:$0xff pattern:$0x73625140] }
 0x4da   : > { %15625 = vmatpush.xpose.msra.mxu2 %v1788_v34  ;;  %15585 = vmatpush.xpose.msra.mxu0 %v1786_v35  ;;  %v14209_v46 = vadd.f32 %v14208_v29, %v14189_v23  ;;  %v14248_v47 = vpop.f32.mrf.mxu1  ;;  %v1029_v35 = vld [vmem:[%s19739_s9 + $0x1298] sm:$0xff]  ;;  %2923 = vst [vmem:[#allocation1] ss:$4 sm:$0xff] %v394_v37  ;;  %v1799_v29 = vld [vmem:[%s19739_s9 + $0x2aa8] sm:$0x3] }
 0x4db   : > { %15645 = vmatpush.xpose.msra.mxu3 %v1789_v24  ;;  %15605 = vmatpush.xpose.msra.mxu1 %v1787_v27  ;;  %v1800_v24 = vld [vmem:[%s19739_s9 + $0x2ab0] sm:$0x3]  ;;  %v1798_v27 = vld [vmem:[%s19739_s9 + $0x2aa0] sm:$0x3]  ;;  %v1801_v23 = vld [vmem:[%s19739_s9 + $0x2ab8] sm:$0x3] }
 0x4dc   : > { %v14229_v63 = vadd.f32 %v14228_v36, %v14209_v46  ;;  %15547 = vmatmul.f32.vlgmr.msrb.gmra.mxu2 %v22694_v38  ;;  %15507 = vmatmul.f32.vlgmr.msrb.gmra.mxu0 %v22696_v54 }
 0x4dd   : > { %15567 = vmatmul.f32.vlgmr.msrb.gmra.mxu3 %v22698_v51  ;;  %15527 = vmatmul.f32.vlgmr.msrb.gmra.mxu1 %v22701_v58  ;;  %v1024_v58 = vld [vmem:[%s19739_s9 + $0x1270] sm:$0xff] }
 0x4de   : > { %v14249_v62 = vadd.f32 %v14248_v47, %v14229_v63  ;;  %15626 = vmatpush.xpose.msra.mxu2 %v1020_v33  ;;  %15586 = vmatpush.xpose.msra.mxu0 %v1018_v60  ;;  %v22820_v33 = vld.sshfl [vmem:[#allocation1 + $0x30] sm:$0xff pattern:$0x73625140]  ;;  %v22822_v60 = vld.sshfl [vmem:[#allocation1 + $0x20] sm:$0xff pattern:$0x73625140] }
 0x4df   : > { %v14268_v1 = vpop.f32.mrf.mxu2  ;;  %15646 = vmatpush.xpose.msra.mxu3 %v1021_v0  ;;  %15606 = vmatpush.xpose.msra.mxu1 %v1019_v59  ;;  %v1030_v63 = vld [vmem:[%s19739_s9 + $0x12a0] sm:$0xff]  ;;  %v395_v59 = vld [vmem:[%s19732_s7 + $0x4c8] sm:$0xff] }
 0x4e0   : > { %v14269_v38 = vadd.f32 %v14268_v1, %v14249_v62  ;;  %v14288_v54 = vpop.f32.mrf.mxu3  ;;  %v22827_v0 = vld.sshfl [vmem:[#allocation1 + $0x28] sm:$0xff pattern:$0x73625140]  ;;  %v1031_v62 = vld [vmem:[%s19739_s9 + $0x12a8] sm:$0xff] }
 0x4e1   : > { %v14308_v51 = vpop.f32.mrf.mxu0  ;;  %2924 = vst [vmem:[#allocation1 + $0x20] ss:$4 sm:$0xff] %v395_v59  ;;  %v22845_v13 = vld.sshfl [vmem:[#allocation1 + $0x18] sm:$0xff pattern:$0x73625140] }
 0x4e2   : > { %15705 = vmatpush.xpose.msrb.mxu2 %v1792_v48  ;;  %15665 = vmatpush.xpose.msrb.mxu0 %v1790_v50  ;;  %v14289_v4 = vadd.f32 %v14288_v54, %v14269_v38  ;;  %v14328_v5 = vpop.f32.mrf.mxu1  ;;  %v1033_v50 = vld [vmem:[%s19739_s9 + $0x12b8] sm:$0xff]  ;;  %v1803_v54 = vld [vmem:[%s19739_s9 + $0x2ac8] sm:$0x3] }
 0x4e3   : > { %15725 = vmatpush.xpose.msrb.mxu3 %v1793_v45  ;;  %15685 = vmatpush.xpose.msrb.mxu1 %v1791_v49  ;;  %v1804_v45 = vld [vmem:[%s19739_s9 + $0x2ad0] sm:$0x3]  ;;  %v1802_v49 = vld [vmem:[%s19739_s9 + $0x2ac0] sm:$0x3]  ;;  %v1805_v38 = vld [vmem:[%s19739_s9 + $0x2ad8] sm:$0x3] }
 0x4e4   : > { %v14309_v20 = vadd.f32 %v14308_v51, %v14289_v4  ;;  %15627 = vmatmul.f32.vlgmr.msra.gmra.mxu2 %v22715_v53  ;;  %15587 = vmatmul.f32.vlgmr.msra.gmra.mxu0 %v22717_v11 }
 0x4e5   : > { %15647 = vmatmul.f32.vlgmr.msra.gmra.mxu3 %v22719_v7  ;;  %15607 = vmatmul.f32.vlgmr.msra.gmra.mxu1 %v22722_v15  ;;  %v1028_v15 = vld [vmem:[%s19739_s9 + $0x1290] sm:$0xff] }
 0x4e6   : > { %v14329_v19 = vadd.f32 %v14328_v5, %v14309_v20  ;;  %15706 = vmatpush.xpose.msrb.mxu2 %v1024_v58  ;;  %15666 = vmatpush.xpose.msrb.mxu0 %v1022_v17  ;;  %v22841_v58 = vld.sshfl [vmem:[#allocation1 + $0x10] sm:$0xff pattern:$0x73625140]  ;;  %v22843_v17 = vld.sshfl [vmem:[#allocation1] sm:$0xff pattern:$0x73625140] }
 0x4e7   : > { %v14348_v22 = vpop.f32.mrf.mxu2  ;;  %15726 = vmatpush.xpose.msrb.mxu3 %v1025_v21  ;;  %15686 = vmatpush.xpose.msrb.mxu1 %v1023_v16  ;;  %v1034_v20 = vld [vmem:[%s19739_s9 + $0x12c0] sm:$0xff]  ;;  %v396_v16 = vld [vmem:[%s19732_s7 + $0x4d0] sm:$0xff] }
 0x4e8   : > { %v14349_v53 = vadd.f32 %v14348_v22, %v14329_v19  ;;  %v14368_v11 = vpop.f32.mrf.mxu3  ;;  %v22848_v21 = vld.sshfl [vmem:[#allocation1 + $0x8] sm:$0xff pattern:$0x73625140]  ;;  %v1035_v19 = vld [vmem:[%s19739_s9 + $0x12c8] sm:$0xff] }
 0x4e9   : > { %v14388_v7 = vpop.f32.mrf.mxu0  ;;  %2933 = vst [vmem:[#allocation1] ss:$4 sm:$0xff] %v396_v16  ;;  %v22866_v37 = vld.sshfl [vmem:[#allocation1 + $0x38] sm:$0xff pattern:$0x73625140] }
 0x4ea   : > { %15785 = vmatpush.xpose.msra.mxu2 %v1796_v3  ;;  %15745 = vmatpush.xpose.msra.mxu0 %v1794_v6  ;;  %v14369_v25 = vadd.f32 %v14368_v11, %v14349_v53  ;;  %v14408_v26 = vpop.f32.mrf.mxu1  ;;  %v1037_v6 = vld [vmem:[%s19739_s9 + $0x12d8] sm:$0xff]  ;;  %v1807_v11 = vld [vmem:[%s19739_s9 + $0x2ae8] sm:$0x3] }
 0x4eb   : > { %15805 = vmatpush.xpose.msra.mxu3 %v1797_v2  ;;  %15765 = vmatpush.xpose.msra.mxu1 %v1795_v8  ;;  %v1808_v2 = vld [vmem:[%s19739_s9 + $0x2af0] sm:$0x3]  ;;  %v1806_v8 = vld [vmem:[%s19739_s9 + $0x2ae0] sm:$0x3]  ;;  %v1809_v53 = vld [vmem:[%s19739_s9 + $0x2af8] sm:$0x3] }
 0x4ec   : > { %v14389_v34 = vadd.f32 %v14388_v7, %v14369_v25  ;;  %15707 = vmatmul.f32.vlgmr.msrb.gmra.mxu2 %v22736_v9  ;;  %15667 = vmatmul.f32.vlgmr.msrb.gmra.mxu0 %v22738_v32 }
 0x4ed   : > { %15727 = vmatmul.f32.vlgmr.msrb.gmra.mxu3 %v22740_v28  ;;  %15687 = vmatmul.f32.vlgmr.msrb.gmra.mxu1 %v22743_v40  ;;  %v1032_v40 = vld [vmem:[%s19739_s9 + $0x12b0] sm:$0xff] }
 0x4ee   : > { %v14409_v44 = vadd.f32 %v14408_v26, %v14389_v34  ;;  %15786 = vmatpush.xpose.msra.mxu2 %v1028_v15  ;;  %15746 = vmatpush.xpose.msra.mxu0 %v1026_v42  ;;  %v22862_v15 = vld.sshfl [vmem:[#allocation1 + $0x30] sm:$0xff pattern:$0x73625140]  ;;  %v22864_v42 = vld.sshfl [vmem:[#allocation1 + $0x20] sm:$0xff pattern:$0x73625140] }
 0x4ef   : > { %v14428_v36 = vpop.f32.mrf.mxu2  ;;  %15806 = vmatpush.xpose.msra.mxu3 %v1029_v35  ;;  %15766 = vmatpush.xpose.msra.mxu1 %v1027_v41  ;;  %v1038_v34 = vld [vmem:[%s19739_s9 + $0x12e0] sm:$0xff]  ;;  %v397_v41 = vld [vmem:[%s19732_s7 + $0x4d8] sm:$0xff] }
 0x4f0   : > { %v14429_v9 = vadd.f32 %v14428_v36, %v14409_v44  ;;  %v14448_v32 = vpop.f32.mrf.mxu3  ;;  %v22869_v35 = vld.sshfl [vmem:[#allocation1 + $0x28] sm:$0xff pattern:$0x73625140]  ;;  %v1039_v44 = vld [vmem:[%s19739_s9 + $0x12e8] sm:$0xff] }
 0x4f1   : > { %v14468_v28 = vpop.f32.mrf.mxu0  ;;  %2934 = vst [vmem:[#allocation1 + $0x20] ss:$4 sm:$0xff] %v397_v41  ;;  %v22887_v59 = vld.sshfl [vmem:[#allocation1 + $0x18] sm:$0xff pattern:$0x73625140] }
 0x4f2   : > { %15865 = vmatpush.xpose.msrb.mxu2 %v1800_v24  ;;  %15825 = vmatpush.xpose.msrb.mxu0 %v1798_v27  ;;  %v14449_v46 = vadd.f32 %v14448_v32, %v14429_v9  ;;  %v14488_v47 = vpop.f32.mrf.mxu1  ;;  %v1041_v27 = vld [vmem:[%s19739_s9 + $0x12f8] sm:$0xff]  ;;  %v1811_v32 = vld [vmem:[%s19739_s9 + $0x2b08] sm:$0x3] }
 0x4f3   : > { %15885 = vmatpush.xpose.msrb.mxu3 %v1801_v23  ;;  %15845 = vmatpush.xpose.msrb.mxu1 %v1799_v29  ;;  %v1812_v23 = vld [vmem:[%s19739_s9 + $0x2b10] sm:$0x3]  ;;  %v1810_v29 = vld [vmem:[%s19739_s9 + $0x2b00] sm:$0x3]  ;;  %v1813_v9 = vld [vmem:[%s19739_s9 + $0x2b18] sm:$0x3] }
 0x4f4   : > { %v14469_v48 = vadd.f32 %v14468_v28, %v14449_v46  ;;  %15787 = vmatmul.f32.vlgmr.msra.gmra.mxu2 %v22757_v30  ;;  %15747 = vmatmul.f32.vlgmr.msra.gmra.mxu0 %v22759_v57 }
 0x4f5   : > { %15807 = vmatmul.f32.vlgmr.msra.gmra.mxu3 %v22761_v52  ;;  %15767 = vmatmul.f32.vlgmr.msra.gmra.mxu1 %v22764_v61  ;;  %v1036_v61 = vld [vmem:[%s19739_s9 + $0x12d0] sm:$0xff] }
 0x4f6   : > { %v14489_v1 = vadd.f32 %v14488_v47, %v14469_v48  ;;  %15866 = vmatpush.xpose.msrb.mxu2 %v1032_v40  ;;  %15826 = vmatpush.xpose.msrb.mxu0 %v1030_v63  ;;  %v22883_v40 = vld.sshfl [vmem:[#allocation1 + $0x10] sm:$0xff pattern:$0x73625140]  ;;  %v22885_v63 = vld.sshfl [vmem:[#allocation1] sm:$0xff pattern:$0x73625140] }
 0x4f7   : > { %v14508_v51 = vpop.f32.mrf.mxu2  ;;  %15886 = vmatpush.xpose.msrb.mxu3 %v1033_v50  ;;  %15846 = vmatpush.xpose.msrb.mxu1 %v1031_v62  ;;  %v1042_v48 = vld [vmem:[%s19739_s9 + $0x1300] sm:$0xff] }
 0x4f8   : > { %v14509_v30 = vadd.f32 %v14508_v51, %v14489_v1  ;;  %v14528_v57 = vpop.f32.mrf.mxu3  ;;  %v22890_v50 = vld.sshfl [vmem:[#allocation1 + $0x8] sm:$0xff pattern:$0x73625140]  ;;  %v1043_v1 = vld [vmem:[%s19739_s9 + $0x1308] sm:$0xff] }
 0x4f9   : > { %v14548_v52 = vpop.f32.mrf.mxu0  ;;  %v398_v62 = vld [vmem:[%s19732_s7 + $0x4e0] sm:$0xff]  ;;  %v22908_v16 = vld.sshfl [vmem:[#allocation1 + $0x38] sm:$0xff pattern:$0x73625140] }
 0x4fa   : > { %15945 = vmatpush.xpose.msra.mxu2 %v1804_v45  ;;  %15905 = vmatpush.xpose.msra.mxu0 %v1802_v49  ;;  %v14529_v4 = vadd.f32 %v14528_v57, %v14509_v30  ;;  %v14568_v5 = vpop.f32.mrf.mxu1  ;;  %v1045_v49 = vld [vmem:[%s19739_s9 + $0x1318] sm:$0xff]  ;;  %2943 = vst [vmem:[#allocation1] ss:$4 sm:$0xff] %v398_v62  ;;  %v1815_v57 = vld [vmem:[%s19739_s9 + $0x2b28] sm:$0x3] }
 0x4fb   : > { %15965 = vmatpush.xpose.msra.mxu3 %v1805_v38  ;;  %15925 = vmatpush.xpose.msra.mxu1 %v1803_v54  ;;  %v1816_v38 = vld [vmem:[%s19739_s9 + $0x2b30] sm:$0x3]  ;;  %v1814_v54 = vld [vmem:[%s19739_s9 + $0x2b20] sm:$0x3]  ;;  %v1817_v30 = vld [vmem:[%s19739_s9 + $0x2b38] sm:$0x3] }
 0x4fc   : > { %v14549_v3 = vadd.f32 %v14548_v52, %v14529_v4  ;;  %15867 = vmatmul.f32.vlgmr.msrb.gmra.mxu2 %v22778_v55  ;;  %15827 = vmatmul.f32.vlgmr.msrb.gmra.mxu0 %v22780_v14 }
 0x4fd   : > { %15887 = vmatmul.f32.vlgmr.msrb.gmra.mxu3 %v22782_v10  ;;  %15847 = vmatmul.f32.vlgmr.msrb.gmra.mxu1 %v22785_v18  ;;  %v1040_v18 = vld [vmem:[%s19739_s9 + $0x12f0] sm:$0xff] }
 0x4fe   : > { %v14569_v22 = vadd.f32 %v14568_v5, %v14549_v3  ;;  %15946 = vmatpush.xpose.msra.mxu2 %v1036_v61  ;;  %15906 = vmatpush.xpose.msra.mxu0 %v1034_v20  ;;  %v22904_v61 = vld.sshfl [vmem:[#allocation1 + $0x30] sm:$0xff pattern:$0x73625140]  ;;  %v22906_v20 = vld.sshfl [vmem:[#allocation1 + $0x20] sm:$0xff pattern:$0x73625140] }
 0x4ff   : > { %v14588_v7 = vpop.f32.mrf.mxu2  ;;  %15966 = vmatpush.xpose.msra.mxu3 %v1037_v6  ;;  %15926 = vmatpush.xpose.msra.mxu1 %v1035_v19  ;;  %v1046_v3 = vld [vmem:[%s19739_s9 + $0x1320] sm:$0xff]  ;;  %v399_v19 = vld [vmem:[%s19732_s7 + $0x4e8] sm:$0xff] }
 0x500   : > { %v14589_v55 = vadd.f32 %v14588_v7, %v14569_v22  ;;  %v14608_v14 = vpop.f32.mrf.mxu3  ;;  %v22911_v6 = vld.sshfl [vmem:[#allocation1 + $0x28] sm:$0xff pattern:$0x73625140]  ;;  %v1047_v22 = vld [vmem:[%s19739_s9 + $0x1328] sm:$0xff] }
 0x501   : > { %v14628_v10 = vpop.f32.mrf.mxu0  ;;  %2944 = vst [vmem:[#allocation1 + $0x20] ss:$4 sm:$0xff] %v399_v19  ;;  %v22929_v41 = vld.sshfl [vmem:[#allocation1 + $0x18] sm:$0xff pattern:$0x73625140] }
 0x502   : > { %16025 = vmatpush.xpose.msrb.mxu2 %v1808_v2  ;;  %15985 = vmatpush.xpose.msrb.mxu0 %v1806_v8  ;;  %v14609_v25 = vadd.f32 %v14608_v14, %v14589_v55  ;;  %v14648_v26 = vpop.f32.mrf.mxu1  ;;  %v1049_v8 = vld [vmem:[%s19739_s9 + $0x1338] sm:$0xff]  ;;  %v1819_v14 = vld [vmem:[%s19739_s9 + $0x2b48] sm:$0x3] }
 0x503   : > { %16045 = vmatpush.xpose.msrb.mxu3 %v1809_v53  ;;  %16005 = vmatpush.xpose.msrb.mxu1 %v1807_v11  ;;  %v1820_v53 = vld [vmem:[%s19739_s9 + $0x2b50] sm:$0x3]  ;;  %v1818_v11 = vld [vmem:[%s19739_s9 + $0x2b40] sm:$0x3]  ;;  %v1821_v55 = vld [vmem:[%s19739_s9 + $0x2b58] sm:$0x3] }
 0x504   : > { %v14629_v24 = vadd.f32 %v14628_v10, %v14609_v25  ;;  %15947 = vmatmul.f32.vlgmr.msra.gmra.mxu2 %v22799_v12  ;;  %15907 = vmatmul.f32.vlgmr.msra.gmra.mxu0 %v22801_v39 }
 0x505   : > { %15967 = vmatmul.f32.vlgmr.msra.gmra.mxu3 %v22803_v31  ;;  %15927 = vmatmul.f32.vlgmr.msra.gmra.mxu1 %v22806_v43  ;;  %v1044_v43 = vld [vmem:[%s19739_s9 + $0x1310] sm:$0xff] }
 0x506   : > { %v14649_v36 = vadd.f32 %v14648_v26, %v14629_v24  ;;  %16026 = vmatpush.xpose.msrb.mxu2 %v1040_v18  ;;  %15986 = vmatpush.xpose.msrb.mxu0 %v1038_v34  ;;  %v22925_v18 = vld.sshfl [vmem:[#allocation1 + $0x10] sm:$0xff pattern:$0x73625140]  ;;  %v22927_v34 = vld.sshfl [vmem:[#allocation1] sm:$0xff pattern:$0x73625140] }
 0x507   : > { %v14668_v28 = vpop.f32.mrf.mxu2  ;;  %16046 = vmatpush.xpose.msrb.mxu3 %v1041_v27  ;;  %16006 = vmatpush.xpose.msrb.mxu1 %v1039_v44  ;;  %v1050_v24 = vld [vmem:[%s19739_s9 + $0x1340] sm:$0xff]  ;;  %v400_v44 = vld [vmem:[%s19732_s7 + $0x4f0] sm:$0xff] }
 0x508   : > { %v14669_v12 = vadd.f32 %v14668_v28, %v14649_v36  ;;  %v14688_v39 = vpop.f32.mrf.mxu3  ;;  %v22932_v27 = vld.sshfl [vmem:[#allocation1 + $0x8] sm:$0xff pattern:$0x73625140]  ;;  %v1051_v36 = vld [vmem:[%s19739_s9 + $0x1348] sm:$0xff] }
 0x509   : > { %v14708_v31 = vpop.f32.mrf.mxu0  ;;  %2953 = vst [vmem:[#allocation1] ss:$4 sm:$0xff] %v400_v44  ;;  %v22950_v62 = vld.sshfl [vmem:[#allocation1 + $0x38] sm:$0xff pattern:$0x73625140] }
 0x50a   : > { %16105 = vmatpush.xpose.msra.mxu2 %v1812_v23  ;;  %16065 = vmatpush.xpose.msra.mxu0 %v1810_v29  ;;  %v14689_v46 = vadd.f32 %v14688_v39, %v14669_v12  ;;  %v14728_v47 = vpop.f32.mrf.mxu1  ;;  %v1053_v29 = vld [vmem:[%s19739_s9 + $0x1358] sm:$0xff]  ;;  %v1823_v39 = vld [vmem:[%s19739_s9 + $0x2b68] sm:$0x3] }
 0x50b   : > { %16125 = vmatpush.xpose.msra.mxu3 %v1813_v9  ;;  %16085 = vmatpush.xpose.msra.mxu1 %v1811_v32  ;;  %v1824_v9 = vld [vmem:[%s19739_s9 + $0x2b70] sm:$0x3]  ;;  %v1822_v32 = vld [vmem:[%s19739_s9 + $0x2b60] sm:$0x3]  ;;  %v1825_v12 = vld [vmem:[%s19739_s9 + $0x2b78] sm:$0x3] }
 0x50c   : > { %v14709_v45 = vadd.f32 %v14708_v31, %v14689_v46  ;;  %16027 = vmatmul.f32.vlgmr.msrb.gmra.mxu2 %v22820_v33  ;;  %15987 = vmatmul.f32.vlgmr.msrb.gmra.mxu0 %v22822_v60 }
 0x50d   : > { %16047 = vmatmul.f32.vlgmr.msrb.gmra.mxu3 %v22824_v56  ;;  %16007 = vmatmul.f32.vlgmr.msrb.gmra.mxu1 %v22827_v0  ;;  %v1048_v0 = vld [vmem:[%s19739_s9 + $0x1330] sm:$0xff] }
 0x50e   : > { %v14729_v51 = vadd.f32 %v14728_v47, %v14709_v45  ;;  %16106 = vmatpush.xpose.msra.mxu2 %v1044_v43  ;;  %16066 = vmatpush.xpose.msra.mxu0 %v1042_v48  ;;  %v22946_v43 = vld.sshfl [vmem:[#allocation1 + $0x30] sm:$0xff pattern:$0x73625140]  ;;  %v22948_v48 = vld.sshfl [vmem:[#allocation1 + $0x20] sm:$0xff pattern:$0x73625140] }
 0x50f   : > { %v14748_v52 = vpop.f32.mrf.mxu2  ;;  %16126 = vmatpush.xpose.msra.mxu3 %v1045_v49  ;;  %16086 = vmatpush.xpose.msra.mxu1 %v1043_v1  ;;  %v1054_v45 = vld [vmem:[%s19739_s9 + $0x1360] sm:$0xff]  ;;  %v401_v1 = vld [vmem:[%s19732_s7 + $0x4f8] sm:$0xff] }
 0x510   : > { %v14749_v33 = vadd.f32 %v14748_v52, %v14729_v51  ;;  %v14768_v60 = vpop.f32.mrf.mxu3  ;;  %v22953_v49 = vld.sshfl [vmem:[#allocation1 + $0x28] sm:$0xff pattern:$0x73625140]  ;;  %v1055_v51 = vld [vmem:[%s19739_s9 + $0x1368] sm:$0xff] }
 0x511   : > { %v14788_v56 = vpop.f32.mrf.mxu0  ;;  %2954 = vst [vmem:[#allocation1 + $0x20] ss:$4 sm:$0xff] %v401_v1  ;;  %v22971_v19 = vld.sshfl [vmem:[#allocation1 + $0x18] sm:$0xff pattern:$0x73625140] }
 0x512   : > { %16185 = vmatpush.xpose.msrb.mxu2 %v1816_v38  ;;  %16145 = vmatpush.xpose.msrb.mxu0 %v1814_v54  ;;  %v14769_v4 = vadd.f32 %v14768_v60, %v14749_v33  ;;  %v14808_v5 = vpop.f32.mrf.mxu1  ;;  %v1057_v54 = vld [vmem:[%s19739_s9 + $0x1378] sm:$0xff]  ;;  %v1827_v60 = vld [vmem:[%s19739_s9 + $0x2b88] sm:$0x3] }
 0x513   : > { %16205 = vmatpush.xpose.msrb.mxu3 %v1817_v30  ;;  %16165 = vmatpush.xpose.msrb.mxu1 %v1815_v57  ;;  %v1828_v30 = vld [vmem:[%s19739_s9 + $0x2b90] sm:$0x3]  ;;  %v1826_v57 = vld [vmem:[%s19739_s9 + $0x2b80] sm:$0x3]  ;;  %v1829_v33 = vld [vmem:[%s19739_s9 + $0x2b98] sm:$0x3] }
 0x514   : > { %v14789_v2 = vadd.f32 %v14788_v56, %v14769_v4  ;;  %16107 = vmatmul.f32.vlgmr.msra.gmra.mxu2 %v22841_v58  ;;  %16067 = vmatmul.f32.vlgmr.msra.gmra.mxu0 %v22843_v17 }
 0x515   : > { %16127 = vmatmul.f32.vlgmr.msra.gmra.mxu3 %v22845_v13  ;;  %16087 = vmatmul.f32.vlgmr.msra.gmra.mxu1 %v22848_v21  ;;  %v1052_v21 = vld [vmem:[%s19739_s9 + $0x1350] sm:$0xff] }
 0x516   : > { %v14809_v7 = vadd.f32 %v14808_v5, %v14789_v2  ;;  %16186 = vmatpush.xpose.msrb.mxu2 %v1048_v0  ;;  %16146 = vmatpush.xpose.msrb.mxu0 %v1046_v3  ;;  %v22967_v0 = vld.sshfl [vmem:[#allocation1 + $0x10] sm:$0xff pattern:$0x73625140]  ;;  %v22969_v3 = vld.sshfl [vmem:[#allocation1] sm:$0xff pattern:$0x73625140] }
 0x517   : > { %v14828_v10 = vpop.f32.mrf.mxu2  ;;  %16206 = vmatpush.xpose.msrb.mxu3 %v1049_v8  ;;  %16166 = vmatpush.xpose.msrb.mxu1 %v1047_v22  ;;  %v1058_v2 = vld [vmem:[%s19739_s9 + $0x1380] sm:$0xff] }
 0x518   : > { %v14829_v58 = vadd.f32 %v14828_v10, %v14809_v7  ;;  %v14848_v17 = vpop.f32.mrf.mxu3  ;;  %v22974_v8 = vld.sshfl [vmem:[#allocation1 + $0x8] sm:$0xff pattern:$0x73625140]  ;;  %v1059_v7 = vld [vmem:[%s19739_s9 + $0x1388] sm:$0xff] }
 0x519   : > { %v14868_v13 = vpop.f32.mrf.mxu0  ;;  %v402_v22 = vld [vmem:[%s19732_s7 + $0x500] sm:$0xff]  ;;  %v22992_v44 = vld.sshfl [vmem:[#allocation1 + $0x38] sm:$0xff pattern:$0x73625140] }
 0x51a   : > { %16265 = vmatpush.xpose.msra.mxu2 %v1820_v53  ;;  %16225 = vmatpush.xpose.msra.mxu0 %v1818_v11  ;;  %v14849_v25 = vadd.f32 %v14848_v17, %v14829_v58  ;;  %v14888_v26 = vpop.f32.mrf.mxu1  ;;  %v1061_v11 = vld [vmem:[%s19739_s9 + $0x1398] sm:$0xff]  ;;  %2963 = vst [vmem:[#allocation1] ss:$4 sm:$0xff] %v402_v22  ;;  %v1831_v17 = vld [vmem:[%s19739_s9 + $0x2ba8] sm:$0x3] }
 0x51b   : > { %16285 = vmatpush.xpose.msra.mxu3 %v1821_v55  ;;  %16245 = vmatpush.xpose.msra.mxu1 %v1819_v14  ;;  %v1832_v55 = vld [vmem:[%s19739_s9 + $0x2bb0] sm:$0x3]  ;;  %v1830_v14 = vld [vmem:[%s19739_s9 + $0x2ba0] sm:$0x3]  ;;  %v1833_v58 = vld [vmem:[%s19739_s9 + $0x2bb8] sm:$0x3] }
 0x51c   : > { %v14869_v23 = vadd.f32 %v14868_v13, %v14849_v25  ;;  %16187 = vmatmul.f32.vlgmr.msrb.gmra.mxu2 %v22862_v15  ;;  %16147 = vmatmul.f32.vlgmr.msrb.gmra.mxu0 %v22864_v42 }
 0x51d   : > { %16207 = vmatmul.f32.vlgmr.msrb.gmra.mxu3 %v22866_v37  ;;  %16167 = vmatmul.f32.vlgmr.msrb.gmra.mxu1 %v22869_v35  ;;  %v1056_v35 = vld [vmem:[%s19739_s9 + $0x1370] sm:$0xff] }
 0x51e   : > { %v14889_v28 = vadd.f32 %v14888_v26, %v14869_v23  ;;  %16266 = vmatpush.xpose.msra.mxu2 %v1052_v21  ;;  %16226 = vmatpush.xpose.msra.mxu0 %v1050_v24  ;;  %v22988_v21 = vld.sshfl [vmem:[#allocation1 + $0x30] sm:$0xff pattern:$0x73625140]  ;;  %v22990_v24 = vld.sshfl [vmem:[#allocation1 + $0x20] sm:$0xff pattern:$0x73625140] }
 0x51f   : > { %v14908_v31 = vpop.f32.mrf.mxu2  ;;  %16286 = vmatpush.xpose.msra.mxu3 %v1053_v29  ;;  %16246 = vmatpush.xpose.msra.mxu1 %v1051_v36  ;;  %v1062_v23 = vld [vmem:[%s19739_s9 + $0x13a0] sm:$0xff]  ;;  %v403_v36 = vld [vmem:[%s19732_s7 + $0x508] sm:$0xff] }
 0x520   : > { %v14909_v15 = vadd.f32 %v14908_v31, %v14889_v28  ;;  %v14928_v42 = vpop.f32.mrf.mxu3  ;;  %v22995_v29 = vld.sshfl [vmem:[#allocation1 + $0x28] sm:$0xff pattern:$0x73625140]  ;;  %v1063_v28 = vld [vmem:[%s19739_s9 + $0x13a8] sm:$0xff] }
 0x521   : > { %v14948_v37 = vpop.f32.mrf.mxu0  ;;  %2964 = vst [vmem:[#allocation1 + $0x20] ss:$4 sm:$0xff] %v403_v36  ;;  %v23013_v1 = vld.sshfl [vmem:[#allocation1 + $0x18] sm:$0xff pattern:$0x73625140] }
 0x522   : > { %16345 = vmatpush.xpose.msrb.mxu2 %v1824_v9  ;;  %16305 = vmatpush.xpose.msrb.mxu0 %v1822_v32  ;;  %v14929_v46 = vadd.f32 %v14928_v42, %v14909_v15  ;;  %v14968_v47 = vpop.f32.mrf.mxu1  ;;  %v1065_v32 = vld [vmem:[%s19739_s9 + $0x13b8] sm:$0xff]  ;;  %v1835_v42 = vld [vmem:[%s19739_s9 + $0x2bc8] sm:$0x3] }
 0x523   : > { %16365 = vmatpush.xpose.msrb.mxu3 %v1825_v12  ;;  %16325 = vmatpush.xpose.msrb.mxu1 %v1823_v39  ;;  %v1836_v12 = vld [vmem:[%s19739_s9 + $0x2bd0] sm:$0x3]  ;;  %v1834_v39 = vld [vmem:[%s19739_s9 + $0x2bc0] sm:$0x3]  ;;  %v1837_v15 = vld [vmem:[%s19739_s9 + $0x2bd8] sm:$0x3] }
 0x524   : > { %v14949_v38 = vadd.f32 %v14948_v37, %v14929_v46  ;;  %16267 = vmatmul.f32.vlgmr.msra.gmra.mxu2 %v22883_v40  ;;  %16227 = vmatmul.f32.vlgmr.msra.gmra.mxu0 %v22885_v63 }
 0x525   : > { %16287 = vmatmul.f32.vlgmr.msra.gmra.mxu3 %v22887_v59  ;;  %16247 = vmatmul.f32.vlgmr.msra.gmra.mxu1 %v22890_v50  ;;  %v1060_v50 = vld [vmem:[%s19739_s9 + $0x1390] sm:$0xff] }
 0x526   : > { %v14969_v52 = vadd.f32 %v14968_v47, %v14949_v38  ;;  %16346 = vmatpush.xpose.msrb.mxu2 %v1056_v35  ;;  %16306 = vmatpush.xpose.msrb.mxu0 %v1054_v45  ;;  %v23009_v35 = vld.sshfl [vmem:[#allocation1 + $0x10] sm:$0xff pattern:$0x73625140]  ;;  %v23011_v45 = vld.sshfl [vmem:[#allocation1] sm:$0xff pattern:$0x73625140] }
 0x527   : > { %v14988_v56 = vpop.f32.mrf.mxu2  ;;  %16366 = vmatpush.xpose.msrb.mxu3 %v1057_v54  ;;  %16326 = vmatpush.xpose.msrb.mxu1 %v1055_v51  ;;  %v1066_v38 = vld [vmem:[%s19739_s9 + $0x13c0] sm:$0xff]  ;;  %v404_v51 = vld [vmem:[%s19732_s7 + $0x510] sm:$0xff] }
 0x528   : > { %v14989_v40 = vadd.f32 %v14988_v56, %v14969_v52  ;;  %v15008_v63 = vpop.f32.mrf.mxu3  ;;  %v23016_v54 = vld.sshfl [vmem:[#allocation1 + $0x8] sm:$0xff pattern:$0x73625140]  ;;  %v1067_v52 = vld [vmem:[%s19739_s9 + $0x13c8] sm:$0xff] }
 0x529   : > { %v15028_v59 = vpop.f32.mrf.mxu0  ;;  %2973 = vst [vmem:[#allocation1] ss:$4 sm:$0xff] %v404_v51  ;;  %v23034_v22 = vld.sshfl [vmem:[#allocation1 + $0x38] sm:$0xff pattern:$0x73625140] }
 0x52a   : > { %16425 = vmatpush.xpose.msra.mxu2 %v1828_v30  ;;  %16385 = vmatpush.xpose.msra.mxu0 %v1826_v57  ;;  %v15009_v4 = vadd.f32 %v15008_v63, %v14989_v40  ;;  %v15048_v5 = vpop.f32.mrf.mxu1  ;;  %v1069_v57 = vld [vmem:[%s19739_s9 + $0x13d8] sm:$0xff]  ;;  %v1839_v63 = vld [vmem:[%s19739_s9 + $0x2be8] sm:$0x3] }
 0x52b   : > { %16445 = vmatpush.xpose.msra.mxu3 %v1829_v33  ;;  %16405 = vmatpush.xpose.msra.mxu1 %v1827_v60  ;;  %v1840_v33 = vld [vmem:[%s19739_s9 + $0x2bf0] sm:$0x3]  ;;  %v1838_v60 = vld [vmem:[%s19739_s9 + $0x2be0] sm:$0x3]  ;;  %v1841_v40 = vld [vmem:[%s19739_s9 + $0x2bf8] sm:$0x3] }
 0x52c   : > { %v15029_v53 = vadd.f32 %v15028_v59, %v15009_v4  ;;  %16347 = vmatmul.f32.vlgmr.msrb.gmra.mxu2 %v22904_v61  ;;  %16307 = vmatmul.f32.vlgmr.msrb.gmra.mxu0 %v22906_v20 }
 0x52d   : > { %16367 = vmatmul.f32.vlgmr.msrb.gmra.mxu3 %v22908_v16  ;;  %16327 = vmatmul.f32.vlgmr.msrb.gmra.mxu1 %v22911_v6  ;;  %v1064_v6 = vld [vmem:[%s19739_s9 + $0x13b0] sm:$0xff] }
 0x52e   : > { %v15049_v10 = vadd.f32 %v15048_v5, %v15029_v53  ;;  %16426 = vmatpush.xpose.msra.mxu2 %v1060_v50  ;;  %16386 = vmatpush.xpose.msra.mxu0 %v1058_v2  ;;  %v23030_v50 = vld.sshfl [vmem:[#allocation1 + $0x30] sm:$0xff pattern:$0x73625140]  ;;  %v23032_v2 = vld.sshfl [vmem:[#allocation1 + $0x20] sm:$0xff pattern:$0x73625140] }
 0x52f   : > { %v15068_v13 = vpop.f32.mrf.mxu2  ;;  %16446 = vmatpush.xpose.msra.mxu3 %v1061_v11  ;;  %16406 = vmatpush.xpose.msra.mxu1 %v1059_v7  ;;  %v1070_v53 = vld [vmem:[%s19739_s9 + $0x13e0] sm:$0xff]  ;;  %v405_v7 = vld [vmem:[%s19732_s7 + $0x518] sm:$0xff] }
 0x530   : > { %v15069_v61 = vadd.f32 %v15068_v13, %v15049_v10  ;;  %v15088_v20 = vpop.f32.mrf.mxu3  ;;  %v23037_v11 = vld.sshfl [vmem:[#allocation1 + $0x28] sm:$0xff pattern:$0x73625140]  ;;  %v1071_v10 = vld [vmem:[%s19739_s9 + $0x13e8] sm:$0xff] }
 0x531   : > { %v15108_v16 = vpop.f32.mrf.mxu0  ;;  %2974 = vst [vmem:[#allocation1 + $0x20] ss:$4 sm:$0xff] %v405_v7  ;;  %v23055_v36 = vld.sshfl [vmem:[#allocation1 + $0x18] sm:$0xff pattern:$0x73625140] }
 0x532   : > { %16505 = vmatpush.xpose.msrb.mxu2 %v1832_v55  ;;  %16465 = vmatpush.xpose.msrb.mxu0 %v1830_v14  ;;  %v15089_v25 = vadd.f32 %v15088_v20, %v15069_v61  ;;  %v15128_v26 = vpop.f32.mrf.mxu1  ;;  %v1073_v14 = vld [vmem:[%s19739_s9 + $0x13f8] sm:$0xff]  ;;  %v1843_v20 = vld [vmem:[%s19739_s9 + $0x2c08] sm:$0x3] }
 0x533   : > { %16525 = vmatpush.xpose.msrb.mxu3 %v1833_v58  ;;  %16485 = vmatpush.xpose.msrb.mxu1 %v1831_v17  ;;  %v1844_v58 = vld [vmem:[%s19739_s9 + $0x2c10] sm:$0x3]  ;;  %v1842_v17 = vld [vmem:[%s19739_s9 + $0x2c00] sm:$0x3]  ;;  %v1845_v61 = vld [vmem:[%s19739_s9 + $0x2c18] sm:$0x3] }
 0x534   : > { %v15109_v9 = vadd.f32 %v15108_v16, %v15089_v25  ;;  %16427 = vmatmul.f32.vlgmr.msra.gmra.mxu2 %v22925_v18  ;;  %16387 = vmatmul.f32.vlgmr.msra.gmra.mxu0 %v22927_v34 }
 0x535   : > { %16447 = vmatmul.f32.vlgmr.msra.gmra.mxu3 %v22929_v41  ;;  %16407 = vmatmul.f32.vlgmr.msra.gmra.mxu1 %v22932_v27  ;;  %v1068_v27 = vld [vmem:[%s19739_s9 + $0x13d0] sm:$0xff] }
 0x536   : > { %v15129_v31 = vadd.f32 %v15128_v26, %v15109_v9  ;;  %16506 = vmatpush.xpose.msrb.mxu2 %v1064_v6  ;;  %16466 = vmatpush.xpose.msrb.mxu0 %v1062_v23  ;;  %v23051_v6 = vld.sshfl [vmem:[#allocation1 + $0x10] sm:$0xff pattern:$0x73625140]  ;;  %v23053_v23 = vld.sshfl [vmem:[#allocation1] sm:$0xff pattern:$0x73625140] }
 0x537   : > { %v15148_v37 = vpop.f32.mrf.mxu2  ;;  %16526 = vmatpush.xpose.msrb.mxu3 %v1065_v32  ;;  %16486 = vmatpush.xpose.msrb.mxu1 %v1063_v28  ;;  %v1074_v9 = vld [vmem:[%s19739_s9 + $0x1400] sm:$0xff] }
 0x538   : > { %v15149_v18 = vadd.f32 %v15148_v37, %v15129_v31  ;;  %v15168_v34 = vpop.f32.mrf.mxu3  ;;  %v23058_v32 = vld.sshfl [vmem:[#allocation1 + $0x8] sm:$0xff pattern:$0x73625140]  ;;  %v1075_v31 = vld [vmem:[%s19739_s9 + $0x1408] sm:$0xff] }
 0x539   : > { %v15188_v41 = vpop.f32.mrf.mxu0  ;;  %v406_v28 = vld [vmem:[%s19732_s7 + $0x520] sm:$0xff]  ;;  %v23076_v51 = vld.sshfl [vmem:[#allocation1 + $0x38] sm:$0xff pattern:$0x73625140] }
 0x53a   : > { %16585 = vmatpush.xpose.msra.mxu2 %v1836_v12  ;;  %16545 = vmatpush.xpose.msra.mxu0 %v1834_v39  ;;  %v15169_v46 = vadd.f32 %v15168_v34, %v15149_v18  ;;  %v15208_v47 = vpop.f32.mrf.mxu1  ;;  %v1077_v39 = vld [vmem:[%s19739_s9 + $0x1418] sm:$0xff]  ;;  %2983 = vst [vmem:[#allocation1] ss:$4 sm:$0xff] %v406_v28  ;;  %v1847_v34 = vld [vmem:[%s19739_s9 + $0x2c28] sm:$0x3] }
 0x53b   : > { %16605 = vmatpush.xpose.msra.mxu3 %v1837_v15  ;;  %16565 = vmatpush.xpose.msra.mxu1 %v1835_v42  ;;  %v1848_v15 = vld [vmem:[%s19739_s9 + $0x2c30] sm:$0x3]  ;;  %v1846_v42 = vld [vmem:[%s19739_s9 + $0x2c20] sm:$0x3]  ;;  %v1849_v18 = vld [vmem:[%s19739_s9 + $0x2c38] sm:$0x3] }
 0x53c   : > { %v15189_v30 = vadd.f32 %v15188_v41, %v15169_v46  ;;  %16507 = vmatmul.f32.vlgmr.msrb.gmra.mxu2 %v22946_v43  ;;  %16467 = vmatmul.f32.vlgmr.msrb.gmra.mxu0 %v22948_v48 }
 0x53d   : > { %16527 = vmatmul.f32.vlgmr.msrb.gmra.mxu3 %v22950_v62  ;;  %16487 = vmatmul.f32.vlgmr.msrb.gmra.mxu1 %v22953_v49  ;;  %v1072_v49 = vld [vmem:[%s19739_s9 + $0x13f0] sm:$0xff] }
 0x53e   : > { %v15209_v56 = vadd.f32 %v15208_v47, %v15189_v30  ;;  %16586 = vmatpush.xpose.msra.mxu2 %v1068_v27  ;;  %16546 = vmatpush.xpose.msra.mxu0 %v1066_v38  ;;  %v23072_v27 = vld.sshfl [vmem:[#allocation1 + $0x30] sm:$0xff pattern:$0x73625140]  ;;  %v23074_v38 = vld.sshfl [vmem:[#allocation1 + $0x20] sm:$0xff pattern:$0x73625140] }
 0x53f   : > { %v15228_v59 = vpop.f32.mrf.mxu2  ;;  %16606 = vmatpush.xpose.msra.mxu3 %v1069_v57  ;;  %16566 = vmatpush.xpose.msra.mxu1 %v1067_v52  ;;  %v1078_v30 = vld [vmem:[%s19739_s9 + $0x1420] sm:$0xff]  ;;  %v407_v52 = vld [vmem:[%s19732_s7 + $0x528] sm:$0xff] }
 0x540   : > { %v15229_v43 = vadd.f32 %v15228_v59, %v15209_v56  ;;  %v15248_v48 = vpop.f32.mrf.mxu3  ;;  %v23079_v57 = vld.sshfl [vmem:[#allocation1 + $0x28] sm:$0xff pattern:$0x73625140]  ;;  %v1079_v56 = vld [vmem:[%s19739_s9 + $0x1428] sm:$0xff] }
 0x541   : > { %v15268_v62 = vpop.f32.mrf.mxu0  ;;  %2984 = vst [vmem:[#allocation1 + $0x20] ss:$4 sm:$0xff] %v407_v52  ;;  %v23097_v7 = vld.sshfl [vmem:[#allocation1 + $0x18] sm:$0xff pattern:$0x73625140] }
 0x542   : > { %16665 = vmatpush.xpose.msrb.mxu2 %v1840_v33  ;;  %16625 = vmatpush.xpose.msrb.mxu0 %v1838_v60  ;;  %v15249_v4 = vadd.f32 %v15248_v48, %v15229_v43  ;;  %v15288_v5 = vpop.f32.mrf.mxu1  ;;  %v1081_v60 = vld [vmem:[%s19739_s9 + $0x1438] sm:$0xff]  ;;  %v1851_v48 = vld [vmem:[%s19739_s9 + $0x2c48] sm:$0x3] }
 0x543   : > { %16685 = vmatpush.xpose.msrb.mxu3 %v1841_v40  ;;  %16645 = vmatpush.xpose.msrb.mxu1 %v1839_v63  ;;  %v1852_v40 = vld [vmem:[%s19739_s9 + $0x2c50] sm:$0x3]  ;;  %v1850_v63 = vld [vmem:[%s19739_s9 + $0x2c40] sm:$0x3]  ;;  %v1853_v43 = vld [vmem:[%s19739_s9 + $0x2c58] sm:$0x3] }
 0x544   : > { %v15269_v55 = vadd.f32 %v15268_v62, %v15249_v4  ;;  %16587 = vmatmul.f32.vlgmr.msra.gmra.mxu2 %v22967_v0  ;;  %16547 = vmatmul.f32.vlgmr.msra.gmra.mxu0 %v22969_v3 }
 0x545   : > { %16607 = vmatmul.f32.vlgmr.msra.gmra.mxu3 %v22971_v19  ;;  %16567 = vmatmul.f32.vlgmr.msra.gmra.mxu1 %v22974_v8  ;;  %v1076_v8 = vld [vmem:[%s19739_s9 + $0x1410] sm:$0xff] }
 0x546   : > { %v15289_v13 = vadd.f32 %v15288_v5, %v15269_v55  ;;  %16666 = vmatpush.xpose.msrb.mxu2 %v1072_v49  ;;  %16626 = vmatpush.xpose.msrb.mxu0 %v1070_v53  ;;  %v23093_v49 = vld.sshfl [vmem:[#allocation1 + $0x10] sm:$0xff pattern:$0x73625140]  ;;  %v23095_v53 = vld.sshfl [vmem:[#allocation1] sm:$0xff pattern:$0x73625140] }
 0x547   : > { %v15308_v16 = vpop.f32.mrf.mxu2  ;;  %16686 = vmatpush.xpose.msrb.mxu3 %v1073_v14  ;;  %16646 = vmatpush.xpose.msrb.mxu1 %v1071_v10  ;;  %v1082_v55 = vld [vmem:[%s19739_s9 + $0x1440] sm:$0xff]  ;;  %v408_v10 = vld [vmem:[%s19732_s7 + $0x530] sm:$0xff] }
 0x548   : > { %v15309_v0 = vadd.f32 %v15308_v16, %v15289_v13  ;;  %v15328_v3 = vpop.f32.mrf.mxu3  ;;  %v23100_v14 = vld.sshfl [vmem:[#allocation1 + $0x8] sm:$0xff pattern:$0x73625140]  ;;  %v1083_v13 = vld [vmem:[%s19739_s9 + $0x1448] sm:$0xff] }
 0x549   : > { %v15348_v19 = vpop.f32.mrf.mxu0  ;;  %2993 = vst [vmem:[#allocation1] ss:$4 sm:$0xff] %v408_v10  ;;  %v23118_v28 = vld.sshfl [vmem:[#allocation1 + $0x38] sm:$0xff pattern:$0x73625140] }
 0x54a   : > { %16745 = vmatpush.xpose.msra.mxu2 %v1844_v58  ;;  %16705 = vmatpush.xpose.msra.mxu0 %v1842_v17  ;;  %v15329_v25 = vadd.f32 %v15328_v3, %v15309_v0  ;;  %v15368_v26 = vpop.f32.mrf.mxu1  ;;  %v1085_v17 = vld [vmem:[%s19739_s9 + $0x1458] sm:$0xff]  ;;  %v1855_v3 = vld [vmem:[%s19739_s9 + $0x2c68] sm:$0x3] }
 0x54b   : > { %16765 = vmatpush.xpose.msra.mxu3 %v1845_v61  ;;  %16725 = vmatpush.xpose.msra.mxu1 %v1843_v20  ;;  %v1856_v61 = vld [vmem:[%s19739_s9 + $0x2c70] sm:$0x3]  ;;  %v1854_v20 = vld [vmem:[%s19739_s9 + $0x2c60] sm:$0x3]  ;;  %v1857_v0 = vld [vmem:[%s19739_s9 + $0x2c78] sm:$0x3] }
 0x54c   : > { %v15349_v12 = vadd.f32 %v15348_v19, %v15329_v25  ;;  %16667 = vmatmul.f32.vlgmr.msrb.gmra.mxu2 %v22988_v21  ;;  %16627 = vmatmul.f32.vlgmr.msrb.gmra.mxu0 %v22990_v24 }
 0x54d   : > { %16687 = vmatmul.f32.vlgmr.msrb.gmra.mxu3 %v22992_v44  ;;  %16647 = vmatmul.f32.vlgmr.msrb.gmra.mxu1 %v22995_v29  ;;  %v1080_v29 = vld [vmem:[%s19739_s9 + $0x1430] sm:$0xff] }
 0x54e   : > { %v15369_v37 = vadd.f32 %v15368_v26, %v15349_v12  ;;  %16746 = vmatpush.xpose.msra.mxu2 %v1076_v8  ;;  %16706 = vmatpush.xpose.msra.mxu0 %v1074_v9  ;;  %v23114_v8 = vld.sshfl [vmem:[#allocation1 + $0x30] sm:$0xff pattern:$0x73625140]  ;;  %v23116_v9 = vld.sshfl [vmem:[#allocation1 + $0x20] sm:$0xff pattern:$0x73625140] }
 0x54f   : > { %v15388_v41 = vpop.f32.mrf.mxu2  ;;  %16766 = vmatpush.xpose.msra.mxu3 %v1077_v39  ;;  %16726 = vmatpush.xpose.msra.mxu1 %v1075_v31  ;;  %v1086_v12 = vld [vmem:[%s19739_s9 + $0x1460] sm:$0xff]  ;;  %v409_v31 = vld [vmem:[%s19732_s7 + $0x538] sm:$0xff] }
 0x550   : > { %v15389_v21 = vadd.f32 %v15388_v41, %v15369_v37  ;;  %v15408_v24 = vpop.f32.mrf.mxu3  ;;  %v23121_v39 = vld.sshfl [vmem:[#allocation1 + $0x28] sm:$0xff pattern:$0x73625140]  ;;  %v1087_v37 = vld [vmem:[%s19739_s9 + $0x1468] sm:$0xff] }
 0x551   : > { %v15428_v44 = vpop.f32.mrf.mxu0  ;;  %2994 = vst [vmem:[#allocation1 + $0x20] ss:$4 sm:$0xff] %v409_v31  ;;  %v23139_v52 = vld.sshfl [vmem:[#allocation1 + $0x18] sm:$0xff pattern:$0x73625140] }
 0x552   : > { %16825 = vmatpush.xpose.msrb.mxu2 %v1848_v15  ;;  %16785 = vmatpush.xpose.msrb.mxu0 %v1846_v42  ;;  %v15409_v46 = vadd.f32 %v15408_v24, %v15389_v21  ;;  %v15448_v47 = vpop.f32.mrf.mxu1  ;;  %v1089_v42 = vld [vmem:[%s19739_s9 + $0x1478] sm:$0xff]  ;;  %v1859_v24 = vld [vmem:[%s19739_s9 + $0x2c88] sm:$0x3] }
 0x553   : > { %16845 = vmatpush.xpose.msrb.mxu3 %v1849_v18  ;;  %16805 = vmatpush.xpose.msrb.mxu1 %v1847_v34  ;;  %v1860_v18 = vld [vmem:[%s19739_s9 + $0x2c90] sm:$0x3]  ;;  %v1858_v34 = vld [vmem:[%s19739_s9 + $0x2c80] sm:$0x3]  ;;  %v1861_v21 = vld [vmem:[%s19739_s9 + $0x2c98] sm:$0x3] }
 0x554   : > { %v15429_v33 = vadd.f32 %v15428_v44, %v15409_v46  ;;  %16747 = vmatmul.f32.vlgmr.msra.gmra.mxu2 %v23009_v35  ;;  %16707 = vmatmul.f32.vlgmr.msra.gmra.mxu0 %v23011_v45 }
 0x555   : > { %16767 = vmatmul.f32.vlgmr.msra.gmra.mxu3 %v23013_v1  ;;  %16727 = vmatmul.f32.vlgmr.msra.gmra.mxu1 %v23016_v54  ;;  %v1084_v54 = vld [vmem:[%s19739_s9 + $0x1450] sm:$0xff] }
 0x556   : > { %v15449_v59 = vadd.f32 %v15448_v47, %v15429_v33  ;;  %16826 = vmatpush.xpose.msrb.mxu2 %v1080_v29  ;;  %16786 = vmatpush.xpose.msrb.mxu0 %v1078_v30  ;;  %v23135_v29 = vld.sshfl [vmem:[#allocation1 + $0x10] sm:$0xff pattern:$0x73625140]  ;;  %v23137_v30 = vld.sshfl [vmem:[#allocation1] sm:$0xff pattern:$0x73625140] }
 0x557   : > { %v15468_v62 = vpop.f32.mrf.mxu2  ;;  %16846 = vmatpush.xpose.msrb.mxu3 %v1081_v60  ;;  %16806 = vmatpush.xpose.msrb.mxu1 %v1079_v56  ;;  %v1090_v33 = vld [vmem:[%s19739_s9 + $0x1480] sm:$0xff] }
 0x558   : > { %v15469_v35 = vadd.f32 %v15468_v62, %v15449_v59  ;;  %v15488_v45 = vpop.f32.mrf.mxu3  ;;  %v23142_v60 = vld.sshfl [vmem:[#allocation1 + $0x8] sm:$0xff pattern:$0x73625140]  ;;  %v1091_v59 = vld [vmem:[%s19739_s9 + $0x1488] sm:$0xff] }
 0x559   : > { %v15508_v1 = vpop.f32.mrf.mxu0  ;;  %v410_v56 = vld [vmem:[%s19732_s7 + $0x540] sm:$0xff]  ;;  %v23160_v10 = vld.sshfl [vmem:[#allocation1 + $0x38] sm:$0xff pattern:$0x73625140] }
 0x55a   : > { %16905 = vmatpush.xpose.msra.mxu2 %v1852_v40  ;;  %16865 = vmatpush.xpose.msra.mxu0 %v1850_v63  ;;  %v15489_v4 = vadd.f32 %v15488_v45, %v15469_v35  ;;  %v15528_v5 = vpop.f32.mrf.mxu1  ;;  %v1093_v63 = vld [vmem:[%s19739_s9 + $0x1498] sm:$0xff]  ;;  %3003 = vst [vmem:[#allocation1] ss:$4 sm:$0xff] %v410_v56  ;;  %v1863_v45 = vld [vmem:[%s19739_s9 + $0x2ca8] sm:$0x3] }
 0x55b   : > { %16925 = vmatpush.xpose.msra.mxu3 %v1853_v43  ;;  %16885 = vmatpush.xpose.msra.mxu1 %v1851_v48  ;;  %v1864_v43 = vld [vmem:[%s19739_s9 + $0x2cb0] sm:$0x3]  ;;  %v1862_v48 = vld [vmem:[%s19739_s9 + $0x2ca0] sm:$0x3]  ;;  %v1865_v35 = vld [vmem:[%s19739_s9 + $0x2cb8] sm:$0x3] }
 0x55c   : > { %v15509_v58 = vadd.f32 %v15508_v1, %v15489_v4  ;;  %16827 = vmatmul.f32.vlgmr.msrb.gmra.mxu2 %v23030_v50  ;;  %16787 = vmatmul.f32.vlgmr.msrb.gmra.mxu0 %v23032_v2 }
 0x55d   : > { %16847 = vmatmul.f32.vlgmr.msrb.gmra.mxu3 %v23034_v22  ;;  %16807 = vmatmul.f32.vlgmr.msrb.gmra.mxu1 %v23037_v11  ;;  %v1088_v11 = vld [vmem:[%s19739_s9 + $0x1470] sm:$0xff] }
 0x55e   : > { %v15529_v16 = vadd.f32 %v15528_v5, %v15509_v58  ;;  %16906 = vmatpush.xpose.msra.mxu2 %v1084_v54  ;;  %16866 = vmatpush.xpose.msra.mxu0 %v1082_v55  ;;  %v23156_v54 = vld.sshfl [vmem:[#allocation1 + $0x30] sm:$0xff pattern:$0x73625140]  ;;  %v23158_v55 = vld.sshfl [vmem:[#allocation1 + $0x20] sm:$0xff pattern:$0x73625140] }
 0x55f   : > { %v15548_v19 = vpop.f32.mrf.mxu2  ;;  %16926 = vmatpush.xpose.msra.mxu3 %v1085_v17  ;;  %16886 = vmatpush.xpose.msra.mxu1 %v1083_v13  ;;  %v1094_v58 = vld [vmem:[%s19739_s9 + $0x14a0] sm:$0xff]  ;;  %v411_v13 = vld [vmem:[%s19732_s7 + $0x548] sm:$0xff] }
 0x560   : > { %v15549_v50 = vadd.f32 %v15548_v19, %v15529_v16  ;;  %v15568_v2 = vpop.f32.mrf.mxu3  ;;  %v23163_v17 = vld.sshfl [vmem:[#allocation1 + $0x28] sm:$0xff pattern:$0x73625140]  ;;  %v1095_v16 = vld [vmem:[%s19739_s9 + $0x14a8] sm:$0xff] }
 0x561   : > { %v15588_v22 = vpop.f32.mrf.mxu0  ;;  %3004 = vst [vmem:[#allocation1 + $0x20] ss:$4 sm:$0xff] %v411_v13  ;;  %v23181_v31 = vld.sshfl [vmem:[#allocation1 + $0x18] sm:$0xff pattern:$0x73625140] }
 0x562   : > { %16985 = vmatpush.xpose.msrb.mxu2 %v1856_v61  ;;  %16945 = vmatpush.xpose.msrb.mxu0 %v1854_v20  ;;  %v15569_v25 = vadd.f32 %v15568_v2, %v15549_v50  ;;  %v15608_v26 = vpop.f32.mrf.mxu1  ;;  %v1097_v20 = vld [vmem:[%s19739_s9 + $0x14b8] sm:$0xff]  ;;  %v1867_v2 = vld [vmem:[%s19739_s9 + $0x2cc8] sm:$0x3] }
 0x563   : > { %17005 = vmatpush.xpose.msrb.mxu3 %v1857_v0  ;;  %16965 = vmatpush.xpose.msrb.mxu1 %v1855_v3  ;;  %v1868_v0 = vld [vmem:[%s19739_s9 + $0x2cd0] sm:$0x3]  ;;  %v1866_v3 = vld [vmem:[%s19739_s9 + $0x2cc0] sm:$0x3]  ;;  %v1869_v50 = vld [vmem:[%s19739_s9 + $0x2cd8] sm:$0x3] }
 0x564   : > { %v15589_v15 = vadd.f32 %v15588_v22, %v15569_v25  ;;  %16907 = vmatmul.f32.vlgmr.msra.gmra.mxu2 %v23051_v6  ;;  %16867 = vmatmul.f32.vlgmr.msra.gmra.mxu0 %v23053_v23 }
 0x565   : > { %16927 = vmatmul.f32.vlgmr.msra.gmra.mxu3 %v23055_v36  ;;  %16887 = vmatmul.f32.vlgmr.msra.gmra.mxu1 %v23058_v32  ;;  %v1092_v32 = vld [vmem:[%s19739_s9 + $0x1490] sm:$0xff] }
 0x566   : > { %v15609_v41 = vadd.f32 %v15608_v26, %v15589_v15  ;;  %16986 = vmatpush.xpose.msrb.mxu2 %v1088_v11  ;;  %16946 = vmatpush.xpose.msrb.mxu0 %v1086_v12  ;;  %v23177_v11 = vld.sshfl [vmem:[#allocation1 + $0x10] sm:$0xff pattern:$0x73625140]  ;;  %v23179_v12 = vld.sshfl [vmem:[#allocation1] sm:$0xff pattern:$0x73625140] }
 0x567   : > { %v15628_v44 = vpop.f32.mrf.mxu2  ;;  %17006 = vmatpush.xpose.msrb.mxu3 %v1089_v42  ;;  %16966 = vmatpush.xpose.msrb.mxu1 %v1087_v37  ;;  %v1098_v15 = vld [vmem:[%s19739_s9 + $0x14c0] sm:$0xff]  ;;  %v412_v37 = vld [vmem:[%s19732_s7 + $0x550] sm:$0xff] }
 0x568   : > { %v15629_v6 = vadd.f32 %v15628_v44, %v15609_v41  ;;  %v15648_v23 = vpop.f32.mrf.mxu3  ;;  %v23184_v42 = vld.sshfl [vmem:[#allocation1 + $0x8] sm:$0xff pattern:$0x73625140]  ;;  %v1099_v41 = vld [vmem:[%s19739_s9 + $0x14c8] sm:$0xff] }
 0x569   : > { %v15668_v36 = vpop.f32.mrf.mxu0  ;;  %3013 = vst [vmem:[#allocation1] ss:$4 sm:$0xff] %v412_v37  ;;  %v23202_v56 = vld.sshfl [vmem:[#allocation1 + $0x38] sm:$0xff pattern:$0x73625140] }
 0x56a   : > { %17065 = vmatpush.xpose.msra.mxu2 %v1860_v18  ;;  %17025 = vmatpush.xpose.msra.mxu0 %v1858_v34  ;;  %v15649_v46 = vadd.f32 %v15648_v23, %v15629_v6  ;;  %v15688_v47 = vpop.f32.mrf.mxu1  ;;  %v1101_v34 = vld [vmem:[%s19739_s9 + $0x14d8] sm:$0xff]  ;;  %v1871_v23 = vld [vmem:[%s19739_s9 + $0x2ce8] sm:$0x3] }
 0x56b   : > { %17085 = vmatpush.xpose.msra.mxu3 %v1861_v21  ;;  %17045 = vmatpush.xpose.msra.mxu1 %v1859_v24  ;;  %v1872_v21 = vld [vmem:[%s19739_s9 + $0x2cf0] sm:$0x3]  ;;  %v1870_v24 = vld [vmem:[%s19739_s9 + $0x2ce0] sm:$0x3]  ;;  %v1873_v6 = vld [vmem:[%s19739_s9 + $0x2cf8] sm:$0x3] }
 0x56c   : > { %v15669_v40 = vadd.f32 %v15668_v36, %v15649_v46  ;;  %16987 = vmatmul.f32.vlgmr.msrb.gmra.mxu2 %v23072_v27  ;;  %16947 = vmatmul.f32.vlgmr.msrb.gmra.mxu0 %v23074_v38 }
 0x56d   : > { %17007 = vmatmul.f32.vlgmr.msrb.gmra.mxu3 %v23076_v51  ;;  %16967 = vmatmul.f32.vlgmr.msrb.gmra.mxu1 %v23079_v57  ;;  %v1096_v57 = vld [vmem:[%s19739_s9 + $0x14b0] sm:$0xff] }
 0x56e   : > { %v15689_v62 = vadd.f32 %v15688_v47, %v15669_v40  ;;  %17066 = vmatpush.xpose.msra.mxu2 %v1092_v32  ;;  %17026 = vmatpush.xpose.msra.mxu0 %v1090_v33  ;;  %v23198_v32 = vld.sshfl [vmem:[#allocation1 + $0x30] sm:$0xff pattern:$0x73625140]  ;;  %v23200_v33 = vld.sshfl [vmem:[#allocation1 + $0x20] sm:$0xff pattern:$0x73625140] }
 0x56f   : > { %v15708_v1 = vpop.f32.mrf.mxu2  ;;  %17086 = vmatpush.xpose.msra.mxu3 %v1093_v63  ;;  %17046 = vmatpush.xpose.msra.mxu1 %v1091_v59  ;;  %v1102_v40 = vld [vmem:[%s19739_s9 + $0x14e0] sm:$0xff]  ;;  %v413_v59 = vld [vmem:[%s19732_s7 + $0x558] sm:$0xff] }
 0x570   : > { %v15709_v27 = vadd.f32 %v15708_v1, %v15689_v62  ;;  %v15728_v38 = vpop.f32.mrf.mxu3  ;;  %v23205_v63 = vld.sshfl [vmem:[#allocation1 + $0x28] sm:$0xff pattern:$0x73625140]  ;;  %v1103_v62 = vld [vmem:[%s19739_s9 + $0x14e8] sm:$0xff] }
 0x571   : > { %v15748_v51 = vpop.f32.mrf.mxu0  ;;  %3014 = vst [vmem:[#allocation1 + $0x20] ss:$4 sm:$0xff] %v413_v59  ;;  %v23223_v13 = vld.sshfl [vmem:[#allocation1 + $0x18] sm:$0xff pattern:$0x73625140] }
 0x572   : > { %17145 = vmatpush.xpose.msrb.mxu2 %v1864_v43  ;;  %17105 = vmatpush.xpose.msrb.mxu0 %v1862_v48  ;;  %v15729_v4 = vadd.f32 %v15728_v38, %v15709_v27  ;;  %v15768_v5 = vpop.f32.mrf.mxu1  ;;  %v1105_v48 = vld [vmem:[%s19739_s9 + $0x14f8] sm:$0xff]  ;;  %v1875_v38 = vld [vmem:[%s19739_s9 + $0x2d08] sm:$0x3] }
 0x573   : > { %17165 = vmatpush.xpose.msrb.mxu3 %v1865_v35  ;;  %17125 = vmatpush.xpose.msrb.mxu1 %v1863_v45  ;;  %v1876_v35 = vld [vmem:[%s19739_s9 + $0x2d10] sm:$0x3]  ;;  %v1874_v45 = vld [vmem:[%s19739_s9 + $0x2d00] sm:$0x3]  ;;  %v1877_v27 = vld [vmem:[%s19739_s9 + $0x2d18] sm:$0x3] }
 0x574   : > { %v15749_v61 = vadd.f32 %v15748_v51, %v15729_v4  ;;  %17067 = vmatmul.f32.vlgmr.msra.gmra.mxu2 %v23093_v49  ;;  %17027 = vmatmul.f32.vlgmr.msra.gmra.mxu0 %v23095_v53 }
 0x575   : > { %17087 = vmatmul.f32.vlgmr.msra.gmra.mxu3 %v23097_v7  ;;  %17047 = vmatmul.f32.vlgmr.msra.gmra.mxu1 %v23100_v14  ;;  %v1100_v14 = vld [vmem:[%s19739_s9 + $0x14d0] sm:$0xff] }
 0x576   : > { %v15769_v19 = vadd.f32 %v15768_v5, %v15749_v61  ;;  %17146 = vmatpush.xpose.msrb.mxu2 %v1096_v57  ;;  %17106 = vmatpush.xpose.msrb.mxu0 %v1094_v58  ;;  %v23219_v57 = vld.sshfl [vmem:[#allocation1 + $0x10] sm:$0xff pattern:$0x73625140]  ;;  %v23221_v58 = vld.sshfl [vmem:[#allocation1] sm:$0xff pattern:$0x73625140] }
 0x577   : > { %v15788_v22 = vpop.f32.mrf.mxu2  ;;  %17166 = vmatpush.xpose.msrb.mxu3 %v1097_v20  ;;  %17126 = vmatpush.xpose.msrb.mxu1 %v1095_v16  ;;  %v1106_v61 = vld [vmem:[%s19739_s9 + $0x1500] sm:$0xff] }
 0x578   : > { %v15789_v49 = vadd.f32 %v15788_v22, %v15769_v19  ;;  %v15808_v53 = vpop.f32.mrf.mxu3  ;;  %v23226_v20 = vld.sshfl [vmem:[#allocation1 + $0x8] sm:$0xff pattern:$0x73625140]  ;;  %v1107_v19 = vld [vmem:[%s19739_s9 + $0x1508] sm:$0xff] }
 0x579   : > { %v15828_v7 = vpop.f32.mrf.mxu0  ;;  %v414_v16 = vld [vmem:[%s19732_s7 + $0x560] sm:$0xff]  ;;  %v23244_v37 = vld.sshfl [vmem:[#allocation1 + $0x38] sm:$0xff pattern:$0x73625140] }
 0x57a   : > { %17225 = vmatpush.xpose.msra.mxu2 %v1868_v0  ;;  %17185 = vmatpush.xpose.msra.mxu0 %v1866_v3  ;;  %v15809_v25 = vadd.f32 %v15808_v53, %v15789_v49  ;;  %v15848_v26 = vpop.f32.mrf.mxu1  ;;  %v1109_v3 = vld [vmem:[%s19739_s9 + $0x1518] sm:$0xff]  ;;  %3023 = vst [vmem:[#allocation1] ss:$4 sm:$0xff] %v414_v16  ;;  %v1879_v53 = vld [vmem:[%s19739_s9 + $0x2d28] sm:$0x3] }
 0x57b   : > { %17245 = vmatpush.xpose.msra.mxu3 %v1869_v50  ;;  %17205 = vmatpush.xpose.msra.mxu1 %v1867_v2  ;;  %v1880_v50 = vld [vmem:[%s19739_s9 + $0x2d30] sm:$0x3]  ;;  %v1878_v2 = vld [vmem:[%s19739_s9 + $0x2d20] sm:$0x3]  ;;  %v1881_v49 = vld [vmem:[%s19739_s9 + $0x2d38] sm:$0x3] }
 0x57c   : > { %v15829_v18 = vadd.f32 %v15828_v7, %v15809_v25  ;;  %17147 = vmatmul.f32.vlgmr.msrb.gmra.mxu2 %v23114_v8  ;;  %17107 = vmatmul.f32.vlgmr.msrb.gmra.mxu0 %v23116_v9 }
 0x57d   : > { %17167 = vmatmul.f32.vlgmr.msrb.gmra.mxu3 %v23118_v28  ;;  %17127 = vmatmul.f32.vlgmr.msrb.gmra.mxu1 %v23121_v39  ;;  %v1104_v39 = vld [vmem:[%s19739_s9 + $0x14f0] sm:$0xff] }
 0x57e   : > { %v15849_v44 = vadd.f32 %v15848_v26, %v15829_v18  ;;  %17226 = vmatpush.xpose.msra.mxu2 %v1100_v14  ;;  %17186 = vmatpush.xpose.msra.mxu0 %v1098_v15  ;;  %v23240_v14 = vld.sshfl [vmem:[#allocation1 + $0x30] sm:$0xff pattern:$0x73625140]  ;;  %v23242_v15 = vld.sshfl [vmem:[#allocation1 + $0x20] sm:$0xff pattern:$0x73625140] }
 0x57f   : > { %v15868_v36 = vpop.f32.mrf.mxu2  ;;  %17246 = vmatpush.xpose.msra.mxu3 %v1101_v34  ;;  %17206 = vmatpush.xpose.msra.mxu1 %v1099_v41  ;;  %v1110_v18 = vld [vmem:[%s19739_s9 + $0x1520] sm:$0xff]  ;;  %v415_v41 = vld [vmem:[%s19732_s7 + $0x568] sm:$0xff] }
 0x580   : > { %v15869_v8 = vadd.f32 %v15868_v36, %v15849_v44  ;;  %v15888_v9 = vpop.f32.mrf.mxu3  ;;  %v23247_v34 = vld.sshfl [vmem:[#allocation1 + $0x28] sm:$0xff pattern:$0x73625140]  ;;  %v1111_v44 = vld [vmem:[%s19739_s9 + $0x1528] sm:$0xff] }
 0x581   : > { %v15908_v28 = vpop.f32.mrf.mxu0  ;;  %3024 = vst [vmem:[#allocation1 + $0x20] ss:$4 sm:$0xff] %v415_v41  ;;  %v23265_v59 = vld.sshfl [vmem:[#allocation1 + $0x18] sm:$0xff pattern:$0x73625140] }
 0x582   : > { %17305 = vmatpush.xpose.msrb.mxu2 %v1872_v21  ;;  %17265 = vmatpush.xpose.msrb.mxu0 %v1870_v24  ;;  %v15889_v46 = vadd.f32 %v15888_v9, %v15869_v8  ;;  %v15928_v47 = vpop.f32.mrf.mxu1  ;;  %v1113_v24 = vld [vmem:[%s19739_s9 + $0x1538] sm:$0xff]  ;;  %v1883_v9 = vld [vmem:[%s19739_s9 + $0x2d48] sm:$0x3] }
 0x583   : > { %17325 = vmatpush.xpose.msrb.mxu3 %v1873_v6  ;;  %17285 = vmatpush.xpose.msrb.mxu1 %v1871_v23  ;;  %v1884_v6 = vld [vmem:[%s19739_s9 + $0x2d50] sm:$0x3]  ;;  %v1882_v23 = vld [vmem:[%s19739_s9 + $0x2d40] sm:$0x3]  ;;  %v1885_v8 = vld [vmem:[%s19739_s9 + $0x2d58] sm:$0x3] }
 0x584   : > { %v15909_v43 = vadd.f32 %v15908_v28, %v15889_v46  ;;  %17227 = vmatmul.f32.vlgmr.msra.gmra.mxu2 %v23135_v29  ;;  %17187 = vmatmul.f32.vlgmr.msra.gmra.mxu0 %v23137_v30 }
 0x585   : > { %17247 = vmatmul.f32.vlgmr.msra.gmra.mxu3 %v23139_v52  ;;  %17207 = vmatmul.f32.vlgmr.msra.gmra.mxu1 %v23142_v60  ;;  %v1108_v60 = vld [vmem:[%s19739_s9 + $0x1510] sm:$0xff] }
 0x586   : > { %v15929_v1 = vadd.f32 %v15928_v47, %v15909_v43  ;;  %17306 = vmatpush.xpose.msrb.mxu2 %v1104_v39  ;;  %17266 = vmatpush.xpose.msrb.mxu0 %v1102_v40  ;;  %v23261_v39 = vld.sshfl [vmem:[#allocation1 + $0x10] sm:$0xff pattern:$0x73625140]  ;;  %v23263_v40 = vld.sshfl [vmem:[#allocation1] sm:$0xff pattern:$0x73625140] }
 0x587   : > { %v15948_v51 = vpop.f32.mrf.mxu2  ;;  %17326 = vmatpush.xpose.msrb.mxu3 %v1105_v48  ;;  %17286 = vmatpush.xpose.msrb.mxu1 %v1103_v62  ;;  %v1114_v43 = vld [vmem:[%s19739_s9 + $0x1540] sm:$0xff]  ;;  %v416_v62 = vld [vmem:[%s19732_s7 + $0x570] sm:$0xff] }
 0x588   : > { %v15949_v29 = vadd.f32 %v15948_v51, %v15929_v1  ;;  %v15968_v30 = vpop.f32.mrf.mxu3  ;;  %v23268_v48 = vld.sshfl [vmem:[#allocation1 + $0x8] sm:$0xff pattern:$0x73625140]  ;;  %v1115_v1 = vld [vmem:[%s19739_s9 + $0x1548] sm:$0xff] }
 0x589   : > { %v15988_v52 = vpop.f32.mrf.mxu0  ;;  %3033 = vst [vmem:[#allocation1] ss:$4 sm:$0xff] %v416_v62  ;;  %v23286_v16 = vld.sshfl [vmem:[#allocation1 + $0x38] sm:$0xff pattern:$0x73625140] }
 0x58a   : > { %17385 = vmatpush.xpose.msra.mxu2 %v1876_v35  ;;  %17345 = vmatpush.xpose.msra.mxu0 %v1874_v45  ;;  %v15969_v4 = vadd.f32 %v15968_v30, %v15949_v29  ;;  %v16008_v5 = vpop.f32.mrf.mxu1  ;;  %v1117_v45 = vld [vmem:[%s19739_s9 + $0x1558] sm:$0xff]  ;;  %v1887_v30 = vld [vmem:[%s19739_s9 + $0x2d68] sm:$0x3] }
 0x58b   : > { %17405 = vmatpush.xpose.msra.mxu3 %v1877_v27  ;;  %17365 = vmatpush.xpose.msra.mxu1 %v1875_v38  ;;  %v1888_v27 = vld [vmem:[%s19739_s9 + $0x2d70] sm:$0x3]  ;;  %v1886_v38 = vld [vmem:[%s19739_s9 + $0x2d60] sm:$0x3]  ;;  %v1889_v29 = vld [vmem:[%s19739_s9 + $0x2d78] sm:$0x3] }
 0x58c   : > { %v15989_v0 = vadd.f32 %v15988_v52, %v15969_v4  ;;  %17307 = vmatmul.f32.vlgmr.msrb.gmra.mxu2 %v23156_v54  ;;  %17267 = vmatmul.f32.vlgmr.msrb.gmra.mxu0 %v23158_v55 }
 0x58d   : > { %17327 = vmatmul.f32.vlgmr.msrb.gmra.mxu3 %v23160_v10  ;;  %17287 = vmatmul.f32.vlgmr.msrb.gmra.mxu1 %v23163_v17  ;;  %v1112_v17 = vld [vmem:[%s19739_s9 + $0x1530] sm:$0xff] }
 0x58e   : > { %v16009_v22 = vadd.f32 %v16008_v5, %v15989_v0  ;;  %17386 = vmatpush.xpose.msra.mxu2 %v1108_v60  ;;  %17346 = vmatpush.xpose.msra.mxu0 %v1106_v61  ;;  %v23282_v60 = vld.sshfl [vmem:[#allocation1 + $0x30] sm:$0xff pattern:$0x73625140]  ;;  %v23284_v61 = vld.sshfl [vmem:[#allocation1 + $0x20] sm:$0xff pattern:$0x73625140] }
 0x58f   : > { %v16028_v7 = vpop.f32.mrf.mxu2  ;;  %17406 = vmatpush.xpose.msra.mxu3 %v1109_v3  ;;  %17366 = vmatpush.xpose.msra.mxu1 %v1107_v19  ;;  %v1118_v0 = vld [vmem:[%s19739_s9 + $0x1560] sm:$0xff]  ;;  %v417_v19 = vld [vmem:[%s19732_s7 + $0x578] sm:$0xff] }
 0x590   : > { %v16029_v54 = vadd.f32 %v16028_v7, %v16009_v22  ;;  %v16048_v55 = vpop.f32.mrf.mxu3  ;;  %v23289_v3 = vld.sshfl [vmem:[#allocation1 + $0x28] sm:$0xff pattern:$0x73625140]  ;;  %v1119_v22 = vld [vmem:[%s19739_s9 + $0x1568] sm:$0xff] }
 0x591   : > { %v16068_v10 = vpop.f32.mrf.mxu0  ;;  %3034 = vst [vmem:[#allocation1 + $0x20] ss:$4 sm:$0xff] %v417_v19  ;;  %v23307_v41 = vld.sshfl [vmem:[#allocation1 + $0x18] sm:$0xff pattern:$0x73625140] }
 0x592   : > { %17465 = vmatpush.xpose.msrb.mxu2 %v1880_v50  ;;  %17425 = vmatpush.xpose.msrb.mxu0 %v1878_v2  ;;  %v16049_v25 = vadd.f32 %v16048_v55, %v16029_v54  ;;  %v16088_v26 = vpop.f32.mrf.mxu1  ;;  %v1121_v2 = vld [vmem:[%s19739_s9 + $0x1578] sm:$0xff]  ;;  %v1891_v55 = vld [vmem:[%s19739_s9 + $0x2d88] sm:$0x3] }
 0x593   : > { %17485 = vmatpush.xpose.msrb.mxu3 %v1881_v49  ;;  %17445 = vmatpush.xpose.msrb.mxu1 %v1879_v53  ;;  %v1892_v49 = vld [vmem:[%s19739_s9 + $0x2d90] sm:$0x3]  ;;  %v1890_v53 = vld [vmem:[%s19739_s9 + $0x2d80] sm:$0x3]  ;;  %v1893_v54 = vld [vmem:[%s19739_s9 + $0x2d98] sm:$0x3] }
 0x594   : > { %v16069_v21 = vadd.f32 %v16068_v10, %v16049_v25  ;;  %17387 = vmatmul.f32.vlgmr.msra.gmra.mxu2 %v23177_v11  ;;  %17347 = vmatmul.f32.vlgmr.msra.gmra.mxu0 %v23179_v12 }
 0x595   : > { %17407 = vmatmul.f32.vlgmr.msra.gmra.mxu3 %v23181_v31  ;;  %17367 = vmatmul.f32.vlgmr.msra.gmra.mxu1 %v23184_v42  ;;  %v1116_v42 = vld [vmem:[%s19739_s9 + $0x1550] sm:$0xff] }
 0x596   : > { %v16089_v36 = vadd.f32 %v16088_v26, %v16069_v21  ;;  %17466 = vmatpush.xpose.msrb.mxu2 %v1112_v17  ;;  %17426 = vmatpush.xpose.msrb.mxu0 %v1110_v18  ;;  %v23303_v17 = vld.sshfl [vmem:[#allocation1 + $0x10] sm:$0xff pattern:$0x73625140]  ;;  %v23305_v18 = vld.sshfl [vmem:[#allocation1] sm:$0xff pattern:$0x73625140] }
 0x597   : > { %v16108_v28 = vpop.f32.mrf.mxu2  ;;  %17486 = vmatpush.xpose.msrb.mxu3 %v1113_v24  ;;  %17446 = vmatpush.xpose.msrb.mxu1 %v1111_v44  ;;  %v1122_v21 = vld [vmem:[%s19739_s9 + $0x1580] sm:$0xff] }
 0x598   : > { %v16109_v11 = vadd.f32 %v16108_v28, %v16089_v36  ;;  %v16128_v12 = vpop.f32.mrf.mxu3  ;;  %v23310_v24 = vld.sshfl [vmem:[#allocation1 + $0x8] sm:$0xff pattern:$0x73625140]  ;;  %v1123_v36 = vld [vmem:[%s19739_s9 + $0x1588] sm:$0xff] }
 0x599   : > { %v16148_v31 = vpop.f32.mrf.mxu0  ;;  %v418_v44 = vld [vmem:[%s19732_s7 + $0x580] sm:$0xff]  ;;  %v23328_v62 = vld.sshfl [vmem:[#allocation1 + $0x38] sm:$0xff pattern:$0x73625140] }
 0x59a   : > { %17545 = vmatpush.xpose.msra.mxu2 %v1884_v6  ;;  %17505 = vmatpush.xpose.msra.mxu0 %v1882_v23  ;;  %v16129_v46 = vadd.f32 %v16128_v12, %v16109_v11  ;;  %v16168_v47 = vpop.f32.mrf.mxu1  ;;  %v1125_v23 = vld [vmem:[%s19739_s9 + $0x1598] sm:$0xff]  ;;  %3043 = vst [vmem:[#allocation1] ss:$4 sm:$0xff] %v418_v44  ;;  %v1895_v12 = vld [vmem:[%s19739_s9 + $0x2da8] sm:$0x3] }
 0x59b   : > { %17565 = vmatpush.xpose.msra.mxu3 %v1885_v8  ;;  %17525 = vmatpush.xpose.msra.mxu1 %v1883_v9  ;;  %v1896_v8 = vld [vmem:[%s19739_s9 + $0x2db0] sm:$0x3]  ;;  %v1894_v9 = vld [vmem:[%s19739_s9 + $0x2da0] sm:$0x3]  ;;  %v1897_v11 = vld [vmem:[%s19739_s9 + $0x2db8] sm:$0x3] }
 0x59c   : > { %v16149_v35 = vadd.f32 %v16148_v31, %v16129_v46  ;;  %17467 = vmatmul.f32.vlgmr.msrb.gmra.mxu2 %v23198_v32  ;;  %17427 = vmatmul.f32.vlgmr.msrb.gmra.mxu0 %v23200_v33 }
 0x59d   : > { %17487 = vmatmul.f32.vlgmr.msrb.gmra.mxu3 %v23202_v56  ;;  %17447 = vmatmul.f32.vlgmr.msrb.gmra.mxu1 %v23205_v63  ;;  %v1120_v63 = vld [vmem:[%s19739_s9 + $0x1570] sm:$0xff] }
 0x59e   : > { %v16169_v51 = vadd.f32 %v16168_v47, %v16149_v35  ;;  %17546 = vmatpush.xpose.msra.mxu2 %v1116_v42  ;;  %17506 = vmatpush.xpose.msra.mxu0 %v1114_v43  ;;  %v23324_v42 = vld.sshfl [vmem:[#allocation1 + $0x30] sm:$0xff pattern:$0x73625140]  ;;  %v23326_v43 = vld.sshfl [vmem:[#allocation1 + $0x20] sm:$0xff pattern:$0x73625140] }
 0x59f   : > { %v16188_v52 = vpop.f32.mrf.mxu2  ;;  %17566 = vmatpush.xpose.msra.mxu3 %v1117_v45  ;;  %17526 = vmatpush.xpose.msra.mxu1 %v1115_v1  ;;  %v1126_v35 = vld [vmem:[%s19739_s9 + $0x15a0] sm:$0xff]  ;;  %v419_v1 = vld [vmem:[%s19732_s7 + $0x588] sm:$0xff] }
 0x5a0   : > { %v16189_v32 = vadd.f32 %v16188_v52, %v16169_v51  ;;  %v16208_v33 = vpop.f32.mrf.mxu3  ;;  %v23331_v45 = vld.sshfl [vmem:[#allocation1 + $0x28] sm:$0xff pattern:$0x73625140]  ;;  %v1127_v51 = vld [vmem:[%s19739_s9 + $0x15a8] sm:$0xff] }
 0x5a1   : > { %v16228_v56 = vpop.f32.mrf.mxu0  ;;  %3044 = vst [vmem:[#allocation1 + $0x20] ss:$4 sm:$0xff] %v419_v1  ;;  %v23349_v19 = vld.sshfl [vmem:[#allocation1 + $0x18] sm:$0xff pattern:$0x73625140] }
 0x5a2   : > { %17625 = vmatpush.xpose.msrb.mxu2 %v1888_v27  ;;  %17585 = vmatpush.xpose.msrb.mxu0 %v1886_v38  ;;  %v16209_v4 = vadd.f32 %v16208_v33, %v16189_v32  ;;  %v16248_v5 = vpop.f32.mrf.mxu1  ;;  %v1129_v38 = vld [vmem:[%s19739_s9 + $0x15b8] sm:$0xff]  ;;  %v1899_v33 = vld [vmem:[%s19739_s9 + $0x2dc8] sm:$0x3] }
 0x5a3   : > { %17645 = vmatpush.xpose.msrb.mxu3 %v1889_v29  ;;  %17605 = vmatpush.xpose.msrb.mxu1 %v1887_v30  ;;  %v1900_v29 = vld [vmem:[%s19739_s9 + $0x2dd0] sm:$0x3]  ;;  %v1898_v30 = vld [vmem:[%s19739_s9 + $0x2dc0] sm:$0x3]  ;;  %v1901_v32 = vld [vmem:[%s19739_s9 + $0x2dd8] sm:$0x3] }
 0x5a4   : > { %v16229_v50 = vadd.f32 %v16228_v56, %v16209_v4  ;;  %17547 = vmatmul.f32.vlgmr.msra.gmra.mxu2 %v23219_v57  ;;  %17507 = vmatmul.f32.vlgmr.msra.gmra.mxu0 %v23221_v58 }
 0x5a5   : > { %17567 = vmatmul.f32.vlgmr.msra.gmra.mxu3 %v23223_v13  ;;  %17527 = vmatmul.f32.vlgmr.msra.gmra.mxu1 %v23226_v20  ;;  %v1124_v20 = vld [vmem:[%s19739_s9 + $0x1590] sm:$0xff] }
 0x5a6   : > { %v16249_v7 = vadd.f32 %v16248_v5, %v16229_v50  ;;  %17626 = vmatpush.xpose.msrb.mxu2 %v1120_v63  ;;  %17586 = vmatpush.xpose.msrb.mxu0 %v1118_v0  ;;  %v23345_v63 = vld.sshfl [vmem:[#allocation1 + $0x10] sm:$0xff pattern:$0x73625140]  ;;  %v23347_v0 = vld.sshfl [vmem:[#allocation1] sm:$0xff pattern:$0x73625140] }
 0x5a7   : > { %v16268_v10 = vpop.f32.mrf.mxu2  ;;  %17646 = vmatpush.xpose.msrb.mxu3 %v1121_v2  ;;  %17606 = vmatpush.xpose.msrb.mxu1 %v1119_v22  ;;  %v1130_v50 = vld [vmem:[%s19739_s9 + $0x15c0] sm:$0xff]  ;;  %v420_v22 = vld [vmem:[%s19732_s7 + $0x590] sm:$0xff] }
 0x5a8   : > { %v16269_v57 = vadd.f32 %v16268_v10, %v16249_v7  ;;  %v16288_v58 = vpop.f32.mrf.mxu3  ;;  %v23352_v2 = vld.sshfl [vmem:[#allocation1 + $0x8] sm:$0xff pattern:$0x73625140]  ;;  %v1131_v7 = vld [vmem:[%s19739_s9 + $0x15c8] sm:$0xff] }
 0x5a9   : > { %v16308_v13 = vpop.f32.mrf.mxu0  ;;  %3053 = vst [vmem:[#allocation1] ss:$4 sm:$0xff] %v420_v22  ;;  %v23370_v44 = vld.sshfl [vmem:[#allocation1 + $0x38] sm:$0xff pattern:$0x73625140] }
 0x5aa   : > { %17705 = vmatpush.xpose.msra.mxu2 %v1892_v49  ;;  %17665 = vmatpush.xpose.msra.mxu0 %v1890_v53  ;;  %v16289_v25 = vadd.f32 %v16288_v58, %v16269_v57  ;;  %v16328_v26 = vpop.f32.mrf.mxu1  ;;  %v1133_v53 = vld [vmem:[%s19739_s9 + $0x15d8] sm:$0xff]  ;;  %v1903_v58 = vld [vmem:[%s19739_s9 + $0x2de8] sm:$0x3] }
 0x5ab   : > { %17725 = vmatpush.xpose.msra.mxu3 %v1893_v54  ;;  %17685 = vmatpush.xpose.msra.mxu1 %v1891_v55  ;;  %v1904_v54 = vld [vmem:[%s19739_s9 + $0x2df0] sm:$0x3]  ;;  %v1902_v55 = vld [vmem:[%s19739_s9 + $0x2de0] sm:$0x3]  ;;  %v1905_v57 = vld [vmem:[%s19739_s9 + $0x2df8] sm:$0x3] }
 0x5ac   : > { %v16309_v6 = vadd.f32 %v16308_v13, %v16289_v25  ;;  %17627 = vmatmul.f32.vlgmr.msrb.gmra.mxu2 %v23240_v14  ;;  %17587 = vmatmul.f32.vlgmr.msrb.gmra.mxu0 %v23242_v15 }
 0x5ad   : > { %17647 = vmatmul.f32.vlgmr.msrb.gmra.mxu3 %v23244_v37  ;;  %17607 = vmatmul.f32.vlgmr.msrb.gmra.mxu1 %v23247_v34  ;;  %v1128_v34 = vld [vmem:[%s19739_s9 + $0x15b0] sm:$0xff] }
 0x5ae   : > { %v16329_v28 = vadd.f32 %v16328_v26, %v16309_v6  ;;  %17706 = vmatpush.xpose.msra.mxu2 %v1124_v20  ;;  %17666 = vmatpush.xpose.msra.mxu0 %v1122_v21  ;;  %v23366_v20 = vld.sshfl [vmem:[#allocation1 + $0x30] sm:$0xff pattern:$0x73625140]  ;;  %v23368_v21 = vld.sshfl [vmem:[#allocation1 + $0x20] sm:$0xff pattern:$0x73625140] }
 0x5af   : > { %v16348_v31 = vpop.f32.mrf.mxu2  ;;  %17726 = vmatpush.xpose.msra.mxu3 %v1125_v23  ;;  %17686 = vmatpush.xpose.msra.mxu1 %v1123_v36  ;;  %v1134_v6 = vld [vmem:[%s19739_s9 + $0x15e0] sm:$0xff]  ;;  %v421_v36 = vld [vmem:[%s19732_s7 + $0x598] sm:$0xff] }
 0x5b0   : > { %v16349_v14 = vadd.f32 %v16348_v31, %v16329_v28  ;;  %v16368_v15 = vpop.f32.mrf.mxu3  ;;  %v23373_v23 = vld.sshfl [vmem:[#allocation1 + $0x28] sm:$0xff pattern:$0x73625140]  ;;  %v1135_v28 = vld [vmem:[%s19739_s9 + $0x15e8] sm:$0xff] }
 0x5b1   : > { %v16388_v37 = vpop.f32.mrf.mxu0  ;;  %3054 = vst [vmem:[#allocation1 + $0x20] ss:$4 sm:$0xff] %v421_v36  ;;  %v23391_v1 = vld.sshfl [vmem:[#allocation1 + $0x18] sm:$0xff pattern:$0x73625140] }
 0x5b2   : > { %17785 = vmatpush.xpose.msrb.mxu2 %v1896_v8  ;;  %17745 = vmatpush.xpose.msrb.mxu0 %v1894_v9  ;;  %v16369_v46 = vadd.f32 %v16368_v15, %v16349_v14  ;;  %v16408_v47 = vpop.f32.mrf.mxu1  ;;  %v1137_v9 = vld [vmem:[%s19739_s9 + $0x15f8] sm:$0xff]  ;;  %v1907_v15 = vld [vmem:[%s19739_s9 + $0x2e08] sm:$0x3] }
 0x5b3   : > { %17805 = vmatpush.xpose.msrb.mxu3 %v1897_v11  ;;  %17765 = vmatpush.xpose.msrb.mxu1 %v1895_v12  ;;  %v1908_v11 = vld [vmem:[%s19739_s9 + $0x2e10] sm:$0x3]  ;;  %v1906_v12 = vld [vmem:[%s19739_s9 + $0x2e00] sm:$0x3]  ;;  %v1909_v14 = vld [vmem:[%s19739_s9 + $0x2e18] sm:$0x3] }
 0x5b4   : > { %v16389_v27 = vadd.f32 %v16388_v37, %v16369_v46  ;;  %17707 = vmatmul.f32.vlgmr.msra.gmra.mxu2 %v23261_v39  ;;  %17667 = vmatmul.f32.vlgmr.msra.gmra.mxu0 %v23263_v40 }
 0x5b5   : > { %17727 = vmatmul.f32.vlgmr.msra.gmra.mxu3 %v23265_v59  ;;  %17687 = vmatmul.f32.vlgmr.msra.gmra.mxu1 %v23268_v48  ;;  %v1132_v48 = vld [vmem:[%s19739_s9 + $0x15d0] sm:$0xff] }
 0x5b6   : > { %v16409_v52 = vadd.f32 %v16408_v47, %v16389_v27  ;;  %17786 = vmatpush.xpose.msrb.mxu2 %v1128_v34  ;;  %17746 = vmatpush.xpose.msrb.mxu0 %v1126_v35  ;;  %v23387_v34 = vld.sshfl [vmem:[#allocation1 + $0x10] sm:$0xff pattern:$0x73625140]  ;;  %v23389_v35 = vld.sshfl [vmem:[#allocation1] sm:$0xff pattern:$0x73625140] }
 0x5b7   : > { %v16428_v56 = vpop.f32.mrf.mxu2  ;;  %17806 = vmatpush.xpose.msrb.mxu3 %v1129_v38  ;;  %17766 = vmatpush.xpose.msrb.mxu1 %v1127_v51  ;;  %v1138_v27 = vld [vmem:[%s19739_s9 + $0x1600] sm:$0xff] }
 0x5b8   : > { %v16429_v39 = vadd.f32 %v16428_v56, %v16409_v52  ;;  %v16448_v40 = vpop.f32.mrf.mxu3  ;;  %v23394_v38 = vld.sshfl [vmem:[#allocation1 + $0x8] sm:$0xff pattern:$0x73625140]  ;;  %v1139_v52 = vld [vmem:[%s19739_s9 + $0x1608] sm:$0xff] }
 0x5b9   : > { %v16468_v59 = vpop.f32.mrf.mxu0  ;;  %v422_v51 = vld [vmem:[%s19732_s7 + $0x5a0] sm:$0xff]  ;;  %v23412_v22 = vld.sshfl [vmem:[#allocation1 + $0x38] sm:$0xff pattern:$0x73625140] }
 0x5ba   : > { %17865 = vmatpush.xpose.msra.mxu2 %v1900_v29  ;;  %17825 = vmatpush.xpose.msra.mxu0 %v1898_v30  ;;  %v16449_v4 = vadd.f32 %v16448_v40, %v16429_v39  ;;  %v16488_v5 = vpop.f32.mrf.mxu1  ;;  %v1141_v30 = vld [vmem:[%s19739_s9 + $0x1618] sm:$0xff]  ;;  %3063 = vst [vmem:[#allocation1] ss:$4 sm:$0xff] %v422_v51  ;;  %v1911_v40 = vld [vmem:[%s19739_s9 + $0x2e28] sm:$0x3] }
 0x5bb   : > { %17885 = vmatpush.xpose.msra.mxu3 %v1901_v32  ;;  %17845 = vmatpush.xpose.msra.mxu1 %v1899_v33  ;;  %v1912_v32 = vld [vmem:[%s19739_s9 + $0x2e30] sm:$0x3]  ;;  %v1910_v33 = vld [vmem:[%s19739_s9 + $0x2e20] sm:$0x3]  ;;  %v1913_v39 = vld [vmem:[%s19739_s9 + $0x2e38] sm:$0x3] }
 0x5bc   : > { %v16469_v49 = vadd.f32 %v16468_v59, %v16449_v4  ;;  %17787 = vmatmul.f32.vlgmr.msrb.gmra.mxu2 %v23282_v60  ;;  %17747 = vmatmul.f32.vlgmr.msrb.gmra.mxu0 %v23284_v61 }
 0x5bd   : > { %17807 = vmatmul.f32.vlgmr.msrb.gmra.mxu3 %v23286_v16  ;;  %17767 = vmatmul.f32.vlgmr.msrb.gmra.mxu1 %v23289_v3  ;;  %v1136_v3 = vld [vmem:[%s19739_s9 + $0x15f0] sm:$0xff] }
 0x5be   : > { %v16489_v10 = vadd.f32 %v16488_v5, %v16469_v49  ;;  %17866 = vmatpush.xpose.msra.mxu2 %v1132_v48  ;;  %17826 = vmatpush.xpose.msra.mxu0 %v1130_v50  ;;  %v23408_v48 = vld.sshfl [vmem:[#allocation1 + $0x30] sm:$0xff pattern:$0x73625140]  ;;  %v23410_v50 = vld.sshfl [vmem:[#allocation1 + $0x20] sm:$0xff pattern:$0x73625140] }
 0x5bf   : > { %v16508_v13 = vpop.f32.mrf.mxu2  ;;  %17886 = vmatpush.xpose.msra.mxu3 %v1133_v53  ;;  %17846 = vmatpush.xpose.msra.mxu1 %v1131_v7  ;;  %v1142_v49 = vld [vmem:[%s19739_s9 + $0x1620] sm:$0xff]  ;;  %v423_v7 = vld [vmem:[%s19732_s7 + $0x5a8] sm:$0xff] }
 0x5c0   : > { %v16509_v60 = vadd.f32 %v16508_v13, %v16489_v10  ;;  %v16528_v61 = vpop.f32.mrf.mxu3  ;;  %v23415_v53 = vld.sshfl [vmem:[#allocation1 + $0x28] sm:$0xff pattern:$0x73625140]  ;;  %v1143_v10 = vld [vmem:[%s19739_s9 + $0x1628] sm:$0xff] }
 0x5c1   : > { %v16548_v16 = vpop.f32.mrf.mxu0  ;;  %3064 = vst [vmem:[#allocation1 + $0x20] ss:$4 sm:$0xff] %v423_v7  ;;  %v23433_v36 = vld.sshfl [vmem:[#allocation1 + $0x18] sm:$0xff pattern:$0x73625140] }
 0x5c2   : > { %17945 = vmatpush.xpose.msrb.mxu2 %v1904_v54  ;;  %17905 = vmatpush.xpose.msrb.mxu0 %v1902_v55  ;;  %v16529_v25 = vadd.f32 %v16528_v61, %v16509_v60  ;;  %v16568_v26 = vpop.f32.mrf.mxu1  ;;  %v1145_v55 = vld [vmem:[%s19739_s9 + $0x1638] sm:$0xff]  ;;  %v1915_v61 = vld [vmem:[%s19739_s9 + $0x2e48] sm:$0x3] }
 0x5c3   : > { %17965 = vmatpush.xpose.msrb.mxu3 %v1905_v57  ;;  %17925 = vmatpush.xpose.msrb.mxu1 %v1903_v58  ;;  %v1916_v57 = vld [vmem:[%s19739_s9 + $0x2e50] sm:$0x3]  ;;  %v1914_v58 = vld [vmem:[%s19739_s9 + $0x2e40] sm:$0x3]  ;;  %v1917_v60 = vld [vmem:[%s19739_s9 + $0x2e58] sm:$0x3] }
 0x5c4   : > { %v16549_v8 = vadd.f32 %v16548_v16, %v16529_v25  ;;  %17867 = vmatmul.f32.vlgmr.msra.gmra.mxu2 %v23303_v17  ;;  %17827 = vmatmul.f32.vlgmr.msra.gmra.mxu0 %v23305_v18 }
 0x5c5   : > { %17887 = vmatmul.f32.vlgmr.msra.gmra.mxu3 %v23307_v41  ;;  %17847 = vmatmul.f32.vlgmr.msra.gmra.mxu1 %v23310_v24  ;;  %v1140_v24 = vld [vmem:[%s19739_s9 + $0x1610] sm:$0xff] }
 0x5c6   : > { %v16569_v31 = vadd.f32 %v16568_v26, %v16549_v8  ;;  %17946 = vmatpush.xpose.msrb.mxu2 %v1136_v3  ;;  %17906 = vmatpush.xpose.msrb.mxu0 %v1134_v6  ;;  %v23429_v3 = vld.sshfl [vmem:[#allocation1 + $0x10] sm:$0xff pattern:$0x73625140]  ;;  %v23431_v6 = vld.sshfl [vmem:[#allocation1] sm:$0xff pattern:$0x73625140] }
 0x5c7   : > { %v16588_v37 = vpop.f32.mrf.mxu2  ;;  %17966 = vmatpush.xpose.msrb.mxu3 %v1137_v9  ;;  %17926 = vmatpush.xpose.msrb.mxu1 %v1135_v28  ;;  %v1146_v8 = vld [vmem:[%s19739_s9 + $0x1640] sm:$0xff]  ;;  %v424_v28 = vld [vmem:[%s19732_s7 + $0x5b0] sm:$0xff] }
 0x5c8   : > { %v16589_v17 = vadd.f32 %v16588_v37, %v16569_v31  ;;  %v16608_v18 = vpop.f32.mrf.mxu3  ;;  %v23436_v9 = vld.sshfl [vmem:[#allocation1 + $0x8] sm:$0xff pattern:$0x73625140]  ;;  %v1147_v31 = vld [vmem:[%s19739_s9 + $0x1648] sm:$0xff] }
 0x5c9   : > { %v16628_v41 = vpop.f32.mrf.mxu0  ;;  %3073 = vst [vmem:[#allocation1] ss:$4 sm:$0xff] %v424_v28  ;;  %v23454_v51 = vld.sshfl [vmem:[#allocation1 + $0x38] sm:$0xff pattern:$0x73625140] }
 0x5ca   : > { %18025 = vmatpush.xpose.msra.mxu2 %v1908_v11  ;;  %17985 = vmatpush.xpose.msra.mxu0 %v1906_v12  ;;  %v16609_v46 = vadd.f32 %v16608_v18, %v16589_v17  ;;  %v16648_v47 = vpop.f32.mrf.mxu1  ;;  %v1149_v12 = vld [vmem:[%s19739_s9 + $0x1658] sm:$0xff]  ;;  %v1919_v18 = vld [vmem:[%s19739_s9 + $0x2e68] sm:$0x3] }
 0x5cb   : > { %18045 = vmatpush.xpose.msra.mxu3 %v1909_v14  ;;  %18005 = vmatpush.xpose.msra.mxu1 %v1907_v15  ;;  %v1920_v14 = vld [vmem:[%s19739_s9 + $0x2e70] sm:$0x3]  ;;  %v1918_v15 = vld [vmem:[%s19739_s9 + $0x2e60] sm:$0x3]  ;;  %v1921_v17 = vld [vmem:[%s19739_s9 + $0x2e78] sm:$0x3] }
 0x5cc   : > { %v16629_v29 = vadd.f32 %v16628_v41, %v16609_v46  ;;  %17947 = vmatmul.f32.vlgmr.msrb.gmra.mxu2 %v23324_v42  ;;  %17907 = vmatmul.f32.vlgmr.msrb.gmra.mxu0 %v23326_v43 }
 0x5cd   : > { %17967 = vmatmul.f32.vlgmr.msrb.gmra.mxu3 %v23328_v62  ;;  %17927 = vmatmul.f32.vlgmr.msrb.gmra.mxu1 %v23331_v45  ;;  %v1144_v45 = vld [vmem:[%s19739_s9 + $0x1630] sm:$0xff] }
 0x5ce   : > { %v16649_v56 = vadd.f32 %v16648_v47, %v16629_v29  ;;  %18026 = vmatpush.xpose.msra.mxu2 %v1140_v24  ;;  %17986 = vmatpush.xpose.msra.mxu0 %v1138_v27  ;;  %v23450_v24 = vld.sshfl [vmem:[#allocation1 + $0x30] sm:$0xff pattern:$0x73625140]  ;;  %v23452_v27 = vld.sshfl [vmem:[#allocation1 + $0x20] sm:$0xff pattern:$0x73625140] }
 0x5cf   : > { %v16668_v59 = vpop.f32.mrf.mxu2  ;;  %18046 = vmatpush.xpose.msra.mxu3 %v1141_v30  ;;  %18006 = vmatpush.xpose.msra.mxu1 %v1139_v52  ;;  %v1150_v29 = vld [vmem:[%s19739_s9 + $0x1660] sm:$0xff]  ;;  %v425_v52 = vld [vmem:[%s19732_s7 + $0x5b8] sm:$0xff] }
 0x5d0   : > { %v16669_v42 = vadd.f32 %v16668_v59, %v16649_v56  ;;  %v16688_v43 = vpop.f32.mrf.mxu3  ;;  %v23457_v30 = vld.sshfl [vmem:[#allocation1 + $0x28] sm:$0xff pattern:$0x73625140]  ;;  %v1151_v56 = vld [vmem:[%s19739_s9 + $0x1668] sm:$0xff] }
 0x5d1   : > { %v16708_v62 = vpop.f32.mrf.mxu0  ;;  %3074 = vst [vmem:[#allocation1 + $0x20] ss:$4 sm:$0xff] %v425_v52  ;;  %v23475_v7 = vld.sshfl [vmem:[#allocation1 + $0x18] sm:$0xff pattern:$0x73625140] }
 0x5d2   : > { %18105 = vmatpush.xpose.msrb.mxu2 %v1912_v32  ;;  %18065 = vmatpush.xpose.msrb.mxu0 %v1910_v33  ;;  %v16689_v4 = vadd.f32 %v16688_v43, %v16669_v42  ;;  %v16728_v5 = vpop.f32.mrf.mxu1  ;;  %v1153_v33 = vld [vmem:[%s19739_s9 + $0x1678] sm:$0xff]  ;;  %v1923_v43 = vld [vmem:[%s19739_s9 + $0x2e88] sm:$0x3] }
 0x5d3   : > { %18125 = vmatpush.xpose.msrb.mxu3 %v1913_v39  ;;  %18085 = vmatpush.xpose.msrb.mxu1 %v1911_v40  ;;  %v1924_v39 = vld [vmem:[%s19739_s9 + $0x2e90] sm:$0x3]  ;;  %v1922_v40 = vld [vmem:[%s19739_s9 + $0x2e80] sm:$0x3]  ;;  %v1925_v42 = vld [vmem:[%s19739_s9 + $0x2e98] sm:$0x3] }
 0x5d4   : > { %v16709_v54 = vadd.f32 %v16708_v62, %v16689_v4  ;;  %18027 = vmatmul.f32.vlgmr.msra.gmra.mxu2 %v23345_v63  ;;  %17987 = vmatmul.f32.vlgmr.msra.gmra.mxu0 %v23347_v0 }
 0x5d5   : > { %18047 = vmatmul.f32.vlgmr.msra.gmra.mxu3 %v23349_v19  ;;  %18007 = vmatmul.f32.vlgmr.msra.gmra.mxu1 %v23352_v2  ;;  %v1148_v2 = vld [vmem:[%s19739_s9 + $0x1650] sm:$0xff] }
 0x5d6   : > { %v16729_v13 = vadd.f32 %v16728_v5, %v16709_v54  ;;  %18106 = vmatpush.xpose.msrb.mxu2 %v1144_v45  ;;  %18066 = vmatpush.xpose.msrb.mxu0 %v1142_v49  ;;  %v23471_v45 = vld.sshfl [vmem:[#allocation1 + $0x10] sm:$0xff pattern:$0x73625140]  ;;  %v23473_v49 = vld.sshfl [vmem:[#allocation1] sm:$0xff pattern:$0x73625140] }
 0x5d7   : > { %v16748_v16 = vpop.f32.mrf.mxu2  ;;  %18126 = vmatpush.xpose.msrb.mxu3 %v1145_v55  ;;  %18086 = vmatpush.xpose.msrb.mxu1 %v1143_v10  ;;  %v1154_v54 = vld [vmem:[%s19739_s9 + $0x1680] sm:$0xff] }
 0x5d8   : > { %v16749_v63 = vadd.f32 %v16748_v16, %v16729_v13  ;;  %v16768_v0 = vpop.f32.mrf.mxu3  ;;  %v23478_v55 = vld.sshfl [vmem:[#allocation1 + $0x8] sm:$0xff pattern:$0x73625140]  ;;  %v1155_v13 = vld [vmem:[%s19739_s9 + $0x1688] sm:$0xff] }
 0x5d9   : > { %v16788_v19 = vpop.f32.mrf.mxu0  ;;  %v426_v10 = vld [vmem:[%s19732_s7 + $0x5c0] sm:$0xff]  ;;  %v23496_v28 = vld.sshfl [vmem:[#allocation1 + $0x38] sm:$0xff pattern:$0x73625140] }
 0x5da   : > { %18185 = vmatpush.xpose.msra.mxu2 %v1916_v57  ;;  %18145 = vmatpush.xpose.msra.mxu0 %v1914_v58  ;;  %v16769_v25 = vadd.f32 %v16768_v0, %v16749_v63  ;;  %v16808_v26 = vpop.f32.mrf.mxu1  ;;  %v1157_v58 = vld [vmem:[%s19739_s9 + $0x1698] sm:$0xff]  ;;  %3083 = vst [vmem:[#allocation1] ss:$4 sm:$0xff] %v426_v10  ;;  %v1927_v0 = vld [vmem:[%s19739_s9 + $0x2ea8] sm:$0x3] }
 0x5db   : > { %18205 = vmatpush.xpose.msra.mxu3 %v1917_v60  ;;  %18165 = vmatpush.xpose.msra.mxu1 %v1915_v61  ;;  %v1928_v60 = vld [vmem:[%s19739_s9 + $0x2eb0] sm:$0x3]  ;;  %v1926_v61 = vld [vmem:[%s19739_s9 + $0x2ea0] sm:$0x3]  ;;  %v1929_v63 = vld [vmem:[%s19739_s9 + $0x2eb8] sm:$0x3] }
 0x5dc   : > { %v16789_v11 = vadd.f32 %v16788_v19, %v16769_v25  ;;  %18107 = vmatmul.f32.vlgmr.msrb.gmra.mxu2 %v23366_v20  ;;  %18067 = vmatmul.f32.vlgmr.msrb.gmra.mxu0 %v23368_v21 }
 0x5dd   : > { %18127 = vmatmul.f32.vlgmr.msrb.gmra.mxu3 %v23370_v44  ;;  %18087 = vmatmul.f32.vlgmr.msrb.gmra.mxu1 %v23373_v23  ;;  %v1152_v23 = vld [vmem:[%s19739_s9 + $0x1670] sm:$0xff] }
 0x5de   : > { %v16809_v37 = vadd.f32 %v16808_v26, %v16789_v11  ;;  %18186 = vmatpush.xpose.msra.mxu2 %v1148_v2  ;;  %18146 = vmatpush.xpose.msra.mxu0 %v1146_v8  ;;  %v23492_v2 = vld.sshfl [vmem:[#allocation1 + $0x30] sm:$0xff pattern:$0x73625140]  ;;  %v23494_v8 = vld.sshfl [vmem:[#allocation1 + $0x20] sm:$0xff pattern:$0x73625140] }
 0x5df   : > { %v16828_v41 = vpop.f32.mrf.mxu2  ;;  %18206 = vmatpush.xpose.msra.mxu3 %v1149_v12  ;;  %18166 = vmatpush.xpose.msra.mxu1 %v1147_v31  ;;  %v1158_v11 = vld [vmem:[%s19739_s9 + $0x16a0] sm:$0xff]  ;;  %v427_v31 = vld [vmem:[%s19732_s7 + $0x5c8] sm:$0xff] }
 0x5e0   : > { %v16829_v20 = vadd.f32 %v16828_v41, %v16809_v37  ;;  %v16848_v21 = vpop.f32.mrf.mxu3  ;;  %v23499_v12 = vld.sshfl [vmem:[#allocation1 + $0x28] sm:$0xff pattern:$0x73625140]  ;;  %v1159_v37 = vld [vmem:[%s19739_s9 + $0x16a8] sm:$0xff] }
 0x5e1   : > { %v16868_v44 = vpop.f32.mrf.mxu0  ;;  %3084 = vst [vmem:[#allocation1 + $0x20] ss:$4 sm:$0xff] %v427_v31  ;;  %v23517_v52 = vld.sshfl [vmem:[#allocation1 + $0x18] sm:$0xff pattern:$0x73625140] }
 0x5e2   : > { %18265 = vmatpush.xpose.msrb.mxu2 %v1920_v14  ;;  %18225 = vmatpush.xpose.msrb.mxu0 %v1918_v15  ;;  %v16849_v46 = vadd.f32 %v16848_v21, %v16829_v20  ;;  %v16888_v47 = vpop.f32.mrf.mxu1  ;;  %v1161_v15 = vld [vmem:[%s19739_s9 + $0x16b8] sm:$0xff]  ;;  %v1931_v21 = vld [vmem:[%s19739_s9 + $0x2ec8] sm:$0x3] }
 0x5e3   : > { %18285 = vmatpush.xpose.msrb.mxu3 %v1921_v17  ;;  %18245 = vmatpush.xpose.msrb.mxu1 %v1919_v18  ;;  %v1932_v17 = vld [vmem:[%s19739_s9 + $0x2ed0] sm:$0x3]  ;;  %v1930_v18 = vld [vmem:[%s19739_s9 + $0x2ec0] sm:$0x3]  ;;  %v1933_v20 = vld [vmem:[%s19739_s9 + $0x2ed8] sm:$0x3] }
 0x5e4   : > { %v16869_v32 = vadd.f32 %v16868_v44, %v16849_v46  ;;  %18187 = vmatmul.f32.vlgmr.msra.gmra.mxu2 %v23387_v34  ;;  %18147 = vmatmul.f32.vlgmr.msra.gmra.mxu0 %v23389_v35 }
 0x5e5   : > { %18207 = vmatmul.f32.vlgmr.msra.gmra.mxu3 %v23391_v1  ;;  %18167 = vmatmul.f32.vlgmr.msra.gmra.mxu1 %v23394_v38  ;;  %v1156_v38 = vld [vmem:[%s19739_s9 + $0x1690] sm:$0xff] }
 0x5e6   : > { %v16889_v59 = vadd.f32 %v16888_v47, %v16869_v32  ;;  %18266 = vmatpush.xpose.msrb.mxu2 %v1152_v23  ;;  %18226 = vmatpush.xpose.msrb.mxu0 %v1150_v29  ;;  %v23513_v23 = vld.sshfl [vmem:[#allocation1 + $0x10] sm:$0xff pattern:$0x73625140]  ;;  %v23515_v29 = vld.sshfl [vmem:[#allocation1] sm:$0xff pattern:$0x73625140] }
 0x5e7   : > { %v16908_v62 = vpop.f32.mrf.mxu2  ;;  %18286 = vmatpush.xpose.msrb.mxu3 %v1153_v33  ;;  %18246 = vmatpush.xpose.msrb.mxu1 %v1151_v56  ;;  %v1162_v32 = vld [vmem:[%s19739_s9 + $0x16c0] sm:$0xff]  ;;  %v428_v56 = vld [vmem:[%s19732_s7 + $0x5d0] sm:$0xff] }
 0x5e8   : > { %v16909_v34 = vadd.f32 %v16908_v62, %v16889_v59  ;;  %v16928_v35 = vpop.f32.mrf.mxu3  ;;  %v23520_v33 = vld.sshfl [vmem:[#allocation1 + $0x8] sm:$0xff pattern:$0x73625140]  ;;  %v1163_v59 = vld [vmem:[%s19739_s9 + $0x16c8] sm:$0xff] }
 0x5e9   : > { %v16948_v1 = vpop.f32.mrf.mxu0  ;;  %3093 = vst [vmem:[#allocation1] ss:$4 sm:$0xff] %v428_v56  ;;  %v23538_v10 = vld.sshfl [vmem:[#allocation1 + $0x38] sm:$0xff pattern:$0x73625140] }
 0x5ea   : > { %18345 = vmatpush.xpose.msra.mxu2 %v1924_v39  ;;  %18305 = vmatpush.xpose.msra.mxu0 %v1922_v40  ;;  %v16929_v4 = vadd.f32 %v16928_v35, %v16909_v34  ;;  %v16968_v5 = vpop.f32.mrf.mxu1  ;;  %v1165_v40 = vld [vmem:[%s19739_s9 + $0x16d8] sm:$0xff]  ;;  %v1935_v35 = vld [vmem:[%s19739_s9 + $0x2ee8] sm:$0x3] }
 0x5eb   : > { %18365 = vmatpush.xpose.msra.mxu3 %v1925_v42  ;;  %18325 = vmatpush.xpose.msra.mxu1 %v1923_v43  ;;  %v1936_v42 = vld [vmem:[%s19739_s9 + $0x2ef0] sm:$0x3]  ;;  %v1934_v43 = vld [vmem:[%s19739_s9 + $0x2ee0] sm:$0x3]  ;;  %v1937_v34 = vld [vmem:[%s19739_s9 + $0x2ef8] sm:$0x3] }
 0x5ec   : > { %v16949_v57 = vadd.f32 %v16948_v1, %v16929_v4  ;;  %18267 = vmatmul.f32.vlgmr.msrb.gmra.mxu2 %v23408_v48  ;;  %18227 = vmatmul.f32.vlgmr.msrb.gmra.mxu0 %v23410_v50 }
 0x5ed   : > { %18287 = vmatmul.f32.vlgmr.msrb.gmra.mxu3 %v23412_v22  ;;  %18247 = vmatmul.f32.vlgmr.msrb.gmra.mxu1 %v23415_v53  ;;  %v1160_v53 = vld [vmem:[%s19739_s9 + $0x16b0] sm:$0xff] }
 0x5ee   : > { %v16969_v16 = vadd.f32 %v16968_v5, %v16949_v57  ;;  %18346 = vmatpush.xpose.msra.mxu2 %v1156_v38  ;;  %18306 = vmatpush.xpose.msra.mxu0 %v1154_v54  ;;  %v23534_v38 = vld.sshfl [vmem:[#allocation1 + $0x30] sm:$0xff pattern:$0x73625140]  ;;  %v23536_v54 = vld.sshfl [vmem:[#allocation1 + $0x20] sm:$0xff pattern:$0x73625140] }
 0x5ef   : > { %v16988_v19 = vpop.f32.mrf.mxu2  ;;  %18366 = vmatpush.xpose.msra.mxu3 %v1157_v58  ;;  %18326 = vmatpush.xpose.msra.mxu1 %v1155_v13  ;;  %v1166_v57 = vld [vmem:[%s19739_s9 + $0x16e0] sm:$0xff]  ;;  %v429_v13 = vld [vmem:[%s19732_s7 + $0x5d8] sm:$0xff] }
 0x5f0   : > { %v16989_v48 = vadd.f32 %v16988_v19, %v16969_v16  ;;  %v17008_v50 = vpop.f32.mrf.mxu3  ;;  %v23541_v58 = vld.sshfl [vmem:[#allocation1 + $0x28] sm:$0xff pattern:$0x73625140]  ;;  %v1167_v16 = vld [vmem:[%s19739_s9 + $0x16e8] sm:$0xff] }
 0x5f1   : > { %v17028_v22 = vpop.f32.mrf.mxu0  ;;  %3094 = vst [vmem:[#allocation1 + $0x20] ss:$4 sm:$0xff] %v429_v13  ;;  %v23559_v31 = vld.sshfl [vmem:[#allocation1 + $0x18] sm:$0xff pattern:$0x73625140] }
 0x5f2   : > { %18425 = vmatpush.xpose.msrb.mxu2 %v1928_v60  ;;  %18385 = vmatpush.xpose.msrb.mxu0 %v1926_v61  ;;  %v17009_v25 = vadd.f32 %v17008_v50, %v16989_v48  ;;  %v17048_v26 = vpop.f32.mrf.mxu1  ;;  %v1169_v61 = vld [vmem:[%s19739_s9 + $0x16f8] sm:$0xff]  ;;  %v1939_v50 = vld [vmem:[%s19739_s9 + $0x2f08] sm:$0x3] }
 0x5f3   : > { %18445 = vmatpush.xpose.msrb.mxu3 %v1929_v63  ;;  %18405 = vmatpush.xpose.msrb.mxu1 %v1927_v0  ;;  %v1940_v63 = vld [vmem:[%s19739_s9 + $0x2f10] sm:$0x3]  ;;  %v1938_v0 = vld [vmem:[%s19739_s9 + $0x2f00] sm:$0x3]  ;;  %v1941_v48 = vld [vmem:[%s19739_s9 + $0x2f18] sm:$0x3] }
 0x5f4   : > { %v17029_v14 = vadd.f32 %v17028_v22, %v17009_v25  ;;  %18347 = vmatmul.f32.vlgmr.msra.gmra.mxu2 %v23429_v3  ;;  %18307 = vmatmul.f32.vlgmr.msra.gmra.mxu0 %v23431_v6 }
 0x5f5   : > { %18367 = vmatmul.f32.vlgmr.msra.gmra.mxu3 %v23433_v36  ;;  %18327 = vmatmul.f32.vlgmr.msra.gmra.mxu1 %v23436_v9  ;;  %v1164_v9 = vld [vmem:[%s19739_s9 + $0x16d0] sm:$0xff] }
 0x5f6   : > { %v17049_v41 = vadd.f32 %v17048_v26, %v17029_v14  ;;  %18426 = vmatpush.xpose.msrb.mxu2 %v1160_v53  ;;  %18386 = vmatpush.xpose.msrb.mxu0 %v1158_v11  ;;  %v23555_v53 = vld.sshfl [vmem:[#allocation1 + $0x10] sm:$0xff pattern:$0x73625140]  ;;  %v23557_v11 = vld.sshfl [vmem:[#allocation1] sm:$0xff pattern:$0x73625140] }
 0x5f7   : > { %v17068_v44 = vpop.f32.mrf.mxu2  ;;  %18446 = vmatpush.xpose.msrb.mxu3 %v1161_v15  ;;  %18406 = vmatpush.xpose.msrb.mxu1 %v1159_v37  ;;  %v1170_v14 = vld [vmem:[%s19739_s9 + $0x1700] sm:$0xff] }
 0x5f8   : > { %v17069_v3 = vadd.f32 %v17068_v44, %v17049_v41  ;;  %v17088_v6 = vpop.f32.mrf.mxu3  ;;  %v23562_v15 = vld.sshfl [vmem:[#allocation1 + $0x8] sm:$0xff pattern:$0x73625140]  ;;  %v1171_v41 = vld [vmem:[%s19739_s9 + $0x1708] sm:$0xff] }
 0x5f9   : > { %v17108_v36 = vpop.f32.mrf.mxu0  ;;  %v430_v37 = vld [vmem:[%s19732_s7 + $0x5e0] sm:$0xff]  ;;  %v23580_v56 = vld.sshfl [vmem:[#allocation1 + $0x38] sm:$0xff pattern:$0x73625140] }
 0x5fa   : > { %18505 = vmatpush.xpose.msra.mxu2 %v1932_v17  ;;  %18465 = vmatpush.xpose.msra.mxu0 %v1930_v18  ;;  %v17089_v46 = vadd.f32 %v17088_v6, %v17069_v3  ;;  %v17128_v47 = vpop.f32.mrf.mxu1  ;;  %v1173_v18 = vld [vmem:[%s19739_s9 + $0x1718] sm:$0xff]  ;;  %3103 = vst [vmem:[#allocation1] ss:$4 sm:$0xff] %v430_v37  ;;  %v1943_v6 = vld [vmem:[%s19739_s9 + $0x2f28] sm:$0x3] }
 0x5fb   : > { %18525 = vmatpush.xpose.msra.mxu3 %v1933_v20  ;;  %18485 = vmatpush.xpose.msra.mxu1 %v1931_v21  ;;  %v1944_v20 = vld [vmem:[%s19739_s9 + $0x2f30] sm:$0x3]  ;;  %v1942_v21 = vld [vmem:[%s19739_s9 + $0x2f20] sm:$0x3]  ;;  %v1945_v3 = vld [vmem:[%s19739_s9 + $0x2f38] sm:$0x3] }
 0x5fc   : > { %v17109_v39 = vadd.f32 %v17108_v36, %v17089_v46  ;;  %18427 = vmatmul.f32.vlgmr.msrb.gmra.mxu2 %v23450_v24  ;;  %18387 = vmatmul.f32.vlgmr.msrb.gmra.mxu0 %v23452_v27 }
 0x5fd   : > { %18447 = vmatmul.f32.vlgmr.msrb.gmra.mxu3 %v23454_v51  ;;  %18407 = vmatmul.f32.vlgmr.msrb.gmra.mxu1 %v23457_v30  ;;  %v1168_v30 = vld [vmem:[%s19739_s9 + $0x16f0] sm:$0xff] }
 0x5fe   : > { %v17129_v62 = vadd.f32 %v17128_v47, %v17109_v39  ;;  %18506 = vmatpush.xpose.msra.mxu2 %v1164_v9  ;;  %18466 = vmatpush.xpose.msra.mxu0 %v1162_v32  ;;  %v23576_v9 = vld.sshfl [vmem:[#allocation1 + $0x30] sm:$0xff pattern:$0x73625140]  ;;  %v23578_v32 = vld.sshfl [vmem:[#allocation1 + $0x20] sm:$0xff pattern:$0x73625140] }
 0x5ff   : > { %v17148_v1 = vpop.f32.mrf.mxu2  ;;  %18526 = vmatpush.xpose.msra.mxu3 %v1165_v40  ;;  %18486 = vmatpush.xpose.msra.mxu1 %v1163_v59  ;;  %v1174_v39 = vld [vmem:[%s19739_s9 + $0x1720] sm:$0xff]  ;;  %v431_v59 = vld [vmem:[%s19732_s7 + $0x5e8] sm:$0xff] }
 0x600   : > { %v17149_v24 = vadd.f32 %v17148_v1, %v17129_v62  ;;  %v17168_v27 = vpop.f32.mrf.mxu3  ;;  %v23583_v40 = vld.sshfl [vmem:[#allocation1 + $0x28] sm:$0xff pattern:$0x73625140]  ;;  %v1175_v62 = vld [vmem:[%s19739_s9 + $0x1728] sm:$0xff] }
 0x601   : > { %v17188_v51 = vpop.f32.mrf.mxu0  ;;  %3104 = vst [vmem:[#allocation1 + $0x20] ss:$4 sm:$0xff] %v431_v59  ;;  %v23601_v13 = vld.sshfl [vmem:[#allocation1 + $0x18] sm:$0xff pattern:$0x73625140]  ;;  %v1189_v59 = vld [vmem:[%s19739_s9 + $0x1798] sm:$0xff] }
 0x602   : > { %18585 = vmatpush.xpose.msrb.mxu2 %v1936_v42  ;;  %18545 = vmatpush.xpose.msrb.mxu0 %v1934_v43  ;;  %v17169_v4 = vadd.f32 %v17168_v27, %v17149_v24  ;;  %v17208_v5 = vpop.f32.mrf.mxu1  ;;  %v1177_v43 = vld [vmem:[%s19739_s9 + $0x1738] sm:$0xff]  ;;  %v1947_v27 = vld [vmem:[%s19739_s9 + $0x2f48] sm:$0x3] }
 0x603   : > { %18605 = vmatpush.xpose.msrb.mxu3 %v1937_v34  ;;  %18565 = vmatpush.xpose.msrb.mxu1 %v1935_v35  ;;  %v1948_v34 = vld [vmem:[%s19739_s9 + $0x2f50] sm:$0x3]  ;;  %v1946_v35 = vld [vmem:[%s19739_s9 + $0x2f40] sm:$0x3]  ;;  %v1949_v24 = vld [vmem:[%s19739_s9 + $0x2f58] sm:$0x3] }
 0x604   : > { %v17189_v60 = vadd.f32 %v17188_v51, %v17169_v4  ;;  %18507 = vmatmul.f32.vlgmr.msra.gmra.mxu2 %v23471_v45  ;;  %18467 = vmatmul.f32.vlgmr.msra.gmra.mxu0 %v23473_v49 }
 0x605   : > { %18527 = vmatmul.f32.vlgmr.msra.gmra.mxu3 %v23475_v7  ;;  %18487 = vmatmul.f32.vlgmr.msra.gmra.mxu1 %v23478_v55  ;;  %v1172_v55 = vld [vmem:[%s19739_s9 + $0x1710] sm:$0xff] }
 0x606   : > { %v17209_v19 = vadd.f32 %v17208_v5, %v17189_v60  ;;  %18586 = vmatpush.xpose.msrb.mxu2 %v1168_v30  ;;  %18546 = vmatpush.xpose.msrb.mxu0 %v1166_v57  ;;  %v23597_v30 = vld.sshfl [vmem:[#allocation1 + $0x10] sm:$0xff pattern:$0x73625140]  ;;  %v23599_v57 = vld.sshfl [vmem:[#allocation1] sm:$0xff pattern:$0x73625140] }
 0x607   : > { %v17228_v22 = vpop.f32.mrf.mxu2  ;;  %18606 = vmatpush.xpose.msrb.mxu3 %v1169_v61  ;;  %18566 = vmatpush.xpose.msrb.mxu1 %v1167_v16  ;;  %v1178_v60 = vld [vmem:[%s19739_s9 + $0x1740] sm:$0xff]  ;;  %v432_v16 = vld [vmem:[%s19732_s7 + $0x5f0] sm:$0xff] }
 0x608   : > { %v17229_v45 = vadd.f32 %v17228_v22, %v17209_v19  ;;  %v17248_v49 = vpop.f32.mrf.mxu3  ;;  %v23604_v61 = vld.sshfl [vmem:[#allocation1 + $0x8] sm:$0xff pattern:$0x73625140]  ;;  %v1179_v19 = vld [vmem:[%s19739_s9 + $0x1748] sm:$0xff] }
 0x609   : > { %v17268_v7 = vpop.f32.mrf.mxu0  ;;  %3113 = vst [vmem:[#allocation1] ss:$4 sm:$0xff] %v432_v16  ;;  %v23622_v37 = vld.sshfl [vmem:[#allocation1 + $0x38] sm:$0xff pattern:$0x73625140] }
 0x60a   : > { %18665 = vmatpush.xpose.msra.mxu2 %v1940_v63  ;;  %18625 = vmatpush.xpose.msra.mxu0 %v1938_v0  ;;  %v17249_v25 = vadd.f32 %v17248_v49, %v17229_v45  ;;  %v17288_v26 = vpop.f32.mrf.mxu1  ;;  %v1181_v0 = vld [vmem:[%s19739_s9 + $0x1758] sm:$0xff]  ;;  %v1951_v49 = vld [vmem:[%s19739_s9 + $0x2f68] sm:$0x3] }
 0x60b   : > { %18685 = vmatpush.xpose.msra.mxu3 %v1941_v48  ;;  %18645 = vmatpush.xpose.msra.mxu1 %v1939_v50  ;;  %v1952_v48 = vld [vmem:[%s19739_s9 + $0x2f70] sm:$0x3]  ;;  %v1950_v50 = vld [vmem:[%s19739_s9 + $0x2f60] sm:$0x3]  ;;  %v1953_v45 = vld [vmem:[%s19739_s9 + $0x2f78] sm:$0x3] }
 0x60c   : > { %v17269_v17 = vadd.f32 %v17268_v7, %v17249_v25  ;;  %18587 = vmatmul.f32.vlgmr.msrb.gmra.mxu2 %v23492_v2  ;;  %18547 = vmatmul.f32.vlgmr.msrb.gmra.mxu0 %v23494_v8  ;;  %v1965_v16 = vld [vmem:[%s19739_s9 + $0x2fd8] sm:$0x3] }
 0x60d   : > { %18607 = vmatmul.f32.vlgmr.msrb.gmra.mxu3 %v23496_v28  ;;  %18567 = vmatmul.f32.vlgmr.msrb.gmra.mxu1 %v23499_v12  ;;  %v1176_v12 = vld [vmem:[%s19739_s9 + $0x1730] sm:$0xff] }
 0x60e   : > { %v17289_v44 = vadd.f32 %v17288_v26, %v17269_v17  ;;  %18666 = vmatpush.xpose.msra.mxu2 %v1172_v55  ;;  %18626 = vmatpush.xpose.msra.mxu0 %v1170_v14  ;;  %v23618_v55 = vld.sshfl [vmem:[#allocation1 + $0x30] sm:$0xff pattern:$0x73625140]  ;;  %v23620_v14 = vld.sshfl [vmem:[#allocation1 + $0x20] sm:$0xff pattern:$0x73625140] }
 0x60f   : > { %v17308_v36 = vpop.f32.mrf.mxu2  ;;  %18686 = vmatpush.xpose.msra.mxu3 %v1173_v18  ;;  %18646 = vmatpush.xpose.msra.mxu1 %v1171_v41  ;;  %v1182_v17 = vld [vmem:[%s19739_s9 + $0x1760] sm:$0xff]  ;;  %v433_v41 = vld [vmem:[%s19732_s7 + $0x5f8] sm:$0xff] }
 0x610   : > { %v17309_v2 = vadd.f32 %v17308_v36, %v17289_v44  ;;  %v17328_v8 = vpop.f32.mrf.mxu3  ;;  %v23625_v18 = vld.sshfl [vmem:[#allocation1 + $0x28] sm:$0xff pattern:$0x73625140]  ;;  %v1183_v44 = vld [vmem:[%s19739_s9 + $0x1768] sm:$0xff] }
 0x611   : > { %v17348_v28 = vpop.f32.mrf.mxu0  ;;  %3114 = vst [vmem:[#allocation1 + $0x20] ss:$4 sm:$0xff] %v433_v41 }
 0x612   : > { %18745 = vmatpush.xpose.msrb.mxu2 %v1944_v20  ;;  %18705 = vmatpush.xpose.msrb.mxu0 %v1942_v21  ;;  %v17329_v46 = vadd.f32 %v17328_v8, %v17309_v2  ;;  %v17368_v47 = vpop.f32.mrf.mxu1  ;;  %v1185_v21 = vld [vmem:[%s19739_s9 + $0x1778] sm:$0xff]  ;;  %v1955_v8 = vld [vmem:[%s19739_s9 + $0x2f88] sm:$0x3] }
 0x613   : > { %18765 = vmatpush.xpose.msrb.mxu3 %v1945_v3  ;;  %18725 = vmatpush.xpose.msrb.mxu1 %v1943_v6  ;;  %v1956_v3 = vld [vmem:[%s19739_s9 + $0x2f90] sm:$0x3]  ;;  %v1954_v6 = vld [vmem:[%s19739_s9 + $0x2f80] sm:$0x3]  ;;  %v1957_v2 = vld [vmem:[%s19739_s9 + $0x2f98] sm:$0x3] }
 0x614   : > { %v17349_v42 = vadd.f32 %v17348_v28, %v17329_v46  ;;  %18667 = vmatmul.f32.vlgmr.msra.gmra.mxu2 %v23513_v23  ;;  %18627 = vmatmul.f32.vlgmr.msra.gmra.mxu0 %v23515_v29  ;;  %v1188_v46 = vld [vmem:[%s19739_s9 + $0x1790] sm:$0xff] }
 0x615   : > { %18687 = vmatmul.f32.vlgmr.msra.gmra.mxu3 %v23517_v52  ;;  %18647 = vmatmul.f32.vlgmr.msra.gmra.mxu1 %v23520_v33  ;;  %v1180_v33 = vld [vmem:[%s19739_s9 + $0x1750] sm:$0xff] }
 0x616   : > { %v17369_v1 = vadd.f32 %v17368_v47, %v17349_v42  ;;  %18746 = vmatpush.xpose.msrb.mxu2 %v1176_v12  ;;  %18706 = vmatpush.xpose.msrb.mxu0 %v1174_v39  ;;  %v1186_v47 = vld [vmem:[%s19739_s9 + $0x1780] sm:$0xff]  ;;  %v1187_v42 = vld [vmem:[%s19739_s9 + $0x1788] sm:$0xff] }
 0x617   : > { %v17388_v51 = vpop.f32.mrf.mxu2  ;;  %18766 = vmatpush.xpose.msrb.mxu3 %v1177_v43  ;;  %18726 = vmatpush.xpose.msrb.mxu1 %v1175_v62  ;;  %v1960_v43 = vld [vmem:[%s19739_s9 + $0x2fb0] sm:$0x3]  ;;  %v1958_v62 = vld [vmem:[%s19739_s9 + $0x2fa0] sm:$0x3] }
 0x618   : > { %v17389_v23 = vadd.f32 %v17388_v51, %v17369_v1  ;;  %v17408_v29 = vpop.f32.mrf.mxu3  ;;  %v1959_v1 = vld [vmem:[%s19739_s9 + $0x2fa8] sm:$0x3]  ;;  %v1192_v51 = vld [vmem:[%s19739_s9 + $0x17b0] sm:$0xff] }
 0x619   : > { %v17428_v52 = vpop.f32.mrf.mxu0 }
 0x61a   : > { %18825 = vmatpush.xpose.msra.mxu2 %v1948_v34  ;;  %18785 = vmatpush.xpose.msra.mxu0 %v1946_v35  ;;  %v17409_v4 = vadd.f32 %v17408_v29, %v17389_v23  ;;  %v17448_v5 = vpop.f32.mrf.mxu1  ;;  %v1961_v35 = vld [vmem:[%s19739_s9 + $0x2fb8] sm:$0x3]  ;;  %v1190_v23 = vld [vmem:[%s19739_s9 + $0x17a0] sm:$0xff] }
 0x61b   : > { %18845 = vmatpush.xpose.msra.mxu3 %v1949_v24  ;;  %18805 = vmatpush.xpose.msra.mxu1 %v1947_v27 }
 0x61c   : > { %v17429_v63 = vadd.f32 %v17428_v52, %v17409_v4  ;;  %18747 = vmatmul.f32.vlgmr.msrb.gmra.mxu2 %v23534_v38  ;;  %18707 = vmatmul.f32.vlgmr.msrb.gmra.mxu0 %v23536_v54  ;;  %v1193_v52 = vld [vmem:[%s19739_s9 + $0x17b8] sm:$0xff]  ;;  %v1964_v4 = vld [vmem:[%s19739_s9 + $0x2fd0] sm:$0x3] }
 0x61d   : > { %18767 = vmatmul.f32.vlgmr.msrb.gmra.mxu3 %v23538_v10  ;;  %18727 = vmatmul.f32.vlgmr.msrb.gmra.mxu1 %v23541_v58  ;;  %v1184_v58 = vld [vmem:[%s19739_s9 + $0x1770] sm:$0xff] }
 0x61e   : > { %v17449_v22 = vadd.f32 %v17448_v5, %v17429_v63  ;;  %18826 = vmatpush.xpose.msra.mxu2 %v1180_v33  ;;  %18786 = vmatpush.xpose.msra.mxu0 %v1178_v60  ;;  %v1191_v33 = vld [vmem:[%s19739_s9 + $0x17a8] sm:$0xff]  ;;  %v1962_v5 = vld [vmem:[%s19739_s9 + $0x2fc0] sm:$0x3] }
 0x61f   : > { %v17468_v7 = vpop.f32.mrf.mxu2  ;;  %18846 = vmatpush.xpose.msra.mxu3 %v1181_v0  ;;  %18806 = vmatpush.xpose.msra.mxu1 %v1179_v19  ;;  %v1963_v63 = vld [vmem:[%s19739_s9 + $0x2fc8] sm:$0x3] }
 0x620   : > { %v17469_v38 = vadd.f32 %v17468_v7, %v17449_v22  ;;  %v17488_v54 = vpop.f32.mrf.mxu3  ;;  %v1968_v7 = vld [vmem:[%s19739_s9 + $0x2ff0] sm:$0x3] }
 0x621   : > { %v17508_v10 = vpop.f32.mrf.mxu0 }
 0x622   : > { %18905 = vmatpush.xpose.msrb.mxu2 %v1952_v48  ;;  %18865 = vmatpush.xpose.msrb.mxu0 %v1950_v50  ;;  %v17489_v25 = vadd.f32 %v17488_v54, %v17469_v38  ;;  %v17528_v26 = vpop.f32.mrf.mxu1  ;;  %v1196_v48 = vld [vmem:[%s19739_s9 + $0x17d0] sm:$0xff]  ;;  %v1194_v50 = vld [vmem:[%s19739_s9 + $0x17c0] sm:$0xff] }
 0x623   : > { %18925 = vmatpush.xpose.msrb.mxu3 %v1953_v45  ;;  %18885 = vmatpush.xpose.msrb.mxu1 %v1951_v49  ;;  %v1197_v45 = vld [vmem:[%s19739_s9 + $0x17d8] sm:$0xff]  ;;  %v1195_v49 = vld [vmem:[%s19739_s9 + $0x17c8] sm:$0xff]  ;;  %v1966_v38 = vld [vmem:[%s19739_s9 + $0x2fe0] sm:$0x3] }
 0x624   : > { %v17509_v20 = vadd.f32 %v17508_v10, %v17489_v25  ;;  %18827 = vmatmul.f32.vlgmr.msra.gmra.mxu2 %v23555_v53  ;;  %18787 = vmatmul.f32.vlgmr.msra.gmra.mxu0 %v23557_v11  ;;  %v1969_v10 = vld [vmem:[%s19739_s9 + $0x2ff8] sm:$0x3] }
 0x625   : > { %18847 = vmatmul.f32.vlgmr.msra.gmra.mxu3 %v23559_v31  ;;  %18807 = vmatmul.f32.vlgmr.msra.gmra.mxu1 %v23562_v15 }
 0x626   : > { %v17529_v36 = vadd.f32 %v17528_v26, %v17509_v20  ;;  %18906 = vmatpush.xpose.msrb.mxu2 %v1184_v58  ;;  %18866 = vmatpush.xpose.msrb.mxu0 %v1182_v17  ;;  %v1967_v58 = vld [vmem:[%s19739_s9 + $0x2fe8] sm:$0x3]  ;;  %v3115_v17 = vld.sshfl [vmem:[#allocation1] sm:$0xff pattern:$0x73625140] }
 0x627   : > { %v17548_v28 = vpop.f32.mrf.mxu2  ;;  %18926 = vmatpush.xpose.msrb.mxu3 %v1185_v21  ;;  %18886 = vmatpush.xpose.msrb.mxu1 %v1183_v44  ;;  %v3118_v20 = vld.sshfl [vmem:[#allocation1 + $0x18] sm:$0xff pattern:$0x73625140]  ;;  %v3116_v21 = vld.sshfl [vmem:[#allocation1 + $0x8] sm:$0xff pattern:$0x73625140] }
 0x628   : > { %v17549_v53 = vadd.f32 %v17548_v28, %v17529_v36  ;;  %v17568_v11 = vpop.f32.mrf.mxu3  ;;  %v1200_v44 = vld [vmem:[%s19739_s9 + $0x17f0] sm:$0xff]  ;;  %v1201_v36 = vld [vmem:[%s19739_s9 + $0x17f8] sm:$0xff] }
 0x629   : > { %v17588_v31 = vpop.f32.mrf.mxu0 }
 0x62a   : > { %18985 = vmatpush.xpose.msra.mxu2 %v1956_v3  ;;  %18945 = vmatpush.xpose.msra.mxu0 %v1954_v6  ;;  %v17569_v15 = vadd.f32 %v17568_v11, %v17549_v53  ;;  %v17608_v12 = vpop.f32.mrf.mxu1  ;;  %v1198_v3 = vld [vmem:[%s19739_s9 + $0x17e0] sm:$0xff] }
 0x62b   : > { %19005 = vmatpush.xpose.msra.mxu3 %v1957_v2  ;;  %18965 = vmatpush.xpose.msra.mxu1 %v1955_v8  ;;  %v1199_v2 = vld [vmem:[%s19739_s9 + $0x17e8] sm:$0xff] }
 0x62c   : > { %v17589_v39 = vadd.f32 %v17588_v31, %v17569_v15  ;;  %18907 = vmatmul.f32.vlgmr.msrb.gmra.mxu2 %v23576_v9  ;;  %18867 = vmatmul.f32.vlgmr.msrb.gmra.mxu0 %v23578_v32  ;;  %v3121_v15 = vld.sshfl [vmem:[#allocation1 + $0x30] sm:$0xff pattern:$0x73625140] }
 0x62d   : > { %18927 = vmatmul.f32.vlgmr.msrb.gmra.mxu3 %v23580_v56  ;;  %18887 = vmatmul.f32.vlgmr.msrb.gmra.mxu1 %v23583_v40 }
 0x62e   : > { %v17609_v34 = vadd.f32 %v17608_v12, %v17589_v39  ;;  %18986 = vmatpush.xpose.msra.mxu2 %v1188_v46  ;;  %18946 = vmatpush.xpose.msra.mxu0 %v1186_v47  ;;  %v3119_v12 = vld.sshfl [vmem:[#allocation1 + $0x20] sm:$0xff pattern:$0x73625140]  ;;  %v3122_v39 = vld.sshfl [vmem:[#allocation1 + $0x38] sm:$0xff pattern:$0x73625140] }
 0x62f   : > { %v17628_v24 = vpop.f32.mrf.mxu2  ;;  %19006 = vmatpush.xpose.msra.mxu3 %v1189_v59  ;;  %18966 = vmatpush.xpose.msra.mxu1 %v1187_v42  ;;  %v3120_v59 = vld.sshfl [vmem:[#allocation1 + $0x28] sm:$0xff pattern:$0x73625140] }
 0x630   : > { %v17629_v9 = vadd.f32 %v17628_v24, %v17609_v34  ;;  %v17648_v32 = vpop.f32.mrf.mxu3 }
 0x631   : > { %v17668_v56 = vpop.f32.mrf.mxu0 }
 0x632   : > { %19065 = vmatpush.xpose.msrb.mxu2 %v1960_v43  ;;  %19025 = vmatpush.xpose.msrb.mxu0 %v1958_v62  ;;  %v17649_v40 = vadd.f32 %v17648_v32, %v17629_v9  ;;  %v17688_v27 = vpop.f32.mrf.mxu1 }
 0x633   : > { %19085 = vmatpush.xpose.msrb.mxu3 %v1961_v35  ;;  %19045 = vmatpush.xpose.msrb.mxu1 %v1959_v1 }
 0x634   : > { %v17669_v29 = vadd.f32 %v17668_v56, %v17649_v40  ;;  %18987 = vmatmul.f32.vlgmr.msra.gmra.mxu2 %v23597_v30  ;;  %18947 = vmatmul.f32.vlgmr.msra.gmra.mxu0 %v23599_v57 }
 0x635   : > { %19007 = vmatmul.f32.vlgmr.msra.gmra.mxu3 %v23601_v13  ;;  %18967 = vmatmul.f32.vlgmr.msra.gmra.mxu1 %v23604_v61 }
 0x636   : > { %v17689_v60 = vadd.f32 %v17688_v27, %v17669_v29  ;;  %19066 = vmatpush.xpose.msrb.mxu2 %v1192_v51  ;;  %19026 = vmatpush.xpose.msrb.mxu0 %v1190_v23 }
 0x637   : > { %v17708_v0 = vpop.f32.mrf.mxu2  ;;  %19086 = vmatpush.xpose.msrb.mxu3 %v1193_v52  ;;  %19046 = vmatpush.xpose.msrb.mxu1 %v1191_v33 }
 0x638   : > { %v17709_v30 = vadd.f32 %v17708_v0, %v17689_v60  ;;  %v17728_v57 = vpop.f32.mrf.mxu3 }
 0x639   : > { %v17748_v13 = vpop.f32.mrf.mxu0 }
 0x63a   : > { %19145 = vmatpush.xpose.msra.mxu2 %v1964_v4  ;;  %19105 = vmatpush.xpose.msra.mxu0 %v1962_v5  ;;  %v17729_v61 = vadd.f32 %v17728_v57, %v17709_v30  ;;  %v17768_v19 = vpop.f32.mrf.mxu1 }
 0x63b   : > { %19165 = vmatpush.xpose.msra.mxu3 %v1965_v16  ;;  %19125 = vmatpush.xpose.msra.mxu1 %v1963_v63 }
 0x63c   : > { %v17749_v22 = vadd.f32 %v17748_v13, %v17729_v61  ;;  %19067 = vmatmul.f32.vlgmr.msrb.gmra.mxu2 %v23618_v55  ;;  %19027 = vmatmul.f32.vlgmr.msrb.gmra.mxu0 %v23620_v14 }
 0x63d   : > { %19087 = vmatmul.f32.vlgmr.msrb.gmra.mxu3 %v23622_v37  ;;  %19047 = vmatmul.f32.vlgmr.msrb.gmra.mxu1 %v23625_v18  ;;  %v3117_v37 = vld.sshfl [vmem:[#allocation1 + $0x10] sm:$0xff pattern:$0x73625140] }
 0x63e   : > { %v17769_v54 = vadd.f32 %v17768_v19, %v17749_v22  ;;  %19146 = vmatpush.xpose.msra.mxu2 %v1196_v48  ;;  %19106 = vmatpush.xpose.msra.mxu0 %v1194_v50 }
 0x63f   : > { %v17788_v25 = vpop.f32.mrf.mxu2  ;;  %19166 = vmatpush.xpose.msra.mxu3 %v1197_v45  ;;  %19126 = vmatpush.xpose.msra.mxu1 %v1195_v49 }
 0x640   : > { %v17789_v55 = vadd.f32 %v17788_v25, %v17769_v54  ;;  %v17808_v26 = vpop.f32.mrf.mxu3 }
 0x641   : > { %v17828_v14 = vpop.f32.mrf.mxu0 }
 0x642   : > { %19225 = vmatpush.xpose.msrb.mxu2 %v1968_v7  ;;  %19185 = vmatpush.xpose.msrb.mxu0 %v1966_v38  ;;  %v17809_v18 = vadd.f32 %v17808_v26, %v17789_v55  ;;  %v17848_v41 = vpop.f32.mrf.mxu1 }
 0x643   : > { %19245 = vmatpush.xpose.msrb.mxu3 %v1969_v10  ;;  %19205 = vmatpush.xpose.msrb.mxu1 %v1967_v58 }
 0x644   : > { %v17829_v6 = vadd.f32 %v17828_v14, %v17809_v18  ;;  %19147 = vmatmul.f32.vlgmr.msra.gmra.mxu2 %v3117_v37  ;;  %19107 = vmatmul.f32.vlgmr.msra.gmra.mxu0 %v3115_v17 }
 0x645   : > { %19167 = vmatmul.f32.vlgmr.msra.gmra.mxu3 %v3118_v20  ;;  %19127 = vmatmul.f32.vlgmr.msra.gmra.mxu1 %v3116_v21 }
 0x646   : > { %v17849_v8 = vadd.f32 %v17848_v41, %v17829_v6  ;;  %19226 = vmatpush.xpose.msrb.mxu2 %v1200_v44  ;;  %19186 = vmatpush.xpose.msrb.mxu0 %v1198_v3 }
 0x647   : > { %v17868_v28 = vpop.f32.mrf.mxu2  ;;  %19246 = vmatpush.xpose.msrb.mxu3 %v1201_v36  ;;  %19206 = vmatpush.xpose.msrb.mxu1 %v1199_v2 }
 0x648   : > { %v17869_v53 = vadd.f32 %v17868_v28, %v17849_v8  ;;  %v17888_v11 = vpop.f32.mrf.mxu3 }
 0x649   : > { %v17908_v31 = vpop.f32.mrf.mxu0 }
 0x64a   : > { %v17889_v46 = vadd.f32 %v17888_v11, %v17869_v53  ;;  %v17928_v47 = vpop.f32.mrf.mxu1 }
 0x64c   : > { %v17909_v42 = vadd.f32 %v17908_v31, %v17889_v46  ;;  %19227 = vmatmul.f32.vlgmr.msrb.gmra.mxu2 %v3121_v15  ;;  %19187 = vmatmul.f32.vlgmr.msrb.gmra.mxu0 %v3119_v12 }
 0x64d   : > { %19247 = vmatmul.f32.vlgmr.msrb.gmra.mxu3 %v3122_v39  ;;  %19207 = vmatmul.f32.vlgmr.msrb.gmra.mxu1 %v3120_v59 }
 0x64e   : > { %v17929_v43 = vadd.f32 %v17928_v47, %v17909_v42 }
 0x64f   : > { %v17948_v62 = vpop.f32.mrf.mxu2 }
 0x650   : > { %v17949_v34 = vadd.f32 %v17948_v62, %v17929_v43  ;;  %v17968_v35 = vpop.f32.mrf.mxu3 }
 0x651   : > { %v17988_v1 = vpop.f32.mrf.mxu0 }
 0x652   : > { %v17969_v24 = vadd.f32 %v17968_v35, %v17949_v34  ;;  %v18008_v9 = vpop.f32.mrf.mxu1 }
 0x654   : > { %v17989_v32 = vadd.f32 %v17988_v1, %v17969_v24 }
 0x656   : > { %v18009_v56 = vadd.f32 %v18008_v9, %v17989_v32 }
 0x657   : > { %v18028_v40 = vpop.f32.mrf.mxu2 }
 0x658   : > { %v18029_v27 = vadd.f32 %v18028_v40, %v18009_v56  ;;  %v18048_v51 = vpop.f32.mrf.mxu3 }
 0x659   : > { %v18068_v23 = vpop.f32.mrf.mxu0 }
 0x65a   : > { %v18049_v29 = vadd.f32 %v18048_v51, %v18029_v27  ;;  %v18088_v52 = vpop.f32.mrf.mxu1 }
 0x65c   : > { %v18069_v33 = vadd.f32 %v18068_v23, %v18049_v29 }
 0x65e   : > { %v18089_v4 = vadd.f32 %v18088_v52, %v18069_v33 }
 0x65f   : > { %v18108_v5 = vpop.f32.mrf.mxu2 }
 0x660   : > { %v18109_v60 = vadd.f32 %v18108_v5, %v18089_v4  ;;  %v18128_v16 = vpop.f32.mrf.mxu3 }
 0x661   : > { %v18148_v63 = vpop.f32.mrf.mxu0 }
 0x662   : > { %v18129_v0 = vadd.f32 %v18128_v16, %v18109_v60  ;;  %v18168_v30 = vpop.f32.mrf.mxu1 }
 0x664   : > { %v18149_v57 = vadd.f32 %v18148_v63, %v18129_v0 }
 0x666   : > { %v18169_v13 = vadd.f32 %v18168_v30, %v18149_v57 }
 0x667   : > { %v18188_v61 = vpop.f32.mrf.mxu2 }
 0x668   : > { %v18189_v19 = vadd.f32 %v18188_v61, %v18169_v13  ;;  %v18208_v48 = vpop.f32.mrf.mxu3 }
 0x669   : > { %v18228_v50 = vpop.f32.mrf.mxu0 }
 0x66a   : > { %v18209_v22 = vadd.f32 %v18208_v48, %v18189_v19  ;;  %v18248_v45 = vpop.f32.mrf.mxu1 }
 0x66c   : > { %v18229_v49 = vadd.f32 %v18228_v50, %v18209_v22 }
 0x66e   : > { %v18249_v7 = vadd.f32 %v18248_v45, %v18229_v49 }
 0x66f   : > { %v18268_v38 = vpop.f32.mrf.mxu2 }
 0x670   : > { %v18269_v54 = vadd.f32 %v18268_v38, %v18249_v7  ;;  %v18288_v10 = vpop.f32.mrf.mxu3 }
 0x671   : > { %v18308_v58 = vpop.f32.mrf.mxu0 }
 0x672   : > { %v18289_v25 = vadd.f32 %v18288_v10, %v18269_v54  ;;  %v18328_v55 = vpop.f32.mrf.mxu1 }
 0x674   : > { %v18309_v26 = vadd.f32 %v18308_v58, %v18289_v25 }
 0x676   : > { %v18329_v14 = vadd.f32 %v18328_v55, %v18309_v26 }
 0x677   : > { %v18348_v37 = vpop.f32.mrf.mxu2 }
 0x678   : > { %v18349_v17 = vadd.f32 %v18348_v37, %v18329_v14  ;;  %v18368_v18 = vpop.f32.mrf.mxu3 }
 0x679   : > { %v18388_v41 = vpop.f32.mrf.mxu0 }
 0x67a   : > { %v18369_v20 = vadd.f32 %v18368_v18, %v18349_v17  ;;  %v18408_v21 = vpop.f32.mrf.mxu1 }
 0x67c   : > { %v18389_v44 = vadd.f32 %v18388_v41, %v18369_v20 }
 0x67e   : > { %v18409_v3 = vadd.f32 %v18408_v21, %v18389_v44 }
 0x67f   : > { %v18428_v6 = vpop.f32.mrf.mxu2 }
 0x680   : > { %v18429_v36 = vadd.f32 %v18428_v6, %v18409_v3  ;;  %v18448_v2 = vpop.f32.mrf.mxu3 }
 0x681   : > { %v18468_v8 = vpop.f32.mrf.mxu0 }
 0x682   : > { %v18449_v28 = vadd.f32 %v18448_v2, %v18429_v36  ;;  %v18488_v53 = vpop.f32.mrf.mxu1 }
 0x684   : > { %v18469_v11 = vadd.f32 %v18468_v8, %v18449_v28 }
 0x686   : > { %v18489_v31 = vadd.f32 %v18488_v53, %v18469_v11 }
 0x687   : > { %v18508_v15 = vpop.f32.mrf.mxu2 }
 0x688   : > { %v18509_v12 = vadd.f32 %v18508_v15, %v18489_v31  ;;  %v18528_v46 = vpop.f32.mrf.mxu3 }
 0x689   : > { %v18548_v47 = vpop.f32.mrf.mxu0 }
 0x68a   : > { %v18529_v39 = vadd.f32 %v18528_v46, %v18509_v12  ;;  %v18568_v59 = vpop.f32.mrf.mxu1 }
 0x68c   : > { %v18549_v42 = vadd.f32 %v18548_v47, %v18529_v39 }
 0x68e   : > { %v18569_v43 = vadd.f32 %v18568_v59, %v18549_v42 }
 0x68f   : > { %v18588_v62 = vpop.f32.mrf.mxu2 }
 0x690   : > { %v18589_v34 = vadd.f32 %v18588_v62, %v18569_v43  ;;  %v18608_v35 = vpop.f32.mrf.mxu3 }
 0x691   : > { %v18628_v1 = vpop.f32.mrf.mxu0 }
 0x692   : > { %v18609_v24 = vadd.f32 %v18608_v35, %v18589_v34  ;;  %v18648_v9 = vpop.f32.mrf.mxu1 }
 0x694   : > { %v18629_v32 = vadd.f32 %v18628_v1, %v18609_v24  ;;  %v241_v1 = vld [vmem:[#allocation2] sm:$0x3] }
 0x696   : > { %v18649_v56 = vadd.f32 %v18648_v9, %v18629_v32 }
 0x697   : > { %v18668_v40 = vpop.f32.mrf.mxu2 }
 0x698   : > { %v18669_v27 = vadd.f32 %v18668_v40, %v18649_v56  ;;  %v18688_v51 = vpop.f32.mrf.mxu3 }
 0x699   : > { %v18708_v23 = vpop.f32.mrf.mxu0 }
 0x69a   : > { %v18689_v29 = vadd.f32 %v18688_v51, %v18669_v27  ;;  %v18728_v52 = vpop.f32.mrf.mxu1 }
 0x69c   : > { %v18709_v33 = vadd.f32 %v18708_v23, %v18689_v29 }
 0x69e   : > { %v18729_v4 = vadd.f32 %v18728_v52, %v18709_v33 }
 0x69f   : > { %v18748_v5 = vpop.f32.mrf.mxu2 }
 0x6a0   : > { %v18749_v60 = vadd.f32 %v18748_v5, %v18729_v4  ;;  %v18768_v16 = vpop.f32.mrf.mxu3 }
 0x6a1   : > { %v18788_v63 = vpop.f32.mrf.mxu0 }
 0x6a2   : > { %v18769_v0 = vadd.f32 %v18768_v16, %v18749_v60  ;;  %v18808_v30 = vpop.f32.mrf.mxu1 }
 0x6a4   : > { %v18789_v57 = vadd.f32 %v18788_v63, %v18769_v0 }
 0x6a6   : > { %v18809_v13 = vadd.f32 %v18808_v30, %v18789_v57 }
 0x6a7   : > { %v18828_v61 = vpop.f32.mrf.mxu2 }
 0x6a8   : > { %v18829_v19 = vadd.f32 %v18828_v61, %v18809_v13  ;;  %v18848_v48 = vpop.f32.mrf.mxu3 }
 0x6a9   : > { %v18868_v50 = vpop.f32.mrf.mxu0 }
 0x6aa   : > { %v18849_v22 = vadd.f32 %v18848_v48, %v18829_v19  ;;  %v18888_v45 = vpop.f32.mrf.mxu1 }
 0x6ac   : > { %v18869_v49 = vadd.f32 %v18868_v50, %v18849_v22 }
 0x6ae   : > { %v18889_v7 = vadd.f32 %v18888_v45, %v18869_v49 }
 0x6af   : > { %v18908_v38 = vpop.f32.mrf.mxu2 }
 0x6b0   : > { %v18909_v54 = vadd.f32 %v18908_v38, %v18889_v7  ;;  %v18928_v10 = vpop.f32.mrf.mxu3 }
 0x6b1   : > { %v18948_v58 = vpop.f32.mrf.mxu0 }
 0x6b2   : > { %v18929_v25 = vadd.f32 %v18928_v10, %v18909_v54  ;;  %v18968_v55 = vpop.f32.mrf.mxu1 }
 0x6b4   : > { %v18949_v26 = vadd.f32 %v18948_v58, %v18929_v25 }
 0x6b6   : > { %v18969_v14 = vadd.f32 %v18968_v55, %v18949_v26 }
 0x6b7   : > { %v18988_v37 = vpop.f32.mrf.mxu2 }
 0x6b8   : > { %v18989_v17 = vadd.f32 %v18988_v37, %v18969_v14  ;;  %v19008_v18 = vpop.f32.mrf.mxu3 }
 0x6b9   : > { %v19028_v41 = vpop.f32.mrf.mxu0 }
 0x6ba   : > { %v19009_v20 = vadd.f32 %v19008_v18, %v18989_v17  ;;  %v19048_v21 = vpop.f32.mrf.mxu1 }
 0x6bc   : > { %v19029_v44 = vadd.f32 %v19028_v41, %v19009_v20 }
 0x6be   : > { %v19049_v3 = vadd.f32 %v19048_v21, %v19029_v44 }
 0x6bf   : > { %v19068_v6 = vpop.f32.mrf.mxu2 }
 0x6c0   : > { %v19069_v36 = vadd.f32 %v19068_v6, %v19049_v3  ;;  %v19088_v2 = vpop.f32.mrf.mxu3 }
 0x6c1   : > { %v19108_v8 = vpop.f32.mrf.mxu0 }
 0x6c2   : > { %v19089_v28 = vadd.f32 %v19088_v2, %v19069_v36  ;;  %v19128_v53 = vpop.f32.mrf.mxu1 }
 0x6c4   : > { %v19109_v11 = vadd.f32 %v19108_v8, %v19089_v28 }
 0x6c6   : > { %v19129_v31 = vadd.f32 %v19128_v53, %v19109_v11 }
 0x6c7   : > { %v19148_v15 = vpop.f32.mrf.mxu2 }
 0x6c8   : > { %v19149_v12 = vadd.f32 %v19148_v15, %v19129_v31  ;;  %v19168_v46 = vpop.f32.mrf.mxu3 }
 0x6c9   : > { %v19188_v47 = vpop.f32.mrf.mxu0 }
 0x6ca   : > { %v19169_v39 = vadd.f32 %v19168_v46, %v19149_v12  ;;  %v19208_v59 = vpop.f32.mrf.mxu1 }
 0x6cc   : > { %v19189_v42 = vadd.f32 %v19188_v47, %v19169_v39 }
 0x6ce   : > { %v19209_v43 = vadd.f32 %v19208_v59, %v19189_v42 }
 0x6cf   : > { %v19228_v62 = vpop.f32.mrf.mxu2 }
 0x6d0   : > { %v19229_v34 = vadd.f32 %v19228_v62, %v19209_v43  ;;  %v19248_v35 = vpop.f32.mrf.mxu3 }
 0x6d2   : > { %v19249_v24 = vadd.f32 %v19248_v35, %v19229_v34  ;;  %19257 = sbr.rel (%p19365_p1) target bundleno = 1761 (0x6e1), region = 52 }
 0x6d4   : > { %v19251_v9 = vadd.f32 %v19249_v24, %v241_v1 }
 0x6d6   : > { %19253 = vst.msk [vmem:[#allocation2] sm:$0x3] %vm19252_vm1, %v19251_v9 }
 0x6d7   : > { %v19442_v56 = vld [vmem:[#allocation8] ss:$0 sm:$0xff] }
 0x6dd   : > { %v19258_v32 = vld [vmem:[#allocation2] sm:$0x3] }
 0x6de   : > { %v19263_v40 = vadd.f32 %v19442_v56, %v19258_v32 }
 0x6e0   : > { %19264 = vst.msk [vmem:[#allocation9] sm:$0x3] %vm19252_vm1, %v19263_v40 }
 0x6e1 PF: > { %p19402_p4 = scmp.eq.s32.totalorder %s19654_s16, 1  ;;  %s19614_s17 = smov [#allocation9]  }
 0x6e2   : > { %s19271_s21 = sshll.u32 %s19614_s17, 4  ;;  %s19273_s20 = sshll.u32 %s23699_s3, 4  ;;  %s19272_s21 = int_to_ptr.vmem [resolvable:$true] %s19271_s21  ;;  %s19274_s20 = int_to_ptr.hbm [resolvable:$true] %s19273_s20 }
 0x6e3   : > { %19385 = dma.vmem_to_hbm [thread:$0]  (%p19402_p4), %s19272_s21, 32, %s19274_s20, [#allocation5]  }
 0x6e4   : > { %19590 = dma.done.wait (%p19402_p4), [#allocation5], 32  }
 0x6e5   : > { %19592 = vsyncadd (%p19402_p4), [#allocation5], 4294967264 }
 0x6e6 PF: > { %p17_p5 = scmp.ge.s32.totalorder %s19679_s24, 4   ;;  %s23703_s12 = smov %s19599_s13 }
 0x6e7   : > { %s23704_s13 = smov %s19603_s14  ;;  %s23705_s14 = smov %s19689_s27 }
 0x6e8   : > { %s23706_s15 = smov %s19679_s24  ;;  %19 = sbr.rel (!%p17_p5) target bundleno = 6 (0x6), region = 95 }
 0x6ed   :  { %19287 = vsyncpa [#allocation4], 1 }
 0x6ee   :  { %19289 = vsyncpa [#allocation4 + $0x1], 1 }
 0x6ef   :  { %19290 = vsyncpa [#allocation7], 1 }
 0x6f0   :  { %19292 = vsyncpa [#allocation7 + $0x1], 1 }
 0x6f1   :  { %19293 = vsyncpa [#allocation5], 1 }
 0x6f2   :  { %19295 = vsyncpa [#allocation5 + $0x1], 1 }

</bundles_post_ra>
